<compile_context>
chip_gen: v7x
topology: tpu7x:2x2x1
jax: 0.10.0
libtpu: 0.0.40
codegen_flags: <defaults>
</compile_context>

<pallas_src>
import math

import jax
import jax.numpy as jnp
from jax import lax
from jax.experimental import pallas as pl
from jax.experimental.pallas import tpu as pltpu

LANES = 128

# Fixed LeNet (32x32 input) geometry.
_H1 = 14                       # pooled conv1 spatial extent
_R1 = _H1 * _H1                # 196 a1 rows (row = a*14 + b)
_R1P = 208                     # a1 rows padded to a sublane multiple
_C3_ROWS = 144                 # conv2 "extended" rows (valid q <= 135)
_POOL_ROWS = 128               # pooled-full rows (valid q0 <= 120)
_SHIFTS = tuple(ki * _H1 + kj for ki in range(5) for kj in range(5))


# ----------------------------- Pallas kernels ------------------------------

def _conv_stage_kernel(p1_ref, w1_ref, b1_ref, w2_ref, b2_ref, o_ref,
                       a1_scr, c3_scr, pool_scr):
    """Per-image fused conv1+relu+pool -> conv2+relu+pool.

    p1_ref : (1, 208, 128) bf16  conv1 patches, lane = pool_elem*32 + tap
    w1_ref : (128, 512)    bf16  4-way block-diagonal conv1 weight
    b1/b2  : (1, 128)      f32   biases (zero-padded lanes)
    w2_ref : (25, 128, 128)bf16  per-tap conv2 weight (cin/cout zero-padded)
    o_ref  : (1, 32, 128)  bf16  rows 0..24 = pooled conv2 (pa*5+pb), 16 lanes
    """
    # conv1: one long MXU pass (N=512), then max over the 4 pool-window lane
    # groups, bias, relu (max/bias/relu commute -> identical to 4 separate
    # relu(dot+bias) followed by a max).
    z = jnp.dot(p1_ref[0], w1_ref[...], preferred_element_type=jnp.float32)
    m = jnp.maximum(jnp.maximum(z[:, 0:128], z[:, 128:256]),
                    jnp.maximum(z[:, 256:384], z[:, 384:512]))
    a1_scr[...] = jnp.maximum(m + b1_ref[...], 0.0)          # (208, 128) f32

    # conv2 as 25 shifted-slab matmuls over the VMEM-resident a1
    # (rows of a1 are indexed a*14+b, channels in lanes 0..5).
    acc = jnp.zeros((_C3_ROWS, LANES), jnp.float32)
    for t, s in enumerate(_SHIFTS):
        slab = a1_scr[pl.ds(s, _C3_ROWS), :].astype(jnp.bfloat16)
        acc = acc + jnp.dot(slab, w2_ref[t],
                            preferred_element_type=jnp.float32)
    c3_scr[...] = jnp.maximum(acc + b2_ref[...], 0.0)        # (144, 128) f32

    # 2x2 maxpool of the 10x10 valid grid (row index q = a2*14 + b2):
    # pooled[q0] = max(c3[q0], c3[q0+1], c3[q0+14], c3[q0+15]).
    pool_scr[...] = jnp.maximum(
        jnp.maximum(c3_scr[pl.ds(0, _POOL_ROWS), :],
                    c3_scr[pl.ds(1, _POOL_ROWS), :]),
        jnp.maximum(c3_scr[pl.ds(14, _POOL_ROWS), :],
                    c3_scr[pl.ds(15, _POOL_ROWS), :]))

    # Gather the 25 pooled positions (q0 = 28*pa + 2*pb) into a compact
    # lane-dense (25 valid rows, 16 valid lanes) output block.
    o_ref[...] = jnp.zeros_like(o_ref)
    for pa in range(5):
        for pb in range(5):
            o_ref[0, pl.ds(pa * 5 + pb, 1), :] = (
                pool_scr[pl.ds(28 * pa + 2 * pb, 1), :].astype(o_ref.dtype))


def conv_stage(p1, w1d, b1, w2p, b2):
    """(N, 208, 128) bf16 patches -> (N, 32, 128) bf16 pooled conv2 features."""
    n = p1.shape[0]
    cost = pl.CostEstimate(
        flops=2 * n * (784 * 25 * 6 + 100 * 150 * 16),       # real conv FLOPs
        transcendentals=0,
        bytes_accessed=(p1.size * 2 + w1d.size * 2 + w2p.size * 2
                        + (b1.size + b2.size) * 4 + n * 32 * LANES * 2))
    return pl.pallas_call(
        _conv_stage_kernel,
        out_shape=jax.ShapeDtypeStruct((n, 32, LANES), jnp.bfloat16),
        grid=(n,),
        in_specs=[
            pl.BlockSpec((1, _R1P, LANES), lambda i: (i, 0, 0)),
            pl.BlockSpec(w1d.shape, lambda i: (0, 0)),
            pl.BlockSpec(b1.shape, lambda i: (0, 0)),
            pl.BlockSpec(w2p.shape, lambda i: (0, 0, 0)),
            pl.BlockSpec(b2.shape, lambda i: (0, 0)),
        ],
        out_specs=pl.BlockSpec((1, 32, LANES), lambda i: (i, 0, 0)),
        scratch_shapes=[
            pltpu.VMEM((_R1P, LANES), jnp.float32),      # a1 (stays on-chip)
            pltpu.VMEM((_C3_ROWS, LANES), jnp.float32),  # conv2 pre-pool
            pltpu.VMEM((_POOL_ROWS, LANES), jnp.float32),
        ],
        compiler_params=pltpu.CompilerParams(
            dimension_semantics=("parallel",),
            vmem_limit_bytes=16 * 1024 * 1024),
        cost_estimate=cost,
    )(p1, w1d, b1, w2p, b2)


def _fc_stack_kernel(x_ref, w1_ref, b1_ref, w2_ref, b2_ref, w3_ref, b3_ref,
                     o_ref):
    """Fused fc1+relu -> fc2+relu -> fc3; bf16 matmuls, f32 accumulation."""
    h = jnp.dot(x_ref[...], w1_ref[...],
                preferred_element_type=jnp.float32) + b1_ref[...]
    h = jnp.maximum(h, 0.0).astype(jnp.bfloat16)
    h = jnp.dot(h, w2_ref[...],
                preferred_element_type=jnp.float32) + b2_ref[...]
    h = jnp.maximum(h, 0.0).astype(jnp.bfloat16)
    o_ref[...] = jnp.dot(h, w3_ref[...],
                         preferred_element_type=jnp.float32) + b3_ref[...]


def _pick_tile(m, *, prefer_two=256, max_tile=1024):
    """One block at small m; otherwise >=2 grid steps (v7x 2-core split).
    Tiles are multiples of 16 (bf16 sublane packing) whenever we tile."""
    if m <= prefer_two:
        return m
    t = ((pl.cdiv(m, 2) + 15) // 16) * 16
    return min(t, max_tile)


def fc_stack(x, w1, b1, w2, b2, w3, b3):
    n, kin = x.shape
    cout = w3.shape[1]
    tb = _pick_tile(n)
    cost = pl.CostEstimate(
        flops=2 * n * (400 * 120 + 120 * 84 + 84 * 10),      # real FC FLOPs
        transcendentals=0,
        bytes_accessed=(x.size * 2 + (w1.size + w2.size + w3.size) * 2
                        + (b1.size + b2.size + b3.size) * 4 + n * cout * 4))
    return pl.pallas_call(
        _fc_stack_kernel,
        out_shape=jax.ShapeDtypeStruct((n, cout), jnp.float32),
        grid=(pl.cdiv(n, tb),),
        in_specs=[
            pl.BlockSpec((tb, kin), lambda i: (i, 0)),
            pl.BlockSpec(w1.shape, lambda i: (0, 0)),
            pl.BlockSpec(b1.shape, lambda i: (0, 0)),
            pl.BlockSpec(w2.shape, lambda i: (0, 0)),
            pl.BlockSpec(b2.shape, lambda i: (0, 0)),
            pl.BlockSpec(w3.shape, lambda i: (0, 0)),
            pl.BlockSpec(b3.shape, lambda i: (0, 0)),
        ],
        out_specs=pl.BlockSpec((tb, cout), lambda i: (i, 0)),
        compiler_params=pltpu.CompilerParams(
            dimension_semantics=("parallel",),
            vmem_limit_bytes=16 * 1024 * 1024),
        cost_estimate=cost,
    )(x, w1, b1, w2, b2, w3, b3)


# ------------------------------- JAX glue ----------------------------------

def _conv1_pool_patches(x_nhw):
    """(N,32,32) -> (N,208,128) bf16 conv1 patches grouped by 2x2 pool window.

    lane = pool_element(2p+q)*32 + tap(ki*5+kj); row = a*14 + b (pooled
    coords); rows 196..207 and taps >= 25 are zero padding.
    """
    n, h, w = x_nhw.shape
    ho, wo = h - 4, w - 4                       # 28, 28
    ho2, wo2 = ho // 2, wo // 2                 # 14, 14
    pats = jnp.stack([x_nhw[:, ki:ki + ho, kj:kj + wo]
                      for ki in range(5) for kj in range(5)], axis=-1)
    pats = pats.reshape(n, ho2, 2, wo2, 2, 25)
    pats = pats.transpose(0, 1, 3, 2, 4, 5).reshape(n, ho2 * wo2, 4, 25)
    pats = jnp.pad(pats, ((0, 0), (0, 0), (0, 0), (0, 7)))
    pats = pats.reshape(n, ho2 * wo2, 4 * 32)
    pats = jnp.pad(pats, ((0, 0), (0, _R1P - ho2 * wo2), (0, 0)))
    return pats.astype(jnp.bfloat16)


def pack_params(params):
    """One-time packing: bf16 weights, lane-dense (128), fused layouts."""
    def pad2(a, rows, cols, dtype):
        return jnp.pad(a, ((0, rows - a.shape[0]),
                           (0, cols - a.shape[1]))).astype(dtype)

    bf16, f32 = jnp.bfloat16, jnp.float32
    # conv1 OIHW -> (tap, cout), then 4-way block-diagonal (128, 512).
    w1 = params["conv1_w"].transpose(2, 3, 1, 0).reshape(25, 6)
    w1 = pad2(w1, 32, LANES, f32)
    w1d = jnp.zeros((LANES, 4 * LANES), f32)
    for e in range(4):
        w1d = w1d.at[e * 32:(e + 1) * 32, e * LANES:(e + 1) * LANES].set(w1)
    # conv2 OIHW -> (25 taps, cin pad 128, cout pad 128).
    w2 = params["conv2_w"].transpose(2, 3, 1, 0).reshape(25, 6, 16)
    w2p = jnp.zeros((25, LANES, LANES), f32).at[:, :6, :16].set(w2)
    # fc1: torch flatten order (c, a, b) -> kernel feature order (a, b, c);
    # K de-inflated to the real 400, padded to 512.
    wf1 = params["fc1_w"].reshape(120, 16, 5, 5).transpose(2, 3, 1, 0)
    wf1 = wf1.reshape(400, 120)
    return {
        "w1d": w1d.astype(bf16),
        "b1": pad2(params["conv1_b"].reshape(1, -1), 1, LANES, f32),
        "w2p": w2p.astype(bf16),
        "b2": pad2(params["conv2_b"].reshape(1, -1), 1, LANES, f32),
        "w_fc1": pad2(wf1, 512, LANES, bf16),
        "b_fc1": pad2(params["fc1_b"].reshape(1, -1), 1, LANES, f32),
        "w_fc2": pad2(params["fc2_w"].T, LANES, LANES, bf16),
        "b_fc2": pad2(params["fc2_b"].reshape(1, -1), 1, LANES, f32),
        "w_fc3": pad2(params["fc3_w"].T, LANES, LANES, bf16),
        "b_fc3": pad2(params["fc3_b"].reshape(1, -1), 1, LANES, f32),
    }


def net_forward(packed, x_nchw):
    n, c, h, w = x_nchw.shape
    assert c == 1 and h == 32 and w == 32, "LeNet geometry (1, 32, 32) expected"
    # conv1+relu+pool+conv2+relu+pool : one fused Pallas call (a1 never leaves
    # VMEM; no second im2col, no pre-pool feature map in HBM).
    p1 = _conv1_pool_patches(x_nchw[:, 0, :, :])
    s4 = conv_stage(p1, packed["w1d"], packed["b1"], packed["w2p"],
                    packed["b2"])                                 # (N, 32, 128)
    # fc1+relu -> fc2+relu -> fc3 : one fused Pallas call with the real K=400
    # (padded to 512) contraction instead of the lane-inflated 3200.
    feats = s4[:, :25, :16].reshape(n, 400)
    feats = jnp.pad(feats, ((0, 0), (0, 512 - 400)))
    out = fc_stack(feats, packed["w_fc1"], packed["b_fc1"],
                   packed["w_fc2"], packed["b_fc2"],
                   packed["w_fc3"], packed["b_fc3"])
    return out[:, :10]


# ----------------------- pure-JAX reference (check) ------------------------

def net_reference(params, x):
    dn = ("NCHW", "OIHW", "NCHW")
    hp = lax.Precision.HIGHEST
    c1 = lax.conv_general_dilated(x, params["conv1_w"], (1, 1), "VALID",
                                  dimension_numbers=dn, precision=hp)
    c1 = jax.nn.relu(c1 + params["conv1_b"].reshape(1, -1, 1, 1))
    s2 = lax.reduce_window(c1, -jnp.inf, lax.max, (1, 1, 2, 2), (1, 1, 2, 2),
                           "VALID")
    c3 = lax.conv_general_dilated(s2, params["conv2_w"], (1, 1), "VALID",
                                  dimension_numbers=dn, precision=hp)
    c3 = jax.nn.relu(c3 + params["conv2_b"].reshape(1, -1, 1, 1))
    s4 = lax.reduce_window(c3, -jnp.inf, lax.max, (1, 1, 2, 2), (1, 1, 2, 2),
                           "VALID")
    s4 = s4.reshape(s4.shape[0], -1)
    f5 = jax.nn.relu(jnp.dot(s4, params["fc1_w"].T, precision=hp)
                     + params["fc1_b"])
    f6 = jax.nn.relu(jnp.dot(f5, params["fc2_w"].T, precision=hp)
                     + params["fc2_b"])
    return jnp.dot(f6, params["fc3_w"].T, precision=hp) + params["fc3_b"]


# --------------------------------- main -------------------------------------

if __name__ == "__main__":
    key = jax.random.PRNGKey(0)
    keys = jax.random.split(key, 11)

    def u(k, shape, fan_in):  # PyTorch-style U(-1/sqrt(fan_in), 1/sqrt(fan_in))
        bound = 1.0 / math.sqrt(fan_in)
        return jax.random.uniform(k, shape, jnp.float32, -bound, bound)

    params = {
        "conv1_w": u(keys[0], (6, 1, 5, 5), 25),
        "conv1_b": u(keys[1], (6,), 25),
        "conv2_w": u(keys[2], (16, 6, 5, 5), 150),
        "conv2_b": u(keys[3], (16,), 150),
        "fc1_w":   u(keys[4], (120, 400), 400),
        "fc1_b":   u(keys[5], (120,), 400),
        "fc2_w":   u(keys[6], (84, 120), 120),
        "fc2_b":   u(keys[7], (84,), 120),
        "fc3_w":   u(keys[8], (10, 84), 84),
        "fc3_b":   u(keys[9], (10,), 84),
    }
    # NCHW input; spatial 32x32 is implied by fc1's 16*5*5 input features.
    x = jax.random.normal(keys[10], (2, 1, 32, 32), jnp.float32)

    packed = pack_params(params)           # pack once, outside the jitted fwd
    fwd = jax.jit(net_forward)
    out = jax.block_until_ready(fwd(packed, x))
    ref = jax.block_until_ready(net_reference(params, x))

    assert out.shape == (2, 10), out.shape
    # bf16 operands / f32 accumulation vs f32 reference -> loose tolerance.
    assert jnp.allclose(out, ref, atol=2e-2, rtol=2e-2), (out, ref)
    print("KERNEL_OK")
</pallas_src>

<mosaic_0001>
module attributes {stable_mosaic.version = 11 : i64} {
  func.func @_conv_stage_kernel(%arg0: i32, %arg1: memref<1x208x128xbf16, #tpu.memory_space<vmem>>, %arg2: memref<128x512xbf16, #tpu.memory_space<vmem>>, %arg3: memref<1x128xf32, #tpu.memory_space<vmem>>, %arg4: memref<25x128x128xbf16, #tpu.memory_space<vmem>>, %arg5: memref<1x128xf32, #tpu.memory_space<vmem>>, %arg6: memref<1x32x128xbf16, #tpu.memory_space<vmem>>, %arg7: memref<208x128xf32, #tpu.memory_space<vmem>>, %arg8: memref<144x128xf32, #tpu.memory_space<vmem>>, %arg9: memref<128x128xf32, #tpu.memory_space<vmem>>) attributes {dimension_semantics = [#tpu.dimension_semantics<parallel>], iteration_bounds = array<i64: 2>, scalar_prefetch = 0 : i64, scratch_operands = 3 : i64, tpu.core_type = #tpu.core_type<tc>, window_params = [{transform_indices = @transform_0, window_bounds = array<i64: 1, 208, 128>}, {pipeline_mode = #tpu.pipeline_mode<synchronous>, transform_indices = @transform_1, window_bounds = array<i64: 128, 512>}, {pipeline_mode = #tpu.pipeline_mode<synchronous>, transform_indices = @transform_2, window_bounds = array<i64: 1, 128>}, {pipeline_mode = #tpu.pipeline_mode<synchronous>, transform_indices = @transform_3, window_bounds = array<i64: 25, 128, 128>}, {pipeline_mode = #tpu.pipeline_mode<synchronous>, transform_indices = @transform_4, window_bounds = array<i64: 1, 128>}, {transform_indices = @transform_5, window_bounds = array<i64: 1, 32, 128>}]} {
    %c0 = arith.constant 0 : index
    %c0_0 = arith.constant 0 : index
    %c0_1 = arith.constant 0 : index
    %0 = vector.load %arg1[%c0, %c0_0, %c0_1] : memref<1x208x128xbf16, #tpu.memory_space<vmem>>, vector<1x208x128xbf16>
    %1 = vector.shape_cast %0 : vector<1x208x128xbf16> to vector<208x128xbf16>
    %c0_2 = arith.constant 0 : index
    %c0_3 = arith.constant 0 : index
    %2 = vector.load %arg2[%c0_2, %c0_3] : memref<128x512xbf16, #tpu.memory_space<vmem>>, vector<128x512xbf16>
    %cst = arith.constant dense<0.000000e+00> : vector<208x512xf32>
    %3 = tpu.matmul %1, %2, %cst {dimension_numbers = #tpu.dot_dimension_numbers<[1], [0], [0], [1], [0, 0, 1, 1], [], []>} : vector<208x128xbf16>, vector<128x512xbf16>, vector<208x512xf32> -> vector<208x512xf32>
    %4 = vector.extract_strided_slice %3 {offsets = [0, 0], sizes = [208, 128], strides = [1, 1]} : vector<208x512xf32> to vector<208x128xf32>
    %5 = vector.extract_strided_slice %3 {offsets = [0, 128], sizes = [208, 128], strides = [1, 1]} : vector<208x512xf32> to vector<208x128xf32>
    %6 = arith.maximumf %4, %5 : vector<208x128xf32>
    %7 = vector.extract_strided_slice %3 {offsets = [0, 256], sizes = [208, 128], strides = [1, 1]} : vector<208x512xf32> to vector<208x128xf32>
    %8 = vector.extract_strided_slice %3 {offsets = [0, 384], sizes = [208, 128], strides = [1, 1]} : vector<208x512xf32> to vector<208x128xf32>
    %9 = arith.maximumf %7, %8 : vector<208x128xf32>
    %10 = arith.maximumf %6, %9 : vector<208x128xf32>
    %c0_4 = arith.constant 0 : index
    %c0_5 = arith.constant 0 : index
    %11 = vector.load %arg3[%c0_4, %c0_5] : memref<1x128xf32, #tpu.memory_space<vmem>>, vector<1x128xf32>
    %12 = vector.broadcast %11 : vector<1x128xf32> to vector<208x128xf32>
    %13 = arith.addf %10, %12 : vector<208x128xf32>
    %cst_6 = arith.constant 0.000000e+00 : f32
    %14 = vector.broadcast %cst_6 : f32 to vector<208x128xf32>
    %15 = arith.maximumf %13, %14 : vector<208x128xf32>
    %c0_7 = arith.constant 0 : index
    %c0_8 = arith.constant 0 : index
    %16 = vector.load %arg7[%c0_7, %c0_8] : memref<208x128xf32, #tpu.memory_space<vmem>>, vector<208x128xf32>
    tpu.vector_store %arg7[%c0_7, %c0_8], %15 {strides = array<i32>} : memref<208x128xf32, #tpu.memory_space<vmem>>, vector<208x128xf32>,
    %cst_9 = arith.constant 0.000000e+00 : f32
    %17 = vector.broadcast %cst_9 : f32 to vector<144x128xf32>
    %c0_10 = arith.constant 0 : index
    %c0_11 = arith.constant 0 : index
    %18 = vector.load %arg7[%c0_10, %c0_11] : memref<208x128xf32, #tpu.memory_space<vmem>>, vector<144x128xf32>
    %19 = arith.truncf %18 : vector<144x128xf32> to vector<144x128xbf16>
    %c0_12 = arith.constant 0 : index
    %c0_13 = arith.constant 0 : index
    %c0_14 = arith.constant 0 : index
    %20 = vector.load %arg4[%c0_12, %c0_13, %c0_14] : memref<25x128x128xbf16, #tpu.memory_space<vmem>>, vector<1x128x128xbf16>
    %21 = vector.shape_cast %20 : vector<1x128x128xbf16> to vector<128x128xbf16>
    %cst_15 = arith.constant dense<0.000000e+00> : vector<144x128xf32>
    %22 = tpu.matmul %19, %21, %cst_15 {dimension_numbers = #tpu.dot_dimension_numbers<[1], [0], [0], [1], [0, 0, 1, 1], [], []>} : vector<144x128xbf16>, vector<128x128xbf16>, vector<144x128xf32> -> vector<144x128xf32>
    %23 = arith.addf %17, %22 : vector<144x128xf32>
    %c1 = arith.constant 1 : index
    %c0_16 = arith.constant 0 : index
    %24 = vector.load %arg7[%c1, %c0_16] : memref<208x128xf32, #tpu.memory_space<vmem>>, vector<144x128xf32>
    %25 = arith.truncf %24 : vector<144x128xf32> to vector<144x128xbf16>
    %c1_17 = arith.constant 1 : index
    %c0_18 = arith.constant 0 : index
    %c0_19 = arith.constant 0 : index
    %26 = vector.load %arg4[%c1_17, %c0_18, %c0_19] : memref<25x128x128xbf16, #tpu.memory_space<vmem>>, vector<1x128x128xbf16>
    %27 = vector.shape_cast %26 : vector<1x128x128xbf16> to vector<128x128xbf16>
    %cst_20 = arith.constant dense<0.000000e+00> : vector<144x128xf32>
    %28 = tpu.matmul %25, %27, %cst_20 {dimension_numbers = #tpu.dot_dimension_numbers<[1], [0], [0], [1], [0, 0, 1, 1], [], []>} : vector<144x128xbf16>, vector<128x128xbf16>, vector<144x128xf32> -> vector<144x128xf32>
    %29 = arith.addf %23, %28 : vector<144x128xf32>
    %c2 = arith.constant 2 : index
    %c0_21 = arith.constant 0 : index
    %30 = vector.load %arg7[%c2, %c0_21] : memref<208x128xf32, #tpu.memory_space<vmem>>, vector<144x128xf32>
    %31 = arith.truncf %30 : vector<144x128xf32> to vector<144x128xbf16>
    %c2_22 = arith.constant 2 : index
    %c0_23 = arith.constant 0 : index
    %c0_24 = arith.constant 0 : index
    %32 = vector.load %arg4[%c2_22, %c0_23, %c0_24] : memref<25x128x128xbf16, #tpu.memory_space<vmem>>, vector<1x128x128xbf16>
    %33 = vector.shape_cast %32 : vector<1x128x128xbf16> to vector<128x128xbf16>
    %cst_25 = arith.constant dense<0.000000e+00> : vector<144x128xf32>
    %34 = tpu.matmul %31, %33, %cst_25 {dimension_numbers = #tpu.dot_dimension_numbers<[1], [0], [0], [1], [0, 0, 1, 1], [], []>} : vector<144x128xbf16>, vector<128x128xbf16>, vector<144x128xf32> -> vector<144x128xf32>
    %35 = arith.addf %29, %34 : vector<144x128xf32>
    %c3 = arith.constant 3 : index
    %c0_26 = arith.constant 0 : index
    %36 = vector.load %arg7[%c3, %c0_26] : memref<208x128xf32, #tpu.memory_space<vmem>>, vector<144x128xf32>
    %37 = arith.truncf %36 : vector<144x128xf32> to vector<144x128xbf16>
    %c3_27 = arith.constant 3 : index
    %c0_28 = arith.constant 0 : index
    %c0_29 = arith.constant 0 : index
    %38 = vector.load %arg4[%c3_27, %c0_28, %c0_29] : memref<25x128x128xbf16, #tpu.memory_space<vmem>>, vector<1x128x128xbf16>
    %39 = vector.shape_cast %38 : vector<1x128x128xbf16> to vector<128x128xbf16>
    %cst_30 = arith.constant dense<0.000000e+00> : vector<144x128xf32>
    %40 = tpu.matmul %37, %39, %cst_30 {dimension_numbers = #tpu.dot_dimension_numbers<[1], [0], [0], [1], [0, 0, 1, 1], [], []>} : vector<144x128xbf16>, vector<128x128xbf16>, vector<144x128xf32> -> vector<144x128xf32>
    %41 = arith.addf %35, %40 : vector<144x128xf32>
    %c4 = arith.constant 4 : index
    %c0_31 = arith.constant 0 : index
    %42 = vector.load %arg7[%c4, %c0_31] : memref<208x128xf32, #tpu.memory_space<vmem>>, vector<144x128xf32>
    %43 = arith.truncf %42 : vector<144x128xf32> to vector<144x128xbf16>
    %c4_32 = arith.constant 4 : index
    %c0_33 = arith.constant 0 : index
    %c0_34 = arith.constant 0 : index
    %44 = vector.load %arg4[%c4_32, %c0_33, %c0_34] : memref<25x128x128xbf16, #tpu.memory_space<vmem>>, vector<1x128x128xbf16>
    %45 = vector.shape_cast %44 : vector<1x128x128xbf16> to vector<128x128xbf16>
    %cst_35 = arith.constant dense<0.000000e+00> : vector<144x128xf32>
    %46 = tpu.matmul %43, %45, %cst_35 {dimension_numbers = #tpu.dot_dimension_numbers<[1], [0], [0], [1], [0, 0, 1, 1], [], []>} : vector<144x128xbf16>, vector<128x128xbf16>, vector<144x128xf32> -> vector<144x128xf32>
    %47 = arith.addf %41, %46 : vector<144x128xf32>
    %c14 = arith.constant 14 : index
    %c0_36 = arith.constant 0 : index
    %48 = vector.load %arg7[%c14, %c0_36] : memref<208x128xf32, #tpu.memory_space<vmem>>, vector<144x128xf32>
    %49 = arith.truncf %48 : vector<144x128xf32> to vector<144x128xbf16>
    %c5 = arith.constant 5 : index
    %c0_37 = arith.constant 0 : index
    %c0_38 = arith.constant 0 : index
    %50 = vector.load %arg4[%c5, %c0_37, %c0_38] : memref<25x128x128xbf16, #tpu.memory_space<vmem>>, vector<1x128x128xbf16>
    %51 = vector.shape_cast %50 : vector<1x128x128xbf16> to vector<128x128xbf16>
    %cst_39 = arith.constant dense<0.000000e+00> : vector<144x128xf32>
    %52 = tpu.matmul %49, %51, %cst_39 {dimension_numbers = #tpu.dot_dimension_numbers<[1], [0], [0], [1], [0, 0, 1, 1], [], []>} : vector<144x128xbf16>, vector<128x128xbf16>, vector<144x128xf32> -> vector<144x128xf32>
    %53 = arith.addf %47, %52 : vector<144x128xf32>
    %c15 = arith.constant 15 : index
    %c0_40 = arith.constant 0 : index
    %54 = vector.load %arg7[%c15, %c0_40] : memref<208x128xf32, #tpu.memory_space<vmem>>, vector<144x128xf32>
    %55 = arith.truncf %54 : vector<144x128xf32> to vector<144x128xbf16>
    %c6 = arith.constant 6 : index
    %c0_41 = arith.constant 0 : index
    %c0_42 = arith.constant 0 : index
    %56 = vector.load %arg4[%c6, %c0_41, %c0_42] : memref<25x128x128xbf16, #tpu.memory_space<vmem>>, vector<1x128x128xbf16>
    %57 = vector.shape_cast %56 : vector<1x128x128xbf16> to vector<128x128xbf16>
    %cst_43 = arith.constant dense<0.000000e+00> : vector<144x128xf32>
    %58 = tpu.matmul %55, %57, %cst_43 {dimension_numbers = #tpu.dot_dimension_numbers<[1], [0], [0], [1], [0, 0, 1, 1], [], []>} : vector<144x128xbf16>, vector<128x128xbf16>, vector<144x128xf32> -> vector<144x128xf32>
    %59 = arith.addf %53, %58 : vector<144x128xf32>
    %c16 = arith.constant 16 : index
    %c0_44 = arith.constant 0 : index
    %60 = vector.load %arg7[%c16, %c0_44] : memref<208x128xf32, #tpu.memory_space<vmem>>, vector<144x128xf32>
    %61 = arith.truncf %60 : vector<144x128xf32> to vector<144x128xbf16>
    %c7 = arith.constant 7 : index
    %c0_45 = arith.constant 0 : index
    %c0_46 = arith.constant 0 : index
    %62 = vector.load %arg4[%c7, %c0_45, %c0_46] : memref<25x128x128xbf16, #tpu.memory_space<vmem>>, vector<1x128x128xbf16>
    %63 = vector.shape_cast %62 : vector<1x128x128xbf16> to vector<128x128xbf16>
    %cst_47 = arith.constant dense<0.000000e+00> : vector<144x128xf32>
    %64 = tpu.matmul %61, %63, %cst_47 {dimension_numbers = #tpu.dot_dimension_numbers<[1], [0], [0], [1], [0, 0, 1, 1], [], []>} : vector<144x128xbf16>, vector<128x128xbf16>, vector<144x128xf32> -> vector<144x128xf32>
    %65 = arith.addf %59, %64 : vector<144x128xf32>
    %c17 = arith.constant 17 : index
    %c0_48 = arith.constant 0 : index
    %66 = vector.load %arg7[%c17, %c0_48] : memref<208x128xf32, #tpu.memory_space<vmem>>, vector<144x128xf32>
    %67 = arith.truncf %66 : vector<144x128xf32> to vector<144x128xbf16>
    %c8 = arith.constant 8 : index
    %c0_49 = arith.constant 0 : index
    %c0_50 = arith.constant 0 : index
    %68 = vector.load %arg4[%c8, %c0_49, %c0_50] : memref<25x128x128xbf16, #tpu.memory_space<vmem>>, vector<1x128x128xbf16>
    %69 = vector.shape_cast %68 : vector<1x128x128xbf16> to vector<128x128xbf16>
    %cst_51 = arith.constant dense<0.000000e+00> : vector<144x128xf32>
    %70 = tpu.matmul %67, %69, %cst_51 {dimension_numbers = #tpu.dot_dimension_numbers<[1], [0], [0], [1], [0, 0, 1, 1], [], []>} : vector<144x128xbf16>, vector<128x128xbf16>, vector<144x128xf32> -> vector<144x128xf32>
    %71 = arith.addf %65, %70 : vector<144x128xf32>
    %c18 = arith.constant 18 : index
    %c0_52 = arith.constant 0 : index
    %72 = vector.load %arg7[%c18, %c0_52] : memref<208x128xf32, #tpu.memory_space<vmem>>, vector<144x128xf32>
    %73 = arith.truncf %72 : vector<144x128xf32> to vector<144x128xbf16>
    %c9 = arith.constant 9 : index
    %c0_53 = arith.constant 0 : index
    %c0_54 = arith.constant 0 : index
    %74 = vector.load %arg4[%c9, %c0_53, %c0_54] : memref<25x128x128xbf16, #tpu.memory_space<vmem>>, vector<1x128x128xbf16>
    %75 = vector.shape_cast %74 : vector<1x128x128xbf16> to vector<128x128xbf16>
    %cst_55 = arith.constant dense<0.000000e+00> : vector<144x128xf32>
    %76 = tpu.matmul %73, %75, %cst_55 {dimension_numbers = #tpu.dot_dimension_numbers<[1], [0], [0], [1], [0, 0, 1, 1], [], []>} : vector<144x128xbf16>, vector<128x128xbf16>, vector<144x128xf32> -> vector<144x128xf32>
    %77 = arith.addf %71, %76 : vector<144x128xf32>
    %c28 = arith.constant 28 : index
    %c0_56 = arith.constant 0 : index
    %78 = vector.load %arg7[%c28, %c0_56] : memref<208x128xf32, #tpu.memory_space<vmem>>, vector<144x128xf32>
    %79 = arith.truncf %78 : vector<144x128xf32> to vector<144x128xbf16>
    %c10 = arith.constant 10 : index
    %c0_57 = arith.constant 0 : index
    %c0_58 = arith.constant 0 : index
    %80 = vector.load %arg4[%c10, %c0_57, %c0_58] : memref<25x128x128xbf16, #tpu.memory_space<vmem>>, vector<1x128x128xbf16>
    %81 = vector.shape_cast %80 : vector<1x128x128xbf16> to vector<128x128xbf16>
    %cst_59 = arith.constant dense<0.000000e+00> : vector<144x128xf32>
    %82 = tpu.matmul %79, %81, %cst_59 {dimension_numbers = #tpu.dot_dimension_numbers<[1], [0], [0], [1], [0, 0, 1, 1], [], []>} : vector<144x128xbf16>, vector<128x128xbf16>, vector<144x128xf32> -> vector<144x128xf32>
    %83 = arith.addf %77, %82 : vector<144x128xf32>
    %c29 = arith.constant 29 : index
    %c0_60 = arith.constant 0 : index
    %84 = vector.load %arg7[%c29, %c0_60] : memref<208x128xf32, #tpu.memory_space<vmem>>, vector<144x128xf32>
    %85 = arith.truncf %84 : vector<144x128xf32> to vector<144x128xbf16>
    %c11 = arith.constant 11 : index
    %c0_61 = arith.constant 0 : index
    %c0_62 = arith.constant 0 : index
    %86 = vector.load %arg4[%c11, %c0_61, %c0_62] : memref<25x128x128xbf16, #tpu.memory_space<vmem>>, vector<1x128x128xbf16>
    %87 = vector.shape_cast %86 : vector<1x128x128xbf16> to vector<128x128xbf16>
    %cst_63 = arith.constant dense<0.000000e+00> : vector<144x128xf32>
    %88 = tpu.matmul %85, %87, %cst_63 {dimension_numbers = #tpu.dot_dimension_numbers<[1], [0], [0], [1], [0, 0, 1, 1], [], []>} : vector<144x128xbf16>, vector<128x128xbf16>, vector<144x128xf32> -> vector<144x128xf32>
    %89 = arith.addf %83, %88 : vector<144x128xf32>
    %c30 = arith.constant 30 : index
    %c0_64 = arith.constant 0 : index
    %90 = vector.load %arg7[%c30, %c0_64] : memref<208x128xf32, #tpu.memory_space<vmem>>, vector<144x128xf32>
    %91 = arith.truncf %90 : vector<144x128xf32> to vector<144x128xbf16>
    %c12 = arith.constant 12 : index
    %c0_65 = arith.constant 0 : index
    %c0_66 = arith.constant 0 : index
    %92 = vector.load %arg4[%c12, %c0_65, %c0_66] : memref<25x128x128xbf16, #tpu.memory_space<vmem>>, vector<1x128x128xbf16>
    %93 = vector.shape_cast %92 : vector<1x128x128xbf16> to vector<128x128xbf16>
    %cst_67 = arith.constant dense<0.000000e+00> : vector<144x128xf32>
    %94 = tpu.matmul %91, %93, %cst_67 {dimension_numbers = #tpu.dot_dimension_numbers<[1], [0], [0], [1], [0, 0, 1, 1], [], []>} : vector<144x128xbf16>, vector<128x128xbf16>, vector<144x128xf32> -> vector<144x128xf32>
    %95 = arith.addf %89, %94 : vector<144x128xf32>
    %c31 = arith.constant 31 : index
    %c0_68 = arith.constant 0 : index
    %96 = vector.load %arg7[%c31, %c0_68] : memref<208x128xf32, #tpu.memory_space<vmem>>, vector<144x128xf32>
    %97 = arith.truncf %96 : vector<144x128xf32> to vector<144x128xbf16>
    %c13 = arith.constant 13 : index
    %c0_69 = arith.constant 0 : index
    %c0_70 = arith.constant 0 : index
    %98 = vector.load %arg4[%c13, %c0_69, %c0_70] : memref<25x128x128xbf16, #tpu.memory_space<vmem>>, vector<1x128x128xbf16>
    %99 = vector.shape_cast %98 : vector<1x128x128xbf16> to vector<128x128xbf16>
    %cst_71 = arith.constant dense<0.000000e+00> : vector<144x128xf32>
    %100 = tpu.matmul %97, %99, %cst_71 {dimension_numbers = #tpu.dot_dimension_numbers<[1], [0], [0], [1], [0, 0, 1, 1], [], []>} : vector<144x128xbf16>, vector<128x128xbf16>, vector<144x128xf32> -> vector<144x128xf32>
    %101 = arith.addf %95, %100 : vector<144x128xf32>
    %c32 = arith.constant 32 : index
    %c0_72 = arith.constant 0 : index
    %102 = vector.load %arg7[%c32, %c0_72] : memref<208x128xf32, #tpu.memory_space<vmem>>, vector<144x128xf32>
    %103 = arith.truncf %102 : vector<144x128xf32> to vector<144x128xbf16>
    %c14_73 = arith.constant 14 : index
    %c0_74 = arith.constant 0 : index
    %c0_75 = arith.constant 0 : index
    %104 = vector.load %arg4[%c14_73, %c0_74, %c0_75] : memref<25x128x128xbf16, #tpu.memory_space<vmem>>, vector<1x128x128xbf16>
    %105 = vector.shape_cast %104 : vector<1x128x128xbf16> to vector<128x128xbf16>
    %cst_76 = arith.constant dense<0.000000e+00> : vector<144x128xf32>
    %106 = tpu.matmul %103, %105, %cst_76 {dimension_numbers = #tpu.dot_dimension_numbers<[1], [0], [0], [1], [0, 0, 1, 1], [], []>} : vector<144x128xbf16>, vector<128x128xbf16>, vector<144x128xf32> -> vector<144x128xf32>
    %107 = arith.addf %101, %106 : vector<144x128xf32>
    %c42 = arith.constant 42 : index
    %c0_77 = arith.constant 0 : index
    %108 = vector.load %arg7[%c42, %c0_77] : memref<208x128xf32, #tpu.memory_space<vmem>>, vector<144x128xf32>
    %109 = arith.truncf %108 : vector<144x128xf32> to vector<144x128xbf16>
    %c15_78 = arith.constant 15 : index
    %c0_79 = arith.constant 0 : index
    %c0_80 = arith.constant 0 : index
    %110 = vector.load %arg4[%c15_78, %c0_79, %c0_80] : memref<25x128x128xbf16, #tpu.memory_space<vmem>>, vector<1x128x128xbf16>
    %111 = vector.shape_cast %110 : vector<1x128x128xbf16> to vector<128x128xbf16>
    %cst_81 = arith.constant dense<0.000000e+00> : vector<144x128xf32>
    %112 = tpu.matmul %109, %111, %cst_81 {dimension_numbers = #tpu.dot_dimension_numbers<[1], [0], [0], [1], [0, 0, 1, 1], [], []>} : vector<144x128xbf16>, vector<128x128xbf16>, vector<144x128xf32> -> vector<144x128xf32>
    %113 = arith.addf %107, %112 : vector<144x128xf32>
    %c43 = arith.constant 43 : index
    %c0_82 = arith.constant 0 : index
    %114 = vector.load %arg7[%c43, %c0_82] : memref<208x128xf32, #tpu.memory_space<vmem>>, vector<144x128xf32>
    %115 = arith.truncf %114 : vector<144x128xf32> to vector<144x128xbf16>
    %c16_83 = arith.constant 16 : index
    %c0_84 = arith.constant 0 : index
    %c0_85 = arith.constant 0 : index
    %116 = vector.load %arg4[%c16_83, %c0_84, %c0_85] : memref<25x128x128xbf16, #tpu.memory_space<vmem>>, vector<1x128x128xbf16>
    %117 = vector.shape_cast %116 : vector<1x128x128xbf16> to vector<128x128xbf16>
    %cst_86 = arith.constant dense<0.000000e+00> : vector<144x128xf32>
    %118 = tpu.matmul %115, %117, %cst_86 {dimension_numbers = #tpu.dot_dimension_numbers<[1], [0], [0], [1], [0, 0, 1, 1], [], []>} : vector<144x128xbf16>, vector<128x128xbf16>, vector<144x128xf32> -> vector<144x128xf32>
    %119 = arith.addf %113, %118 : vector<144x128xf32>
    %c44 = arith.constant 44 : index
    %c0_87 = arith.constant 0 : index
    %120 = vector.load %arg7[%c44, %c0_87] : memref<208x128xf32, #tpu.memory_space<vmem>>, vector<144x128xf32>
    %121 = arith.truncf %120 : vector<144x128xf32> to vector<144x128xbf16>
    %c17_88 = arith.constant 17 : index
    %c0_89 = arith.constant 0 : index
    %c0_90 = arith.constant 0 : index
    %122 = vector.load %arg4[%c17_88, %c0_89, %c0_90] : memref<25x128x128xbf16, #tpu.memory_space<vmem>>, vector<1x128x128xbf16>
    %123 = vector.shape_cast %122 : vector<1x128x128xbf16> to vector<128x128xbf16>
    %cst_91 = arith.constant dense<0.000000e+00> : vector<144x128xf32>
    %124 = tpu.matmul %121, %123, %cst_91 {dimension_numbers = #tpu.dot_dimension_numbers<[1], [0], [0], [1], [0, 0, 1, 1], [], []>} : vector<144x128xbf16>, vector<128x128xbf16>, vector<144x128xf32> -> vector<144x128xf32>
    %125 = arith.addf %119, %124 : vector<144x128xf32>
    %c45 = arith.constant 45 : index
    %c0_92 = arith.constant 0 : index
    %126 = vector.load %arg7[%c45, %c0_92] : memref<208x128xf32, #tpu.memory_space<vmem>>, vector<144x128xf32>
    %127 = arith.truncf %126 : vector<144x128xf32> to vector<144x128xbf16>
    %c18_93 = arith.constant 18 : index
    %c0_94 = arith.constant 0 : index
    %c0_95 = arith.constant 0 : index
    %128 = vector.load %arg4[%c18_93, %c0_94, %c0_95] : memref<25x128x128xbf16, #tpu.memory_space<vmem>>, vector<1x128x128xbf16>
    %129 = vector.shape_cast %128 : vector<1x128x128xbf16> to vector<128x128xbf16>
    %cst_96 = arith.constant dense<0.000000e+00> : vector<144x128xf32>
    %130 = tpu.matmul %127, %129, %cst_96 {dimension_numbers = #tpu.dot_dimension_numbers<[1], [0], [0], [1], [0, 0, 1, 1], [], []>} : vector<144x128xbf16>, vector<128x128xbf16>, vector<144x128xf32> -> vector<144x128xf32>
    %131 = arith.addf %125, %130 : vector<144x128xf32>
    %c46 = arith.constant 46 : index
    %c0_97 = arith.constant 0 : index
    %132 = vector.load %arg7[%c46, %c0_97] : memref<208x128xf32, #tpu.memory_space<vmem>>, vector<144x128xf32>
    %133 = arith.truncf %132 : vector<144x128xf32> to vector<144x128xbf16>
    %c19 = arith.constant 19 : index
    %c0_98 = arith.constant 0 : index
    %c0_99 = arith.constant 0 : index
    %134 = vector.load %arg4[%c19, %c0_98, %c0_99] : memref<25x128x128xbf16, #tpu.memory_space<vmem>>, vector<1x128x128xbf16>
    %135 = vector.shape_cast %134 : vector<1x128x128xbf16> to vector<128x128xbf16>
    %cst_100 = arith.constant dense<0.000000e+00> : vector<144x128xf32>
    %136 = tpu.matmul %133, %135, %cst_100 {dimension_numbers = #tpu.dot_dimension_numbers<[1], [0], [0], [1], [0, 0, 1, 1], [], []>} : vector<144x128xbf16>, vector<128x128xbf16>, vector<144x128xf32> -> vector<144x128xf32>
    %137 = arith.addf %131, %136 : vector<144x128xf32>
    %c56 = arith.constant 56 : index
    %c0_101 = arith.constant 0 : index
    %138 = vector.load %arg7[%c56, %c0_101] : memref<208x128xf32, #tpu.memory_space<vmem>>, vector<144x128xf32>
    %139 = arith.truncf %138 : vector<144x128xf32> to vector<144x128xbf16>
    %c20 = arith.constant 20 : index
    %c0_102 = arith.constant 0 : index
    %c0_103 = arith.constant 0 : index
    %140 = vector.load %arg4[%c20, %c0_102, %c0_103] : memref<25x128x128xbf16, #tpu.memory_space<vmem>>, vector<1x128x128xbf16>
    %141 = vector.shape_cast %140 : vector<1x128x128xbf16> to vector<128x128xbf16>
    %cst_104 = arith.constant dense<0.000000e+00> : vector<144x128xf32>
    %142 = tpu.matmul %139, %141, %cst_104 {dimension_numbers = #tpu.dot_dimension_numbers<[1], [0], [0], [1], [0, 0, 1, 1], [], []>} : vector<144x128xbf16>, vector<128x128xbf16>, vector<144x128xf32> -> vector<144x128xf32>
    %143 = arith.addf %137, %142 : vector<144x128xf32>
    %c57 = arith.constant 57 : index
    %c0_105 = arith.constant 0 : index
    %144 = vector.load %arg7[%c57, %c0_105] : memref<208x128xf32, #tpu.memory_space<vmem>>, vector<144x128xf32>
    %145 = arith.truncf %144 : vector<144x128xf32> to vector<144x128xbf16>
    %c21 = arith.constant 21 : index
    %c0_106 = arith.constant 0 : index
    %c0_107 = arith.constant 0 : index
    %146 = vector.load %arg4[%c21, %c0_106, %c0_107] : memref<25x128x128xbf16, #tpu.memory_space<vmem>>, vector<1x128x128xbf16>
    %147 = vector.shape_cast %146 : vector<1x128x128xbf16> to vector<128x128xbf16>
    %cst_108 = arith.constant dense<0.000000e+00> : vector<144x128xf32>
    %148 = tpu.matmul %145, %147, %cst_108 {dimension_numbers = #tpu.dot_dimension_numbers<[1], [0], [0], [1], [0, 0, 1, 1], [], []>} : vector<144x128xbf16>, vector<128x128xbf16>, vector<144x128xf32> -> vector<144x128xf32>
    %149 = arith.addf %143, %148 : vector<144x128xf32>
    %c58 = arith.constant 58 : index
    %c0_109 = arith.constant 0 : index
    %150 = vector.load %arg7[%c58, %c0_109] : memref<208x128xf32, #tpu.memory_space<vmem>>, vector<144x128xf32>
    %151 = arith.truncf %150 : vector<144x128xf32> to vector<144x128xbf16>
    %c22 = arith.constant 22 : index
    %c0_110 = arith.constant 0 : index
    %c0_111 = arith.constant 0 : index
    %152 = vector.load %arg4[%c22, %c0_110, %c0_111] : memref<25x128x128xbf16, #tpu.memory_space<vmem>>, vector<1x128x128xbf16>
    %153 = vector.shape_cast %152 : vector<1x128x128xbf16> to vector<128x128xbf16>
    %cst_112 = arith.constant dense<0.000000e+00> : vector<144x128xf32>
    %154 = tpu.matmul %151, %153, %cst_112 {dimension_numbers = #tpu.dot_dimension_numbers<[1], [0], [0], [1], [0, 0, 1, 1], [], []>} : vector<144x128xbf16>, vector<128x128xbf16>, vector<144x128xf32> -> vector<144x128xf32>
    %155 = arith.addf %149, %154 : vector<144x128xf32>
    %c59 = arith.constant 59 : index
    %c0_113 = arith.constant 0 : index
    %156 = vector.load %arg7[%c59, %c0_113] : memref<208x128xf32, #tpu.memory_space<vmem>>, vector<144x128xf32>
    %157 = arith.truncf %156 : vector<144x128xf32> to vector<144x128xbf16>
    %c23 = arith.constant 23 : index
    %c0_114 = arith.constant 0 : index
    %c0_115 = arith.constant 0 : index
    %158 = vector.load %arg4[%c23, %c0_114, %c0_115] : memref<25x128x128xbf16, #tpu.memory_space<vmem>>, vector<1x128x128xbf16>
    %159 = vector.shape_cast %158 : vector<1x128x128xbf16> to vector<128x128xbf16>
    %cst_116 = arith.constant dense<0.000000e+00> : vector<144x128xf32>
    %160 = tpu.matmul %157, %159, %cst_116 {dimension_numbers = #tpu.dot_dimension_numbers<[1], [0], [0], [1], [0, 0, 1, 1], [], []>} : vector<144x128xbf16>, vector<128x128xbf16>, vector<144x128xf32> -> vector<144x128xf32>
    %161 = arith.addf %155, %160 : vector<144x128xf32>
    %c60 = arith.constant 60 : index
    %c0_117 = arith.constant 0 : index
    %162 = vector.load %arg7[%c60, %c0_117] : memref<208x128xf32, #tpu.memory_space<vmem>>, vector<144x128xf32>
    %163 = arith.truncf %162 : vector<144x128xf32> to vector<144x128xbf16>
    %c24 = arith.constant 24 : index
    %c0_118 = arith.constant 0 : index
    %c0_119 = arith.constant 0 : index
    %164 = vector.load %arg4[%c24, %c0_118, %c0_119] : memref<25x128x128xbf16, #tpu.memory_space<vmem>>, vector<1x128x128xbf16>
    %165 = vector.shape_cast %164 : vector<1x128x128xbf16> to vector<128x128xbf16>
    %cst_120 = arith.constant dense<0.000000e+00> : vector<144x128xf32>
    %166 = tpu.matmul %163, %165, %cst_120 {dimension_numbers = #tpu.dot_dimension_numbers<[1], [0], [0], [1], [0, 0, 1, 1], [], []>} : vector<144x128xbf16>, vector<128x128xbf16>, vector<144x128xf32> -> vector<144x128xf32>
    %167 = arith.addf %161, %166 : vector<144x128xf32>
    %c0_121 = arith.constant 0 : index
    %c0_122 = arith.constant 0 : index
    %168 = vector.load %arg5[%c0_121, %c0_122] : memref<1x128xf32, #tpu.memory_space<vmem>>, vector<1x128xf32>
    %169 = vector.broadcast %168 : vector<1x128xf32> to vector<144x128xf32>
    %170 = arith.addf %167, %169 : vector<144x128xf32>
    %cst_123 = arith.constant 0.000000e+00 : f32
    %171 = vector.broadcast %cst_123 : f32 to vector<144x128xf32>
    %172 = arith.maximumf %170, %171 : vector<144x128xf32>
    %c0_124 = arith.constant 0 : index
    %c0_125 = arith.constant 0 : index
    %173 = vector.load %arg8[%c0_124, %c0_125] : memref<144x128xf32, #tpu.memory_space<vmem>>, vector<144x128xf32>
    tpu.vector_store %arg8[%c0_124, %c0_125], %172 {strides = array<i32>} : memref<144x128xf32, #tpu.memory_space<vmem>>, vector<144x128xf32>,
    %c0_126 = arith.constant 0 : index
    %c0_127 = arith.constant 0 : index
    %174 = vector.load %arg8[%c0_126, %c0_127] : memref<144x128xf32, #tpu.memory_space<vmem>>, vector<128x128xf32>
    %c1_128 = arith.constant 1 : index
    %c0_129 = arith.constant 0 : index
    %175 = vector.load %arg8[%c1_128, %c0_129] : memref<144x128xf32, #tpu.memory_space<vmem>>, vector<128x128xf32>
    %176 = arith.maximumf %174, %175 : vector<128x128xf32>
    %c14_130 = arith.constant 14 : index
    %c0_131 = arith.constant 0 : index
    %177 = vector.load %arg8[%c14_130, %c0_131] : memref<144x128xf32, #tpu.memory_space<vmem>>, vector<128x128xf32>
    %c15_132 = arith.constant 15 : index
    %c0_133 = arith.constant 0 : index
    %178 = vector.load %arg8[%c15_132, %c0_133] : memref<144x128xf32, #tpu.memory_space<vmem>>, vector<128x128xf32>
    %179 = arith.maximumf %177, %178 : vector<128x128xf32>
    %180 = arith.maximumf %176, %179 : vector<128x128xf32>
    %c0_134 = arith.constant 0 : index
    %c0_135 = arith.constant 0 : index
    %181 = vector.load %arg9[%c0_134, %c0_135] : memref<128x128xf32, #tpu.memory_space<vmem>>, vector<128x128xf32>
    tpu.vector_store %arg9[%c0_134, %c0_135], %180 {strides = array<i32>} : memref<128x128xf32, #tpu.memory_space<vmem>>, vector<128x128xf32>,
    %cst_136 = arith.constant 0.000000e+00 : bf16
    %182 = vector.broadcast %cst_136 : bf16 to vector<1x32x128xbf16>
    %c0_137 = arith.constant 0 : index
    %c0_138 = arith.constant 0 : index
    %c0_139 = arith.constant 0 : index
    %183 = vector.load %arg6[%c0_137, %c0_138, %c0_139] : memref<1x32x128xbf16, #tpu.memory_space<vmem>>, vector<1x32x128xbf16>
    tpu.vector_store %arg6[%c0_137, %c0_138, %c0_139], %182 {strides = array<i32>} : memref<1x32x128xbf16, #tpu.memory_space<vmem>>, vector<1x32x128xbf16>,
    %c0_140 = arith.constant 0 : index
    %c0_141 = arith.constant 0 : index
    %184 = vector.load %arg9[%c0_140, %c0_141] : memref<128x128xf32, #tpu.memory_space<vmem>>, vector<1x128xf32>
    %185 = arith.truncf %184 : vector<1x128xf32> to vector<1x128xbf16>
    %c0_142 = arith.constant 0 : index
    %c0_143 = arith.constant 0 : index
    %c0_144 = arith.constant 0 : index
    %186 = vector.load %arg6[%c0_142, %c0_143, %c0_144] : memref<1x32x128xbf16, #tpu.memory_space<vmem>>, vector<1x1x128xbf16>
    %187 = vector.shape_cast %186 : vector<1x1x128xbf16> to vector<1x128xbf16>
    %188 = vector.shape_cast %185 : vector<1x128xbf16> to vector<1x1x128xbf16>
    tpu.vector_store %arg6[%c0_142, %c0_143, %c0_144], %188 {strides = array<i32>} : memref<1x32x128xbf16, #tpu.memory_space<vmem>>, vector<1x1x128xbf16>,
    %c2_145 = arith.constant 2 : index
    %c0_146 = arith.constant 0 : index
    %189 = vector.load %arg9[%c2_145, %c0_146] : memref<128x128xf32, #tpu.memory_space<vmem>>, vector<1x128xf32>
    %190 = arith.truncf %189 : vector<1x128xf32> to vector<1x128xbf16>
    %c0_147 = arith.constant 0 : index
    %c1_148 = arith.constant 1 : index
    %c0_149 = arith.constant 0 : index
    %191 = vector.load %arg6[%c0_147, %c1_148, %c0_149] : memref<1x32x128xbf16, #tpu.memory_space<vmem>>, vector<1x1x128xbf16>
    %192 = vector.shape_cast %191 : vector<1x1x128xbf16> to vector<1x128xbf16>
    %193 = vector.shape_cast %190 : vector<1x128xbf16> to vector<1x1x128xbf16>
    tpu.vector_store %arg6[%c0_147, %c1_148, %c0_149], %193 {strides = array<i32>} : memref<1x32x128xbf16, #tpu.memory_space<vmem>>, vector<1x1x128xbf16>,
    %c4_150 = arith.constant 4 : index
    %c0_151 = arith.constant 0 : index
    %194 = vector.load %arg9[%c4_150, %c0_151] : memref<128x128xf32, #tpu.memory_space<vmem>>, vector<1x128xf32>
    %195 = arith.truncf %194 : vector<1x128xf32> to vector<1x128xbf16>
    %c0_152 = arith.constant 0 : index
    %c2_153 = arith.constant 2 : index
    %c0_154 = arith.constant 0 : index
    %196 = vector.load %arg6[%c0_152, %c2_153, %c0_154] : memref<1x32x128xbf16, #tpu.memory_space<vmem>>, vector<1x1x128xbf16>
    %197 = vector.shape_cast %196 : vector<1x1x128xbf16> to vector<1x128xbf16>
    %198 = vector.shape_cast %195 : vector<1x128xbf16> to vector<1x1x128xbf16>
    tpu.vector_store %arg6[%c0_152, %c2_153, %c0_154], %198 {strides = array<i32>} : memref<1x32x128xbf16, #tpu.memory_space<vmem>>, vector<1x1x128xbf16>,
    %c6_155 = arith.constant 6 : index
    %c0_156 = arith.constant 0 : index
    %199 = vector.load %arg9[%c6_155, %c0_156] : memref<128x128xf32, #tpu.memory_space<vmem>>, vector<1x128xf32>
    %200 = arith.truncf %199 : vector<1x128xf32> to vector<1x128xbf16>
    %c0_157 = arith.constant 0 : index
    %c3_158 = arith.constant 3 : index
    %c0_159 = arith.constant 0 : index
    %201 = vector.load %arg6[%c0_157, %c3_158, %c0_159] : memref<1x32x128xbf16, #tpu.memory_space<vmem>>, vector<1x1x128xbf16>
    %202 = vector.shape_cast %201 : vector<1x1x128xbf16> to vector<1x128xbf16>
    %203 = vector.shape_cast %200 : vector<1x128xbf16> to vector<1x1x128xbf16>
    tpu.vector_store %arg6[%c0_157, %c3_158, %c0_159], %203 {strides = array<i32>} : memref<1x32x128xbf16, #tpu.memory_space<vmem>>, vector<1x1x128xbf16>,
    %c8_160 = arith.constant 8 : index
    %c0_161 = arith.constant 0 : index
    %204 = vector.load %arg9[%c8_160, %c0_161] : memref<128x128xf32, #tpu.memory_space<vmem>>, vector<1x128xf32>
    %205 = arith.truncf %204 : vector<1x128xf32> to vector<1x128xbf16>
    %c0_162 = arith.constant 0 : index
    %c4_163 = arith.constant 4 : index
    %c0_164 = arith.constant 0 : index
    %206 = vector.load %arg6[%c0_162, %c4_163, %c0_164] : memref<1x32x128xbf16, #tpu.memory_space<vmem>>, vector<1x1x128xbf16>
    %207 = vector.shape_cast %206 : vector<1x1x128xbf16> to vector<1x128xbf16>
    %208 = vector.shape_cast %205 : vector<1x128xbf16> to vector<1x1x128xbf16>
    tpu.vector_store %arg6[%c0_162, %c4_163, %c0_164], %208 {strides = array<i32>} : memref<1x32x128xbf16, #tpu.memory_space<vmem>>, vector<1x1x128xbf16>,
    %c28_165 = arith.constant 28 : index
    %c0_166 = arith.constant 0 : index
    %209 = vector.load %arg9[%c28_165, %c0_166] : memref<128x128xf32, #tpu.memory_space<vmem>>, vector<1x128xf32>
    %210 = arith.truncf %209 : vector<1x128xf32> to vector<1x128xbf16>
    %c0_167 = arith.constant 0 : index
    %c5_168 = arith.constant 5 : index
    %c0_169 = arith.constant 0 : index
    %211 = vector.load %arg6[%c0_167, %c5_168, %c0_169] : memref<1x32x128xbf16, #tpu.memory_space<vmem>>, vector<1x1x128xbf16>
    %212 = vector.shape_cast %211 : vector<1x1x128xbf16> to vector<1x128xbf16>
    %213 = vector.shape_cast %210 : vector<1x128xbf16> to vector<1x1x128xbf16>
    tpu.vector_store %arg6[%c0_167, %c5_168, %c0_169], %213 {strides = array<i32>} : memref<1x32x128xbf16, #tpu.memory_space<vmem>>, vector<1x1x128xbf16>,
    %c30_170 = arith.constant 30 : index
    %c0_171 = arith.constant 0 : index
    %214 = vector.load %arg9[%c30_170, %c0_171] : memref<128x128xf32, #tpu.memory_space<vmem>>, vector<1x128xf32>
    %215 = arith.truncf %214 : vector<1x128xf32> to vector<1x128xbf16>
    %c0_172 = arith.constant 0 : index
    %c6_173 = arith.constant 6 : index
    %c0_174 = arith.constant 0 : index
    %216 = vector.load %arg6[%c0_172, %c6_173, %c0_174] : memref<1x32x128xbf16, #tpu.memory_space<vmem>>, vector<1x1x128xbf16>
    %217 = vector.shape_cast %216 : vector<1x1x128xbf16> to vector<1x128xbf16>
    %218 = vector.shape_cast %215 : vector<1x128xbf16> to vector<1x1x128xbf16>
    tpu.vector_store %arg6[%c0_172, %c6_173, %c0_174], %218 {strides = array<i32>} : memref<1x32x128xbf16, #tpu.memory_space<vmem>>, vector<1x1x128xbf16>,
    %c32_175 = arith.constant 32 : index
    %c0_176 = arith.constant 0 : index
    %219 = vector.load %arg9[%c32_175, %c0_176] : memref<128x128xf32, #tpu.memory_space<vmem>>, vector<1x128xf32>
    %220 = arith.truncf %219 : vector<1x128xf32> to vector<1x128xbf16>
    %c0_177 = arith.constant 0 : index
    %c7_178 = arith.constant 7 : index
    %c0_179 = arith.constant 0 : index
    %221 = vector.load %arg6[%c0_177, %c7_178, %c0_179] : memref<1x32x128xbf16, #tpu.memory_space<vmem>>, vector<1x1x128xbf16>
    %222 = vector.shape_cast %221 : vector<1x1x128xbf16> to vector<1x128xbf16>
    %223 = vector.shape_cast %220 : vector<1x128xbf16> to vector<1x1x128xbf16>
    tpu.vector_store %arg6[%c0_177, %c7_178, %c0_179], %223 {strides = array<i32>} : memref<1x32x128xbf16, #tpu.memory_space<vmem>>, vector<1x1x128xbf16>,
    %c34 = arith.constant 34 : index
    %c0_180 = arith.constant 0 : index
    %224 = vector.load %arg9[%c34, %c0_180] : memref<128x128xf32, #tpu.memory_space<vmem>>, vector<1x128xf32>
    %225 = arith.truncf %224 : vector<1x128xf32> to vector<1x128xbf16>
    %c0_181 = arith.constant 0 : index
    %c8_182 = arith.constant 8 : index
    %c0_183 = arith.constant 0 : index
    %226 = vector.load %arg6[%c0_181, %c8_182, %c0_183] : memref<1x32x128xbf16, #tpu.memory_space<vmem>>, vector<1x1x128xbf16>
    %227 = vector.shape_cast %226 : vector<1x1x128xbf16> to vector<1x128xbf16>
    %228 = vector.shape_cast %225 : vector<1x128xbf16> to vector<1x1x128xbf16>
    tpu.vector_store %arg6[%c0_181, %c8_182, %c0_183], %228 {strides = array<i32>} : memref<1x32x128xbf16, #tpu.memory_space<vmem>>, vector<1x1x128xbf16>,
    %c36 = arith.constant 36 : index
    %c0_184 = arith.constant 0 : index
    %229 = vector.load %arg9[%c36, %c0_184] : memref<128x128xf32, #tpu.memory_space<vmem>>, vector<1x128xf32>
    %230 = arith.truncf %229 : vector<1x128xf32> to vector<1x128xbf16>
    %c0_185 = arith.constant 0 : index
    %c9_186 = arith.constant 9 : index
    %c0_187 = arith.constant 0 : index
    %231 = vector.load %arg6[%c0_185, %c9_186, %c0_187] : memref<1x32x128xbf16, #tpu.memory_space<vmem>>, vector<1x1x128xbf16>
    %232 = vector.shape_cast %231 : vector<1x1x128xbf16> to vector<1x128xbf16>
    %233 = vector.shape_cast %230 : vector<1x128xbf16> to vector<1x1x128xbf16>
    tpu.vector_store %arg6[%c0_185, %c9_186, %c0_187], %233 {strides = array<i32>} : memref<1x32x128xbf16, #tpu.memory_space<vmem>>, vector<1x1x128xbf16>,
    %c56_188 = arith.constant 56 : index
    %c0_189 = arith.constant 0 : index
    %234 = vector.load %arg9[%c56_188, %c0_189] : memref<128x128xf32, #tpu.memory_space<vmem>>, vector<1x128xf32>
    %235 = arith.truncf %234 : vector<1x128xf32> to vector<1x128xbf16>
    %c0_190 = arith.constant 0 : index
    %c10_191 = arith.constant 10 : index
    %c0_192 = arith.constant 0 : index
    %236 = vector.load %arg6[%c0_190, %c10_191, %c0_192] : memref<1x32x128xbf16, #tpu.memory_space<vmem>>, vector<1x1x128xbf16>
    %237 = vector.shape_cast %236 : vector<1x1x128xbf16> to vector<1x128xbf16>
    %238 = vector.shape_cast %235 : vector<1x128xbf16> to vector<1x1x128xbf16>
    tpu.vector_store %arg6[%c0_190, %c10_191, %c0_192], %238 {strides = array<i32>} : memref<1x32x128xbf16, #tpu.memory_space<vmem>>, vector<1x1x128xbf16>,
    %c58_193 = arith.constant 58 : index
    %c0_194 = arith.constant 0 : index
    %239 = vector.load %arg9[%c58_193, %c0_194] : memref<128x128xf32, #tpu.memory_space<vmem>>, vector<1x128xf32>
    %240 = arith.truncf %239 : vector<1x128xf32> to vector<1x128xbf16>
    %c0_195 = arith.constant 0 : index
    %c11_196 = arith.constant 11 : index
    %c0_197 = arith.constant 0 : index
    %241 = vector.load %arg6[%c0_195, %c11_196, %c0_197] : memref<1x32x128xbf16, #tpu.memory_space<vmem>>, vector<1x1x128xbf16>
    %242 = vector.shape_cast %241 : vector<1x1x128xbf16> to vector<1x128xbf16>
    %243 = vector.shape_cast %240 : vector<1x128xbf16> to vector<1x1x128xbf16>
    tpu.vector_store %arg6[%c0_195, %c11_196, %c0_197], %243 {strides = array<i32>} : memref<1x32x128xbf16, #tpu.memory_space<vmem>>, vector<1x1x128xbf16>,
    %c60_198 = arith.constant 60 : index
    %c0_199 = arith.constant 0 : index
    %244 = vector.load %arg9[%c60_198, %c0_199] : memref<128x128xf32, #tpu.memory_space<vmem>>, vector<1x128xf32>
    %245 = arith.truncf %244 : vector<1x128xf32> to vector<1x128xbf16>
    %c0_200 = arith.constant 0 : index
    %c12_201 = arith.constant 12 : index
    %c0_202 = arith.constant 0 : index
    %246 = vector.load %arg6[%c0_200, %c12_201, %c0_202] : memref<1x32x128xbf16, #tpu.memory_space<vmem>>, vector<1x1x128xbf16>
    %247 = vector.shape_cast %246 : vector<1x1x128xbf16> to vector<1x128xbf16>
    %248 = vector.shape_cast %245 : vector<1x128xbf16> to vector<1x1x128xbf16>
    tpu.vector_store %arg6[%c0_200, %c12_201, %c0_202], %248 {strides = array<i32>} : memref<1x32x128xbf16, #tpu.memory_space<vmem>>, vector<1x1x128xbf16>,
    %c62 = arith.constant 62 : index
    %c0_203 = arith.constant 0 : index
    %249 = vector.load %arg9[%c62, %c0_203] : memref<128x128xf32, #tpu.memory_space<vmem>>, vector<1x128xf32>
    %250 = arith.truncf %249 : vector<1x128xf32> to vector<1x128xbf16>
    %c0_204 = arith.constant 0 : index
    %c13_205 = arith.constant 13 : index
    %c0_206 = arith.constant 0 : index
    %251 = vector.load %arg6[%c0_204, %c13_205, %c0_206] : memref<1x32x128xbf16, #tpu.memory_space<vmem>>, vector<1x1x128xbf16>
    %252 = vector.shape_cast %251 : vector<1x1x128xbf16> to vector<1x128xbf16>
    %253 = vector.shape_cast %250 : vector<1x128xbf16> to vector<1x1x128xbf16>
    tpu.vector_store %arg6[%c0_204, %c13_205, %c0_206], %253 {strides = array<i32>} : memref<1x32x128xbf16, #tpu.memory_space<vmem>>, vector<1x1x128xbf16>,
    %c64 = arith.constant 64 : index
    %c0_207 = arith.constant 0 : index
    %254 = vector.load %arg9[%c64, %c0_207] : memref<128x128xf32, #tpu.memory_space<vmem>>, vector<1x128xf32>
    %255 = arith.truncf %254 : vector<1x128xf32> to vector<1x128xbf16>
    %c0_208 = arith.constant 0 : index
    %c14_209 = arith.constant 14 : index
    %c0_210 = arith.constant 0 : index
    %256 = vector.load %arg6[%c0_208, %c14_209, %c0_210] : memref<1x32x128xbf16, #tpu.memory_space<vmem>>, vector<1x1x128xbf16>
    %257 = vector.shape_cast %256 : vector<1x1x128xbf16> to vector<1x128xbf16>
    %258 = vector.shape_cast %255 : vector<1x128xbf16> to vector<1x1x128xbf16>
    tpu.vector_store %arg6[%c0_208, %c14_209, %c0_210], %258 {strides = array<i32>} : memref<1x32x128xbf16, #tpu.memory_space<vmem>>, vector<1x1x128xbf16>,
    %c84 = arith.constant 84 : index
    %c0_211 = arith.constant 0 : index
    %259 = vector.load %arg9[%c84, %c0_211] : memref<128x128xf32, #tpu.memory_space<vmem>>, vector<1x128xf32>
    %260 = arith.truncf %259 : vector<1x128xf32> to vector<1x128xbf16>
    %c0_212 = arith.constant 0 : index
    %c15_213 = arith.constant 15 : index
    %c0_214 = arith.constant 0 : index
    %261 = vector.load %arg6[%c0_212, %c15_213, %c0_214] : memref<1x32x128xbf16, #tpu.memory_space<vmem>>, vector<1x1x128xbf16>
    %262 = vector.shape_cast %261 : vector<1x1x128xbf16> to vector<1x128xbf16>
    %263 = vector.shape_cast %260 : vector<1x128xbf16> to vector<1x1x128xbf16>
    tpu.vector_store %arg6[%c0_212, %c15_213, %c0_214], %263 {strides = array<i32>} : memref<1x32x128xbf16, #tpu.memory_space<vmem>>, vector<1x1x128xbf16>,
    %c86 = arith.constant 86 : index
    %c0_215 = arith.constant 0 : index
    %264 = vector.load %arg9[%c86, %c0_215] : memref<128x128xf32, #tpu.memory_space<vmem>>, vector<1x128xf32>
    %265 = arith.truncf %264 : vector<1x128xf32> to vector<1x128xbf16>
    %c0_216 = arith.constant 0 : index
    %c16_217 = arith.constant 16 : index
    %c0_218 = arith.constant 0 : index
    %266 = vector.load %arg6[%c0_216, %c16_217, %c0_218] : memref<1x32x128xbf16, #tpu.memory_space<vmem>>, vector<1x1x128xbf16>
    %267 = vector.shape_cast %266 : vector<1x1x128xbf16> to vector<1x128xbf16>
    %268 = vector.shape_cast %265 : vector<1x128xbf16> to vector<1x1x128xbf16>
    tpu.vector_store %arg6[%c0_216, %c16_217, %c0_218], %268 {strides = array<i32>} : memref<1x32x128xbf16, #tpu.memory_space<vmem>>, vector<1x1x128xbf16>,
    %c88 = arith.constant 88 : index
    %c0_219 = arith.constant 0 : index
    %269 = vector.load %arg9[%c88, %c0_219] : memref<128x128xf32, #tpu.memory_space<vmem>>, vector<1x128xf32>
    %270 = arith.truncf %269 : vector<1x128xf32> to vector<1x128xbf16>
    %c0_220 = arith.constant 0 : index
    %c17_221 = arith.constant 17 : index
    %c0_222 = arith.constant 0 : index
    %271 = vector.load %arg6[%c0_220, %c17_221, %c0_222] : memref<1x32x128xbf16, #tpu.memory_space<vmem>>, vector<1x1x128xbf16>
    %272 = vector.shape_cast %271 : vector<1x1x128xbf16> to vector<1x128xbf16>
    %273 = vector.shape_cast %270 : vector<1x128xbf16> to vector<1x1x128xbf16>
    tpu.vector_store %arg6[%c0_220, %c17_221, %c0_222], %273 {strides = array<i32>} : memref<1x32x128xbf16, #tpu.memory_space<vmem>>, vector<1x1x128xbf16>,
    %c90 = arith.constant 90 : index
    %c0_223 = arith.constant 0 : index
    %274 = vector.load %arg9[%c90, %c0_223] : memref<128x128xf32, #tpu.memory_space<vmem>>, vector<1x128xf32>
    %275 = arith.truncf %274 : vector<1x128xf32> to vector<1x128xbf16>
    %c0_224 = arith.constant 0 : index
    %c18_225 = arith.constant 18 : index
    %c0_226 = arith.constant 0 : index
    %276 = vector.load %arg6[%c0_224, %c18_225, %c0_226] : memref<1x32x128xbf16, #tpu.memory_space<vmem>>, vector<1x1x128xbf16>
    %277 = vector.shape_cast %276 : vector<1x1x128xbf16> to vector<1x128xbf16>
    %278 = vector.shape_cast %275 : vector<1x128xbf16> to vector<1x1x128xbf16>
    tpu.vector_store %arg6[%c0_224, %c18_225, %c0_226], %278 {strides = array<i32>} : memref<1x32x128xbf16, #tpu.memory_space<vmem>>, vector<1x1x128xbf16>,
    %c92 = arith.constant 92 : index
    %c0_227 = arith.constant 0 : index
    %279 = vector.load %arg9[%c92, %c0_227] : memref<128x128xf32, #tpu.memory_space<vmem>>, vector<1x128xf32>
    %280 = arith.truncf %279 : vector<1x128xf32> to vector<1x128xbf16>
    %c0_228 = arith.constant 0 : index
    %c19_229 = arith.constant 19 : index
    %c0_230 = arith.constant 0 : index
    %281 = vector.load %arg6[%c0_228, %c19_229, %c0_230] : memref<1x32x128xbf16, #tpu.memory_space<vmem>>, vector<1x1x128xbf16>
    %282 = vector.shape_cast %281 : vector<1x1x128xbf16> to vector<1x128xbf16>
    %283 = vector.shape_cast %280 : vector<1x128xbf16> to vector<1x1x128xbf16>
    tpu.vector_store %arg6[%c0_228, %c19_229, %c0_230], %283 {strides = array<i32>} : memref<1x32x128xbf16, #tpu.memory_space<vmem>>, vector<1x1x128xbf16>,
    %c112 = arith.constant 112 : index
    %c0_231 = arith.constant 0 : index
    %284 = vector.load %arg9[%c112, %c0_231] : memref<128x128xf32, #tpu.memory_space<vmem>>, vector<1x128xf32>
    %285 = arith.truncf %284 : vector<1x128xf32> to vector<1x128xbf16>
    %c0_232 = arith.constant 0 : index
    %c20_233 = arith.constant 20 : index
    %c0_234 = arith.constant 0 : index
    %286 = vector.load %arg6[%c0_232, %c20_233, %c0_234] : memref<1x32x128xbf16, #tpu.memory_space<vmem>>, vector<1x1x128xbf16>
    %287 = vector.shape_cast %286 : vector<1x1x128xbf16> to vector<1x128xbf16>
    %288 = vector.shape_cast %285 : vector<1x128xbf16> to vector<1x1x128xbf16>
    tpu.vector_store %arg6[%c0_232, %c20_233, %c0_234], %288 {strides = array<i32>} : memref<1x32x128xbf16, #tpu.memory_space<vmem>>, vector<1x1x128xbf16>,
    %c114 = arith.constant 114 : index
    %c0_235 = arith.constant 0 : index
    %289 = vector.load %arg9[%c114, %c0_235] : memref<128x128xf32, #tpu.memory_space<vmem>>, vector<1x128xf32>
    %290 = arith.truncf %289 : vector<1x128xf32> to vector<1x128xbf16>
    %c0_236 = arith.constant 0 : index
    %c21_237 = arith.constant 21 : index
    %c0_238 = arith.constant 0 : index
    %291 = vector.load %arg6[%c0_236, %c21_237, %c0_238] : memref<1x32x128xbf16, #tpu.memory_space<vmem>>, vector<1x1x128xbf16>
    %292 = vector.shape_cast %291 : vector<1x1x128xbf16> to vector<1x128xbf16>
    %293 = vector.shape_cast %290 : vector<1x128xbf16> to vector<1x1x128xbf16>
    tpu.vector_store %arg6[%c0_236, %c21_237, %c0_238], %293 {strides = array<i32>} : memref<1x32x128xbf16, #tpu.memory_space<vmem>>, vector<1x1x128xbf16>,
    %c116 = arith.constant 116 : index
    %c0_239 = arith.constant 0 : index
    %294 = vector.load %arg9[%c116, %c0_239] : memref<128x128xf32, #tpu.memory_space<vmem>>, vector<1x128xf32>
    %295 = arith.truncf %294 : vector<1x128xf32> to vector<1x128xbf16>
    %c0_240 = arith.constant 0 : index
    %c22_241 = arith.constant 22 : index
    %c0_242 = arith.constant 0 : index
    %296 = vector.load %arg6[%c0_240, %c22_241, %c0_242] : memref<1x32x128xbf16, #tpu.memory_space<vmem>>, vector<1x1x128xbf16>
    %297 = vector.shape_cast %296 : vector<1x1x128xbf16> to vector<1x128xbf16>
    %298 = vector.shape_cast %295 : vector<1x128xbf16> to vector<1x1x128xbf16>
    tpu.vector_store %arg6[%c0_240, %c22_241, %c0_242], %298 {strides = array<i32>} : memref<1x32x128xbf16, #tpu.memory_space<vmem>>, vector<1x1x128xbf16>,
    %c118 = arith.constant 118 : index
    %c0_243 = arith.constant 0 : index
    %299 = vector.load %arg9[%c118, %c0_243] : memref<128x128xf32, #tpu.memory_space<vmem>>, vector<1x128xf32>
    %300 = arith.truncf %299 : vector<1x128xf32> to vector<1x128xbf16>
    %c0_244 = arith.constant 0 : index
    %c23_245 = arith.constant 23 : index
    %c0_246 = arith.constant 0 : index
    %301 = vector.load %arg6[%c0_244, %c23_245, %c0_246] : memref<1x32x128xbf16, #tpu.memory_space<vmem>>, vector<1x1x128xbf16>
    %302 = vector.shape_cast %301 : vector<1x1x128xbf16> to vector<1x128xbf16>
    %303 = vector.shape_cast %300 : vector<1x128xbf16> to vector<1x1x128xbf16>
    tpu.vector_store %arg6[%c0_244, %c23_245, %c0_246], %303 {strides = array<i32>} : memref<1x32x128xbf16, #tpu.memory_space<vmem>>, vector<1x1x128xbf16>,
    %c120 = arith.constant 120 : index
    %c0_247 = arith.constant 0 : index
    %304 = vector.load %arg9[%c120, %c0_247] : memref<128x128xf32, #tpu.memory_space<vmem>>, vector<1x128xf32>
    %305 = arith.truncf %304 : vector<1x128xf32> to vector<1x128xbf16>
    %c0_248 = arith.constant 0 : index
    %c24_249 = arith.constant 24 : index
    %c0_250 = arith.constant 0 : index
    %306 = vector.load %arg6[%c0_248, %c24_249, %c0_250] : memref<1x32x128xbf16, #tpu.memory_space<vmem>>, vector<1x1x128xbf16>
    %307 = vector.shape_cast %306 : vector<1x1x128xbf16> to vector<1x128xbf16>
    %308 = vector.shape_cast %305 : vector<1x128xbf16> to vector<1x1x128xbf16>
    tpu.vector_store %arg6[%c0_248, %c24_249, %c0_250], %308 {strides = array<i32>} : memref<1x32x128xbf16, #tpu.memory_space<vmem>>, vector<1x1x128xbf16>,
    return
  }
  func.func @transform_0(%arg0: i32) -> (i32, i32, i32) {
    %c0_i32 = arith.constant 0 : i32
    %c0_i32_0 = arith.constant 0 : i32
    %c0_i32_1 = arith.constant 0 : i32
    return %arg0, %c0_i32, %c0_i32_0 : i32, i32, i32
  }
  func.func @transform_1(%arg0: i32) -> (i32, i32) {
    %c0_i32 = arith.constant 0 : i32
    %c0_i32_0 = arith.constant 0 : i32
    %c0_i32_1 = arith.constant 0 : i32
    return %c0_i32, %c0_i32_0 : i32, i32
  }
  func.func @transform_2(%arg0: i32) -> (i32, i32) {
    %c0_i32 = arith.constant 0 : i32
    %c0_i32_0 = arith.constant 0 : i32
    %c0_i32_1 = arith.constant 0 : i32
    return %c0_i32, %c0_i32_0 : i32, i32
  }
  func.func @transform_3(%arg0: i32) -> (i32, i32, i32) {
    %c0_i32 = arith.constant 0 : i32
    %c0_i32_0 = arith.constant 0 : i32
    %c0_i32_1 = arith.constant 0 : i32
    %c0_i32_2 = arith.constant 0 : i32
    return %c0_i32, %c0_i32_0, %c0_i32_1 : i32, i32, i32
  }
  func.func @transform_4(%arg0: i32) -> (i32, i32) {
    %c0_i32 = arith.constant 0 : i32
    %c0_i32_0 = arith.constant 0 : i32
    %c0_i32_1 = arith.constant 0 : i32
    return %c0_i32, %c0_i32_0 : i32, i32
  }
  func.func @transform_5(%arg0: i32) -> (i32, i32, i32) {
    %c0_i32 = arith.constant 0 : i32
    %c0_i32_0 = arith.constant 0 : i32
    %c0_i32_1 = arith.constant 0 : i32
    return %arg0, %c0_i32, %c0_i32_0 : i32, i32, i32
  }
}

module attributes {stable_mosaic.version = 11 : i64} {
  func.func @_fc_stack_kernel(%arg0: i32, %arg1: memref<2x512xbf16, #tpu.memory_space<vmem>>, %arg2: memref<512x128xbf16, #tpu.memory_space<vmem>>, %arg3: memref<1x128xf32, #tpu.memory_space<vmem>>, %arg4: memref<128x128xbf16, #tpu.memory_space<vmem>>, %arg5: memref<1x128xf32, #tpu.memory_space<vmem>>, %arg6: memref<128x128xbf16, #tpu.memory_space<vmem>>, %arg7: memref<1x128xf32, #tpu.memory_space<vmem>>, %arg8: memref<2x128xf32, #tpu.memory_space<vmem>>) attributes {dimension_semantics = [#tpu.dimension_semantics<parallel>], iteration_bounds = array<i64: 1>, scalar_prefetch = 0 : i64, scratch_operands = 0 : i64, tpu.core_type = #tpu.core_type<tc>, window_params = [{transform_indices = @transform_0, window_bounds = array<i64: 2, 512>}, {pipeline_mode = #tpu.pipeline_mode<synchronous>, transform_indices = @transform_1, window_bounds = array<i64: 512, 128>}, {pipeline_mode = #tpu.pipeline_mode<synchronous>, transform_indices = @transform_2, window_bounds = array<i64: 1, 128>}, {pipeline_mode = #tpu.pipeline_mode<synchronous>, transform_indices = @transform_3, window_bounds = array<i64: 128, 128>}, {pipeline_mode = #tpu.pipeline_mode<synchronous>, transform_indices = @transform_4, window_bounds = array<i64: 1, 128>}, {pipeline_mode = #tpu.pipeline_mode<synchronous>, transform_indices = @transform_5, window_bounds = array<i64: 128, 128>}, {pipeline_mode = #tpu.pipeline_mode<synchronous>, transform_indices = @transform_6, window_bounds = array<i64: 1, 128>}, {transform_indices = @transform_7, window_bounds = array<i64: 2, 128>}]} {
    %c0 = arith.constant 0 : index
    %c0_0 = arith.constant 0 : index
    %0 = vector.load %arg1[%c0, %c0_0] : memref<2x512xbf16, #tpu.memory_space<vmem>>, vector<2x512xbf16>
    %c0_1 = arith.constant 0 : index
    %c0_2 = arith.constant 0 : index
    %1 = vector.load %arg2[%c0_1, %c0_2] : memref<512x128xbf16, #tpu.memory_space<vmem>>, vector<512x128xbf16>
    %cst = arith.constant dense<0.000000e+00> : vector<2x128xf32>
    %2 = tpu.matmul %0, %1, %cst {dimension_numbers = #tpu.dot_dimension_numbers<[1], [0], [0], [1], [0, 0, 1, 1], [], []>} : vector<2x512xbf16>, vector<512x128xbf16>, vector<2x128xf32> -> vector<2x128xf32>
    %c0_3 = arith.constant 0 : index
    %c0_4 = arith.constant 0 : index
    %3 = vector.load %arg3[%c0_3, %c0_4] : memref<1x128xf32, #tpu.memory_space<vmem>>, vector<1x128xf32>
    %4 = vector.broadcast %3 : vector<1x128xf32> to vector<2x128xf32>
    %5 = arith.addf %2, %4 : vector<2x128xf32>
    %cst_5 = arith.constant 0.000000e+00 : f32
    %6 = vector.broadcast %cst_5 : f32 to vector<2x128xf32>
    %7 = arith.maximumf %5, %6 : vector<2x128xf32>
    %8 = arith.truncf %7 : vector<2x128xf32> to vector<2x128xbf16>
    %c0_6 = arith.constant 0 : index
    %c0_7 = arith.constant 0 : index
    %9 = vector.load %arg4[%c0_6, %c0_7] : memref<128x128xbf16, #tpu.memory_space<vmem>>, vector<128x128xbf16>
    %cst_8 = arith.constant dense<0.000000e+00> : vector<2x128xf32>
    %10 = tpu.matmul %8, %9, %cst_8 {dimension_numbers = #tpu.dot_dimension_numbers<[1], [0], [0], [1], [0, 0, 1, 1], [], []>} : vector<2x128xbf16>, vector<128x128xbf16>, vector<2x128xf32> -> vector<2x128xf32>
    %c0_9 = arith.constant 0 : index
    %c0_10 = arith.constant 0 : index
    %11 = vector.load %arg5[%c0_9, %c0_10] : memref<1x128xf32, #tpu.memory_space<vmem>>, vector<1x128xf32>
    %12 = vector.broadcast %11 : vector<1x128xf32> to vector<2x128xf32>
    %13 = arith.addf %10, %12 : vector<2x128xf32>
    %cst_11 = arith.constant 0.000000e+00 : f32
    %14 = vector.broadcast %cst_11 : f32 to vector<2x128xf32>
    %15 = arith.maximumf %13, %14 : vector<2x128xf32>
    %16 = arith.truncf %15 : vector<2x128xf32> to vector<2x128xbf16>
    %c0_12 = arith.constant 0 : index
    %c0_13 = arith.constant 0 : index
    %17 = vector.load %arg6[%c0_12, %c0_13] : memref<128x128xbf16, #tpu.memory_space<vmem>>, vector<128x128xbf16>
    %cst_14 = arith.constant dense<0.000000e+00> : vector<2x128xf32>
    %18 = tpu.matmul %16, %17, %cst_14 {dimension_numbers = #tpu.dot_dimension_numbers<[1], [0], [0], [1], [0, 0, 1, 1], [], []>} : vector<2x128xbf16>, vector<128x128xbf16>, vector<2x128xf32> -> vector<2x128xf32>
    %c0_15 = arith.constant 0 : index
    %c0_16 = arith.constant 0 : index
    %19 = vector.load %arg7[%c0_15, %c0_16] : memref<1x128xf32, #tpu.memory_space<vmem>>, vector<1x128xf32>
    %20 = vector.broadcast %19 : vector<1x128xf32> to vector<2x128xf32>
    %21 = arith.addf %18, %20 : vector<2x128xf32>
    %c0_17 = arith.constant 0 : index
    %c0_18 = arith.constant 0 : index
    %22 = vector.load %arg8[%c0_17, %c0_18] : memref<2x128xf32, #tpu.memory_space<vmem>>, vector<2x128xf32>
    tpu.vector_store %arg8[%c0_17, %c0_18], %21 {strides = array<i32>} : memref<2x128xf32, #tpu.memory_space<vmem>>, vector<2x128xf32>,
    return
  }
  func.func @transform_0(%arg0: i32) -> (i32, i32) {
    %c0_i32 = arith.constant 0 : i32
    %c0_i32_0 = arith.constant 0 : i32
    return %arg0, %c0_i32 : i32, i32
  }
  func.func @transform_1(%arg0: i32) -> (i32, i32) {
    %c0_i32 = arith.constant 0 : i32
    %c0_i32_0 = arith.constant 0 : i32
    %c0_i32_1 = arith.constant 0 : i32
    return %c0_i32, %c0_i32_0 : i32, i32
  }
  func.func @transform_2(%arg0: i32) -> (i32, i32) {
    %c0_i32 = arith.constant 0 : i32
    %c0_i32_0 = arith.constant 0 : i32
    %c0_i32_1 = arith.constant 0 : i32
    return %c0_i32, %c0_i32_0 : i32, i32
  }
  func.func @transform_3(%arg0: i32) -> (i32, i32) {
    %c0_i32 = arith.constant 0 : i32
    %c0_i32_0 = arith.constant 0 : i32
    %c0_i32_1 = arith.constant 0 : i32
    return %c0_i32, %c0_i32_0 : i32, i32
  }
  func.func @transform_4(%arg0: i32) -> (i32, i32) {
    %c0_i32 = arith.constant 0 : i32
    %c0_i32_0 = arith.constant 0 : i32
    %c0_i32_1 = arith.constant 0 : i32
    return %c0_i32, %c0_i32_0 : i32, i32
  }
  func.func @transform_5(%arg0: i32) -> (i32, i32) {
    %c0_i32 = arith.constant 0 : i32
    %c0_i32_0 = arith.constant 0 : i32
    %c0_i32_1 = arith.constant 0 : i32
    return %c0_i32, %c0_i32_0 : i32, i32
  }
  func.func @transform_6(%arg0: i32) -> (i32, i32) {
    %c0_i32 = arith.constant 0 : i32
    %c0_i32_0 = arith.constant 0 : i32
    %c0_i32_1 = arith.constant 0 : i32
    return %c0_i32, %c0_i32_0 : i32, i32
  }
  func.func @transform_7(%arg0: i32) -> (i32, i32) {
    %c0_i32 = arith.constant 0 : i32
    %c0_i32_0 = arith.constant 0 : i32
    return %arg0, %c0_i32 : i32, i32
  }
}

</mosaic_0001>

<bundles_post_ra>
// kernel: net_forward.3
= control target key start
LH: loop header
LB: loop body
LE: loop exit
PB: predicated region body
PF: predicated region fallthrough
CT: control target
= control target key end

     0   :  { %v112_v30 = vlaneseq  ;;  %v872_v34 = vmov 1966171168   ;;  %v873_v37 = vmov 0.0   ;;  %s1102_s0 = inlined_call_operand.vmem [shape: bf16[2,512], index: 0, kind: input, shape index: {}]   ;;  %s1103_s1 = inlined_call_operand.vmem [shape: bf16[512,128], index: 1, kind: input, shape index: {}]   ;;  %s1104_s2 = inlined_call_operand.vmem [shape: f32[1,128], index: 2, kind: input, shape index: {}]   ;;  %s1105_s3 = inlined_call_operand.vmem [shape: bf16[128,128], index: 3, kind: input, shape index: {}]   ;;  %s1106_s4 = inlined_call_operand.vmem [shape: f32[1,128], index: 4, kind: input, shape index: {}]   ;;  %s1107_s5 = inlined_call_operand.vmem [shape: bf16[128,128], index: 5, kind: input, shape index: {}]   ;;  %s1108_s6 = inlined_call_operand.vmem [shape: f32[1,128], index: 6, kind: input, shape index: {}]   ;;  %s1109_s7 = inlined_call_operand.hbm [shape: f32[2,128], index: 7, kind: output, shape index: {}]  }
   0x1   :  { %v800_v0 = vld [vmem:[%s1103_s1 + $0x40] sm:$0xff]   ;;  %v804_v4 = vld [vmem:[%s1103_s1 + $0x48] sm:$0xff]   ;;  %v808_v8 = vld [vmem:[%s1103_s1 + $0x50] sm:$0xff]   ;;  %v110_v35 = vunpack.c.l.s4 %v872_v34 }
   0x2   :  { %v801_v1 = vld [vmem:[%s1103_s1 + $0xc0] sm:$0xff]   ;;  %694 = vmatprep.subr.bf16.mxu0 %v800_v0  ;;  %v805_v5 = vld [vmem:[%s1103_s1 + $0xc8] sm:$0xff]   ;;  %v809_v9 = vld [vmem:[%s1103_s1 + $0xd0] sm:$0xff]   ;;  %v113_v36 = vshrl.u32 %v112_v30, 7 }
   0x3   :  { %v802_v2 = vld [vmem:[%s1103_s1] sm:$0xff]   ;;  %716 = vmatprep.subr.bf16.mxu1 %v801_v1  ;;  %v806_v6 = vld [vmem:[%s1103_s1 + $0x8] sm:$0xff]   ;;  %v810_v10 = vld [vmem:[%s1103_s1 + $0x10] sm:$0xff]   ;;  %v111_v39 = vunpack.c.0.s8 %v110_v35 }
   0x4   :  { %v803_v3 = vld [vmem:[%s1103_s1 + $0x80] sm:$0xff]   ;;  %695 = vmatpush3.bf16.msra.mxu0 %v802_v2  ;;  %v807_v7 = vld [vmem:[%s1103_s1 + $0x88] sm:$0xff]   ;;  %v811_v11 = vld [vmem:[%s1103_s1 + $0x90] sm:$0xff]  }
   0x5   :  { %717 = vmatpush3.bf16.msra.mxu1 %v803_v3  ;;  %696 = vmatprep.subr.bf16.mxu0 %v804_v4  ;;  %v812_v12 = vld [vmem:[%s1103_s1 + $0x58] sm:$0xff]   ;;  %v816_v16 = vld [vmem:[%s1103_s1 + $0x60] sm:$0xff]   ;;  %v820_v20 = vld [vmem:[%s1103_s1 + $0x68] sm:$0xff]   ;;  %v114_v40 = vsub.s32 %v111_v39, %v113_v36 }
   0x6   :  { %718 = vmatprep.subr.bf16.mxu1 %v805_v5  ;;  %v813_v13 = vld [vmem:[%s1103_s1 + $0xd8] sm:$0xff]   ;;  %v817_v17 = vld [vmem:[%s1103_s1 + $0xe0] sm:$0xff]   ;;  %v821_v21 = vld [vmem:[%s1103_s1 + $0xe8] sm:$0xff]  }
   0x7   :  { %v814_v14 = vld [vmem:[%s1103_s1 + $0x18] sm:$0xff]   ;;  %v818_v18 = vld [vmem:[%s1103_s1 + $0x20] sm:$0xff]   ;;  %v822_v22 = vld [vmem:[%s1103_s1 + $0x28] sm:$0xff]  }
   0x8   :  { %697 = vmatpush3.bf16.msra.mxu0 %v806_v6  ;;  %v815_v15 = vld [vmem:[%s1103_s1 + $0x98] sm:$0xff]   ;;  %v819_v19 = vld [vmem:[%s1103_s1 + $0xa0] sm:$0xff]   ;;  %v823_v23 = vld [vmem:[%s1103_s1 + $0xa8] sm:$0xff]  }
   0x9   :  { %719 = vmatpush3.bf16.msra.mxu1 %v807_v7  ;;  %698 = vmatprep.subr.bf16.mxu0 %v808_v8  ;;  %v824_v24 = vld [vmem:[%s1103_s1 + $0x70] sm:$0xff]   ;;  %v828_v28 = vld [vmem:[%s1103_s1 + $0x78] sm:$0xff]   ;;  %v643_v33 = vld.sshfl [vmem:[%s1102_s0] sm:$0x33 pattern:$0x75316420] }
   0xa   :  { %720 = vmatprep.subr.bf16.mxu1 %v809_v9  ;;  %v825_v25 = vld [vmem:[%s1103_s1 + $0xf0] sm:$0xff]   ;;  %v829_v29 = vld [vmem:[%s1103_s1 + $0xf8] sm:$0xff]   ;;  %v108_v38 = vcombine.high %v643_v33, %v643_v33  ;;  %v832_v41 = vld [vmem:[%s1105_s3] sm:$0xff]   ;;  %v115_v43 = vrot.slane %v643_v33, %v114_v40 }
   0xb   :  { %v826_v26 = vld [vmem:[%s1103_s1 + $0x30] sm:$0xff]   ;;  %v830_v31 = vld [vmem:[%s1103_s1 + $0x38] sm:$0xff]   ;;  %v833_v46 = vld [vmem:[%s1105_s3 + $0x8] sm:$0xff]  }
   0xc   :  { %699 = vmatpush3.bf16.msra.mxu0 %v810_v10  ;;  %v827_v27 = vld [vmem:[%s1103_s1 + $0xb0] sm:$0xff]   ;;  %v831_v32 = vld [vmem:[%s1103_s1 + $0xb8] sm:$0xff]   ;;  %v122_v42 = vrot.slane %v108_v38, %v114_v40  ;;  %v123_v45 = vcombine.high %v115_v43, %v115_v43 }
   0xd   :  { %721 = vmatpush3.bf16.msra.mxu1 %v811_v11  ;;  %700 = vmatprep.subr.bf16.mxu0 %v812_v12 }
   0xe   :  { %722 = vmatprep.subr.bf16.mxu1 %v813_v13  ;;  %353 = vmatprep.mubr.bf16.mxu0 %v122_v42  ;;  %v124_v44 = vcombine.high %v122_v42, %v122_v42 }
  0x10   :  { %701 = vmatpush3.bf16.msra.mxu0 %v814_v14  ;;  %393 = vmatprep.mubr.bf16.mxu1 %v124_v44 }
  0x11   :  { %723 = vmatpush3.bf16.msra.mxu1 %v815_v15  ;;  %702 = vmatprep.subr.bf16.mxu0 %v816_v16 }
  0x12   :  { %724 = vmatprep.subr.bf16.mxu1 %v817_v17 }
  0x14   :  { %703 = vmatpush3.bf16.msra.mxu0 %v818_v18 }
  0x15   :  { %725 = vmatpush3.bf16.msra.mxu1 %v819_v19  ;;  %704 = vmatprep.subr.bf16.mxu0 %v820_v20 }
  0x16   :  { %726 = vmatprep.subr.bf16.mxu1 %v821_v21 }
  0x18   :  { %705 = vmatpush3.bf16.msra.mxu0 %v822_v22 }
  0x19   :  { %727 = vmatpush3.bf16.msra.mxu1 %v823_v23  ;;  %706 = vmatprep.subr.bf16.mxu0 %v824_v24 }
  0x1a   :  { %728 = vmatprep.subr.bf16.mxu1 %v825_v25 }
  0x1c   :  { %707 = vmatpush3.bf16.msra.mxu0 %v826_v26 }
  0x1d   :  { %729 = vmatpush3.bf16.msra.mxu1 %v827_v27  ;;  %708 = vmatprep.subr.bf16.mxu0 %v828_v28 }
  0x1e   :  { %730 = vmatprep.subr.bf16.mxu1 %v829_v29 }
  0x20   :  { %709 = vmatpush3.bf16.msra.mxu0 %v830_v31 }
  0x21   :  { %731 = vmatpush3.bf16.msra.mxu1 %v831_v32  ;;  %756 = vmatprep.subr.bf16.mxu0 %v873_v37 }
  0x22   :  { %776 = vmatprep.subr.bf16.mxu1 %v873_v37 }
  0x23   :  { %354 = vmatmul.mubr.bf16.vlgmr.msra.gmra.mrb[0].mxu0 %v115_v43 }
  0x24   :  { %757 = vmatpush3.bf16.msra.mxu0 %v832_v41  ;;  %394 = vmatmul.mubr.bf16.vlgmr.msra.gmra.mrb[0].mxu1 %v123_v45 }
  0x25   :  { %758 = vmatprep.subr.bf16.mxu0 %v873_v37 }
  0x26   :  { %12 = vsyncpa [#allocation3], 0  ;;  %v834_v47 = vld [vmem:[%s1105_s3 + $0x10] sm:$0xff]   ;;  %v835_v48 = vld [vmem:[%s1105_s3 + $0x18] sm:$0xff]   ;;  %vm874_vm0 = vmmov 0   ;;  %s875_s30 = smov [#allocation2]  }
  0x27   :  { %v836_v49 = vld [vmem:[%s1105_s3 + $0x20] sm:$0xff]   ;;  %v837_v50 = vld [vmem:[%s1105_s3 + $0x28] sm:$0xff]   ;;  %v838_v51 = vld [vmem:[%s1105_s3 + $0x30] sm:$0xff]   ;;  %772 = vmatprep.mubr.msk.bf16.mxu0 %vm874_vm0, %v873_v37  ;;  %792 = vmatprep.mubr.msk.bf16.mxu1 %vm874_vm0, %v873_v37  ;;  %s634_s8 = sshll.u32 %s875_s30, 4  ;;  %s635_s8 = int_to_ptr.vmem [resolvable:$true] %s634_s8 }
  0x28   :  { %759 = vmatpush3.bf16.msra.mxu0 %v833_v46  ;;  %v839_v52 = vld [vmem:[%s1105_s3 + $0x38] sm:$0xff]   ;;  %v840_v53 = vld [vmem:[%s1107_s5] sm:$0xff]   ;;  %v841_v54 = vld [vmem:[%s1107_s5 + $0x8] sm:$0xff]   ;;  %p853_p1 = scmp.lt.s32.totalorder %s635_s8, %s635_s8 }
  0x29   :  { %760 = vmatprep.subr.bf16.mxu0 %v873_v37  ;;  %777 = vmatpush3.bf16.msra.mxu1 %v840_v53  ;;  %v842_v55 = vld [vmem:[%s1107_s5 + $0x10] sm:$0xff]   ;;  %v843_v56 = vld [vmem:[%s1107_s5 + $0x18] sm:$0xff]   ;;  %v844_v57 = vld [vmem:[%s1107_s5 + $0x20] sm:$0xff]  }
  0x2a   :  { %778 = vmatprep.subr.bf16.mxu1 %v873_v37  ;;  %v845_v58 = vld [vmem:[%s1107_s5 + $0x28] sm:$0xff]   ;;  %v642_v60 = vld [vmem:[%s1104_s2] ss:$0 sm:$0xff]  ;;  %v846_v10 = vld [vmem:[%s1107_s5 + $0x30] sm:$0xff]  }
  0x2b   :  { %v847_v11 = vld [vmem:[%s1107_s5 + $0x38] sm:$0xff]   ;;  %v676_v12 = vld [vmem:[%s1106_s4] ss:$0 sm:$0xff]  ;;  %s848_s4 = scalar_lea.vmem %s635_s8, 32 }
  0x2c   :  { %761 = vmatpush3.bf16.msra.mxu0 %v834_v47  ;;  %v685_v20 = vld [vmem:[%s1108_s6] ss:$0 sm:$0xff]  ;;  %p849_p0 = scmp.ne.s32.totalorder %s635_s8, %s848_s4  ;;  %p854_p2 = scmp.lt.s32.totalorder %s848_s4, %s848_s4 }
  0x2d   :  { %762 = vmatprep.subr.bf16.mxu0 %v873_v37  ;;  %779 = vmatpush3.bf16.msra.mxu1 %v841_v54 }
  0x2e   :  { %780 = vmatprep.subr.bf16.mxu1 %v873_v37  ;;  %p855_p3 = por %p854_p2, %p853_p1 }
  0x30   :  { %763 = vmatpush3.bf16.msra.mxu0 %v835_v48  ;;  %p856_p4 = pnand %p855_p3, %p849_p0 }
  0x31   :  { %764 = vmatprep.subr.bf16.mxu0 %v873_v37  ;;  %781 = vmatpush3.bf16.msra.mxu1 %v842_v55 }
  0x32   :  { %782 = vmatprep.subr.bf16.mxu1 %v873_v37 }
  0x34   :  { %765 = vmatpush3.bf16.msra.mxu0 %v836_v49 }
  0x35   :  { %766 = vmatprep.subr.bf16.mxu0 %v873_v37  ;;  %783 = vmatpush3.bf16.msra.mxu1 %v843_v56 }
  0x36   :  { %784 = vmatprep.subr.bf16.mxu1 %v873_v37 }
  0x38   :  { %767 = vmatpush3.bf16.msra.mxu0 %v837_v50 }
  0x39   :  { %768 = vmatprep.subr.bf16.mxu0 %v873_v37  ;;  %785 = vmatpush3.bf16.msra.mxu1 %v844_v57 }
  0x3a   :  { %786 = vmatprep.subr.bf16.mxu1 %v873_v37 }
  0x3c   :  { %769 = vmatpush3.bf16.msra.mxu0 %v838_v51 }
  0x3d   :  { %770 = vmatprep.subr.bf16.mxu0 %v873_v37  ;;  %787 = vmatpush3.bf16.msra.mxu1 %v845_v58 }
  0x3e   :  { %788 = vmatprep.subr.bf16.mxu1 %v873_v37 }
  0x40   :  { %771 = vmatpush3.bf16.msra.mxu0 %v839_v52 }
  0x41   :  { %789 = vmatpush3.bf16.msra.mxu1 %v846_v10 }
  0x42   :  { %790 = vmatprep.subr.bf16.mxu1 %v873_v37 }
  0x45   :  { %791 = vmatpush3.bf16.msra.mxu1 %v847_v11 }
  0xf6   :  { %v710_v59 = vpop.f32.mrb[0].mxu0 }
  0xf7   :  { %v711_v61 = vpop.f32.mrb[1].mxu0  ;;  %v732_v62 = vpop.f32.mrb[0].mxu1 }
  0xf8   :  { %v712_v63 = vadd.f32 %v711_v61, %v710_v59  ;;  %v713_v0 = vpop.f32.mrb[2].mxu0  ;;  %v733_v1 = vpop.f32.mrb[1].mxu1 }
  0xf9   :  { %v714_v2 = vpop.f32.mrb[3].mxu0  ;;  %v734_v4 = vadd.f32 %v733_v1, %v732_v62  ;;  %v735_v5 = vpop.f32.mrb[2].mxu1 }
  0xfa   :  { %v356_v3 = vadd.f32 %v712_v63, %v642_v60  ;;  %v736_v6 = vpop.f32.mrb[3].mxu1 }
  0xfc   :  { %v396_v7 = vadd.f32 %v734_v4, %v356_v3 }
  0xfe   :  { %v401_v8 = vmax.f32 %v396_v7, 0.0 }
 0x100   :  { %v402_v9 = vpack.c.bf16 %v401_v8, %v401_v8 }
 0x102   :  { %773 = vmatmul.mubr.bf16.vlgmr.msra.gmra.mrb[4].mxu0 %v402_v9 }
 0x1d5   :  { %v508_v13 = vpop.f32.mrb[4].mxu0 }
 0x1d6   :  { %v509_v14 = vadd.f32 %v676_v12, %v508_v13  ;;  %v774_v15 = vpop.f32.mrb[5].mxu0 }
 0x1d7   :  { %v511_v16 = vpop.f32.mrb[6].mxu0 }
 0x1d8   :  { %v514_v17 = vmax.f32 %v509_v14, 0.0  ;;  %v775_v18 = vpop.f32.mrb[7].mxu0 }
 0x1da   :  { %v515_v19 = vpack.c.bf16 %v514_v17, %v514_v17 }
 0x1dc   :  { %793 = vmatmul.mubr.bf16.vlgmr.msra.gmra.mrb[4].mxu1 %v515_v19 }
 0x2af   :  { %v621_v21 = vpop.f32.mrb[4].mxu1 }
 0x2b0   :  { %v622_v22 = vadd.f32 %v685_v20, %v621_v21  ;;  %v794_v23 = vpop.f32.mrb[5].mxu1 }
 0x2b1   :  { %v624_v24 = vpop.f32.mrb[6].mxu1 }
 0x2b2   :  { %627 = vst [vmem:[#allocation2] sm:$0x3] %v622_v22  ;;  %v795_v25 = vpop.f32.mrb[7].mxu1 }
 0x2b3   :  { %859 = shalt.err (!%p856_p4)
}
 0x2b4   :  { %s860_s6 = scalar_lea.hbm %s1109_s7, 32 }
 0x2b5   :  { %p861_p5 = scmp.ne.s32.totalorder %s1109_s7, %s860_s6  ;;  %p864_p6 = scmp.lt.u32.totalorder %s860_s6, %s1109_s7 }
 0x2b7   :  { %p866_p7 = pnand %p864_p6, %p861_p5 }
 0x2b9   :  { %869 = shalt.err (!%p866_p7)
}
 0x2ba   :  { %637 = dma.vmem_to_hbm [thread:$0]  %s635_s8, 32, %s1109_s7, [#allocation3]  }
 0x2bb   :  { %870 = dma.done.wait [#allocation3], 32  }
 0x2bc   :  { %871 = vsyncadd [#allocation3], 4294967264 }
 0x2bd   :  { %641 = vsyncpa [#allocation3], 1 }

// kernel: net_forward.2
= control target key start
LH: loop header
LB: loop body
LE: loop exit
PB: predicated region body
PF: predicated region fallthrough
CT: control target
= control target key end

     0   :  { %s9620_s18 = smov 0   ;;  %s12329_s0 = inlined_call_operand.vmem [shape: bf16[2,208,128], index: 0, kind: input, shape index: {}]   ;;  %s12330_s1 = inlined_call_operand.vmem [shape: bf16[128,512], index: 1, kind: input, shape index: {}]   ;;  %s12331_s2 = inlined_call_operand.vmem [shape: f32[1,128], index: 2, kind: input, shape index: {}]   ;;  %s12332_s3 = inlined_call_operand.vmem [shape: bf16[25,128,128], index: 3, kind: input, shape index: {}]   ;;  %s12333_s4 = inlined_call_operand.vmem [shape: f32[1,128], index: 4, kind: input, shape index: {}]   ;;  %s12334_s5 = inlined_call_operand.vmem [shape: bf16[2,32,128], index: 5, kind: output, shape index: {}]  }
   0x1 LB: > { %s6880_s19 = sadd.s32 4294967295, %s9585_s18   ;;  %p6884_p0 = scmp.ge.s32.totalorder %s9585_s18, 1  ;;  %s9585_s18 = sphi %s9620_s18, %s15_s18  }
   0x2   : > { %p187_p1 = scmp.lt.s32.totalorder %s9585_s18, 3 }
   0x4   : > { %p188_p2 = pnand %p6884_p0, %p187_p1 }
   0x5   : > { %v9317_v0 = vld [vmem:[%s12330_s1 + $0x4] ss:$16 sps:$4 sm:$0xff] (!%p188_p2)   ;;  %p215_p3 = scmp.lt.s32.totalorder (!%p188_p2), %s6880_s19, 1  ;;  %v9319_v1 = vld [vmem:[%s12330_s1] ss:$16 sps:$4 sm:$0xff] (!%p188_p2)   ;;  %v9587_v2 = vmov (!%p188_p2), 0  }
   0x6   : > { %191 = sbr.rel (%p188_p2) target bundleno = 1493 (0x5d5), region = 40  ;;  %644 = vmatprep.mubr.bf16.mxu1 (!%p188_p2), %v9587_v2  ;;  %554 = vmatprep.mubr.bf16.mxu0 (!%p188_p2), %v9587_v2  ;;  %v9320_v3 = vld [vmem:[%s12330_s1 + $0x24] ss:$16 sps:$4 sm:$0xff] (!%p188_p2)   ;;  %v9322_v4 = vld [vmem:[%s12330_s1 + $0x20] ss:$16 sps:$4 sm:$0xff] (!%p188_p2)   ;;  %v9588_v28 = vmov (!%p188_p2), 0.0  }
   0x7   : > { %9289 = vmatprep.subr.bf16.mxu1 (!%p188_p2), %v9317_v0  ;;  %522 = vmatprep.subr.bf16.mxu0 (!%p188_p2), %v9317_v0  ;;  %v9323_v5 = vld [vmem:[%s12330_s1 + $0x44] ss:$16 sps:$4 sm:$0xff] (!%p188_p2)   ;;  %v9325_v6 = vld [vmem:[%s12330_s1 + $0x40] ss:$16 sps:$4 sm:$0xff] (!%p188_p2)   ;;  %v9344_v17 = vld [vmem:[%s12330_s1 + $0xc] ss:$16 sps:$4 sm:$0xff] (!%p188_p2)  }
   0x8   : > { %9297 = vmatpush1.bf16.msra.mxu1 (!%p188_p2), %v9319_v1  ;;  %523 = vmatpush1.bf16.msra.mxu0 (!%p188_p2), %v9319_v1  ;;  %v9326_v7 = vld [vmem:[%s12330_s1 + $0x64] ss:$16 sps:$4 sm:$0xff] (!%p188_p2)   ;;  %v9328_v8 = vld [vmem:[%s12330_s1 + $0x60] ss:$16 sps:$4 sm:$0xff] (!%p188_p2)   ;;  %v9342_v20 = vld [vmem:[%s12330_s1 + $0x8] ss:$16 sps:$4 sm:$0xff] (!%p188_p2)  }
   0x9   : > { %9290 = vmatprep.subr.bf16.mxu1 (!%p188_p2), %v9320_v3  ;;  %524 = vmatprep.subr.bf16.mxu0 (!%p188_p2), %v9320_v3  ;;  %v9329_v9 = vld [vmem:[%s12330_s1 + $0x84] ss:$16 sps:$4 sm:$0xff] (!%p188_p2)   ;;  %v9331_v10 = vld [vmem:[%s12330_s1 + $0x80] ss:$16 sps:$4 sm:$0xff] (!%p188_p2)   ;;  %v9347_v21 = vld [vmem:[%s12330_s1 + $0x2c] ss:$16 sps:$4 sm:$0xff] (!%p188_p2)  }
   0xa   : > { %v9332_v11 = vld [vmem:[%s12330_s1 + $0xa4] ss:$16 sps:$4 sm:$0xff] (!%p188_p2)   ;;  %v9334_v12 = vld [vmem:[%s12330_s1 + $0xa0] ss:$16 sps:$4 sm:$0xff] (!%p188_p2)   ;;  %v9345_v22 = vld [vmem:[%s12330_s1 + $0x28] ss:$16 sps:$4 sm:$0xff] (!%p188_p2)  }
   0xb   : > { %v9335_v13 = vld [vmem:[%s12330_s1 + $0xc4] ss:$16 sps:$4 sm:$0xff] (!%p188_p2)   ;;  %v9337_v14 = vld [vmem:[%s12330_s1 + $0xc0] ss:$16 sps:$4 sm:$0xff] (!%p188_p2)   ;;  %v9351_v23 = vld [vmem:[%s12330_s1 + $0x4c] ss:$16 sps:$4 sm:$0xff] (!%p188_p2)  }
   0xc   : > { %9298 = vmatpush1.bf16.msra.mxu1 (!%p188_p2), %v9322_v4  ;;  %525 = vmatpush1.bf16.msra.mxu0 (!%p188_p2), %v9322_v4  ;;  %v9338_v15 = vld [vmem:[%s12330_s1 + $0xe4] ss:$16 sps:$4 sm:$0xff] (!%p188_p2)   ;;  %v9340_v16 = vld [vmem:[%s12330_s1 + $0xe0] ss:$16 sps:$4 sm:$0xff] (!%p188_p2)   ;;  %v9349_v27 = vld [vmem:[%s12330_s1 + $0x48] ss:$16 sps:$4 sm:$0xff] (!%p188_p2)  }
   0xd   : > { %s12358_s19 = smov (!%p215_p3, %s6880_s19), 1  ;;  %9291 = vmatprep.subr.bf16.mxu1 %v9323_v5  ;;  %526 = vmatprep.subr.bf16.mxu0 %v9323_v5  ;;  %v9378_v24 = vld [vmem:[%s12332_s3 + $0x40] sm:$0xff]   ;;  %v9354_v29 = vld [vmem:[%s12330_s1 + $0x6c] ss:$16 sps:$4 sm:$0xff]   ;;  %v9352_v31 = vld [vmem:[%s12330_s1 + $0x68] ss:$16 sps:$4 sm:$0xff]  }
   0xe   : > { %s7542_s30 = sshll.u32 %s12358_s19, 4  ;;  %s9305_s6 = smul.u32 104, %s12358_s19  ;;  %v9379_v30 = vld [vmem:[%s12332_s3 + $0x48] sm:$0xff]   ;;  %v9380_v49 = vld [vmem:[%s12332_s3 + $0x50] sm:$0xff]   ;;  %v9382_v50 = vld [vmem:[%s12332_s3] sm:$0xff]   ;;  %vm9589_vm0 = vmmov 0  }
   0xf   : > { %s9648_s9 = scalar_lea.vmem %s12334_s5, %s7542_s30  ;;  %v9358_v32 = vld [vmem:[%s12330_s1 + $0x8c] ss:$16 sps:$4 sm:$0xff]   ;;  %v9356_v35 = vld [vmem:[%s12330_s1 + $0x88] ss:$16 sps:$4 sm:$0xff]   ;;  %v9385_v53 = vld [vmem:[%s12332_s3 + $0x10] sm:$0xff]   ;;  %vm6544_vm1 = vcmask 1040384  }
  0x10   : > { %6538 = vst [vmem:[%s9648_s9] sm:$0xf] %v9587_v2  ;;  %6539 = vst [vmem:[%s9648_s9 + $0x4] sm:$0xf] %v9587_v2  ;;  %s9667_s16 = scalar_lea.vmem %s12329_s0, %s9305_s6  ;;  %9299 = vmatpush1.bf16.msra.mxu1 %v9325_v6  ;;  %527 = vmatpush1.bf16.msra.mxu0 %v9325_v6  ;;  %v9361_v36 = vld [vmem:[%s12330_s1 + $0xac] ss:$16 sps:$4 sm:$0xff]   ;;  %v9383_v55 = vld [vmem:[%s12332_s3 + $0x60] sm:$0xff]  }
  0x11   : > { %6540 = vst [vmem:[%s9648_s9 + $0x8] sm:$0xf] %v9587_v2  ;;  %6541 = vst [vmem:[%s9648_s9 + $0xc] sm:$0xf] %v9587_v2  ;;  %9292 = vmatprep.subr.bf16.mxu1 %v9326_v7  ;;  %528 = vmatprep.subr.bf16.mxu0 %v9326_v7  ;;  %v9700_v18 = vld [vmem:[%s9667_s16 + $0x48] sm:$0xff]   ;;  %v9703_v19 = vld [vmem:[%s9667_s16] sm:$0xff]  }
  0x12   : > { %v9724_v25 = vld [vmem:[%s9667_s16 + $0x50] sm:$0xff]   ;;  %v9370_v26 = vld [vmem:[%s9667_s16 + $0x8] sm:$0xff]   ;;  %v9748_v33 = vld [vmem:[%s9667_s16 + $0x58] sm:$0xff]   ;;  %vm6545_vm2 = vsmask.f32 256  ;;  %vm6571_vm3 = vcmask 1041409  }
  0x13   : > { %v9371_v34 = vld [vmem:[%s9667_s16 + $0x10] sm:$0xff]   ;;  %v9359_v37 = vld [vmem:[%s12330_s1 + $0xa8] ss:$16 sps:$4 sm:$0xff]   ;;  %v9365_v38 = vld [vmem:[%s12330_s1 + $0xcc] ss:$16 sps:$4 sm:$0xff]   ;;  %vm6599_vm5 = vcmask 1042434  }
  0x14   : > { %9300 = vmatpush1.bf16.msra.mxu1 %v9328_v8  ;;  %529 = vmatpush1.bf16.msra.mxu0 %v9328_v8  ;;  %v9768_v39 = vld [vmem:[%s9667_s16 + $0x60] sm:$0xff]   ;;  %v9372_v40 = vld [vmem:[%s9667_s16 + $0x18] sm:$0xff]   ;;  %v9374_v45 = vld [vmem:[%s9667_s16 + $0x28] sm:$0xff]   ;;  %vm6572_vm4 = vsmask.f32 1280  ;;  %vm6627_vm13 = vcmask 1043459  }
  0x15   : > { %9293 = vmatprep.subr.bf16.mxu1 %v9329_v9  ;;  %530 = vmatprep.subr.bf16.mxu0 %v9329_v9  ;;  %v9363_v41 = vld [vmem:[%s12330_s1 + $0xc8] ss:$16 sps:$4 sm:$0xff]   ;;  %v9368_v42 = vld [vmem:[%s12330_s1 + $0xec] ss:$16 sps:$4 sm:$0xff]   ;;  %v9373_v44 = vld [vmem:[%s9667_s16 + $0x20] sm:$0xff]  }
  0x16   : > { %v9366_v43 = vld [vmem:[%s12330_s1 + $0xe8] ss:$16 sps:$4 sm:$0xff]   ;;  %v9375_v46 = vld [vmem:[%s9667_s16 + $0x30] sm:$0xff]   ;;  %v9377_v48 = vld [vmem:[%s9667_s16 + $0x40] sm:$0xff]   ;;  %vm6600_vm7 = vsmask.f32 2304 }
  0x17   : > { %v9376_v47 = vld [vmem:[%s9667_s16 + $0x38] sm:$0xff]   ;;  %v9384_v52 = vld [vmem:[%s12332_s3 + $0x8] sm:$0xff]   ;;  %v9388_v56 = vld [vmem:[%s12332_s3 + $0x20] sm:$0xff]   ;;  %vm6559_vm10 = vsmask.f32 7938 }
  0x18   : > { %9301 = vmatpush1.bf16.msra.mxu1 %v9331_v10  ;;  %531 = vmatpush1.bf16.msra.mxu0 %v9331_v10  ;;  %v9381_v51 = vld [vmem:[%s12332_s3 + $0x58] sm:$0xff]   ;;  %v9390_v57 = vld [vmem:[%s12332_s3 + $0x28] sm:$0xff]   ;;  %v9391_v58 = vld [vmem:[%s12332_s3 + $0x30] sm:$0xff]   ;;  %vm6587_vm11 = vsmask.f32 7942 }
  0x19   : > { %9294 = vmatprep.subr.bf16.mxu1 %v9332_v11  ;;  %532 = vmatprep.subr.bf16.mxu0 %v9332_v11  ;;  %v9387_v54 = vld [vmem:[%s12332_s3 + $0x18] sm:$0xff]   ;;  %v9386_v60 = vld [vmem:[%s12332_s3 + $0x68] sm:$0xff]   ;;  %v9389_v61 = vld [vmem:[%s12332_s3 + $0x70] sm:$0xff]   ;;  %vm6628_vm14 = vsmask.f32 3328 }
  0x1a   : > { %v9392_v59 = vld [vmem:[%s12332_s3 + $0x38] sm:$0xff]   ;;  %vm12125_vm6 = vmand %vm6544_vm1, %vm6545_vm2 }
  0x1b   : > { %v9393_v62 = vld [vmem:[%s12332_s3 + $0x78] sm:$0xff]   ;;  %vm12132_vm8 = vmand %vm6571_vm3, %vm6572_vm4 }
  0x1c   : > { %9302 = vmatpush1.bf16.msra.mxu1 %v9334_v12  ;;  %533 = vmatpush1.bf16.msra.mxu0 %v9334_v12  ;;  %vm12144_vm9 = vmand %vm6599_vm5, %vm6600_vm7 }
  0x1d   : > { %9295 = vmatprep.subr.bf16.mxu1 %v9335_v13  ;;  %534 = vmatprep.subr.bf16.mxu0 %v9335_v13  ;;  %vm12164_vm12 = vmand %vm6544_vm1, %vm6559_vm10 }
  0x1e   : > { %vm12175_vm15 = vmand %vm6571_vm3, %vm6587_vm11  ;;  %vm6643_vm3 = vsmask.f32 7950 }
  0x1f   : > { %vm12186_vm1 = vmand %vm6627_vm13, %vm6628_vm14 }
  0x20   : > { %9303 = vmatpush1.bf16.msra.mxu1 %v9337_v14  ;;  %535 = vmatpush1.bf16.msra.mxu0 %v9337_v14  ;;  %vm12226_vm4 = vmand %vm6627_vm13, %vm6643_vm3 }
  0x21   : > { %9296 = vmatprep.subr.bf16.mxu1 %v9338_v15  ;;  %536 = vmatprep.subr.bf16.mxu0 %v9338_v15 }
  0x24   : > { %9304 = vmatpush1.bf16.msra.mxu1 %v9340_v16  ;;  %537 = vmatpush1.bf16.msra.mxu0 %v9340_v16 }
  0x25   : > { %685 = vmatprep.subr.bf16.mxu1 %v9344_v17  ;;  %7989 = vmatprep.subr.bf16.mxu0 %v9588_v28 }
  0x27   : > { %645 = vmatmul.mubr.bf16.vlgmr.msra.gmra.mrb[0].mxu1 %v9700_v18  ;;  %555 = vmatmul.mubr.bf16.vlgmr.msra.gmra.mrb[0].mxu0 %v9703_v19 }
  0x28   : > { %686 = vmatpush1.bf16.msra.mxu1 %v9342_v20  ;;  %654 = vmatprep.mubr.bf16.mxu1 %v9587_v2 }
  0x29   : > { %687 = vmatprep.subr.bf16.mxu1 %v9347_v21  ;;  %564 = vmatprep.mubr.bf16.mxu0 %v9587_v2 }
  0x2a   : > { %7990 = vmatpush3.bf16.msra.mxu0 %v9378_v24 }
  0x2b   : > { %7991 = vmatprep.subr.bf16.mxu0 %v9588_v28 }
  0x2c   : > { %688 = vmatpush1.bf16.msra.mxu1 %v9345_v22 }
  0x2d   : > { %689 = vmatprep.subr.bf16.mxu1 %v9351_v23 }
  0x2e   : > { %7992 = vmatpush3.bf16.msra.mxu0 %v9379_v30 }
  0x2f   : > { %655 = vmatmul.mubr.bf16.gmra.mrb[4].mxu1 %v9724_v25  ;;  %565 = vmatmul.mubr.bf16.gmra.mrb[4].mxu0 %v9370_v26 }
  0x30   : > { %690 = vmatpush1.bf16.msra.mxu1 %v9349_v27  ;;  %664 = vmatprep.mubr.bf16.mxu1 %v9587_v2 }
  0x31   : > { %691 = vmatprep.subr.bf16.mxu1 %v9354_v29  ;;  %574 = vmatprep.mubr.bf16.mxu0 %v9587_v2 }
  0x32   : > { %7993 = vmatprep.subr.bf16.mxu0 %v9588_v28 }
  0x33   : > { %7994 = vmatpush3.bf16.msra.mxu0 %v9380_v49 }
  0x34   : > { %692 = vmatpush1.bf16.msra.mxu1 %v9352_v31  ;;  %7995 = vmatprep.subr.bf16.mxu0 %v9588_v28 }
  0x35   : > { %693 = vmatprep.subr.bf16.mxu1 %v9358_v32 }
  0x37   : > { %665 = vmatmul.mubr.bf16.gmra.mrb[8].mxu1 %v9748_v33  ;;  %575 = vmatmul.mubr.bf16.gmra.mrb[8].mxu0 %v9371_v34 }
  0x38   : > { %694 = vmatpush1.bf16.msra.mxu1 %v9356_v35  ;;  %674 = vmatprep.mubr.bf16.mxu1 %v9587_v2 }
  0x39   : > { %695 = vmatprep.subr.bf16.mxu1 %v9361_v36  ;;  %584 = vmatprep.mubr.bf16.mxu0 %v9587_v2 }
  0x3a   : > { %7996 = vmatpush3.bf16.msra.mxu0 %v9381_v51 }
  0x3b   : > { %7997 = vmatprep.subr.bf16.mxu0 %v9588_v28 }
  0x3c   : > { %696 = vmatpush1.bf16.msra.mxu1 %v9359_v37 }
  0x3d   : > { %697 = vmatprep.subr.bf16.mxu1 %v9365_v38 }
  0x3e   : > { %7998 = vmatpush3.bf16.msra.mxu0 %v9383_v55 }
  0x3f   : > { %675 = vmatmul.mubr.bf16.gmra.mrb[12].mxu1 %v9768_v39  ;;  %585 = vmatmul.mubr.bf16.gmra.mrb[12].mxu0 %v9372_v40 }
  0x40   : > { %698 = vmatpush1.bf16.msra.mxu1 %v9363_v41  ;;  %717 = vmatprep.mubr.bf16.mxu1 %v9587_v2 }
  0x41   : > { %699 = vmatprep.subr.bf16.mxu1 %v9368_v42  ;;  %594 = vmatprep.mubr.bf16.mxu0 %v9587_v2 }
  0x42   : > { %7999 = vmatprep.subr.bf16.mxu0 %v9588_v28 }
  0x43   : > { %8000 = vmatpush3.bf16.msra.mxu0 %v9386_v60 }
  0x44   : > { %700 = vmatpush1.bf16.msra.mxu1 %v9366_v43  ;;  %8001 = vmatprep.subr.bf16.mxu0 %v9588_v28 }
  0x45   : > { %8041 = vmatprep.subr.bf16.mxu1 %v9588_v28 }
  0x47   : > { %718 = vmatmul.mubr.bf16.vlgmr.msra.gmra.mrb[16].mxu1 %v9703_v19  ;;  %595 = vmatmul.mubr.bf16.gmra.mrb[16].mxu0 %v9373_v44 }
  0x48   : > { %727 = vmatprep.mubr.bf16.mxu1 %v9587_v2  ;;  %604 = vmatprep.mubr.bf16.mxu0 %v9587_v2 }
  0x49   : > { %8042 = vmatpush3.bf16.msra.mxu1 %v9382_v50  ;;  %8002 = vmatpush3.bf16.msra.mxu0 %v9389_v61 }
  0x4a   : > { %8043 = vmatprep.subr.bf16.mxu1 %v9588_v28  ;;  %8003 = vmatprep.subr.bf16.mxu0 %v9588_v28 }
  0x4d   : > { %8044 = vmatpush3.bf16.msra.mxu1 %v9384_v52  ;;  %8004 = vmatpush3.bf16.msra.mxu0 %v9393_v62 }
  0x4e   : > { %8045 = vmatprep.subr.bf16.mxu1 %v9588_v28  ;;  %8093 = vmatprep.subr.bf16.mxu0 %v9588_v28 }
  0x4f   : > { %728 = vmatmul.mubr.bf16.gmra.mrb[20].mxu1 %v9370_v26  ;;  %605 = vmatmul.mubr.bf16.gmra.mrb[20].mxu0 %v9374_v45 }
  0x50   : > { %737 = vmatprep.mubr.bf16.mxu1 %v9587_v2  ;;  %614 = vmatprep.mubr.bf16.mxu0 %v9587_v2 }
  0x51   : > { %8046 = vmatpush3.bf16.msra.mxu1 %v9385_v53 }
  0x52   : > { %8047 = vmatprep.subr.bf16.mxu1 %v9588_v28 }
  0x55   : > { %8048 = vmatpush3.bf16.msra.mxu1 %v9387_v54 }
  0x56   : > { %8049 = vmatprep.subr.bf16.mxu1 %v9588_v28 }
  0x57   : > { %738 = vmatmul.mubr.bf16.gmra.mrb[24].mxu1 %v9371_v34  ;;  %615 = vmatmul.mubr.bf16.gmra.mrb[24].mxu0 %v9375_v46 }
  0x58   : > { %747 = vmatprep.mubr.bf16.mxu1 %v9587_v2  ;;  %624 = vmatprep.mubr.bf16.mxu0 %v9587_v2 }
  0x59   : > { %8050 = vmatpush3.bf16.msra.mxu1 %v9388_v56  ;;  %v9966_v56 = vld [vmem:[%s12331_s2] ss:$0 sm:$0xff] }
  0x5a   : > { %8051 = vmatprep.subr.bf16.mxu1 %v9588_v28 }
  0x5d   : > { %8052 = vmatpush3.bf16.msra.mxu1 %v9390_v57 }
  0x5e   : > { %8053 = vmatprep.subr.bf16.mxu1 %v9588_v28 }
  0x5f   : > { %748 = vmatmul.mubr.bf16.gmra.mrb[28].mxu1 %v9372_v40  ;;  %625 = vmatmul.mubr.bf16.gmra.mrb[28].mxu0 %v9376_v47 }
  0x60   : > { %757 = vmatprep.mubr.bf16.mxu1 %v9587_v2  ;;  %634 = vmatprep.mubr.bf16.mxu0 %v9587_v2 }
  0x61   : > { %8054 = vmatpush3.bf16.msra.mxu1 %v9391_v58 }
  0x62   : > { %8055 = vmatprep.subr.bf16.mxu1 %v9588_v28 }
  0x65   : > { %8056 = vmatpush3.bf16.msra.mxu1 %v9392_v59 }
  0x66   : > { %8145 = vmatprep.subr.bf16.mxu1 %v9588_v28 }
  0x67   : > { %758 = vmatmul.mubr.bf16.gmra.mrb[32].mxu1 %v9373_v44  ;;  %635 = vmatmul.mubr.bf16.gmra.mrb[32].mxu0 %v9377_v48 }
  0x68   : > { %767 = vmatprep.mubr.bf16.mxu1 %v9587_v2  ;;  %8005 = vmatprep.mubr.msk.bf16.mxu0 %vm9589_vm0, %v9588_v28 }
  0x6f   : > { %768 = vmatmul.mubr.bf16.gmra.mrb[36].mxu1 %v9374_v45 }
  0x70   : > { %777 = vmatprep.mubr.bf16.mxu1 %v9587_v2 }
  0x77   : > { %778 = vmatmul.mubr.bf16.gmra.mrb[40].mxu1 %v9375_v46 }
  0x78   : > { %787 = vmatprep.mubr.bf16.mxu1 %v9587_v2 }
  0x7f   : > { %788 = vmatmul.mubr.bf16.gmra.mrb[44].mxu1 %v9376_v47 }
  0x80   : > { %797 = vmatprep.mubr.bf16.mxu1 %v9587_v2 }
  0x87   : > { %798 = vmatmul.mubr.bf16.gmra.mrb[48].mxu1 %v9377_v48 }
  0x88   : > { %807 = vmatprep.mubr.bf16.mxu1 %v9587_v2 }
  0x8f   : > { %808 = vmatmul.mubr.bf16.gmra.mrb[52].mxu1 %v9700_v18 }
  0x90   : > { %817 = vmatprep.mubr.bf16.mxu1 %v9587_v2 }
  0x97   : > { %818 = vmatmul.mubr.bf16.gmra.mrb[56].mxu1 %v9724_v25 }
  0x98   : > { %827 = vmatprep.mubr.bf16.mxu1 %v9587_v2 }
  0x9f   : > { %828 = vmatmul.mubr.bf16.gmra.mrb[60].mxu1 %v9748_v33 }
  0xa0   : > { %837 = vmatprep.mubr.bf16.mxu1 %v9587_v2 }
  0xa7   : > { %838 = vmatmul.mubr.bf16.gmra.mrb[64].mxu1 %v9768_v39 }
  0xa8   : > { %8057 = vmatprep.mubr.msk.bf16.mxu1 %vm9589_vm0, %v9588_v28 }
  0xfa   : > { %v9871_v63 = vpop.f32.mrb[0].mxu1  ;;  %v556_v0 = vpop.f32.mrb[0].mxu0 }
  0xfb   : > { %v9873_v1 = vpop.f32.mrb[1].mxu1  ;;  %v558_v2 = vpop.f32.mrb[1].mxu0 }
  0xfc   : > { %v866_v3 = vmax.f32 %v9871_v63, %v9873_v1  ;;  %v9877_v4 = vpop.f32.mrb[2].mxu1  ;;  %v848_v5 = vmax.f32 %v556_v0, %v558_v2  ;;  %v560_v6 = vpop.f32.mrb[2].mxu0 }
  0xfd   : > { %v9879_v7 = vpop.f32.mrb[3].mxu1  ;;  %v562_v8 = vpop.f32.mrb[3].mxu0 }
  0xfe   : > { %v867_v9 = vmax.f32 %v9877_v4, %v9879_v7  ;;  %v849_v10 = vmax.f32 %v560_v6, %v562_v8  ;;  %v9414_v7 = vld [vmem:[%s12332_s3 + $0x140] sm:$0xff]  }
 0x102   : > { %v9883_v11 = vpop.f32.mrb[4].mxu1  ;;  %v9885_v12 = vpop.f32.mrb[4].mxu0 }
 0x103   : > { %v9887_v13 = vpop.f32.mrb[5].mxu1  ;;  %v9889_v14 = vpop.f32.mrb[5].mxu0 }
 0x104   : > { %v9893_v16 = vpop.f32.mrb[6].mxu1  ;;  %v850_v17 = vmax.f32 %v9885_v12, %v9889_v14  ;;  %v9897_v18 = vpop.f32.mrb[6].mxu0 }
 0x105   : > { %v9899_v19 = vpop.f32.mrb[7].mxu1  ;;  %v9901_v20 = vpop.f32.mrb[7].mxu0 }
 0x106   : > { %v851_v22 = vmax.f32 %v9897_v18, %v9901_v20 }
 0x10a   : > { %v9907_v23 = vpop.f32.mrb[8].mxu1  ;;  %v9909_v24 = vpop.f32.mrb[8].mxu0 }
 0x10b   : > { %v9911_v25 = vpop.f32.mrb[9].mxu1  ;;  %v9913_v26 = vpop.f32.mrb[9].mxu0 }
 0x10c   : > { %v9917_v29 = vpop.f32.mrb[10].mxu1  ;;  %v852_v30 = vmax.f32 %v9909_v24, %v9913_v26  ;;  %v9921_v31 = vpop.f32.mrb[10].mxu0  ;;  %v9403_v24 = vld [vmem:[%s12332_s3 + $0xd8] sm:$0xff]  }
 0x10d   : > { %v9923_v32 = vpop.f32.mrb[11].mxu1  ;;  %v9925_v33 = vpop.f32.mrb[11].mxu0 }
 0x10e   : > { %v853_v35 = vmax.f32 %v9921_v31, %v9925_v33 }
 0x112   : > { %v9931_v36 = vpop.f32.mrb[12].mxu1  ;;  %v9933_v37 = vpop.f32.mrb[12].mxu0 }
 0x113   : > { %v9935_v38 = vpop.f32.mrb[13].mxu1  ;;  %v9937_v39 = vpop.f32.mrb[13].mxu0 }
 0x114   : > { %v9941_v41 = vpop.f32.mrb[14].mxu1  ;;  %v854_v42 = vmax.f32 %v9933_v37, %v9937_v39  ;;  %v9945_v43 = vpop.f32.mrb[14].mxu0 }
 0x115   : > { %v9947_v44 = vpop.f32.mrb[15].mxu1  ;;  %v9949_v45 = vpop.f32.mrb[15].mxu0 }
 0x116   : > { %v855_v47 = vmax.f32 %v9945_v43, %v9949_v45 }
 0x11a   : > { %v719_v48 = vpop.f32.mrb[16].mxu1  ;;  %v9955_v49 = vpop.f32.mrb[16].mxu0 }
 0x11b   : > { %v721_v50 = vpop.f32.mrb[17].mxu1  ;;  %v9957_v51 = vpop.f32.mrb[17].mxu0 }
 0x11c   : > { %v874_v52 = vmax.f32 %v719_v48, %v721_v50  ;;  %v723_v53 = vpop.f32.mrb[18].mxu1  ;;  %v856_v54 = vmax.f32 %v9955_v49, %v9957_v51  ;;  %v9961_v55 = vpop.f32.mrb[18].mxu0  ;;  %v9407_v51 = vld [vmem:[%s12332_s3 + $0xf0] sm:$0xff]  }
 0x11d   : > { %v725_v57 = vpop.f32.mrb[19].mxu1  ;;  %v9968_v58 = vpop.f32.mrb[19].mxu0 }
 0x11e   : > { %v900_v59 = vmax.f32 %v848_v5, %v874_v52  ;;  %v875_v60 = vmax.f32 %v723_v53, %v725_v57  ;;  %v857_v61 = vmax.f32 %v9961_v55, %v9968_v58  ;;  %v9398_v57 = vld [vmem:[%s12332_s3 + $0xc0] sm:$0xff]  }
 0x120   : > { %v933_v62 = vadd.f32 %v9966_v56, %v900_v59  ;;  %v901_v0 = vmax.f32 %v849_v10, %v875_v60 }
 0x122   : > { %v959_v2 = vmax.f32 %v933_v62, 0.0  ;;  %v934_v6 = vadd.f32 %v9966_v56, %v901_v0  ;;  %v729_v8 = vpop.f32.mrb[20].mxu1  ;;  %v9974_v12 = vpop.f32.mrb[20].mxu0 }
 0x123   : > { %v731_v14 = vpop.f32.mrb[21].mxu1  ;;  %v9976_v18 = vpop.f32.mrb[21].mxu0 }
 0x124   : > { %985 = vst [vmem:[#allocation2] sm:$0xff] %v959_v2  ;;  %v960_v20 = vmax.f32 %v934_v6, 0.0  ;;  %v876_v48 = vmax.f32 %v729_v8, %v731_v14  ;;  %v733_v5 = vpop.f32.mrb[22].mxu1  ;;  %v858_v50 = vmax.f32 %v9974_v12, %v9976_v18  ;;  %v9980_v52 = vpop.f32.mrb[22].mxu0  ;;  %v9400_v14 = vld [vmem:[%s12332_s3 + $0xc8] sm:$0xff]  }
 0x125   : > { %v735_v53 = vpop.f32.mrb[23].mxu1  ;;  %v9982_v10 = vpop.f32.mrb[23].mxu0 }
 0x126   : > { %986 = vst [vmem:[#allocation2 + $0x8] sm:$0xff] %v960_v20  ;;  %v902_v59 = vmax.f32 %v850_v17, %v876_v48  ;;  %v877_v60 = vmax.f32 %v733_v5, %v735_v53  ;;  %v1029_v62 = vpack.c.bf16 %v960_v20, %v959_v2  ;;  %v859_v0 = vmax.f32 %v9980_v52, %v9982_v10  ;;  %v9405_v52 = vld [vmem:[%s12332_s3 + $0xb0] sm:$0xff]  }
 0x128   : > { %v935_v6 = vadd.f32 %v9966_v56, %v902_v59  ;;  %v903_v8 = vmax.f32 %v851_v22, %v877_v60  ;;  %8058 = vmatmul.mubr.bf16.vlgmr.msra.gmra.mrb[68].mxu1 %v1029_v62 }
 0x129   : > { %8061 = vmatprep.mubr.msk.bf16.mxu1 %vm9589_vm0, %v9588_v28  ;;  %8146 = vmatpush3.bf16.msra.mxu1 %v9398_v57 }
 0x12a   : > { %v961_v46 = vmax.f32 %v935_v6, 0.0  ;;  %v936_v17 = vadd.f32 %v9966_v56, %v903_v8  ;;  %v739_v48 = vpop.f32.mrb[24].mxu1  ;;  %v9996_v2 = vpop.f32.mrb[24].mxu0  ;;  %8147 = vmatprep.subr.bf16.mxu1 %v9588_v28  ;;  %v9401_v8 = vld [vmem:[%s12332_s3 + $0xd0] sm:$0xff]  }
 0x12b   : > { %v741_v20 = vpop.f32.mrb[25].mxu1  ;;  %v9999_v5 = vpop.f32.mrb[25].mxu0 }
 0x12c   : > { %987 = vst [vmem:[#allocation2 + $0x10] sm:$0xff] %v961_v46  ;;  %v962_v22 = vmax.f32 %v936_v17, 0.0  ;;  %v878_v53 = vmax.f32 %v739_v48, %v741_v20  ;;  %v743_v59 = vpop.f32.mrb[26].mxu1  ;;  %v860_v57 = vmax.f32 %v9996_v2, %v9999_v5  ;;  %v10003_v60 = vpop.f32.mrb[26].mxu0 }
 0x12d   : > { %v745_v62 = vpop.f32.mrb[27].mxu1  ;;  %v10005_v6 = vpop.f32.mrb[27].mxu0  ;;  %8148 = vmatpush3.bf16.msra.mxu1 %v9400_v14  ;;  %v1054_v31 = vld [vmem:[#allocation2 + $0x1] sm:$0xff] }
 0x12e   : > { %988 = vst [vmem:[#allocation2 + $0x18] sm:$0xff] %v962_v22  ;;  %v904_v17 = vmax.f32 %v852_v30, %v878_v53  ;;  %v879_v48 = vmax.f32 %v743_v59, %v745_v62  ;;  %v1030_v20 = vpack.c.bf16 %v962_v22, %v961_v46  ;;  %v861_v40 = vmax.f32 %v10003_v60, %v10005_v6  ;;  %v1619_v4 = vld [vmem:[#allocation2 + $0x3] sm:$0xff] }
 0x12f   : > { %8149 = vmatprep.subr.bf16.mxu1 %v9588_v28 }
 0x130   : > { %v937_v34 = vadd.f32 %v9966_v56, %v904_v17  ;;  %v905_v14 = vmax.f32 %v853_v35, %v879_v48  ;;  %8062 = vmatmul.mubr.bf16.gmra.mrb[72].mxu1 %v1030_v20  ;;  %v9394_v35 = vld [vmem:[%s12332_s3 + $0x80] sm:$0xff]  }
 0x131   : > { %8065 = vmatprep.mubr.msk.bf16.mxu1 %vm9589_vm0, %v9588_v28  ;;  %8150 = vmatpush3.bf16.msra.mxu1 %v9401_v8 }
 0x132   : > { %v963_v26 = vmax.f32 %v937_v34, 0.0  ;;  %v938_v30 = vadd.f32 %v9966_v56, %v905_v14  ;;  %v749_v46 = vpop.f32.mrb[28].mxu1  ;;  %v10026_v22 = vpop.f32.mrb[28].mxu0  ;;  %8151 = vmatprep.subr.bf16.mxu1 %v9588_v28 }
 0x133   : > { %v751_v53 = vpop.f32.mrb[29].mxu1  ;;  %v1055_v33 = vld [vmem:[#allocation2 + $0x9] sm:$0xff]  ;;  %v10032_v59 = vpop.f32.mrb[29].mxu0 }
 0x134   : > { %989 = vst [vmem:[#allocation2 + $0x20] sm:$0xff] %v963_v26  ;;  %v964_v62 = vmax.f32 %v938_v30, 0.0  ;;  %v880_v8 = vmax.f32 %v749_v46, %v751_v53  ;;  %v753_v34 = vpop.f32.mrb[30].mxu1  ;;  %v1072_v17 = vpack.c.bf16 %v1055_v33, %v1054_v31  ;;  %v862_v48 = vmax.f32 %v10026_v22, %v10032_v59  ;;  %v10036_v20 = vpop.f32.mrb[30].mxu0  ;;  %v9404_v53 = vld [vmem:[%s12332_s3 + $0xe0] sm:$0xff]  }
 0x135   : > { %v755_v14 = vpop.f32.mrb[31].mxu1  ;;  %v10038_v27 = vpop.f32.mrb[31].mxu0  ;;  %8152 = vmatpush3.bf16.msra.mxu1 %v9403_v24  ;;  %v9395_v24 = vld [vmem:[%s12332_s3 + $0x88] sm:$0xff]  }
 0x136   : > { %990 = vst [vmem:[#allocation2 + $0x28] sm:$0xff] %v964_v62  ;;  %v906_v21 = vmax.f32 %v854_v42, %v880_v8  ;;  %v881_v15 = vmax.f32 %v753_v34, %v755_v14  ;;  %8006 = vmatmul.mubr.bf16.vlgmr.msra.gmra.mrb[36].mxu0 %v1072_v17  ;;  %v1031_v30 = vpack.c.bf16 %v964_v62, %v963_v26 }
 0x137   : > { %v863_v46 = vmax.f32 %v10036_v20, %v10038_v27  ;;  %8094 = vmatpush3.bf16.msra.mxu0 %v9394_v35  ;;  %8009 = vmatprep.mubr.msk.bf16.mxu0 %vm9589_vm0, %v9588_v28  ;;  %v1056_v35 = vld [vmem:[#allocation2 + $0x11] sm:$0xff] }
 0x138   : > { %v939_v37 = vadd.f32 %v9966_v56, %v906_v21  ;;  %v907_v39 = vmax.f32 %v855_v47, %v881_v15  ;;  %8095 = vmatprep.subr.bf16.mxu0 %v9588_v28  ;;  %8066 = vmatmul.mubr.bf16.gmra.mrb[76].mxu1 %v1031_v30  ;;  %v9396_v15 = vld [vmem:[%s12332_s3 + $0x90] sm:$0xff]  }
 0x139   : > { %8069 = vmatprep.mubr.msk.bf16.mxu1 %vm9589_vm0, %v9588_v28  ;;  %8153 = vmatprep.subr.bf16.mxu1 %v9588_v28 }
 0x13a   : > { %v965_v42 = vmax.f32 %v939_v37, 0.0  ;;  %v940_v26 = vadd.f32 %v9966_v56, %v907_v39  ;;  %v759_v31 = vpop.f32.mrb[32].mxu1  ;;  %v10062_v33 = vpop.f32.mrb[32].mxu0  ;;  %8154 = vmatpush3.bf16.msra.mxu1 %v9404_v53 }
 0x13b   : > { %v761_v21 = vpop.f32.mrb[33].mxu1  ;;  %v1057_v62 = vld [vmem:[#allocation2 + $0x19] sm:$0xff]  ;;  %8096 = vmatpush3.bf16.msra.mxu0 %v9395_v24  ;;  %v10067_v43 = vpop.f32.mrb[33].mxu0  ;;  %8155 = vmatprep.subr.bf16.mxu1 %v9588_v28  ;;  %v9406_v24 = vld [vmem:[%s12332_s3 + $0xe8] sm:$0xff]  }
 0x13c   : > { %991 = vst [vmem:[#allocation2 + $0x30] sm:$0xff] %v965_v42  ;;  %v966_v45 = vmax.f32 %v940_v26, 0.0  ;;  %v882_v47 = vmax.f32 %v759_v31, %v761_v21  ;;  %v763_v8 = vpop.f32.mrb[34].mxu1  ;;  %v1073_v34 = vpack.c.bf16 %v1057_v62, %v1056_v35  ;;  %8097 = vmatprep.subr.bf16.mxu0 %v9588_v28  ;;  %v864_v17 = vmax.f32 %v10062_v33, %v10067_v43  ;;  %v10073_v14 = vpop.f32.mrb[34].mxu0  ;;  %v9397_v21 = vld [vmem:[%s12332_s3 + $0x98] sm:$0xff]  }
 0x13d   : > { %v765_v30 = vpop.f32.mrb[35].mxu1  ;;  %v10075_v53 = vpop.f32.mrb[35].mxu0  ;;  %v1058_v55 = vld [vmem:[#allocation2 + $0x21] sm:$0xff] }
 0x13e   : > { %992 = vst [vmem:[#allocation2 + $0x38] sm:$0xff] %v966_v45  ;;  %v908_v37 = vmax.f32 %v856_v54, %v882_v47  ;;  %v883_v39 = vmax.f32 %v763_v8, %v765_v30  ;;  %8010 = vmatmul.mubr.bf16.gmra.mrb[40].mxu0 %v1073_v34  ;;  %v1032_v26 = vpack.c.bf16 %v966_v45, %v965_v42 }
 0x13f   : > { %v865_v31 = vmax.f32 %v10073_v14, %v10075_v53  ;;  %8013 = vmatprep.mubr.msk.bf16.mxu0 %vm9589_vm0, %v9588_v28  ;;  %8098 = vmatpush3.bf16.msra.mxu0 %v9396_v15 }
 0x140   : > { %v941_v35 = vadd.f32 %v9966_v56, %v908_v37  ;;  %v909_v49 = vmax.f32 %v857_v61, %v883_v39  ;;  %8070 = vmatmul.mubr.bf16.gmra.mrb[80].mxu1 %v1032_v26  ;;  %8099 = vmatprep.subr.bf16.mxu0 %v9588_v28  ;;  %v9399_v61 = vld [vmem:[%s12332_s3 + $0xa0] sm:$0xff]  }
 0x141   : > { %8073 = vmatprep.mubr.msk.bf16.mxu1 %vm9589_vm0, %v9588_v28  ;;  %8156 = vmatpush3.bf16.msra.mxu1 %v9406_v24  ;;  %v9408_v24 = vld [vmem:[%s12332_s3 + $0xf8] sm:$0xff]  }
 0x142   : > { %v967_v54 = vmax.f32 %v941_v35, 0.0  ;;  %v942_v42 = vadd.f32 %v9966_v56, %v909_v49  ;;  %v769_v62 = vpop.f32.mrb[36].mxu1  ;;  %8157 = vmatprep.subr.bf16.mxu1 %v9588_v28 }
 0x143   : > { %v771_v15 = vpop.f32.mrb[37].mxu1  ;;  %v1059_v58 = vld [vmem:[#allocation2 + $0x29] sm:$0xff]  ;;  %8100 = vmatpush3.bf16.msra.mxu0 %v9397_v21 }
 0x144   : > { %993 = vst [vmem:[#allocation2 + $0x40] sm:$0xff] %v967_v54  ;;  %v968_v45 = vmax.f32 %v942_v42, 0.0  ;;  %v884_v47 = vmax.f32 %v769_v62, %v771_v15  ;;  %v773_v8 = vpop.f32.mrb[38].mxu1  ;;  %v1074_v34 = vpack.c.bf16 %v1059_v58, %v1058_v55  ;;  %8101 = vmatprep.subr.bf16.mxu0 %v9588_v28  ;;  %v9402_v21 = vld [vmem:[%s12332_s3 + $0xa8] sm:$0xff]  }
 0x145   : > { %v775_v30 = vpop.f32.mrb[39].mxu1  ;;  %8158 = vmatpush3.bf16.msra.mxu1 %v9407_v51 }
 0x146   : > { %994 = vst [vmem:[#allocation2 + $0x48] sm:$0xff] %v968_v45  ;;  %v910_v37 = vmax.f32 %v858_v50, %v884_v47  ;;  %v885_v39 = vmax.f32 %v773_v8, %v775_v30  ;;  %8014 = vmatmul.mubr.bf16.gmra.mrb[44].mxu0 %v1074_v34  ;;  %v1033_v26 = vpack.c.bf16 %v968_v45, %v967_v54  ;;  %v1060_v54 = vld [vmem:[#allocation2 + $0x31] sm:$0xff] }
 0x147   : > { %8159 = vmatprep.subr.bf16.mxu1 %v9588_v28  ;;  %8017 = vmatprep.mubr.msk.bf16.mxu0 %vm9589_vm0, %v9588_v28  ;;  %v9409_v47 = vld [vmem:[%s12332_s3 + $0xb8] sm:$0xff]  }
 0x148   : > { %8102 = vmatpush3.bf16.msra.mxu0 %v9399_v61  ;;  %v943_v35 = vadd.f32 %v9966_v56, %v910_v37  ;;  %v911_v12 = vmax.f32 %v859_v0, %v885_v39  ;;  %8074 = vmatmul.mubr.bf16.gmra.mrb[84].mxu1 %v1033_v26 }
 0x149   : > { %8103 = vmatprep.subr.bf16.mxu0 %v9588_v28  ;;  %8077 = vmatprep.mubr.msk.bf16.mxu1 %vm9589_vm0, %v9588_v28 }
 0x14a   : > { %8160 = vmatpush3.bf16.msra.mxu1 %v9408_v24  ;;  %v969_v18 = vmax.f32 %v943_v35, 0.0  ;;  %v944_v50 = vadd.f32 %v9966_v56, %v911_v12  ;;  %v779_v49 = vpop.f32.mrb[40].mxu1 }
 0x14b   : > { %8249 = vmatprep.subr.bf16.mxu1 %v9588_v28  ;;  %v781_v51 = vpop.f32.mrb[41].mxu1  ;;  %v1061_v42 = vld [vmem:[#allocation2 + $0x39] sm:$0xff] }
 0x14c   : > { %8104 = vmatpush3.bf16.msra.mxu0 %v9402_v21  ;;  %995 = vst [vmem:[#allocation2 + $0x50] sm:$0xff] %v969_v18  ;;  %v970_v10 = vmax.f32 %v944_v50, 0.0  ;;  %v886_v0 = vmax.f32 %v779_v49, %v781_v51  ;;  %v783_v62 = vpop.f32.mrb[42].mxu1  ;;  %v1075_v15 = vpack.c.bf16 %v1061_v42, %v1060_v54 }
 0x14d   : > { %8105 = vmatprep.subr.bf16.mxu0 %v9588_v28  ;;  %v785_v55 = vpop.f32.mrb[43].mxu1  ;;  %v1062_v24 = vld [vmem:[#allocation2 + $0x41] sm:$0xff] }
 0x14e   : > { %996 = vst [vmem:[#allocation2 + $0x58] sm:$0xff] %v970_v10  ;;  %v912_v58 = vmax.f32 %v860_v57, %v886_v0  ;;  %v887_v61 = vmax.f32 %v783_v62, %v785_v55  ;;  %8018 = vmatmul.mubr.bf16.gmra.mrb[48].mxu0 %v1075_v15  ;;  %v1034_v45 = vpack.c.bf16 %v970_v10, %v969_v18 }
 0x14f   : > { %8021 = vmatprep.mubr.msk.bf16.mxu0 %vm9589_vm0, %v9588_v28 }
 0x150   : > { %8106 = vmatpush3.bf16.msra.mxu0 %v9405_v52  ;;  %v945_v8 = vadd.f32 %v9966_v56, %v912_v58  ;;  %v913_v34 = vmax.f32 %v861_v40, %v887_v61  ;;  %8078 = vmatmul.mubr.bf16.gmra.mrb[88].mxu1 %v1034_v45 }
 0x151   : > { %8107 = vmatprep.subr.bf16.mxu0 %v9588_v28  ;;  %8081 = vmatprep.mubr.msk.bf16.mxu1 %vm9589_vm0, %v9588_v28 }
 0x152   : > { %v971_v2 = vmax.f32 %v945_v8, 0.0  ;;  %v946_v5 = vadd.f32 %v9966_v56, %v913_v34  ;;  %v789_v57 = vpop.f32.mrb[44].mxu1 }
 0x153   : > { %v791_v30 = vpop.f32.mrb[45].mxu1  ;;  %v1063_v37 = vld [vmem:[#allocation2 + $0x49] sm:$0xff] }
 0x154   : > { %8108 = vmatpush3.bf16.msra.mxu0 %v9409_v47  ;;  %997 = vst [vmem:[#allocation2 + $0x60] sm:$0xff] %v971_v2  ;;  %v972_v39 = vmax.f32 %v946_v5, 0.0  ;;  %v888_v26 = vmax.f32 %v789_v57, %v791_v30  ;;  %v793_v21 = vpop.f32.mrb[46].mxu1  ;;  %v1076_v60 = vpack.c.bf16 %v1063_v37, %v1062_v24 }
 0x155   : > { %8197 = vmatprep.subr.bf16.mxu0 %v9588_v28  ;;  %v795_v40 = vpop.f32.mrb[47].mxu1  ;;  %v1064_v51 = vld [vmem:[#allocation2 + $0x51] sm:$0xff] }
 0x156   : > { %998 = vst [vmem:[#allocation2 + $0x68] sm:$0xff] %v972_v39  ;;  %v914_v6 = vmax.f32 %v862_v48, %v888_v26  ;;  %v889_v35 = vmax.f32 %v793_v21, %v795_v40  ;;  %8022 = vmatmul.mubr.bf16.gmra.mrb[52].mxu0 %v1076_v60  ;;  %v1035_v12 = vpack.c.bf16 %v972_v39, %v971_v2  ;;  %v1620_v26 = vld [vmem:[#allocation2 + $0xb] sm:$0xff] }
 0x157   : > { %8025 = vmatprep.mubr.msk.bf16.mxu0 %vm9589_vm0, %v9588_v28 }
 0x158   : > { %v947_v18 = vadd.f32 %v9966_v56, %v914_v6  ;;  %v915_v50 = vmax.f32 %v863_v46, %v889_v35  ;;  %8082 = vmatmul.mubr.bf16.gmra.mrb[92].mxu1 %v1035_v12 }
 0x159   : > { %8085 = vmatprep.mubr.msk.bf16.mxu1 %vm9589_vm0, %v9588_v28 }
 0x15a   : > { %v973_v49 = vmax.f32 %v947_v18, 0.0  ;;  %v948_v22 = vadd.f32 %v9966_v56, %v915_v50  ;;  %v799_v59 = vpop.f32.mrb[48].mxu1  ;;  %v1637_v50 = vpack.c.bf16 %v1620_v26, %v1619_v4 }
 0x15b   : > { %v801_v48 = vpop.f32.mrb[49].mxu1  ;;  %v1065_v54 = vld [vmem:[#allocation2 + $0x59] sm:$0xff] }
 0x15c   : > { %999 = vst [vmem:[#allocation2 + $0x70] sm:$0xff] %v973_v49  ;;  %v974_v42 = vmax.f32 %v948_v22, 0.0  ;;  %v890_v52 = vmax.f32 %v799_v59, %v801_v48  ;;  %v803_v10 = vpop.f32.mrb[50].mxu1  ;;  %v1077_v0 = vpack.c.bf16 %v1065_v54, %v1064_v51  ;;  %v12336_v22 = vmax.f32 %v9893_v16, %v9899_v19  ;;  %v1622_v16 = vld [vmem:[#allocation2 + $0x1b] sm:$0xff] }
 0x15d   : > { %v805_v62 = vpop.f32.mrb[51].mxu1  ;;  %v1066_v61 = vld [vmem:[#allocation2 + $0x61] sm:$0xff] }
 0x15e   : > { %1000 = vst [vmem:[#allocation2 + $0x78] sm:$0xff] %v974_v42  ;;  %v916_v27 = vmax.f32 %v864_v17, %v890_v52  ;;  %v891_v20 = vmax.f32 %v803_v10, %v805_v62  ;;  %8026 = vmatmul.mubr.bf16.gmra.mrb[56].mxu0 %v1077_v0  ;;  %v1036_v46 = vpack.c.bf16 %v974_v42, %v973_v49 }
 0x15f   : > { %8029 = vmatprep.mubr.msk.bf16.mxu0 %vm9589_vm0, %v9588_v28 }
 0x160   : > { %v949_v15 = vadd.f32 %v9966_v56, %v916_v27  ;;  %v917_v55 = vmax.f32 %v865_v31, %v891_v20  ;;  %8086 = vmatmul.mubr.bf16.gmra.mrb[96].mxu1 %v1036_v46  ;;  %v1621_v20 = vld [vmem:[#allocation2 + $0x13] sm:$0xff] }
 0x161   : > { %8089 = vmatprep.mubr.msk.bf16.mxu1 %vm9589_vm0, %v9588_v28  ;;  %v9417_v46 = vld [vmem:[%s12332_s3 + $0x150] sm:$0xff]  }
 0x162   : > { %v975_v58 = vmax.f32 %v949_v15, 0.0  ;;  %v950_v33 = vadd.f32 %v9966_v56, %v917_v55  ;;  %v809_v43 = vpop.f32.mrb[52].mxu1  ;;  %v12337_v15 = vmax.f32 %v9907_v23, %v9911_v25  ;;  %v9419_v23 = vld [vmem:[%s12332_s3 + $0x158] sm:$0xff]  }
 0x163   : > { %v811_v17 = vpop.f32.mrb[53].mxu1  ;;  %v1067_v45 = vld [vmem:[#allocation2 + $0x69] sm:$0xff] }
 0x164   : > { %1001 = vst [vmem:[#allocation2 + $0x80] sm:$0xff] %v975_v58  ;;  %v976_v47 = vmax.f32 %v950_v33, 0.0  ;;  %v892_v8 = vmax.f32 %v809_v43, %v811_v17  ;;  %v813_v34 = vpop.f32.mrb[54].mxu1  ;;  %v1078_v2 = vpack.c.bf16 %v1067_v45, %v1066_v61  ;;  %v1638_v33 = vpack.c.bf16 %v1622_v16, %v1621_v20  ;;  %v1405_v45 = vld [vmem:[#allocation2 + $0xa] sm:$0xff]  ;;  %v1630_v16 = vld [vmem:[#allocation2 + $0x5b] sm:$0xff] }
 0x165   : > { %v815_v5 = vpop.f32.mrb[55].mxu1  ;;  %v1068_v37 = vld [vmem:[#allocation2 + $0x71] sm:$0xff]  ;;  %v12338_v17 = vmax.f32 %v9917_v29, %v9923_v32  ;;  %v9410_v29 = vld [vmem:[%s12332_s3 + $0x100] sm:$0xff]  }
 0x166   : > { %1002 = vst [vmem:[#allocation2 + $0x88] sm:$0xff] %v976_v47  ;;  %v918_v14 = vmax.f32 %v866_v3, %v892_v8  ;;  %v893_v53 = vmax.f32 %v813_v34, %v815_v5  ;;  %8030 = vmatmul.mubr.bf16.gmra.mrb[60].mxu0 %v1078_v2  ;;  %v1037_v31 = vpack.c.bf16 %v976_v47, %v975_v58  ;;  %v1404_v2 = vld [vmem:[#allocation2 + $0x2] sm:$0xff]  ;;  %v1624_v32 = vld [vmem:[#allocation2 + $0x2b] sm:$0xff] }
 0x167   : > { %8033 = vmatprep.mubr.msk.bf16.mxu0 %vm9589_vm0, %v9588_v28  ;;  %v1413_v20 = vld [vmem:[#allocation2 + $0x4a] sm:$0xff] }
 0x168   : > { %v951_v57 = vadd.f32 %v9966_v56, %v918_v14  ;;  %v919_v30 = vmax.f32 %v867_v9, %v893_v53  ;;  %8090 = vmatmul.mubr.bf16.gmra.mrb[100].mxu1 %v1037_v31  ;;  %v12335_v9 = vmax.f32 %v9883_v11, %v9887_v13  ;;  %v9416_v11 = vld [vmem:[%s12332_s3 + $0x148] sm:$0xff]   ;;  %v1422_v31 = vpack.c.bf16 %v1405_v45, %v1404_v2 }
 0x169   : > { %8161 = vmatprep.mubr.msk.bf16.mxu1 %vm9589_vm0, %v9588_v28 }
 0x16a   : > { %v977_v24 = vmax.f32 %v951_v57, 0.0  ;;  %v952_v63 = vadd.f32 %v9966_v56, %v919_v30  ;;  %v819_v1 = vpop.f32.mrb[56].mxu1  ;;  %v1623_v30 = vld [vmem:[#allocation2 + $0x23] sm:$0xff] }
 0x16b   : > { %v821_v3 = vpop.f32.mrb[57].mxu1  ;;  %v1069_v39 = vld [vmem:[#allocation2 + $0x79] sm:$0xff] }
 0x16c   : > { %1003 = vst [vmem:[#allocation2 + $0x90] sm:$0xff] %v977_v24  ;;  %v978_v21 = vmax.f32 %v952_v63, 0.0  ;;  %v894_v60 = vmax.f32 %v819_v1, %v821_v3  ;;  %v823_v40 = vpop.f32.mrb[58].mxu1  ;;  %v1079_v6 = vpack.c.bf16 %v1069_v39, %v1068_v37  ;;  %v9420_v24 = vld [vmem:[%s12332_s3 + $0x160] sm:$0xff]   ;;  %v12339_v63 = vmax.f32 %v9931_v36, %v9935_v38  ;;  %v9411_v39 = vld [vmem:[%s12332_s3 + $0x108] sm:$0xff]  }
 0x16d   : > { %v825_v35 = vpop.f32.mrb[59].mxu1  ;;  %v1070_v42 = vld [vmem:[#allocation2 + $0x81] sm:$0xff]  ;;  %v1639_v37 = vpack.c.bf16 %v1624_v32, %v1623_v30 }
 0x16e   : > { %1004 = vst [vmem:[#allocation2 + $0x98] sm:$0xff] %v978_v21  ;;  %v920_v12 = vmax.f32 %v12335_v9, %v894_v60  ;;  %v895_v18 = vmax.f32 %v823_v40, %v825_v35  ;;  %8034 = vmatmul.mubr.bf16.gmra.mrb[64].mxu0 %v1079_v6  ;;  %v12340_v21 = vmax.f32 %v9941_v41, %v9947_v44  ;;  %v1407_v38 = vld [vmem:[#allocation2 + $0x1a] sm:$0xff]  ;;  %v9422_v60 = vld [vmem:[%s12332_s3 + $0x168] sm:$0xff]   ;;  %v1406_v35 = vld [vmem:[#allocation2 + $0x12] sm:$0xff] }
 0x16f   : > { %8037 = vmatprep.mubr.msk.bf16.mxu0 %vm9589_vm0, %v9588_v28  ;;  %v1626_v41 = vld [vmem:[#allocation2 + $0x3b] sm:$0xff]  ;;  %v9412_v44 = vld [vmem:[%s12332_s3 + $0x110] sm:$0xff]  }
 0x170   : > { %v953_v49 = vadd.f32 %v9966_v56, %v920_v12  ;;  %v921_v59 = vmax.f32 %v12336_v22, %v895_v18  ;;  %8162 = vmatmul.mubr.bf16.vlgmr.msra.gmra.mrb[104].mxu1 %v1637_v50  ;;  %v1625_v9 = vld [vmem:[#allocation2 + $0x33] sm:$0xff]  ;;  %v1409_v50 = vld [vmem:[#allocation2 + $0x2a] sm:$0xff]  ;;  %v1408_v22 = vld [vmem:[#allocation2 + $0x22] sm:$0xff] }
 0x171   : > { %8165 = vmatprep.mubr.msk.bf16.mxu1 %vm9589_vm0, %v9588_v28  ;;  %8250 = vmatpush3.bf16.msra.mxu1 %v9414_v7  ;;  %v1423_v7 = vpack.c.bf16 %v1407_v38, %v1406_v35  ;;  %v1640_v12 = vpack.c.bf16 %v1626_v41, %v1625_v9  ;;  %v9413_v18 = vld [vmem:[%s12332_s3 + $0x118] sm:$0xff]   ;;  %v9430_v30 = vld [vmem:[%s12332_s3 + $0x1c0] sm:$0xff]   ;;  %v1835_v38 = vld [vmem:[#allocation2 + $0xc] sm:$0xff] }
 0x172   : > { %v979_v13 = vmax.f32 %v953_v49, 0.0  ;;  %v954_v48 = vadd.f32 %v9966_v56, %v921_v59  ;;  %v829_v51 = vpop.f32.mrb[60].mxu1  ;;  %8251 = vmatprep.subr.bf16.mxu1 %v9588_v28  ;;  %v9424_v49 = vld [vmem:[%s12332_s3 + $0x178] sm:$0xff]   ;;  %v1628_v59 = vld [vmem:[#allocation2 + $0x4b] sm:$0xff] }
 0x173   : > { %v831_v54 = vpop.f32.mrb[61].mxu1  ;;  %v1071_v52 = vld [vmem:[#allocation2 + $0x89] sm:$0xff]  ;;  %v2054_v35 = vld [vmem:[#allocation2 + $0x36] sm:$0xff] }
 0x174   : > { %1005 = vst [vmem:[#allocation2 + $0xa0] sm:$0xff] %v979_v13  ;;  %v980_v19 = vmax.f32 %v954_v48, 0.0  ;;  %v896_v10 = vmax.f32 %v829_v51, %v831_v54  ;;  %v833_v0 = vpop.f32.mrb[62].mxu1  ;;  %v1080_v62 = vpack.c.bf16 %v1071_v52, %v1070_v42  ;;  %v1424_v13 = vpack.c.bf16 %v1409_v50, %v1408_v22  ;;  %v1627_v48 = vld [vmem:[#allocation2 + $0x43] sm:$0xff]  ;;  %v1411_v42 = vld [vmem:[#allocation2 + $0x3a] sm:$0xff]  ;;  %v1410_v52 = vld [vmem:[#allocation2 + $0x32] sm:$0xff] }
 0x175   : > { %v835_v27 = vpop.f32.mrb[63].mxu1  ;;  %8252 = vmatpush3.bf16.msra.mxu1 %v9416_v11  ;;  %v9415_v11 = vld [vmem:[%s12332_s3 + $0x120] sm:$0xff]   ;;  %v1641_v51 = vpack.c.bf16 %v1628_v59, %v1627_v48  ;;  %v9418_v54 = vld [vmem:[%s12332_s3 + $0x128] sm:$0xff]   ;;  %v9429_v48 = vld [vmem:[%s12332_s3 + $0x198] sm:$0xff]  }
 0x176   : > { %1006 = vst [vmem:[#allocation2 + $0xa8] sm:$0xff] %v980_v19  ;;  %v922_v55 = vmax.f32 %v12337_v15, %v896_v10  ;;  %v897_v58 = vmax.f32 %v833_v0, %v835_v27  ;;  %8038 = vmatmul.mubr.bf16.gmra.mrb[68].mxu0 %v1080_v62  ;;  %8253 = vmatprep.subr.bf16.mxu1 %v9588_v28  ;;  %v9421_v19 = vld [vmem:[%s12332_s3 + $0x130] sm:$0xff]   ;;  %v9425_v27 = vld [vmem:[%s12332_s3 + $0x138] sm:$0xff]   ;;  %v9427_v9 = vld [vmem:[%s12332_s3 + $0x188] sm:$0xff]  }
 0x177   : > { %8109 = vmatprep.mubr.msk.bf16.mxu0 %vm9589_vm0, %v9588_v28  ;;  %v1425_v10 = vpack.c.bf16 %v1411_v42, %v1410_v52  ;;  %v1629_v0 = vld [vmem:[#allocation2 + $0x53] sm:$0xff]  ;;  %v1632_v15 = vld [vmem:[#allocation2 + $0x6b] sm:$0xff]  ;;  %v2055_v59 = vld [vmem:[#allocation2 + $0x3e] sm:$0xff] }
 0x178   : > { %v955_v43 = vadd.f32 %v9966_v56, %v922_v55  ;;  %v923_v61 = vmax.f32 %v12338_v17, %v897_v58  ;;  %8166 = vmatmul.mubr.bf16.gmra.mrb[108].mxu1 %v1638_v33  ;;  %v1642_v62 = vpack.c.bf16 %v1630_v16, %v1629_v0  ;;  %v1631_v58 = vld [vmem:[#allocation2 + $0x63] sm:$0xff]  ;;  %v1414_v17 = vld [vmem:[#allocation2 + $0x52] sm:$0xff] }
 0x179   : > { %8169 = vmatprep.mubr.msk.bf16.mxu1 %vm9589_vm0, %v9588_v28  ;;  %8254 = vmatpush3.bf16.msra.mxu1 %v9417_v46  ;;  %v1412_v46 = vld [vmem:[#allocation2 + $0x42] sm:$0xff]  ;;  %v1643_v33 = vpack.c.bf16 %v1632_v15, %v1631_v58  ;;  %v2058_v52 = vld [vmem:[#allocation2 + $0x56] sm:$0xff] }
 0x17a   : > { %v981_v25 = vmax.f32 %v955_v43, 0.0  ;;  %v956_v47 = vadd.f32 %v9966_v56, %v923_v61  ;;  %v839_v8 = vpop.f32.mrb[64].mxu1  ;;  %8255 = vmatprep.subr.bf16.mxu1 %v9588_v28  ;;  %v1426_v55 = vpack.c.bf16 %v1413_v20, %v1412_v46  ;;  %v1415_v43 = vld [vmem:[#allocation2 + $0x5a] sm:$0xff]  ;;  %v2056_v50 = vld [vmem:[#allocation2 + $0x46] sm:$0xff]  ;;  %v9437_v15 = vld [vmem:[%s12332_s3 + $0x1b0] sm:$0xff]  }
 0x17b   : > { %v841_v34 = vpop.f32.mrb[65].mxu1  ;;  %v1634_v61 = vld [vmem:[#allocation2 + $0x7b] sm:$0xff]  ;;  %v1427_v45 = vpack.c.bf16 %v1415_v43, %v1414_v17  ;;  %v1838_v42 = vld [vmem:[#allocation2 + $0x24] sm:$0xff]  ;;  %v1843_v17 = vld [vmem:[#allocation2 + $0x4c] sm:$0xff] }
 0x17c   : > { %1007 = vst [vmem:[#allocation2 + $0xb0] sm:$0xff] %v981_v25  ;;  %v982_v5 = vmax.f32 %v956_v47, 0.0  ;;  %v898_v14 = vmax.f32 %v839_v8, %v841_v34  ;;  %v843_v53 = vpop.f32.mrb[66].mxu1  ;;  %v1417_v47 = vld [vmem:[#allocation2 + $0x6a] sm:$0xff]  ;;  %v1416_v8 = vld [vmem:[#allocation2 + $0x62] sm:$0xff]  ;;  %v1840_v20 = vld [vmem:[#allocation2 + $0x34] sm:$0xff] }
 0x17d   : > { %v845_v57 = vpop.f32.mrb[67].mxu1  ;;  %8256 = vmatpush3.bf16.msra.mxu1 %v9419_v23  ;;  %v1633_v23 = vld [vmem:[#allocation2 + $0x73] sm:$0xff]  ;;  %v1636_v34 = vld [vmem:[#allocation2 + $0x8b] sm:$0xff]  ;;  %v1428_v2 = vpack.c.bf16 %v1417_v47, %v1416_v8  ;;  %v9431_v16 = vld [vmem:[%s12332_s3 + $0x1a0] sm:$0xff]  }
 0x17e   : > { %1008 = vst [vmem:[#allocation2 + $0xb8] sm:$0xff] %v982_v5  ;;  %v924_v1 = vmax.f32 %v12339_v63, %v898_v14  ;;  %v899_v3 = vmax.f32 %v843_v53, %v845_v57  ;;  %8110 = vmatmul.mubr.bf16.vlgmr.msra.gmra.mrb[72].mxu0 %v1422_v31  ;;  %8257 = vmatprep.subr.bf16.mxu1 %v9588_v28  ;;  %v1419_v5 = vld [vmem:[#allocation2 + $0x7a] sm:$0xff]  ;;  %v1418_v14 = vld [vmem:[#allocation2 + $0x72] sm:$0xff]  ;;  %v1421_v63 = vld [vmem:[#allocation2 + $0x8a] sm:$0xff] }
 0x17f   : > { %8198 = vmatpush3.bf16.msra.mxu0 %v9410_v29  ;;  %8113 = vmatprep.mubr.msk.bf16.mxu0 %vm9589_vm0, %v9588_v28  ;;  %v1644_v25 = vpack.c.bf16 %v1634_v61, %v1633_v23  ;;  %v1635_v29 = vld [vmem:[#allocation2 + $0x83] sm:$0xff]  ;;  %v2050_v53 = vld [vmem:[#allocation2 + $0x16] sm:$0xff]  ;;  %v1429_v31 = vpack.c.bf16 %v1419_v5, %v1418_v14  ;;  %v2049_v57 = vld [vmem:[#allocation2 + $0xe] sm:$0xff] }
 0x180   : > { %v957_v26 = vadd.f32 %v9966_v56, %v924_v1  ;;  %v925_v36 = vmax.f32 %v12340_v21, %v899_v3  ;;  %8199 = vmatprep.subr.bf16.mxu0 %v9588_v28  ;;  %8170 = vmatmul.mubr.bf16.gmra.mrb[112].mxu1 %v1639_v37  ;;  %v1645_v32 = vpack.c.bf16 %v1636_v34, %v1635_v29  ;;  %v9432_v1 = vld [vmem:[%s12332_s3 + $0x1c8] sm:$0xff]   ;;  %v9433_v21 = vld [vmem:[%s12332_s3 + $0x1d0] sm:$0xff]   ;;  %v2059_v58 = vld [vmem:[#allocation2 + $0x5e] sm:$0xff] }
 0x181   : > { %8173 = vmatprep.mubr.msk.bf16.mxu1 %vm9589_vm0, %v9588_v28  ;;  %8258 = vmatpush3.bf16.msra.mxu1 %v9420_v24  ;;  %v2067_v24 = vpack.c.bf16 %v2050_v53, %v2049_v57  ;;  %v1420_v3 = vld [vmem:[#allocation2 + $0x82] sm:$0xff]  ;;  %v9441_v43 = vld [vmem:[%s12332_s3 + $0x1b8] sm:$0xff]   ;;  %v1847_v14 = vld [vmem:[#allocation2 + $0x6c] sm:$0xff] }
 0x182   : > { %v983_v40 = vmax.f32 %v957_v26, 0.0  ;;  %v958_v6 = vadd.f32 %v9966_v56, %v925_v36  ;;  %8259 = vmatprep.subr.bf16.mxu1 %v9588_v28  ;;  %v9423_v56 = vld [vmem:[%s12332_s3 + $0x170] sm:$0xff]   ;;  %v2052_v37 = vld [vmem:[#allocation2 + $0x26] sm:$0xff]  ;;  %v2051_v26 = vld [vmem:[#allocation2 + $0x1e] sm:$0xff] }
 0x183   : > { %8200 = vmatpush3.bf16.msra.mxu0 %v9411_v39  ;;  %v1430_v39 = vpack.c.bf16 %v1421_v63, %v1420_v3  ;;  %v2068_v36 = vpack.c.bf16 %v2052_v37, %v2051_v26  ;;  %v2060_v46 = vld [vmem:[#allocation2 + $0x66] sm:$0xff]  ;;  %v1845_v8 = vld [vmem:[#allocation2 + $0x5c] sm:$0xff]  ;;  %v1844_v34 = vld [vmem:[#allocation2 + $0x54] sm:$0xff] }
 0x184   : > { %1009 = vst [vmem:[#allocation2 + $0xc0] sm:$0xff] %v983_v40  ;;  %v984_v4 = vmax.f32 %v958_v6, 0.0  ;;  %8201 = vmatprep.subr.bf16.mxu0 %v9588_v28  ;;  %v1834_v40 = vld [vmem:[#allocation2 + $0x4] sm:$0xff]  ;;  %v1857_v29 = vpack.c.bf16 %v1845_v8, %v1844_v34  ;;  %v1849_v63 = vld [vmem:[#allocation2 + $0x7c] sm:$0xff]  ;;  %v9444_v34 = vld [vmem:[%s12332_s3 + $0x210] sm:$0xff]  }
 0x185   : > { %8260 = vmatpush3.bf16.msra.mxu1 %v9422_v60  ;;  %v9435_v60 = vld [vmem:[%s12332_s3 + $0x1d8] sm:$0xff]   ;;  %v9426_v6 = vld [vmem:[%s12332_s3 + $0x180] sm:$0xff]   ;;  %v1852_v41 = vpack.c.bf16 %v1835_v38, %v1834_v40  ;;  %v2486_v8 = vld [vmem:[#allocation2 + $0x48] sm:$0xff] }
 0x186   : > { %1010 = vst [vmem:[#allocation2 + $0xc8] sm:$0xff] %v984_v4  ;;  %8114 = vmatmul.mubr.bf16.gmra.mrb[76].mxu0 %v1423_v7  ;;  %8261 = vmatprep.subr.bf16.mxu1 %v9588_v28  ;;  %v9436_v4 = vld [vmem:[%s12332_s3 + $0x1e0] sm:$0xff]   ;;  %v2480_v37 = vld [vmem:[#allocation2 + $0x18] sm:$0xff] }
 0x187   : > { %8117 = vmatprep.mubr.msk.bf16.mxu0 %vm9589_vm0, %v9588_v28  ;;  %8202 = vmatpush3.bf16.msra.mxu0 %v9412_v44  ;;  %v2053_v44 = vld [vmem:[#allocation2 + $0x2e] sm:$0xff]  ;;  %v1842_v61 = vld [vmem:[#allocation2 + $0x44] sm:$0xff] }
 0x188   : > { %8174 = vmatmul.mubr.bf16.gmra.mrb[116].mxu1 %v1640_v12  ;;  %8203 = vmatprep.subr.bf16.mxu0 %v9588_v28  ;;  %v2069_v7 = vpack.c.bf16 %v2054_v35, %v2053_v44  ;;  %v9438_v12 = vld [vmem:[%s12332_s3 + $0x1e8] sm:$0xff]   ;;  %v1856_v23 = vpack.c.bf16 %v1843_v17, %v1842_v61  ;;  %v9446_v38 = vld [vmem:[%s12332_s3 + $0x240] sm:$0xff]  }
 0x189   : > { %8177 = vmatprep.mubr.msk.bf16.mxu1 %vm9589_vm0, %v9588_v28  ;;  %8262 = vmatpush3.bf16.msra.mxu1 %v9423_v56  ;;  %v1837_v56 = vld [vmem:[#allocation2 + $0x1c] sm:$0xff]  ;;  %v1846_v53 = vld [vmem:[#allocation2 + $0x64] sm:$0xff] }
 0x18a   : > { %8263 = vmatprep.subr.bf16.mxu1 %v9588_v28  ;;  %v1858_v57 = vpack.c.bf16 %v1847_v14, %v1846_v53  ;;  %v9448_v35 = vld [vmem:[%s12332_s3 + $0x248] sm:$0xff]   ;;  %v2485_v53 = vld [vmem:[#allocation2 + $0x40] sm:$0xff] }
 0x18b   : > { %8204 = vmatpush3.bf16.msra.mxu0 %v9413_v18  ;;  %v1836_v18 = vld [vmem:[#allocation2 + $0x14] sm:$0xff]  ;;  %v9454_v17 = vld [vmem:[%s12332_s3 + $0x268] sm:$0xff]  }
 0x18c   : > { %8205 = vmatprep.subr.bf16.mxu0 %v9588_v28  ;;  %v1853_v22 = vpack.c.bf16 %v1837_v56, %v1836_v18  ;;  %v9449_v18 = vld [vmem:[%s12332_s3 + $0x250] sm:$0xff]  }
 0x18d   : > { %8264 = vmatpush3.bf16.msra.mxu1 %v9424_v49  ;;  %v9428_v49 = vld [vmem:[%s12332_s3 + $0x190] sm:$0xff]  }
 0x18e   : > { %8118 = vmatmul.mubr.bf16.gmra.mrb[80].mxu0 %v1424_v13  ;;  %8353 = vmatprep.subr.bf16.mxu1 %v9588_v28  ;;  %v2070_v13 = vpack.c.bf16 %v2056_v50, %v2055_v59  ;;  %v2265_v59 = vld [vmem:[#allocation2 + $0x17] sm:$0xff] }
 0x18f   : > { %8121 = vmatprep.mubr.msk.bf16.mxu0 %vm9589_vm0, %v9588_v28  ;;  %8206 = vmatpush3.bf16.msra.mxu0 %v9415_v11  ;;  %v9439_v11 = vld [vmem:[%s12332_s3 + $0x1f0] sm:$0xff]  }
 0x190   : > { %8178 = vmatmul.mubr.bf16.gmra.mrb[120].mxu1 %v1641_v51  ;;  %8207 = vmatprep.subr.bf16.mxu0 %v9588_v28  ;;  %v1839_v51 = vld [vmem:[#allocation2 + $0x2c] sm:$0xff] }
 0x191   : > { %8181 = vmatprep.mubr.msk.bf16.mxu1 %vm9589_vm0, %v9588_v28 }
 0x193   : > { %8208 = vmatpush3.bf16.msra.mxu0 %v9418_v54  ;;  %v9440_v54 = vld [vmem:[%s12332_s3 + $0x1f8] sm:$0xff]  }
 0x194   : > { %8209 = vmatprep.subr.bf16.mxu0 %v9588_v28 }
 0x196   : > { %8122 = vmatmul.mubr.bf16.gmra.mrb[84].mxu0 %v1425_v10  ;;  %v2057_v10 = vld [vmem:[#allocation2 + $0x4e] sm:$0xff] }
 0x197   : > { %8125 = vmatprep.mubr.msk.bf16.mxu0 %vm9589_vm0, %v9588_v28  ;;  %8210 = vmatpush3.bf16.msra.mxu0 %v9421_v19  ;;  %v1854_v19 = vpack.c.bf16 %v1839_v51, %v1838_v42  ;;  %v2071_v0 = vpack.c.bf16 %v2058_v52, %v2057_v10  ;;  %v9442_v42 = vld [vmem:[%s12332_s3 + $0x200] sm:$0xff]  }
 0x198   : > { %8182 = vmatmul.mubr.bf16.gmra.mrb[124].mxu1 %v1642_v62  ;;  %8211 = vmatprep.subr.bf16.mxu0 %v9588_v28  ;;  %v9434_v62 = vld [vmem:[%s12332_s3 + $0x1a8] sm:$0xff]  }
 0x199   : > { %8185 = vmatprep.mubr.msk.bf16.mxu1 %vm9589_vm0, %v9588_v28 }
 0x19b   : > { %8212 = vmatpush3.bf16.msra.mxu0 %v9425_v27  ;;  %v1841_v27 = vld [vmem:[#allocation2 + $0x3c] sm:$0xff] }
 0x19c   : > { %8301 = vmatprep.subr.bf16.mxu0 %v9588_v28 }
 0x19e   : > { %8126 = vmatmul.mubr.bf16.gmra.mrb[88].mxu0 %v1426_v55  ;;  %v1855_v55 = vpack.c.bf16 %v1841_v27, %v1840_v20  ;;  %v2483_v20 = vld [vmem:[#allocation2 + $0x30] sm:$0xff] }
 0x19f   : > { %8129 = vmatprep.mubr.msk.bf16.mxu0 %vm9589_vm0, %v9588_v28 }
 0x1a0   : > { %8186 = vmatmul.mubr.bf16.gmra.mrb[128].mxu1 %v1643_v33  ;;  %v2072_v33 = vpack.c.bf16 %v2060_v46, %v2059_v58  ;;  %v9452_v46 = vld [vmem:[%s12332_s3 + $0x260] sm:$0xff]   ;;  %v9443_v58 = vld [vmem:[%s12332_s3 + $0x208] sm:$0xff]  }
 0x1a1   : > { %8189 = vmatprep.mubr.msk.bf16.mxu1 %vm9589_vm0, %v9588_v28 }
 0x1a6   : > { %8130 = vmatmul.mubr.bf16.gmra.mrb[92].mxu0 %v1427_v45  ;;  %v2062_v45 = vld [vmem:[#allocation2 + $0x76] sm:$0xff] }
 0x1a7   : > { %8133 = vmatprep.mubr.msk.bf16.mxu0 %vm9589_vm0, %v9588_v28 }
 0x1a8   : > { %8190 = vmatmul.mubr.bf16.gmra.mrb[132].mxu1 %v1644_v25  ;;  %v2061_v25 = vld [vmem:[#allocation2 + $0x6e] sm:$0xff] }
 0x1a9   : > { %8193 = vmatprep.mubr.msk.bf16.mxu1 %vm9589_vm0, %v9588_v28  ;;  %v2073_v47 = vpack.c.bf16 %v2062_v45, %v2061_v25  ;;  %v2266_v25 = vld [vmem:[#allocation2 + $0x1f] sm:$0xff] }
 0x1ae   : > { %8134 = vmatmul.mubr.bf16.gmra.mrb[96].mxu0 %v1428_v2  ;;  %v2064_v2 = vld [vmem:[#allocation2 + $0x86] sm:$0xff] }
 0x1af   : > { %8137 = vmatprep.mubr.msk.bf16.mxu0 %vm9589_vm0, %v9588_v28 }
 0x1b0   : > { %8194 = vmatmul.mubr.bf16.gmra.mrb[136].mxu1 %v1645_v32  ;;  %v2063_v32 = vld [vmem:[#allocation2 + $0x7e] sm:$0xff] }
 0x1b1   : > { %8265 = vmatprep.mubr.msk.bf16.mxu1 %vm9589_vm0, %v9588_v28  ;;  %v2074_v5 = vpack.c.bf16 %v2064_v2, %v2063_v32 }
 0x1b6   : > { %8138 = vmatmul.mubr.bf16.gmra.mrb[100].mxu0 %v1429_v31  ;;  %v2066_v31 = vld [vmem:[#allocation2 + $0x96] sm:$0xff] }
 0x1b7   : > { %8141 = vmatprep.mubr.msk.bf16.mxu0 %vm9589_vm0, %v9588_v28 }
 0x1b8   : > { %8266 = vmatmul.mubr.bf16.vlgmr.msra.gmra.mrb[140].mxu1 %v2067_v24 }
 0x1b9   : > { %8269 = vmatprep.mubr.msk.bf16.mxu1 %vm9589_vm0, %v9588_v28  ;;  %8354 = vmatpush3.bf16.msra.mxu1 %v9430_v30  ;;  %v2065_v30 = vld [vmem:[#allocation2 + $0x8e] sm:$0xff] }
 0x1ba   : > { %8355 = vmatprep.subr.bf16.mxu1 %v9588_v28  ;;  %v2075_v24 = vpack.c.bf16 %v2066_v31, %v2065_v30  ;;  %v9455_v31 = vld [vmem:[%s12332_s3 + $0x270] sm:$0xff]   ;;  %v2500_v30 = vpack.c.bf16 %v2486_v8, %v2485_v53  ;;  %v2275_v53 = vld [vmem:[#allocation2 + $0x67] sm:$0xff] }
 0x1bd   : > { %8356 = vmatpush3.bf16.msra.mxu1 %v9432_v1  ;;  %v1848_v1 = vld [vmem:[#allocation2 + $0x74] sm:$0xff] }
 0x1be   : > { %8142 = vmatmul.mubr.bf16.gmra.mrb[104].mxu0 %v1430_v39  ;;  %8357 = vmatprep.subr.bf16.mxu1 %v9588_v28  ;;  %v1859_v39 = vpack.c.bf16 %v1849_v63, %v1848_v1  ;;  %v2269_v1 = vld [vmem:[#allocation2 + $0x37] sm:$0xff] }
 0x1bf   : > { %8213 = vmatprep.mubr.msk.bf16.mxu0 %vm9589_vm0, %v9588_v28 }
 0x1c0   : > { %8270 = vmatmul.mubr.bf16.gmra.mrb[144].mxu1 %v2068_v36  ;;  %v2479_v36 = vld [vmem:[#allocation2 + $0x10] sm:$0xff] }
 0x1c1   : > { %8273 = vmatprep.mubr.msk.bf16.mxu1 %vm9589_vm0, %v9588_v28  ;;  %8358 = vmatpush3.bf16.msra.mxu1 %v9433_v21  ;;  %v2497_v40 = vpack.c.bf16 %v2480_v37, %v2479_v36 }
 0x1c2   : > { %8359 = vmatprep.subr.bf16.mxu1 %v9588_v28 }
 0x1c5   : > { %8360 = vmatpush3.bf16.msra.mxu1 %v9435_v60 }
 0x1c6   : > { %8214 = vmatmul.mubr.bf16.vlgmr.msra.gmra.mrb[108].mxu0 %v1852_v41  ;;  %8361 = vmatprep.subr.bf16.mxu1 %v9588_v28  ;;  %v1850_v41 = vld [vmem:[#allocation2 + $0x84] sm:$0xff] }
 0x1c7   : > { %8302 = vmatpush3.bf16.msra.mxu0 %v9426_v6  ;;  %8217 = vmatprep.mubr.msk.bf16.mxu0 %vm9589_vm0, %v9588_v28  ;;  %v1851_v6 = vld [vmem:[#allocation2 + $0x8c] sm:$0xff] }
 0x1c8   : > { %8303 = vmatprep.subr.bf16.mxu0 %v9588_v28  ;;  %8274 = vmatmul.mubr.bf16.gmra.mrb[148].mxu1 %v2069_v7  ;;  %v1860_v7 = vpack.c.bf16 %v1851_v6, %v1850_v41 }
 0x1c9   : > { %8277 = vmatprep.mubr.msk.bf16.mxu1 %vm9589_vm0, %v9588_v28  ;;  %8362 = vmatpush3.bf16.msra.mxu1 %v9436_v4  ;;  %v2482_v4 = vld [vmem:[#allocation2 + $0x28] sm:$0xff] }
 0x1ca   : > { %8363 = vmatprep.subr.bf16.mxu1 %v9588_v28 }
 0x1cb   : > { %8304 = vmatpush3.bf16.msra.mxu0 %v9427_v9 }
 0x1cc   : > { %8305 = vmatprep.subr.bf16.mxu0 %v9588_v28 }
 0x1cd   : > { %8364 = vmatpush3.bf16.msra.mxu1 %v9438_v12  ;;  %v2481_v12 = vld [vmem:[#allocation2 + $0x20] sm:$0xff] }
 0x1ce   : > { %8218 = vmatmul.mubr.bf16.gmra.mrb[112].mxu0 %v1853_v22  ;;  %8365 = vmatprep.subr.bf16.mxu1 %v9588_v28 }
 0x1cf   : > { %8221 = vmatprep.mubr.msk.bf16.mxu0 %vm9589_vm0, %v9588_v28  ;;  %8306 = vmatpush3.bf16.msra.mxu0 %v9428_v49  ;;  %v2498_v49 = vpack.c.bf16 %v2482_v4, %v2481_v12  ;;  %v2487_v4 = vld [vmem:[#allocation2 + $0x50] sm:$0xff] }
 0x1d0   : > { %8278 = vmatmul.mubr.bf16.gmra.mrb[152].mxu1 %v2070_v13  ;;  %8307 = vmatprep.subr.bf16.mxu0 %v9588_v28 }
 0x1d1   : > { %8281 = vmatprep.mubr.msk.bf16.mxu1 %vm9589_vm0, %v9588_v28  ;;  %8366 = vmatpush3.bf16.msra.mxu1 %v9439_v11  ;;  %v9451_v11 = vld [vmem:[%s12332_s3 + $0x258] sm:$0xff]  }
 0x1d2   : > { %8367 = vmatprep.subr.bf16.mxu1 %v9588_v28 }
 0x1d3   : > { %8308 = vmatpush3.bf16.msra.mxu0 %v9429_v48 }
 0x1d4   : > { %8309 = vmatprep.subr.bf16.mxu0 %v9588_v28 }
 0x1d5   : > { %8368 = vmatpush3.bf16.msra.mxu1 %v9440_v54  ;;  %v2264_v54 = vld [vmem:[#allocation2 + $0xf] sm:$0xff] }
 0x1d6   : > { %8222 = vmatmul.mubr.bf16.gmra.mrb[116].mxu0 %v1854_v19  ;;  %8457 = vmatprep.subr.bf16.mxu1 %v9588_v28 }
 0x1d7   : > { %8225 = vmatprep.mubr.msk.bf16.mxu0 %vm9589_vm0, %v9588_v28  ;;  %8310 = vmatpush3.bf16.msra.mxu0 %v9431_v16  ;;  %v2484_v16 = vld [vmem:[#allocation2 + $0x38] sm:$0xff] }
 0x1d8   : > { %8282 = vmatmul.mubr.bf16.gmra.mrb[156].mxu1 %v2071_v0  ;;  %8311 = vmatprep.subr.bf16.mxu0 %v9588_v28  ;;  %v2282_v0 = vpack.c.bf16 %v2265_v59, %v2264_v54  ;;  %v2270_v59 = vld [vmem:[#allocation2 + $0x3f] sm:$0xff] }
 0x1d9   : > { %8285 = vmatprep.mubr.msk.bf16.mxu1 %vm9589_vm0, %v9588_v28 }
 0x1db   : > { %8312 = vmatpush3.bf16.msra.mxu0 %v9434_v62 }
 0x1dc   : > { %8313 = vmatprep.subr.bf16.mxu0 %v9588_v28 }
 0x1de   : > { %8226 = vmatmul.mubr.bf16.gmra.mrb[120].mxu0 %v1855_v55  ;;  %v2499_v55 = vpack.c.bf16 %v2484_v16, %v2483_v20  ;;  %v9457_v20 = vld [vmem:[%s12332_s3 + $0x238] sm:$0xff]  }
 0x1df   : > { %8229 = vmatprep.mubr.msk.bf16.mxu0 %vm9589_vm0, %v9588_v28  ;;  %8314 = vmatpush3.bf16.msra.mxu0 %v9437_v15 }
 0x1e0   : > { %8286 = vmatmul.mubr.bf16.gmra.mrb[160].mxu1 %v2072_v33  ;;  %8315 = vmatprep.subr.bf16.mxu0 %v9588_v28 }
 0x1e1   : > { %8289 = vmatprep.mubr.msk.bf16.mxu1 %vm9589_vm0, %v9588_v28 }
 0x1e3   : > { %8316 = vmatpush3.bf16.msra.mxu0 %v9441_v43  ;;  %v2267_v43 = vld [vmem:[#allocation2 + $0x27] sm:$0xff] }
 0x1e4   : > { %8405 = vmatprep.subr.bf16.mxu0 %v9588_v28  ;;  %v2283_v32 = vpack.c.bf16 %v2267_v43, %v2266_v25  ;;  %v2272_v43 = vld [vmem:[#allocation2 + $0x4f] sm:$0xff] }
 0x1e6   : > { %8230 = vmatmul.mubr.bf16.gmra.mrb[124].mxu0 %v1856_v23 }
 0x1e7   : > { %8233 = vmatprep.mubr.msk.bf16.mxu0 %vm9589_vm0, %v9588_v28 }
 0x1e8   : > { %8290 = vmatmul.mubr.bf16.gmra.mrb[164].mxu1 %v2073_v47 }
 0x1e9   : > { %8293 = vmatprep.mubr.msk.bf16.mxu1 %vm9589_vm0, %v9588_v28 }
 0x1ee   : > { %8234 = vmatmul.mubr.bf16.gmra.mrb[128].mxu0 %v1857_v29 }
 0x1ef   : > { %8237 = vmatprep.mubr.msk.bf16.mxu0 %vm9589_vm0, %v9588_v28 }
 0x1f0   : > { %8294 = vmatmul.mubr.bf16.gmra.mrb[168].mxu1 %v2074_v5 }
 0x1f1   : > { %8297 = vmatprep.mubr.msk.bf16.mxu1 %vm9589_vm0, %v9588_v28 }
 0x1f6   : > { %8238 = vmatmul.mubr.bf16.gmra.mrb[132].mxu0 %v1858_v57 }
 0x1f7   : > { %8241 = vmatprep.mubr.msk.bf16.mxu0 %vm9589_vm0, %v9588_v28 }
 0x1f8   : > { %8298 = vmatmul.mubr.bf16.gmra.mrb[172].mxu1 %v2075_v24  ;;  %v9445_v24 = vld [vmem:[%s12332_s3 + $0x218] sm:$0xff]  }
 0x1f9   : > { %8369 = vmatprep.mubr.msk.bf16.mxu1 %vm9589_vm0, %v9588_v28 }
 0x1fb   : > { %v1333_v3 = vpop.f32.mrb[68].mxu1 }
 0x1fc   : > { %v8059_v26 = vpop.f32.mrb[69].mxu1 }
 0x1fd   : > { %v1336_v21 = vpop.f32.mrb[70].mxu1 }
 0x1fe   : > { %8242 = vmatmul.mubr.bf16.gmra.mrb[136].mxu0 %v1859_v39  ;;  %v8060_v60 = vpop.f32.mrb[71].mxu1 }
 0x1ff   : > { %8245 = vmatprep.mubr.msk.bf16.mxu0 %vm9589_vm0, %v9588_v28  ;;  %v9447_v60 = vld [vmem:[%s12332_s3 + $0x220] sm:$0xff]  }
 0x200   : > { %8370 = vmatmul.mubr.bf16.vlgmr.msra.gmra.mrb[176].mxu1 %v2497_v40 }
 0x201   : > { %8373 = vmatprep.mubr.msk.bf16.mxu1 %vm9589_vm0, %v9588_v28  ;;  %8458 = vmatpush3.bf16.msra.mxu1 %v9446_v38  ;;  %v2488_v38 = vld [vmem:[#allocation2 + $0x58] sm:$0xff] }
 0x202   : > { %8459 = vmatprep.subr.bf16.mxu1 %v9588_v28 }
 0x203   : > { %v1341_v44 = vpop.f32.mrb[72].mxu1 }
 0x204   : > { %v8063_v9 = vpop.f32.mrb[73].mxu1 }
 0x205   : > { %v1344_v56 = vpop.f32.mrb[74].mxu1  ;;  %8460 = vmatpush3.bf16.msra.mxu1 %v9448_v35  ;;  %v2501_v9 = vpack.c.bf16 %v2488_v38, %v2487_v4  ;;  %v2493_v38 = vld [vmem:[#allocation2 + $0x80] sm:$0xff] }
 0x206   : > { %8246 = vmatmul.mubr.bf16.gmra.mrb[140].mxu0 %v1860_v7  ;;  %v8064_v50 = vpop.f32.mrb[75].mxu1  ;;  %8461 = vmatprep.subr.bf16.mxu1 %v9588_v28 }
 0x207   : > { %8317 = vmatprep.mubr.msk.bf16.mxu0 %vm9589_vm0, %v9588_v28 }
 0x208   : > { %8374 = vmatmul.mubr.bf16.gmra.mrb[180].mxu1 %v2498_v49 }
 0x209   : > { %v1180_v22 = vpop.f32.mrb[36].mxu0  ;;  %8377 = vmatprep.mubr.msk.bf16.mxu1 %vm9589_vm0, %v9588_v28  ;;  %8462 = vmatpush3.bf16.msra.mxu1 %v9449_v18  ;;  %v2271_v18 = vld [vmem:[#allocation2 + $0x47] sm:$0xff] }
 0x20a   : > { %v10430_v13 = vadd.f32 %v1333_v3, %v1180_v22  ;;  %v8007_v48 = vpop.f32.mrb[37].mxu0  ;;  %8463 = vmatprep.subr.bf16.mxu1 %v9588_v28  ;;  %v9456_v3 = vld [vmem:[%s12332_s3 + $0x278] sm:$0xff]  }
 0x20b   : > { %v1183_v51 = vpop.f32.mrb[38].mxu0  ;;  %v1349_v52 = vpop.f32.mrb[76].mxu1  ;;  %v2490_v48 = vld [vmem:[#allocation2 + $0x68] sm:$0xff] }
 0x20c   : > { %v10436_v19 = vadd.f32 %v1336_v21, %v1183_v51  ;;  %v8008_v10 = vpop.f32.mrb[39].mxu0  ;;  %v8067_v62 = vpop.f32.mrb[77].mxu1  ;;  %v2268_v21 = vld [vmem:[#allocation2 + $0x2f] sm:$0xff] }
 0x20d   : > { %v1352_v27 = vpop.f32.mrb[78].mxu1  ;;  %8464 = vmatpush3.bf16.msra.mxu1 %v9451_v11  ;;  %v2284_v35 = vpack.c.bf16 %v2269_v1, %v2268_v21  ;;  %v9453_v51 = vld [vmem:[%s12332_s3 + $0x230] sm:$0xff]   ;;  %v2494_v1 = vld [vmem:[#allocation2 + $0x88] sm:$0xff] }
 0x20e   : > { %8318 = vmatmul.mubr.bf16.vlgmr.msra.gmra.mrb[144].mxu0 %v2282_v0  ;;  %v8068_v15 = vpop.f32.mrb[79].mxu1  ;;  %8465 = vmatprep.subr.bf16.mxu1 %v9588_v28  ;;  %v2489_v0 = vld [vmem:[#allocation2 + $0x60] sm:$0xff] }
 0x20f   : > { %8406 = vmatpush3.bf16.msra.mxu0 %v9442_v42  ;;  %8321 = vmatprep.mubr.msk.bf16.mxu0 %vm9589_vm0, %v9588_v28  ;;  %v2273_v15 = vld [vmem:[#allocation2 + $0x57] sm:$0xff] }
 0x210   : > { %8407 = vmatprep.subr.bf16.mxu0 %v9588_v28  ;;  %8378 = vmatmul.mubr.bf16.gmra.mrb[184].mxu1 %v2499_v55 }
 0x211   : > { %v1188_v33 = vpop.f32.mrb[40].mxu0  ;;  %8381 = vmatprep.mubr.msk.bf16.mxu1 %vm9589_vm0, %v9588_v28  ;;  %8466 = vmatpush3.bf16.msra.mxu1 %v9452_v46 }
 0x212   : > { %v10453_v61 = vadd.f32 %v1341_v44, %v1188_v33  ;;  %v8011_v45 = vpop.f32.mrb[41].mxu0  ;;  %8467 = vmatprep.subr.bf16.mxu1 %v9588_v28 }
 0x213   : > { %v1191_v23 = vpop.f32.mrb[42].mxu0  ;;  %8408 = vmatpush3.bf16.msra.mxu0 %v9443_v58  ;;  %v1357_v47 = vpop.f32.mrb[80].mxu1  ;;  %v2492_v45 = vld [vmem:[#allocation2 + $0x78] sm:$0xff] }
 0x214   : > { %v10459_v2 = vadd.f32 %v1344_v56, %v1191_v23  ;;  %v8012_v29 = vpop.f32.mrb[43].mxu0  ;;  %v8071_v5 = vpop.f32.mrb[81].mxu1  ;;  %8409 = vmatprep.subr.bf16.mxu0 %v9588_v28  ;;  %v9450_v56 = vld [vmem:[%s12332_s3 + $0x228] sm:$0xff]  }
 0x215   : > { %v1360_v14 = vpop.f32.mrb[82].mxu1  ;;  %8468 = vmatpush3.bf16.msra.mxu1 %v9454_v17  ;;  %v2491_v29 = vld [vmem:[#allocation2 + $0x70] sm:$0xff] }
 0x216   : > { %8322 = vmatmul.mubr.bf16.gmra.mrb[148].mxu0 %v2283_v32  ;;  %v8072_v57 = vpop.f32.mrb[83].mxu1  ;;  %8469 = vmatprep.subr.bf16.mxu1 %v9588_v28  ;;  %v2503_v5 = vpack.c.bf16 %v2492_v45, %v2491_v29  ;;  %v2909_v45 = vld [vmem:[#allocation2 + $0x12] sm:$0xff] }
 0x217   : > { %8325 = vmatprep.mubr.msk.bf16.mxu0 %vm9589_vm0, %v9588_v28  ;;  %8410 = vmatpush3.bf16.msra.mxu0 %v9444_v34  ;;  %v2281_v29 = vld [vmem:[#allocation2 + $0x97] sm:$0xff] }
 0x218   : > { %8382 = vmatmul.mubr.bf16.gmra.mrb[188].mxu1 %v2500_v30  ;;  %8411 = vmatprep.subr.bf16.mxu0 %v9588_v28 }
 0x219   : > { %v1196_v63 = vpop.f32.mrb[44].mxu0  ;;  %8385 = vmatprep.mubr.msk.bf16.mxu1 %vm9589_vm0, %v9588_v28  ;;  %8470 = vmatpush3.bf16.msra.mxu1 %v9455_v31 }
 0x21a   : > { %v10477_v37 = vadd.f32 %v1349_v52, %v1196_v63  ;;  %v8015_v39 = vpop.f32.mrb[45].mxu0  ;;  %8471 = vmatprep.subr.bf16.mxu1 %v9588_v28  ;;  %v2285_v52 = vpack.c.bf16 %v2271_v18, %v2270_v59 }
 0x21b   : > { %v1199_v26 = vpop.f32.mrb[46].mxu0  ;;  %v1365_v36 = vpop.f32.mrb[84].mxu1  ;;  %8412 = vmatpush3.bf16.msra.mxu0 %v9445_v24  ;;  %v2274_v24 = vld [vmem:[#allocation2 + $0x5f] sm:$0xff] }
 0x21c   : > { %v10483_v40 = vadd.f32 %v1352_v27, %v1199_v26  ;;  %v8016_v6 = vpop.f32.mrb[47].mxu0  ;;  %v8075_v41 = vpop.f32.mrb[85].mxu1  ;;  %8413 = vmatprep.subr.bf16.mxu0 %v9588_v28  ;;  %v2502_v27 = vpack.c.bf16 %v2490_v48, %v2489_v0  ;;  %v2287_v26 = vpack.c.bf16 %v2275_v53, %v2274_v24  ;;  %v2495_v48 = vld [vmem:[#allocation2 + $0x90] sm:$0xff] }
 0x21d   : > { %v1368_v44 = vpop.f32.mrb[86].mxu1  ;;  %8472 = vmatpush3.bf16.msra.mxu1 %v9456_v3  ;;  %v2504_v6 = vpack.c.bf16 %v2494_v1, %v2493_v38  ;;  %v2277_v41 = vld [vmem:[#allocation2 + $0x77] sm:$0xff]  ;;  %v2912_v24 = vld [vmem:[#allocation2 + $0x2a] sm:$0xff] }
 0x21e   : > { %8326 = vmatmul.mubr.bf16.gmra.mrb[152].mxu0 %v2284_v35  ;;  %v8076_v7 = vpop.f32.mrb[87].mxu1  ;;  %8561 = vmatprep.subr.bf16.mxu1 %v9588_v28  ;;  %v9465_v38 = vld [vmem:[%s12332_s3 + $0x2d0] sm:$0xff]  }
 0x21f   : > { %8329 = vmatprep.mubr.msk.bf16.mxu0 %vm9589_vm0, %v9588_v28  ;;  %8414 = vmatpush3.bf16.msra.mxu0 %v9447_v60 }
 0x220   : > { %8386 = vmatmul.mubr.bf16.gmra.mrb[192].mxu1 %v2501_v9  ;;  %8415 = vmatprep.subr.bf16.mxu0 %v9588_v28  ;;  %v2276_v9 = vld [vmem:[#allocation2 + $0x6f] sm:$0xff] }
 0x221   : > { %v1204_v12 = vpop.f32.mrb[48].mxu0  ;;  %8389 = vmatprep.mubr.msk.bf16.mxu1 %vm9589_vm0, %v9588_v28 }
 0x222   : > { %v10495_v50 = vadd.f32 %v1357_v47, %v1204_v12  ;;  %v8019_v49 = vpop.f32.mrb[49].mxu0  ;;  %v2286_v47 = vpack.c.bf16 %v2273_v15, %v2272_v43  ;;  %v2496_v12 = vld [vmem:[#allocation2 + $0x98] sm:$0xff] }
 0x223   : > { %v1207_v22 = vpop.f32.mrb[50].mxu0  ;;  %v1373_v11 = vpop.f32.mrb[88].mxu1  ;;  %8416 = vmatpush3.bf16.msra.mxu0 %v9450_v56 }
 0x224   : > { %v10500_v54 = vadd.f32 %v1360_v14, %v1207_v22  ;;  %v8020_v42 = vpop.f32.mrb[51].mxu0  ;;  %v8079_v16 = vpop.f32.mrb[89].mxu1  ;;  %8417 = vmatprep.subr.bf16.mxu0 %v9588_v28  ;;  %v2288_v22 = vpack.c.bf16 %v2277_v41, %v2276_v9  ;;  %v2695_v41 = vld [vmem:[#allocation2 + $0x19] sm:$0xff] }
 0x225   : > { %v1376_v10 = vpop.f32.mrb[90].mxu1  ;;  %v2505_v42 = vpack.c.bf16 %v2496_v12, %v2495_v48  ;;  %v2279_v16 = vld [vmem:[#allocation2 + $0x87] sm:$0xff]  ;;  %v2694_v12 = vld [vmem:[#allocation2 + $0x11] sm:$0xff] }
 0x226   : > { %8330 = vmatmul.mubr.bf16.gmra.mrb[156].mxu0 %v2285_v52  ;;  %v8080_v62 = vpop.f32.mrb[91].mxu1 }
 0x227   : > { %8333 = vmatprep.mubr.msk.bf16.mxu0 %vm9589_vm0, %v9588_v28  ;;  %8418 = vmatpush3.bf16.msra.mxu0 %v9453_v51 }
 0x228   : > { %8390 = vmatmul.mubr.bf16.gmra.mrb[196].mxu1 %v2502_v27  ;;  %8419 = vmatprep.subr.bf16.mxu0 %v9588_v28  ;;  %v2278_v27 = vld [vmem:[#allocation2 + $0x7f] sm:$0xff] }
 0x229   : > { %v1212_v46 = vpop.f32.mrb[52].mxu0  ;;  %8393 = vmatprep.mubr.msk.bf16.mxu1 %vm9589_vm0, %v9588_v28 }
 0x22a   : > { %v10511_v55 = vadd.f32 %v1365_v36, %v1212_v46  ;;  %v8023_v58 = vpop.f32.mrb[53].mxu0  ;;  %v2910_v46 = vld [vmem:[#allocation2 + $0x1a] sm:$0xff] }
 0x22b   : > { %v1215_v33 = vpop.f32.mrb[54].mxu0  ;;  %v1381_v17 = vpop.f32.mrb[92].mxu1  ;;  %8420 = vmatpush3.bf16.msra.mxu0 %v9457_v20 }
 0x22c   : > { %v10513_v23 = vadd.f32 %v1368_v44, %v1215_v33  ;;  %v8024_v25 = vpop.f32.mrb[55].mxu0  ;;  %v8083_v8 = vpop.f32.mrb[93].mxu1  ;;  %8509 = vmatprep.subr.bf16.mxu0 %v9588_v28  ;;  %v2289_v33 = vpack.c.bf16 %v2279_v16, %v2278_v27  ;;  %v2913_v16 = vld [vmem:[#allocation2 + $0x32] sm:$0xff] }
 0x22d   : > { %v1384_v34 = vpop.f32.mrb[94].mxu1  ;;  %v9462_v25 = vld [vmem:[%s12332_s3 + $0x2c0] sm:$0xff]   ;;  %v2927_v8 = vpack.c.bf16 %v2910_v46, %v2909_v45 }
 0x22e   : > { %8334 = vmatmul.mubr.bf16.gmra.mrb[160].mxu0 %v2286_v47  ;;  %v8084_v32 = vpop.f32.mrb[95].mxu1 }
 0x22f   : > { %8337 = vmatprep.mubr.msk.bf16.mxu0 %vm9589_vm0, %v9588_v28  ;;  %v9464_v32 = vld [vmem:[%s12332_s3 + $0x2c8] sm:$0xff]  }
 0x230   : > { %8394 = vmatmul.mubr.bf16.gmra.mrb[200].mxu1 %v2503_v5 }
 0x231   : > { %v1220_v14 = vpop.f32.mrb[56].mxu0  ;;  %8397 = vmatprep.mubr.msk.bf16.mxu1 %vm9589_vm0, %v9588_v28 }
 0x232   : > { %v10520_v31 = vadd.f32 %v1373_v11, %v1220_v14  ;;  %v8027_v57 = vpop.f32.mrb[57].mxu0 }
 0x233   : > { %v1223_v30 = vpop.f32.mrb[58].mxu0  ;;  %v1389_v63 = vpop.f32.mrb[96].mxu1  ;;  %v2280_v57 = vld [vmem:[#allocation2 + $0x8f] sm:$0xff] }
 0x234   : > { %v10522_v3 = vadd.f32 %v1376_v10, %v1223_v30  ;;  %v8028_v39 = vpop.f32.mrb[59].mxu0  ;;  %v8087_v21 = vpop.f32.mrb[97].mxu1 }
 0x235   : > { %v1392_v36 = vpop.f32.mrb[98].mxu1  ;;  %v2290_v39 = vpack.c.bf16 %v2281_v29, %v2280_v57 }
 0x236   : > { %8338 = vmatmul.mubr.bf16.gmra.mrb[164].mxu0 %v2287_v26  ;;  %v8088_v60 = vpop.f32.mrb[99].mxu1 }
 0x237   : > { %8341 = vmatprep.mubr.msk.bf16.mxu0 %vm9589_vm0, %v9588_v28 }
 0x238   : > { %8398 = vmatmul.mubr.bf16.gmra.mrb[204].mxu1 %v2504_v6 }
 0x239   : > { %v1228_v35 = vpop.f32.mrb[60].mxu0  ;;  %8401 = vmatprep.mubr.msk.bf16.mxu1 %vm9589_vm0, %v9588_v28 }
 0x23a   : > { %v10528_v44 = vadd.f32 %v1381_v17, %v1228_v35  ;;  %v8031_v4 = vpop.f32.mrb[61].mxu0 }
 0x23b   : > { %v1231_v7 = vpop.f32.mrb[62].mxu0  ;;  %v1397_v56 = vpop.f32.mrb[100].mxu1  ;;  %v9467_v4 = vld [vmem:[%s12332_s3 + $0x2d8] sm:$0xff]  }
 0x23c   : > { %v10530_v18 = vadd.f32 %v1384_v34, %v1231_v7  ;;  %v8032_v49 = vpop.f32.mrb[63].mxu0  ;;  %v8091_v59 = vpop.f32.mrb[101].mxu1 }
 0x23d   : > { %v1400_v11 = vpop.f32.mrb[102].mxu1  ;;  %v9458_v49 = vld [vmem:[%s12332_s3 + $0x280] sm:$0xff]  }
 0x23e   : > { %8342 = vmatmul.mubr.bf16.gmra.mrb[168].mxu0 %v2288_v22  ;;  %v8092_v51 = vpop.f32.mrb[103].mxu1  ;;  %v2914_v59 = vld [vmem:[#allocation2 + $0x3a] sm:$0xff] }
 0x23f   : > { %8345 = vmatprep.mubr.msk.bf16.mxu0 %vm9589_vm0, %v9588_v28  ;;  %v2712_v51 = vpack.c.bf16 %v2695_v41, %v2694_v12  ;;  %v2929_v27 = vpack.c.bf16 %v2914_v59, %v2913_v16  ;;  %v2698_v41 = vld [vmem:[#allocation2 + $0x31] sm:$0xff] }
 0x240   : > { %8402 = vmatmul.mubr.bf16.gmra.mrb[208].mxu1 %v2505_v42 }
 0x241   : > { %v1236_v52 = vpop.f32.mrb[64].mxu0  ;;  %8473 = vmatprep.mubr.msk.bf16.mxu1 %vm9589_vm0, %v9588_v28 }
 0x242   : > { %v10536_v10 = vadd.f32 %v1389_v63, %v1236_v52  ;;  %v8035_v0 = vpop.f32.mrb[65].mxu0 }
 0x243   : > { %v1239_v62 = vpop.f32.mrb[66].mxu0  ;;  %v1745_v20 = vpop.f32.mrb[104].mxu1  ;;  %v9468_v0 = vld [vmem:[%s12332_s3 + $0x2e0] sm:$0xff]  }
 0x244   : > { %v10538_v15 = vadd.f32 %v1392_v36, %v1239_v62  ;;  %v8036_v58 = vpop.f32.mrb[67].mxu0  ;;  %v8163_v43 = vpop.f32.mrb[105].mxu1  ;;  %v2911_v36 = vld [vmem:[#allocation2 + $0x22] sm:$0xff] }
 0x245   : > { %v1748_v17 = vpop.f32.mrb[106].mxu1  ;;  %v2928_v6 = vpack.c.bf16 %v2912_v24, %v2911_v36  ;;  %v2697_v58 = vld [vmem:[#allocation2 + $0x29] sm:$0xff] }
 0x246   : > { %8346 = vmatmul.mubr.bf16.gmra.mrb[172].mxu0 %v2289_v33  ;;  %v8164_v47 = vpop.f32.mrb[107].mxu1  ;;  %v9470_v33 = vld [vmem:[%s12332_s3 + $0x2e8] sm:$0xff]  }
 0x247   : > { %8349 = vmatprep.mubr.msk.bf16.mxu0 %vm9589_vm0, %v9588_v28  ;;  %v2915_v24 = vld [vmem:[#allocation2 + $0x42] sm:$0xff] }
 0x248   : > { %8474 = vmatmul.mubr.bf16.vlgmr.msra.gmra.mrb[212].mxu1 %v2927_v8  ;;  %v2916_v8 = vld [vmem:[#allocation2 + $0x4a] sm:$0xff] }
 0x249   : > { %v1244_v34 = vpop.f32.mrb[68].mxu0  ;;  %8477 = vmatprep.mubr.msk.bf16.mxu1 %vm9589_vm0, %v9588_v28  ;;  %8562 = vmatpush3.bf16.msra.mxu1 %v9462_v25  ;;  %v2696_v25 = vld [vmem:[#allocation2 + $0x21] sm:$0xff] }
 0x24a   : > { %v10550_v5 = vadd.f32 %v1397_v56, %v1244_v34  ;;  %v8039_v14 = vpop.f32.mrb[69].mxu0  ;;  %8563 = vmatprep.subr.bf16.mxu1 %v9588_v28  ;;  %v9460_v34 = vld [vmem:[%s12332_s3 + $0x290] sm:$0xff]  }
 0x24b   : > { %v1247_v53 = vpop.f32.mrb[70].mxu0  ;;  %v10553_v30 = vpop.f32.mrb[108].mxu1  ;;  %v2713_v14 = vpack.c.bf16 %v2697_v58, %v2696_v25  ;;  %v2920_v58 = vld [vmem:[#allocation2 + $0x6a] sm:$0xff] }
 0x24c   : > { %v10555_v63 = vadd.f32 %v1400_v11, %v1247_v53  ;;  %v8040_v1 = vpop.f32.mrb[71].mxu0  ;;  %v8167_v26 = vpop.f32.mrb[109].mxu1 }
 0x24d   : > { %v10557_v21 = vpop.f32.mrb[110].mxu1  ;;  %8564 = vmatpush3.bf16.msra.mxu1 %v9464_v32  ;;  %v9471_v1 = vld [vmem:[%s12332_s3 + $0x2f0] sm:$0xff]   ;;  %v2930_v26 = vpack.c.bf16 %v2916_v8, %v2915_v24 }
 0x24e   : > { %8350 = vmatmul.mubr.bf16.gmra.mrb[176].mxu0 %v2290_v39  ;;  %v8168_v60 = vpop.f32.mrb[111].mxu1  ;;  %8565 = vmatprep.subr.bf16.mxu1 %v9588_v28 }
 0x24f   : > { %8421 = vmatprep.mubr.msk.bf16.mxu0 %vm9589_vm0, %v9588_v28 }
 0x250   : > { %8478 = vmatmul.mubr.bf16.gmra.mrb[216].mxu1 %v2928_v6 }
 0x251   : > { %v1530_v35 = vpop.f32.mrb[72].mxu0  ;;  %8481 = vmatprep.mubr.msk.bf16.mxu1 %vm9589_vm0, %v9588_v28  ;;  %8566 = vmatpush3.bf16.msra.mxu1 %v9465_v38  ;;  %v2699_v38 = vld [vmem:[#allocation2 + $0x39] sm:$0xff] }
 0x252   : > { %v1601_v7 = vadd.f32 %v1530_v35, %v10430_v13  ;;  %v8111_v9 = vpop.f32.mrb[73].mxu0  ;;  %8567 = vmatprep.subr.bf16.mxu1 %v9588_v28 }
 0x253   : > { %v1533_v56 = vpop.f32.mrb[74].mxu0  ;;  %v10575_v22 = vpop.f32.mrb[112].mxu1  ;;  %v9463_v9 = vld [vmem:[%s12332_s3 + $0x2a0] sm:$0xff]  }
 0x254   : > { %v1602_v11 = vadd.f32 %v1533_v56, %v10436_v19  ;;  %v8112_v48 = vpop.f32.mrb[75].mxu0  ;;  %v8171_v42 = vpop.f32.mrb[113].mxu1  ;;  %v10578_v52 = vadd.f32 %v1745_v20, %v1601_v7  ;;  %v9459_v19 = vld [vmem:[%s12332_s3 + $0x288] sm:$0xff]   ;;  %v2918_v7 = vld [vmem:[#allocation2 + $0x5a] sm:$0xff] }
 0x255   : > { %v10580_v13 = vpop.f32.mrb[114].mxu1  ;;  %8568 = vmatpush3.bf16.msra.mxu1 %v9467_v4  ;;  %v2917_v48 = vld [vmem:[#allocation2 + $0x52] sm:$0xff] }
 0x256   : > { %8422 = vmatmul.mubr.bf16.vlgmr.msra.gmra.mrb[180].mxu0 %v2712_v51  ;;  %v8172_v62 = vpop.f32.mrb[115].mxu1  ;;  %8569 = vmatprep.subr.bf16.mxu1 %v9588_v28  ;;  %v10586_v46 = vadd.f32 %v1748_v17, %v1602_v11  ;;  %v2931_v42 = vpack.c.bf16 %v2918_v7, %v2917_v48 }
 0x257   : > { %8510 = vmatpush3.bf16.msra.mxu0 %v9458_v49  ;;  %8425 = vmatprep.mubr.msk.bf16.mxu0 %vm9589_vm0, %v9588_v28  ;;  %v2714_v49 = vpack.c.bf16 %v2699_v38, %v2698_v41  ;;  %v2921_v41 = vld [vmem:[#allocation2 + $0x72] sm:$0xff] }
 0x258   : > { %8511 = vmatprep.subr.bf16.mxu0 %v9588_v28  ;;  %8482 = vmatmul.mubr.bf16.gmra.mrb[220].mxu1 %v2929_v27 }
 0x259   : > { %v1538_v20 = vpop.f32.mrb[76].mxu0  ;;  %8485 = vmatprep.mubr.msk.bf16.mxu1 %vm9589_vm0, %v9588_v28  ;;  %8570 = vmatpush3.bf16.msra.mxu1 %v9468_v0  ;;  %v2701_v0 = vld [vmem:[#allocation2 + $0x49] sm:$0xff] }
 0x25a   : > { %v1603_v43 = vadd.f32 %v1538_v20, %v10453_v61  ;;  %v8115_v17 = vpop.f32.mrb[77].mxu0  ;;  %8571 = vmatprep.subr.bf16.mxu1 %v9588_v28 }
 0x25b   : > { %v1541_v45 = vpop.f32.mrb[78].mxu0  ;;  %8512 = vmatpush3.bf16.msra.mxu0 %v9459_v19  ;;  %v10601_v47 = vpop.f32.mrb[116].mxu1  ;;  %v2700_v19 = vld [vmem:[#allocation2 + $0x41] sm:$0xff] }
 0x25c   : > { %v1604_v29 = vadd.f32 %v1541_v45, %v10459_v2  ;;  %v8116_v32 = vpop.f32.mrb[79].mxu0  ;;  %v8175_v53 = vpop.f32.mrb[117].mxu1  ;;  %8513 = vmatprep.subr.bf16.mxu0 %v9588_v28  ;;  %v10609_v61 = vadd.f32 %v10553_v30, %v1603_v43  ;;  %v9461_v30 = vld [vmem:[%s12332_s3 + $0x298] sm:$0xff]   ;;  %v2715_v45 = vpack.c.bf16 %v2701_v0, %v2700_v19 }
 0x25d   : > { %v10611_v57 = vpop.f32.mrb[118].mxu1  ;;  %8572 = vmatpush3.bf16.msra.mxu1 %v9470_v33  ;;  %v9469_v33 = vld [vmem:[%s12332_s3 + $0x2b0] sm:$0xff]   ;;  %v2703_v53 = vld [vmem:[#allocation2 + $0x59] sm:$0xff] }
 0x25e   : > { %8426 = vmatmul.mubr.bf16.gmra.mrb[184].mxu0 %v2713_v14  ;;  %v8176_v39 = vpop.f32.mrb[119].mxu1  ;;  %8573 = vmatprep.subr.bf16.mxu1 %v9588_v28  ;;  %v10618_v2 = vadd.f32 %v10557_v21, %v1604_v29  ;;  %v9472_v21 = vld [vmem:[%s12332_s3 + $0x2f8] sm:$0xff]  }
 0x25f   : > { %8429 = vmatprep.mubr.msk.bf16.mxu0 %vm9589_vm0, %v9588_v28  ;;  %8514 = vmatpush3.bf16.msra.mxu0 %v9460_v34  ;;  %v2919_v34 = vld [vmem:[#allocation2 + $0x62] sm:$0xff]  ;;  %v2702_v39 = vld [vmem:[#allocation2 + $0x51] sm:$0xff] }
 0x260   : > { %8486 = vmatmul.mubr.bf16.gmra.mrb[224].mxu1 %v2930_v26  ;;  %8515 = vmatprep.subr.bf16.mxu0 %v9588_v28  ;;  %v2932_v32 = vpack.c.bf16 %v2920_v58, %v2919_v34 }
 0x261   : > { %v1546_v36 = vpop.f32.mrb[80].mxu0  ;;  %8489 = vmatprep.mubr.msk.bf16.mxu1 %vm9589_vm0, %v9588_v28  ;;  %8574 = vmatpush3.bf16.msra.mxu1 %v9471_v1 }
 0x262   : > { %v1605_v60 = vadd.f32 %v1546_v36, %v10477_v37  ;;  %v8119_v6 = vpop.f32.mrb[81].mxu0  ;;  %8575 = vmatprep.subr.bf16.mxu1 %v9588_v28 }
 0x263   : > { %v1549_v35 = vpop.f32.mrb[82].mxu0  ;;  %v10633_v4 = vpop.f32.mrb[120].mxu1  ;;  %8516 = vmatpush3.bf16.msra.mxu0 %v9461_v30  ;;  %v2922_v30 = vld [vmem:[#allocation2 + $0x7a] sm:$0xff] }
 0x264   : > { %v1606_v56 = vadd.f32 %v1549_v35, %v10483_v40  ;;  %v8120_v12 = vpop.f32.mrb[83].mxu0  ;;  %v8179_v59 = vpop.f32.mrb[121].mxu1  ;;  %8517 = vmatprep.subr.bf16.mxu0 %v9588_v28  ;;  %v10641_v37 = vadd.f32 %v10575_v22, %v1605_v60  ;;  %v9466_v40 = vld [vmem:[%s12332_s3 + $0x2a8] sm:$0xff]   ;;  %v2933_v7 = vpack.c.bf16 %v2922_v30, %v2921_v41 }
 0x265   : > { %v1780_v11 = vpop.f32.mrb[122].mxu1  ;;  %8576 = vmatpush3.bf16.msra.mxu1 %v9472_v21  ;;  %v2716_v21 = vpack.c.bf16 %v2703_v53, %v2702_v39  ;;  %v2704_v59 = vld [vmem:[#allocation2 + $0x61] sm:$0xff]  ;;  %v2925_v53 = vld [vmem:[#allocation2 + $0x92] sm:$0xff]  ;;  %v2709_v39 = vld [vmem:[#allocation2 + $0x89] sm:$0xff] }
 0x266   : > { %8430 = vmatmul.mubr.bf16.gmra.mrb[188].mxu0 %v2714_v49  ;;  %v8180_v51 = vpop.f32.mrb[123].mxu1  ;;  %v10644_v16 = vadd.f32 %v10580_v13, %v1606_v56  ;;  %8665 = vmatprep.subr.bf16.mxu1 %v9588_v28  ;;  %v2705_v56 = vld [vmem:[#allocation2 + $0x69] sm:$0xff] }
 0x267   : > { %8433 = vmatprep.mubr.msk.bf16.mxu0 %vm9589_vm0, %v9588_v28  ;;  %8518 = vmatpush3.bf16.msra.mxu0 %v9463_v9  ;;  %v2924_v51 = vld [vmem:[#allocation2 + $0x8a] sm:$0xff] }
 0x268   : > { %8490 = vmatmul.mubr.bf16.gmra.mrb[228].mxu1 %v2931_v42  ;;  %8519 = vmatprep.subr.bf16.mxu0 %v9588_v28 }
 0x269   : > { %v1554_v22 = vpop.f32.mrb[84].mxu0  ;;  %8493 = vmatprep.mubr.msk.bf16.mxu1 %vm9589_vm0, %v9588_v28 }
 0x26a   : > { %v1607_v13 = vadd.f32 %v1554_v22, %v10495_v50  ;;  %v8123_v62 = vpop.f32.mrb[85].mxu0 }
 0x26b   : > { %v1557_v27 = vpop.f32.mrb[86].mxu0  ;;  %v1785_v20 = vpop.f32.mrb[124].mxu1  ;;  %8520 = vmatpush3.bf16.msra.mxu0 %v9466_v40  ;;  %v2717_v40 = vpack.c.bf16 %v2705_v56, %v2704_v59  ;;  %v2923_v62 = vld [vmem:[#allocation2 + $0x82] sm:$0xff]  ;;  %v2711_v59 = vld [vmem:[#allocation2 + $0x99] sm:$0xff] }
 0x26c   : > { %v1608_v43 = vadd.f32 %v1557_v27, %v10500_v54  ;;  %v8124_v17 = vpop.f32.mrb[87].mxu0  ;;  %v8183_v25 = vpop.f32.mrb[125].mxu1  ;;  %8521 = vmatprep.subr.bf16.mxu0 %v9588_v28  ;;  %v10662_v8 = vadd.f32 %v10601_v47, %v1607_v13  ;;  %v9473_v54 = vld [vmem:[%s12332_s3 + $0x2b8] sm:$0xff]   ;;  %v2934_v19 = vpack.c.bf16 %v2924_v51, %v2923_v62 }
 0x26d   : > { %v1788_v50 = vpop.f32.mrb[126].mxu1  ;;  %v2706_v17 = vld [vmem:[#allocation2 + $0x71] sm:$0xff]  ;;  %v2926_v25 = vld [vmem:[#allocation2 + $0x9a] sm:$0xff] }
 0x26e   : > { %8434 = vmatmul.mubr.bf16.gmra.mrb[192].mxu0 %v2715_v45  ;;  %v8184_v29 = vpop.f32.mrb[127].mxu1  ;;  %v10665_v14 = vadd.f32 %v10611_v57, %v1608_v43  ;;  %v3339_v56 = vld [vmem:[#allocation2 + $0x1d] sm:$0xff] }
 0x26f   : > { %8437 = vmatprep.mubr.msk.bf16.mxu0 %vm9589_vm0, %v9588_v28  ;;  %8522 = vmatpush3.bf16.msra.mxu0 %v9469_v33  ;;  %v2707_v33 = vld [vmem:[#allocation2 + $0x79] sm:$0xff] }
 0x270   : > { %8494 = vmatmul.mubr.bf16.gmra.mrb[232].mxu1 %v2932_v32  ;;  %8523 = vmatprep.subr.bf16.mxu0 %v9588_v28  ;;  %v2718_v29 = vpack.c.bf16 %v2707_v33, %v2706_v17 }
 0x271   : > { %v1562_v47 = vpop.f32.mrb[88].mxu0  ;;  %8497 = vmatprep.mubr.msk.bf16.mxu1 %vm9589_vm0, %v9588_v28 }
 0x272   : > { %v1609_v24 = vadd.f32 %v1562_v47, %v10511_v55  ;;  %v8127_v57 = vpop.f32.mrb[89].mxu0 }
 0x273   : > { %v1565_v1 = vpop.f32.mrb[90].mxu0  ;;  %v1793_v26 = vpop.f32.mrb[128].mxu1  ;;  %8524 = vmatpush3.bf16.msra.mxu0 %v9473_v54  ;;  %v2935_v57 = vpack.c.bf16 %v2926_v25, %v2925_v53  ;;  %v9474_v53 = vld [vmem:[%s12332_s3 + $0x300] sm:$0xff]  }
 0x274   : > { %v1610_v36 = vadd.f32 %v1565_v1, %v10513_v23  ;;  %v8128_v38 = vpop.f32.mrb[91].mxu0  ;;  %v8187_v60 = vpop.f32.mrb[129].mxu1  ;;  %8613 = vmatprep.subr.bf16.mxu0 %v9588_v28  ;;  %v10679_v6 = vadd.f32 %v10633_v4, %v1609_v24 }
 0x275   : > { %v1796_v35 = vpop.f32.mrb[130].mxu1 }
 0x276   : > { %8438 = vmatmul.mubr.bf16.gmra.mrb[196].mxu0 %v2716_v21  ;;  %v8188_v55 = vpop.f32.mrb[131].mxu1  ;;  %v10681_v9 = vadd.f32 %v1780_v11, %v1610_v36  ;;  %v2708_v36 = vld [vmem:[#allocation2 + $0x81] sm:$0xff] }
 0x277   : > { %8441 = vmatprep.mubr.msk.bf16.mxu0 %vm9589_vm0, %v9588_v28  ;;  %v3340_v21 = vld [vmem:[#allocation2 + $0x25] sm:$0xff]  ;;  %v2719_v41 = vpack.c.bf16 %v2709_v39, %v2708_v36  ;;  %v3343_v36 = vld [vmem:[#allocation2 + $0x3d] sm:$0xff] }
 0x278   : > { %8498 = vmatmul.mubr.bf16.gmra.mrb[236].mxu1 %v2933_v7 }
 0x279   : > { %v1570_v23 = vpop.f32.mrb[92].mxu0  ;;  %8501 = vmatprep.mubr.msk.bf16.mxu1 %vm9589_vm0, %v9588_v28 }
 0x27a   : > { %v1611_v12 = vadd.f32 %v1570_v23, %v10520_v31  ;;  %v8131_v4 = vpop.f32.mrb[93].mxu0 }
 0x27b   : > { %v1573_v49 = vpop.f32.mrb[94].mxu0  ;;  %v1801_v48 = vpop.f32.mrb[132].mxu1  ;;  %v3357_v4 = vpack.c.bf16 %v3340_v21, %v3339_v56  ;;  %v9484_v21 = vld [vmem:[%s12332_s3 + $0x360] sm:$0xff]  }
 0x27c   : > { %v1612_v42 = vadd.f32 %v1573_v49, %v10522_v3  ;;  %v8132_v11 = vpop.f32.mrb[95].mxu0  ;;  %v8191_v22 = vpop.f32.mrb[133].mxu1  ;;  %v10689_v0 = vadd.f32 %v1785_v20, %v1611_v12  ;;  %v9478_v12 = vld [vmem:[%s12332_s3 + $0x340] sm:$0xff]  }
 0x27d   : > { %v1804_v13 = vpop.f32.mrb[134].mxu1 }
 0x27e   : > { %8442 = vmatmul.mubr.bf16.gmra.mrb[200].mxu0 %v2717_v40  ;;  %v8192_v27 = vpop.f32.mrb[135].mxu1  ;;  %v10691_v58 = vadd.f32 %v1788_v50, %v1612_v42  ;;  %v2710_v40 = vld [vmem:[#allocation2 + $0x91] sm:$0xff] }
 0x27f   : > { %8445 = vmatprep.mubr.msk.bf16.mxu0 %vm9589_vm0, %v9588_v28 }
 0x280   : > { %8502 = vmatmul.mubr.bf16.gmra.mrb[240].mxu1 %v2934_v19  ;;  %v2720_v19 = vpack.c.bf16 %v2711_v59, %v2710_v40  ;;  %v3346_v59 = vld [vmem:[#allocation2 + $0x55] sm:$0xff] }
 0x281   : > { %v1578_v31 = vpop.f32.mrb[96].mxu0  ;;  %8505 = vmatprep.mubr.msk.bf16.mxu1 %vm9589_vm0, %v9588_v28 }
 0x282   : > { %v1613_v3 = vadd.f32 %v1578_v31, %v10528_v44  ;;  %v8135_v20 = vpop.f32.mrb[97].mxu0 }
 0x283   : > { %v1581_v43 = vpop.f32.mrb[98].mxu0  ;;  %v1809_v45 = vpop.f32.mrb[136].mxu1  ;;  %v3341_v20 = vld [vmem:[#allocation2 + $0x2d] sm:$0xff] }
 0x284   : > { %v1614_v34 = vadd.f32 %v1581_v43, %v10530_v18  ;;  %v8136_v50 = vpop.f32.mrb[99].mxu0  ;;  %v8195_v32 = vpop.f32.mrb[137].mxu1  ;;  %v10699_v54 = vadd.f32 %v1793_v26, %v1613_v3 }
 0x285   : > { %v1812_v47 = vpop.f32.mrb[138].mxu1 }
 0x286   : > { %8446 = vmatmul.mubr.bf16.gmra.mrb[204].mxu0 %v2718_v29  ;;  %v8196_v24 = vpop.f32.mrb[139].mxu1  ;;  %v10701_v1 = vadd.f32 %v1796_v35, %v1614_v34  ;;  %v9483_v34 = vld [vmem:[%s12332_s3 + $0x358] sm:$0xff]  }
 0x287   : > { %8449 = vmatprep.mubr.msk.bf16.mxu0 %vm9589_vm0, %v9588_v28 }
 0x288   : > { %8506 = vmatmul.mubr.bf16.gmra.mrb[244].mxu1 %v2935_v57  ;;  %v3344_v57 = vld [vmem:[#allocation2 + $0x45] sm:$0xff] }
 0x289   : > { %v1586_v44 = vpop.f32.mrb[100].mxu0  ;;  %8577 = vmatprep.mubr.msk.bf16.mxu1 %vm9589_vm0, %v9588_v28 }
 0x28a   : > { %v1615_v18 = vadd.f32 %v1586_v44, %v10536_v10  ;;  %v8139_v26 = vpop.f32.mrb[101].mxu0 }
 0x28b   : > { %v1589_v30 = vpop.f32.mrb[102].mxu0  ;;  %v2175_v38 = vpop.f32.mrb[140].mxu1 }
 0x28c   : > { %v1616_v60 = vadd.f32 %v1589_v30, %v10538_v15  ;;  %v8140_v35 = vpop.f32.mrb[103].mxu0  ;;  %v8267_v55 = vpop.f32.mrb[141].mxu1  ;;  %v10709_v7 = vadd.f32 %v1801_v48, %v1615_v18  ;;  %v9480_v48 = vld [vmem:[%s12332_s3 + $0x348] sm:$0xff]  }
 0x28d   : > { %v10711_v23 = vpop.f32.mrb[142].mxu1  ;;  %v3359_v35 = vpack.c.bf16 %v3344_v57, %v3343_v36  ;;  %v3127_v55 = vld [vmem:[#allocation2 + $0x34] sm:$0xff] }
 0x28e   : > { %8450 = vmatmul.mubr.bf16.gmra.mrb[208].mxu0 %v2719_v41  ;;  %v8268_v10 = vpop.f32.mrb[143].mxu1  ;;  %v10716_v49 = vadd.f32 %v1804_v13, %v1616_v60  ;;  %v3342_v13 = vld [vmem:[#allocation2 + $0x35] sm:$0xff] }
 0x28f   : > { %8453 = vmatprep.mubr.msk.bf16.mxu0 %vm9589_vm0, %v9588_v28  ;;  %v3358_v17 = vpack.c.bf16 %v3342_v13, %v3341_v20 }
 0x290   : > { %8578 = vmatmul.mubr.bf16.vlgmr.msra.gmra.mrb[248].mxu1 %v3357_v4  ;;  %v3126_v4 = vld [vmem:[#allocation2 + $0x2c] sm:$0xff] }
 0x291   : > { %v1594_v15 = vpop.f32.mrb[104].mxu0  ;;  %8581 = vmatprep.mubr.msk.bf16.mxu1 %vm9589_vm0, %v9588_v28  ;;  %8666 = vmatpush3.bf16.msra.mxu1 %v9478_v12 }
 0x292   : > { %v1617_v51 = vadd.f32 %v1594_v15, %v10550_v5  ;;  %v8143_v42 = vpop.f32.mrb[105].mxu0  ;;  %8667 = vmatprep.subr.bf16.mxu1 %v9588_v28  ;;  %v9481_v5 = vld [vmem:[%s12332_s3 + $0x350] sm:$0xff]  }
 0x293   : > { %v1597_v11 = vpop.f32.mrb[106].mxu0  ;;  %v10727_v22 = vpop.f32.mrb[144].mxu1 }
 0x294   : > { %v1618_v62 = vadd.f32 %v1597_v11, %v10555_v63  ;;  %v8144_v27 = vpop.f32.mrb[107].mxu0  ;;  %v8271_v31 = vpop.f32.mrb[145].mxu1  ;;  %v10730_v33 = vadd.f32 %v1809_v45, %v1617_v51  ;;  %v3125_v45 = vld [vmem:[#allocation2 + $0x24] sm:$0xff]  ;;  %v3143_v11 = vpack.c.bf16 %v3127_v55, %v3126_v4  ;;  %v3350_v55 = vld [vmem:[#allocation2 + $0x75] sm:$0xff] }
 0x295   : > { %v10732_v3 = vpop.f32.mrb[146].mxu1  ;;  %8668 = vmatpush3.bf16.msra.mxu1 %v9480_v48  ;;  %v9476_v48 = vld [vmem:[%s12332_s3 + $0x310] sm:$0xff]  }
 0x296   : > { %8454 = vmatmul.mubr.bf16.gmra.mrb[212].mxu0 %v2720_v19  ;;  %v8272_v43 = vpop.f32.mrb[147].mxu1  ;;  %8669 = vmatprep.subr.bf16.mxu1 %v9588_v28  ;;  %v10738_v25 = vadd.f32 %v1812_v47, %v1618_v62  ;;  %v3124_v47 = vld [vmem:[#allocation2 + $0x1c] sm:$0xff]  ;;  %v3345_v62 = vld [vmem:[#allocation2 + $0x4d] sm:$0xff] }
 0x297   : > { %8525 = vmatprep.mubr.msk.bf16.mxu0 %vm9589_vm0, %v9588_v28  ;;  %v3142_v18 = vpack.c.bf16 %v3125_v45, %v3124_v47  ;;  %v9487_v27 = vld [vmem:[%s12332_s3 + $0x370] sm:$0xff]   ;;  %v3360_v31 = vpack.c.bf16 %v3346_v59, %v3345_v62  ;;  %v3128_v45 = vld [vmem:[#allocation2 + $0x3c] sm:$0xff] }
 0x298   : > { %8582 = vmatmul.mubr.bf16.gmra.mrb[252].mxu1 %v3358_v17 }
 0x299   : > { %v1960_v63 = vpop.f32.mrb[108].mxu0  ;;  %8585 = vmatprep.mubr.msk.bf16.mxu1 %vm9589_vm0, %v9588_v28  ;;  %8670 = vmatpush3.bf16.msra.mxu1 %v9481_v5  ;;  %v3129_v5 = vld [vmem:[#allocation2 + $0x44] sm:$0xff] }
 0x29a   : > { %v2031_v50 = vadd.f32 %v1960_v63, %v10578_v52  ;;  %v8215_v29 = vpop.f32.mrb[109].mxu0  ;;  %8671 = vmatprep.subr.bf16.mxu1 %v9588_v28 }
 0x29b   : > { %v1963_v32 = vpop.f32.mrb[110].mxu0  ;;  %v10752_v24 = vpop.f32.mrb[148].mxu1  ;;  %v9479_v29 = vld [vmem:[%s12332_s3 + $0x320] sm:$0xff]  }
 0x29c   : > { %v2032_v44 = vadd.f32 %v1963_v32, %v10586_v46  ;;  %v8216_v39 = vpop.f32.mrb[111].mxu0  ;;  %v8275_v26 = vpop.f32.mrb[149].mxu1  ;;  %v10755_v30 = vadd.f32 %v2175_v38, %v2031_v50  ;;  %v9475_v38 = vld [vmem:[%s12332_s3 + $0x308] sm:$0xff]  }
 0x29d   : > { %v10757_v52 = vpop.f32.mrb[150].mxu1  ;;  %8672 = vmatpush3.bf16.msra.mxu1 %v9483_v34  ;;  %v3348_v50 = vld [vmem:[#allocation2 + $0x65] sm:$0xff]  ;;  %v3347_v39 = vld [vmem:[#allocation2 + $0x5d] sm:$0xff] }
 0x29e   : > { %8526 = vmatmul.mubr.bf16.vlgmr.msra.gmra.mrb[216].mxu0 %v3142_v18  ;;  %v8276_v60 = vpop.f32.mrb[151].mxu1  ;;  %8673 = vmatprep.subr.bf16.mxu1 %v9588_v28  ;;  %v10764_v46 = vadd.f32 %v10711_v23, %v2032_v44  ;;  %v9486_v23 = vld [vmem:[%s12332_s3 + $0x368] sm:$0xff]   ;;  %v3361_v26 = vpack.c.bf16 %v3348_v50, %v3347_v39 }
 0x29f   : > { %8614 = vmatpush3.bf16.msra.mxu0 %v9474_v53  ;;  %8529 = vmatprep.mubr.msk.bf16.mxu0 %vm9589_vm0, %v9588_v28  ;;  %v3144_v53 = vpack.c.bf16 %v3129_v5, %v3128_v45  ;;  %v3351_v45 = vld [vmem:[#allocation2 + $0x7d] sm:$0xff] }
 0x2a0   : > { %8615 = vmatprep.subr.bf16.mxu0 %v9588_v28  ;;  %8586 = vmatmul.mubr.bf16.gmra.mrb[0].mxu1 %v3359_v35 }
 0x2a1   : > { %v1968_v41 = vpop.f32.mrb[112].mxu0  ;;  %8589 = vmatprep.mubr.msk.bf16.mxu1 %vm9589_vm0, %v9588_v28  ;;  %8674 = vmatpush3.bf16.msra.mxu1 %v9484_v21  ;;  %v3131_v21 = vld [vmem:[#allocation2 + $0x54] sm:$0xff] }
 0x2a2   : > { %v2033_v56 = vadd.f32 %v1968_v41, %v10609_v61  ;;  %v8219_v12 = vpop.f32.mrb[113].mxu0  ;;  %8675 = vmatprep.subr.bf16.mxu1 %v9588_v28 }
 0x2a3   : > { %v1971_v10 = vpop.f32.mrb[114].mxu0  ;;  %8616 = vmatpush3.bf16.msra.mxu0 %v9475_v38  ;;  %v10779_v15 = vpop.f32.mrb[152].mxu1  ;;  %v3130_v38 = vld [vmem:[#allocation2 + $0x4c] sm:$0xff] }
 0x2a4   : > { %v2034_v51 = vadd.f32 %v1971_v10, %v10618_v2  ;;  %v8220_v42 = vpop.f32.mrb[115].mxu0  ;;  %v8279_v40 = vpop.f32.mrb[153].mxu1  ;;  %8617 = vmatprep.subr.bf16.mxu0 %v9588_v28  ;;  %v10787_v61 = vadd.f32 %v10727_v22, %v2033_v56  ;;  %v9477_v22 = vld [vmem:[%s12332_s3 + $0x318] sm:$0xff]   ;;  %v3145_v10 = vpack.c.bf16 %v3131_v21, %v3130_v38 }
 0x2a5   : > { %v10789_v13 = vpop.f32.mrb[154].mxu1  ;;  %8676 = vmatpush3.bf16.msra.mxu1 %v9486_v23  ;;  %v9485_v23 = vld [vmem:[%s12332_s3 + $0x330] sm:$0xff]   ;;  %v3133_v40 = vld [vmem:[#allocation2 + $0x64] sm:$0xff] }
 0x2a6   : > { %8530 = vmatmul.mubr.bf16.gmra.mrb[220].mxu0 %v3143_v11  ;;  %v8280_v19 = vpop.f32.mrb[155].mxu1  ;;  %8677 = vmatprep.subr.bf16.mxu1 %v9588_v28  ;;  %v10796_v2 = vadd.f32 %v10732_v3, %v2034_v51  ;;  %v9488_v3 = vld [vmem:[%s12332_s3 + $0x378] sm:$0xff]  }
 0x2a7   : > { %8533 = vmatprep.mubr.msk.bf16.mxu0 %vm9589_vm0, %v9588_v28  ;;  %8618 = vmatpush3.bf16.msra.mxu0 %v9476_v48  ;;  %v3349_v48 = vld [vmem:[#allocation2 + $0x6d] sm:$0xff]  ;;  %v3132_v19 = vld [vmem:[#allocation2 + $0x5c] sm:$0xff] }
 0x2a8   : > { %8590 = vmatmul.mubr.bf16.gmra.mrb[4].mxu1 %v3360_v31  ;;  %8619 = vmatprep.subr.bf16.mxu0 %v9588_v28  ;;  %v3362_v42 = vpack.c.bf16 %v3350_v55, %v3349_v48 }
 0x2a9   : > { %v1976_v20 = vpop.f32.mrb[116].mxu0  ;;  %8593 = vmatprep.mubr.msk.bf16.mxu1 %vm9589_vm0, %v9588_v28  ;;  %8678 = vmatpush3.bf16.msra.mxu1 %v9487_v27 }
 0x2aa   : > { %v2035_v43 = vadd.f32 %v1976_v20, %v10641_v37  ;;  %v8223_v17 = vpop.f32.mrb[117].mxu0  ;;  %8679 = vmatprep.subr.bf16.mxu1 %v9588_v28 }
 0x2ab   : > { %v1979_v63 = vpop.f32.mrb[118].mxu0  ;;  %v10811_v34 = vpop.f32.mrb[156].mxu1  ;;  %8620 = vmatpush3.bf16.msra.mxu0 %v9477_v22  ;;  %v3352_v22 = vld [vmem:[#allocation2 + $0x85] sm:$0xff] }
 0x2ac   : > { %v2036_v32 = vadd.f32 %v1979_v63, %v10644_v16  ;;  %v8224_v47 = vpop.f32.mrb[119].mxu0  ;;  %v8283_v57 = vpop.f32.mrb[157].mxu1  ;;  %8621 = vmatprep.subr.bf16.mxu0 %v9588_v28  ;;  %v10819_v37 = vadd.f32 %v10752_v24, %v2035_v43  ;;  %v9482_v16 = vld [vmem:[%s12332_s3 + $0x328] sm:$0xff]   ;;  %v3363_v50 = vpack.c.bf16 %v3352_v22, %v3351_v45 }
 0x2ad   : > { %v2210_v44 = vpop.f32.mrb[158].mxu1  ;;  %8680 = vmatpush3.bf16.msra.mxu1 %v9488_v3  ;;  %v3146_v3 = vpack.c.bf16 %v3133_v40, %v3132_v19  ;;  %v3134_v57 = vld [vmem:[#allocation2 + $0x6c] sm:$0xff]  ;;  %v3355_v40 = vld [vmem:[#allocation2 + $0x9d] sm:$0xff]  ;;  %v3139_v19 = vld [vmem:[#allocation2 + $0x94] sm:$0xff] }
 0x2ae   : > { %8534 = vmatmul.mubr.bf16.gmra.mrb[224].mxu0 %v3144_v53  ;;  %v8284_v18 = vpop.f32.mrb[159].mxu1  ;;  %v10822_v36 = vadd.f32 %v10757_v52, %v2036_v32  ;;  %8769 = vmatprep.subr.bf16.mxu1 %v9588_v28  ;;  %v3135_v32 = vld [vmem:[#allocation2 + $0x74] sm:$0xff]  ;;  %v3770_v22 = vld [vmem:[#allocation2 + $0x27] sm:$0xff] }
 0x2af   : > { %8537 = vmatprep.mubr.msk.bf16.mxu0 %vm9589_vm0, %v9588_v28  ;;  %8622 = vmatpush3.bf16.msra.mxu0 %v9479_v29  ;;  %v3354_v18 = vld [vmem:[#allocation2 + $0x95] sm:$0xff] }
 0x2b0   : > { %8594 = vmatmul.mubr.bf16.gmra.mrb[8].mxu1 %v3361_v26  ;;  %8623 = vmatprep.subr.bf16.mxu0 %v9588_v28 }
 0x2b1   : > { %v1984_v24 = vpop.f32.mrb[120].mxu0  ;;  %8597 = vmatprep.mubr.msk.bf16.mxu1 %vm9589_vm0, %v9588_v28 }
 0x2b2   : > { %v2037_v52 = vadd.f32 %v1984_v24, %v10662_v8  ;;  %v8227_v60 = vpop.f32.mrb[121].mxu0 }
 0x2b3   : > { %v1987_v35 = vpop.f32.mrb[122].mxu0  ;;  %v2215_v41 = vpop.f32.mrb[160].mxu1  ;;  %8624 = vmatpush3.bf16.msra.mxu0 %v9482_v16  ;;  %v3147_v16 = vpack.c.bf16 %v3135_v32, %v3134_v57  ;;  %v3353_v60 = vld [vmem:[#allocation2 + $0x8d] sm:$0xff]  ;;  %v3141_v57 = vld [vmem:[#allocation2 + $0xa4] sm:$0xff] }
 0x2b4   : > { %v2038_v56 = vadd.f32 %v1987_v35, %v10665_v14  ;;  %v8228_v12 = vpop.f32.mrb[123].mxu0  ;;  %v8287_v4 = vpop.f32.mrb[161].mxu1  ;;  %8625 = vmatprep.subr.bf16.mxu0 %v9588_v28  ;;  %v10840_v59 = vadd.f32 %v10779_v15, %v2037_v52  ;;  %v9489_v14 = vld [vmem:[%s12332_s3 + $0x338] sm:$0xff]   ;;  %v3364_v38 = vpack.c.bf16 %v3354_v18, %v3353_v60 }
 0x2b5   : > { %v2218_v8 = vpop.f32.mrb[162].mxu1  ;;  %v3136_v12 = vld [vmem:[#allocation2 + $0x7c] sm:$0xff]  ;;  %v3356_v4 = vld [vmem:[#allocation2 + $0xa5] sm:$0xff] }
 0x2b6   : > { %8538 = vmatmul.mubr.bf16.gmra.mrb[228].mxu0 %v3145_v10  ;;  %v8288_v51 = vpop.f32.mrb[163].mxu1  ;;  %v10843_v11 = vadd.f32 %v10789_v13, %v2038_v56 }
 0x2b7   : > { %8541 = vmatprep.mubr.msk.bf16.mxu0 %vm9589_vm0, %v9588_v28  ;;  %8626 = vmatpush3.bf16.msra.mxu0 %v9485_v23  ;;  %v3137_v23 = vld [vmem:[#allocation2 + $0x84] sm:$0xff] }
 0x2b8   : > { %8598 = vmatmul.mubr.bf16.gmra.mrb[12].mxu1 %v3362_v42  ;;  %8627 = vmatprep.subr.bf16.mxu0 %v9588_v28  ;;  %v3148_v51 = vpack.c.bf16 %v3137_v23, %v3136_v12 }
 0x2b9   : > { %v1992_v15 = vpop.f32.mrb[124].mxu0  ;;  %8601 = vmatprep.mubr.msk.bf16.mxu1 %vm9589_vm0, %v9588_v28 }
 0x2ba   : > { %v2039_v62 = vadd.f32 %v1992_v15, %v10679_v6  ;;  %v8231_v13 = vpop.f32.mrb[125].mxu0 }
 0x2bb   : > { %v1995_v27 = vpop.f32.mrb[126].mxu0  ;;  %v2223_v31 = vpop.f32.mrb[164].mxu1  ;;  %8628 = vmatpush3.bf16.msra.mxu0 %v9489_v14  ;;  %v3365_v13 = vpack.c.bf16 %v3356_v4, %v3355_v40  ;;  %v9490_v40 = vld [vmem:[%s12332_s3 + $0x380] sm:$0xff]  }
 0x2bc   : > { %v2040_v20 = vadd.f32 %v1995_v27, %v10681_v9  ;;  %v8232_v5 = vpop.f32.mrb[127].mxu0  ;;  %v8291_v43 = vpop.f32.mrb[165].mxu1  ;;  %8717 = vmatprep.subr.bf16.mxu0 %v9588_v28  ;;  %v10857_v17 = vadd.f32 %v10811_v34, %v2039_v62 }
 0x2bd   : > { %v2226_v63 = vpop.f32.mrb[166].mxu1  ;;  %v3138_v5 = vld [vmem:[#allocation2 + $0x8c] sm:$0xff] }
 0x2be   : > { %8542 = vmatmul.mubr.bf16.gmra.mrb[232].mxu0 %v3146_v3  ;;  %v8292_v6 = vpop.f32.mrb[167].mxu1  ;;  %v10859_v29 = vadd.f32 %v2210_v44, %v2040_v20  ;;  %v3149_v45 = vpack.c.bf16 %v3139_v19, %v3138_v5  ;;  %v9500_v5 = vld [vmem:[%s12332_s3 + $0x3e0] sm:$0xff]  }
 0x2bf   : > { %8545 = vmatprep.mubr.msk.bf16.mxu0 %vm9589_vm0, %v9588_v28 }
 0x2c0   : > { %8602 = vmatmul.mubr.bf16.gmra.mrb[16].mxu1 %v3363_v50 }
 0x2c1   : > { %v2000_v9 = vpop.f32.mrb[128].mxu0  ;;  %8605 = vmatprep.mubr.msk.bf16.mxu1 %vm9589_vm0, %v9588_v28 }
 0x2c2   : > { %v2041_v47 = vadd.f32 %v2000_v9, %v10689_v0  ;;  %v8235_v34 = vpop.f32.mrb[129].mxu0  ;;  %v3769_v9 = vld [vmem:[#allocation2 + $0x1f] sm:$0xff] }
 0x2c3   : > { %v2003_v53 = vpop.f32.mrb[130].mxu0  ;;  %v2231_v39 = vpop.f32.mrb[168].mxu1  ;;  %v3787_v34 = vpack.c.bf16 %v3770_v22, %v3769_v9  ;;  %v9502_v9 = vld [vmem:[%s12332_s3 + $0x3e8] sm:$0xff]  }
 0x2c4   : > { %v2042_v26 = vadd.f32 %v2003_v53, %v10691_v58  ;;  %v8236_v44 = vpop.f32.mrb[131].mxu0  ;;  %v8295_v24 = vpop.f32.mrb[169].mxu1  ;;  %v10867_v21 = vadd.f32 %v2215_v41, %v2041_v47  ;;  %v9494_v47 = vld [vmem:[%s12332_s3 + $0x3c0] sm:$0xff]  }
 0x2c5   : > { %v2234_v52 = vpop.f32.mrb[170].mxu1 }
 0x2c6   : > { %8546 = vmatmul.mubr.bf16.gmra.mrb[236].mxu0 %v3147_v16  ;;  %v8296_v35 = vpop.f32.mrb[171].mxu1  ;;  %v10869_v55 = vadd.f32 %v2218_v8, %v2042_v26  ;;  %v3140_v16 = vld [vmem:[#allocation2 + $0x9c] sm:$0xff] }
 0x2c7   : > { %8549 = vmatprep.mubr.msk.bf16.mxu0 %vm9589_vm0, %v9588_v28 }
 0x2c8   : > { %8606 = vmatmul.mubr.bf16.gmra.mrb[20].mxu1 %v3364_v38  ;;  %v3150_v38 = vpack.c.bf16 %v3141_v57, %v3140_v16  ;;  %v3776_v57 = vld [vmem:[#allocation2 + $0x57] sm:$0xff] }
 0x2c9   : > { %v2008_v0 = vpop.f32.mrb[132].mxu0  ;;  %8609 = vmatprep.mubr.msk.bf16.mxu1 %vm9589_vm0, %v9588_v28 }
 0x2ca   : > { %v2043_v58 = vadd.f32 %v2008_v0, %v10699_v54  ;;  %v8239_v41 = vpop.f32.mrb[133].mxu0 }
 0x2cb   : > { %v2011_v56 = vpop.f32.mrb[134].mxu0  ;;  %v2239_v10 = vpop.f32.mrb[172].mxu1  ;;  %v3771_v41 = vld [vmem:[#allocation2 + $0x2f] sm:$0xff] }
 0x2cc   : > { %v2044_v48 = vadd.f32 %v2011_v56, %v10701_v1  ;;  %v8240_v8 = vpop.f32.mrb[135].mxu0  ;;  %v8299_v42 = vpop.f32.mrb[173].mxu1  ;;  %v10877_v14 = vadd.f32 %v2223_v31, %v2043_v58 }
 0x2cd   : > { %v2242_v15 = vpop.f32.mrb[174].mxu1 }
 0x2ce   : > { %8550 = vmatmul.mubr.bf16.gmra.mrb[240].mxu0 %v3148_v51  ;;  %v8300_v62 = vpop.f32.mrb[175].mxu1  ;;  %v10879_v27 = vadd.f32 %v2226_v63, %v2044_v48  ;;  %v9499_v48 = vld [vmem:[%s12332_s3 + $0x3d8] sm:$0xff]  }
 0x2cf   : > { %8553 = vmatprep.mubr.msk.bf16.mxu0 %vm9589_vm0, %v9588_v28 }
 0x2d0   : > { %8610 = vmatmul.mubr.bf16.gmra.mrb[24].mxu1 %v3365_v13  ;;  %v3774_v13 = vld [vmem:[#allocation2 + $0x47] sm:$0xff] }
 0x2d1   : > { %v2016_v54 = vpop.f32.mrb[136].mxu0  ;;  %8681 = vmatprep.mubr.msk.bf16.mxu1 %vm9589_vm0, %v9588_v28 }
 0x2d2   : > { %v2045_v1 = vadd.f32 %v2016_v54, %v10709_v7  ;;  %v8243_v31 = vpop.f32.mrb[137].mxu0 }
 0x2d3   : > { %v2019_v20 = vpop.f32.mrb[138].mxu0  ;;  %v2605_v3 = vpop.f32.mrb[176].mxu1 }
 0x2d4   : > { %v2046_v43 = vadd.f32 %v2019_v20, %v10716_v49  ;;  %v8244_v63 = vpop.f32.mrb[139].mxu0  ;;  %v8371_v6 = vpop.f32.mrb[177].mxu1  ;;  %v10887_v50 = vadd.f32 %v2231_v39, %v2045_v1  ;;  %v9496_v39 = vld [vmem:[%s12332_s3 + $0x3c8] sm:$0xff]   ;;  %v3773_v20 = vld [vmem:[#allocation2 + $0x3f] sm:$0xff] }
 0x2d5   : > { %v2608_v32 = vpop.f32.mrb[178].mxu1  ;;  %v3789_v63 = vpack.c.bf16 %v3774_v13, %v3773_v20  ;;  %v3557_v6 = vld [vmem:[#allocation2 + $0x36] sm:$0xff] }
 0x2d6   : > { %8554 = vmatmul.mubr.bf16.gmra.mrb[244].mxu0 %v3149_v45  ;;  %v8372_v7 = vpop.f32.mrb[179].mxu1  ;;  %v10892_v53 = vadd.f32 %v2234_v52, %v2046_v43  ;;  %v3772_v52 = vld [vmem:[#allocation2 + $0x37] sm:$0xff] }
 0x2d7   : > { %8557 = vmatprep.mubr.msk.bf16.mxu0 %vm9589_vm0, %v9588_v28  ;;  %v3788_v12 = vpack.c.bf16 %v3772_v52, %v3771_v41 }
 0x2d8   : > { %8682 = vmatmul.mubr.bf16.vlgmr.msra.gmra.mrb[28].mxu1 %v3787_v34  ;;  %v3556_v34 = vld [vmem:[#allocation2 + $0x2e] sm:$0xff] }
 0x2d9   : > { %v2024_v49 = vpop.f32.mrb[140].mxu0  ;;  %8685 = vmatprep.mubr.msk.bf16.mxu1 %vm9589_vm0, %v9588_v28  ;;  %8770 = vmatpush3.bf16.msra.mxu1 %v9494_v47 }
 0x2da   : > { %v2047_v18 = vadd.f32 %v2024_v49, %v10730_v33  ;;  %v8247_v26 = vpop.f32.mrb[141].mxu0  ;;  %8771 = vmatprep.subr.bf16.mxu1 %v9588_v28  ;;  %v9497_v33 = vld [vmem:[%s12332_s3 + $0x3d0] sm:$0xff]  }
 0x2db   : > { %v2027_v44 = vpop.f32.mrb[142].mxu0  ;;  %v10903_v24 = vpop.f32.mrb[180].mxu1 }
 0x2dc   : > { %v2048_v60 = vadd.f32 %v2027_v44, %v10738_v25  ;;  %v8248_v35 = vpop.f32.mrb[143].mxu0  ;;  %v8375_v0 = vpop.f32.mrb[181].mxu1  ;;  %v10906_v23 = vadd.f32 %v2239_v10, %v2047_v18  ;;  %v3555_v10 = vld [vmem:[#allocation2 + $0x26] sm:$0xff]  ;;  %v3573_v44 = vpack.c.bf16 %v3557_v6, %v3556_v34  ;;  %v3780_v6 = vld [vmem:[#allocation2 + $0x77] sm:$0xff] }
 0x2dd   : > { %v10908_v58 = vpop.f32.mrb[182].mxu1  ;;  %8772 = vmatpush3.bf16.msra.mxu1 %v9496_v39  ;;  %v9492_v39 = vld [vmem:[%s12332_s3 + $0x390] sm:$0xff]  }
 0x2de   : > { %8558 = vmatmul.mubr.bf16.gmra.mrb[248].mxu0 %v3150_v38  ;;  %v8376_v56 = vpop.f32.mrb[183].mxu1  ;;  %8773 = vmatprep.subr.bf16.mxu1 %v9588_v28  ;;  %v10914_v4 = vadd.f32 %v2242_v15, %v2048_v60  ;;  %v3554_v15 = vld [vmem:[#allocation2 + $0x1e] sm:$0xff]  ;;  %v3775_v60 = vld [vmem:[#allocation2 + $0x4f] sm:$0xff] }
 0x2df   : > { %8629 = vmatprep.mubr.msk.bf16.mxu0 %vm9589_vm0, %v9588_v28  ;;  %v3572_v1 = vpack.c.bf16 %v3555_v10, %v3554_v15  ;;  %v9503_v35 = vld [vmem:[%s12332_s3 + $0x3f0] sm:$0xff]   ;;  %v3790_v0 = vpack.c.bf16 %v3776_v57, %v3775_v60  ;;  %v3558_v10 = vld [vmem:[#allocation2 + $0x3e] sm:$0xff] }
 0x2e0   : > { %8686 = vmatmul.mubr.bf16.gmra.mrb[32].mxu1 %v3788_v12 }
 0x2e1   : > { %v2390_v25 = vpop.f32.mrb[144].mxu0  ;;  %8689 = vmatprep.mubr.msk.bf16.mxu1 %vm9589_vm0, %v9588_v28  ;;  %8774 = vmatpush3.bf16.msra.mxu1 %v9497_v33  ;;  %v3559_v33 = vld [vmem:[#allocation2 + $0x46] sm:$0xff] }
 0x2e2   : > { %v2461_v8 = vadd.f32 %v2390_v25, %v10755_v30  ;;  %v8319_v51 = vpop.f32.mrb[145].mxu0  ;;  %8775 = vmatprep.subr.bf16.mxu1 %v9588_v28 }
 0x2e3   : > { %v2393_v42 = vpop.f32.mrb[146].mxu0  ;;  %v10928_v62 = vpop.f32.mrb[184].mxu1  ;;  %v9495_v51 = vld [vmem:[%s12332_s3 + $0x3a0] sm:$0xff]  }
 0x2e4   : > { %v2462_v54 = vadd.f32 %v2393_v42, %v10764_v46  ;;  %v8320_v19 = vpop.f32.mrb[147].mxu0  ;;  %v8379_v31 = vpop.f32.mrb[185].mxu1  ;;  %v10931_v22 = vadd.f32 %v2605_v3, %v2461_v8  ;;  %v9491_v46 = vld [vmem:[%s12332_s3 + $0x388] sm:$0xff]  }
 0x2e5   : > { %v10933_v30 = vpop.f32.mrb[186].mxu1  ;;  %8776 = vmatpush3.bf16.msra.mxu1 %v9499_v48  ;;  %v3778_v8 = vld [vmem:[#allocation2 + $0x67] sm:$0xff]  ;;  %v3777_v19 = vld [vmem:[#allocation2 + $0x5f] sm:$0xff] }
 0x2e6   : > { %8630 = vmatmul.mubr.bf16.vlgmr.msra.gmra.mrb[252].mxu0 %v3572_v1  ;;  %v8380_v43 = vpop.f32.mrb[187].mxu1  ;;  %8777 = vmatprep.subr.bf16.mxu1 %v9588_v28  ;;  %v10939_v45 = vadd.f32 %v2608_v32, %v2462_v54  ;;  %v3791_v31 = vpack.c.bf16 %v3778_v8, %v3777_v19 }
 0x2e7   : > { %8718 = vmatpush3.bf16.msra.mxu0 %v9490_v40  ;;  %8633 = vmatprep.mubr.msk.bf16.mxu0 %vm9589_vm0, %v9588_v28  ;;  %v3574_v40 = vpack.c.bf16 %v3559_v33, %v3558_v10  ;;  %v3781_v10 = vld [vmem:[#allocation2 + $0x7f] sm:$0xff] }
 0x2e8   : > { %8719 = vmatprep.subr.bf16.mxu0 %v9588_v28  ;;  %8690 = vmatmul.mubr.bf16.gmra.mrb[36].mxu1 %v3789_v63 }
 0x2e9   : > { %v2398_v3 = vpop.f32.mrb[148].mxu0  ;;  %8693 = vmatprep.mubr.msk.bf16.mxu1 %vm9589_vm0, %v9588_v28  ;;  %8778 = vmatpush3.bf16.msra.mxu1 %v9500_v5  ;;  %v3561_v5 = vld [vmem:[#allocation2 + $0x56] sm:$0xff] }
 0x2ea   : > { %v2463_v32 = vadd.f32 %v2398_v3, %v10787_v61  ;;  %v8323_v47 = vpop.f32.mrb[149].mxu0  ;;  %8779 = vmatprep.subr.bf16.mxu1 %v9588_v28 }
 0x2eb   : > { %v2401_v7 = vpop.f32.mrb[150].mxu0  ;;  %8720 = vmatpush3.bf16.msra.mxu0 %v9491_v46  ;;  %v10954_v49 = vpop.f32.mrb[188].mxu1  ;;  %v3560_v46 = vld [vmem:[#allocation2 + $0x4e] sm:$0xff] }
 0x2ec   : > { %v2464_v18 = vadd.f32 %v2401_v7, %v10796_v2  ;;  %v8324_v26 = vpop.f32.mrb[151].mxu0  ;;  %v8383_v16 = vpop.f32.mrb[189].mxu1  ;;  %8721 = vmatprep.subr.bf16.mxu0 %v9588_v28  ;;  %v10962_v61 = vadd.f32 %v10903_v24, %v2463_v32  ;;  %v9493_v24 = vld [vmem:[%s12332_s3 + $0x398] sm:$0xff]   ;;  %v3575_v7 = vpack.c.bf16 %v3561_v5, %v3560_v46 }
 0x2ed   : > { %v10964_v52 = vpop.f32.mrb[190].mxu1  ;;  %8780 = vmatpush3.bf16.msra.mxu1 %v9502_v9  ;;  %v9501_v9 = vld [vmem:[%s12332_s3 + $0x3b0] sm:$0xff]   ;;  %v3563_v16 = vld [vmem:[#allocation2 + $0x66] sm:$0xff] }
 0x2ee   : > { %8634 = vmatmul.mubr.bf16.gmra.mrb[0].mxu0 %v3573_v44  ;;  %v8384_v38 = vpop.f32.mrb[191].mxu1  ;;  %8781 = vmatprep.subr.bf16.mxu1 %v9588_v28  ;;  %v10971_v2 = vadd.f32 %v10908_v58, %v2464_v18  ;;  %v9504_v58 = vld [vmem:[%s12332_s3 + $0x3f8] sm:$0xff]  }
 0x2ef   : > { %8637 = vmatprep.mubr.msk.bf16.mxu0 %vm9589_vm0, %v9588_v28  ;;  %8722 = vmatpush3.bf16.msra.mxu0 %v9492_v39  ;;  %v3779_v39 = vld [vmem:[#allocation2 + $0x6f] sm:$0xff]  ;;  %v3562_v38 = vld [vmem:[#allocation2 + $0x5e] sm:$0xff] }
 0x2f0   : > { %8694 = vmatmul.mubr.bf16.gmra.mrb[40].mxu1 %v3790_v0  ;;  %8723 = vmatprep.subr.bf16.mxu0 %v9588_v28  ;;  %v3792_v26 = vpack.c.bf16 %v3780_v6, %v3779_v39 }
 0x2f1   : > { %v2406_v41 = vpop.f32.mrb[152].mxu0  ;;  %8697 = vmatprep.mubr.msk.bf16.mxu1 %vm9589_vm0, %v9588_v28  ;;  %8782 = vmatpush3.bf16.msra.mxu1 %v9503_v35 }
 0x2f2   : > { %v2465_v56 = vadd.f32 %v2406_v41, %v10819_v37  ;;  %v8327_v12 = vpop.f32.mrb[153].mxu0  ;;  %8783 = vmatprep.subr.bf16.mxu1 %v9588_v28 }
 0x2f3   : > { %v2409_v25 = vpop.f32.mrb[154].mxu0  ;;  %v10986_v48 = vpop.f32.mrb[192].mxu1  ;;  %8724 = vmatpush3.bf16.msra.mxu0 %v9493_v24  ;;  %v3782_v24 = vld [vmem:[#allocation2 + $0x87] sm:$0xff] }
 0x2f4   : > { %v2466_v42 = vadd.f32 %v2409_v25, %v10822_v36  ;;  %v8328_v15 = vpop.f32.mrb[155].mxu0  ;;  %v8387_v13 = vpop.f32.mrb[193].mxu1  ;;  %8725 = vmatprep.subr.bf16.mxu0 %v9588_v28  ;;  %v10994_v37 = vadd.f32 %v10928_v62, %v2465_v56  ;;  %v9498_v36 = vld [vmem:[%s12332_s3 + $0x3a8] sm:$0xff]   ;;  %v3793_v8 = vpack.c.bf16 %v3782_v24, %v3781_v10 }
 0x2f5   : > { %v2640_v54 = vpop.f32.mrb[194].mxu1  ;;  %8784 = vmatpush3.bf16.msra.mxu1 %v9504_v58  ;;  %v3576_v58 = vpack.c.bf16 %v3563_v16, %v3562_v38  ;;  %v3564_v13 = vld [vmem:[#allocation2 + $0x6e] sm:$0xff]  ;;  %v3785_v16 = vld [vmem:[#allocation2 + $0x9f] sm:$0xff]  ;;  %v3569_v38 = vld [vmem:[#allocation2 + $0x96] sm:$0xff] }
 0x2f6   : > { %8638 = vmatmul.mubr.bf16.gmra.mrb[4].mxu0 %v3574_v40  ;;  %v8388_v1 = vpop.f32.mrb[195].mxu1  ;;  %v10997_v20 = vadd.f32 %v10933_v30, %v2466_v42  ;;  %8873 = vmatprep.subr.bf16.mxu1 %v9588_v28  ;;  %v3565_v42 = vld [vmem:[#allocation2 + $0x76] sm:$0xff] }
 0x2f7   : > { %8641 = vmatprep.mubr.msk.bf16.mxu0 %vm9589_vm0, %v9588_v28  ;;  %8726 = vmatpush3.bf16.msra.mxu0 %v9495_v51  ;;  %v3784_v1 = vld [vmem:[#allocation2 + $0x97] sm:$0xff] }
 0x2f8   : > { %8698 = vmatmul.mubr.bf16.gmra.mrb[44].mxu1 %v3791_v31  ;;  %8727 = vmatprep.subr.bf16.mxu0 %v9588_v28 }
 0x2f9   : > { %v2414_v62 = vpop.f32.mrb[156].mxu0  ;;  %8701 = vmatprep.mubr.msk.bf16.mxu1 %vm9589_vm0, %v9588_v28 }
 0x2fa   : > { %v2467_v30 = vadd.f32 %v2414_v62, %v10840_v59  ;;  %v8331_v43 = vpop.f32.mrb[157].mxu0 }
 0x2fb   : > { %v2417_v63 = vpop.f32.mrb[158].mxu0  ;;  %v2645_v3 = vpop.f32.mrb[196].mxu1  ;;  %8728 = vmatpush3.bf16.msra.mxu0 %v9498_v36  ;;  %v3577_v36 = vpack.c.bf16 %v3565_v42, %v3564_v13  ;;  %v3783_v43 = vld [vmem:[#allocation2 + $0x8f] sm:$0xff]  ;;  %v3571_v13 = vld [vmem:[#allocation2 + $0xa6] sm:$0xff] }
 0x2fc   : > { %v2468_v32 = vadd.f32 %v2417_v63, %v10843_v11  ;;  %v8332_v47 = vpop.f32.mrb[159].mxu0  ;;  %v8391_v34 = vpop.f32.mrb[197].mxu1  ;;  %8729 = vmatprep.subr.bf16.mxu0 %v9588_v28  ;;  %v11015_v57 = vadd.f32 %v10954_v49, %v2467_v30  ;;  %v9505_v11 = vld [vmem:[%s12332_s3 + $0x3b8] sm:$0xff]   ;;  %v3794_v46 = vpack.c.bf16 %v3784_v1, %v3783_v43  ;;  %v4199_v42 = vld [vmem:[#allocation2 + $0x2a] sm:$0xff] }
 0x2fd   : > { %v2648_v59 = vpop.f32.mrb[198].mxu1  ;;  %v3566_v47 = vld [vmem:[#allocation2 + $0x7e] sm:$0xff]  ;;  %v3786_v34 = vld [vmem:[#allocation2 + $0xa7] sm:$0xff] }
 0x2fe   : > { %8642 = vmatmul.mubr.bf16.gmra.mrb[8].mxu0 %v3575_v7  ;;  %v8392_v18 = vpop.f32.mrb[199].mxu1  ;;  %v11018_v44 = vadd.f32 %v10964_v52, %v2468_v32 }
 0x2ff   : > { %8645 = vmatprep.mubr.msk.bf16.mxu0 %vm9589_vm0, %v9588_v28  ;;  %8730 = vmatpush3.bf16.msra.mxu0 %v9501_v9  ;;  %v3567_v9 = vld [vmem:[#allocation2 + $0x86] sm:$0xff] }
 0x300   : > { %8702 = vmatmul.mubr.bf16.gmra.mrb[48].mxu1 %v3792_v26  ;;  %8731 = vmatprep.subr.bf16.mxu0 %v9588_v28  ;;  %v3578_v18 = vpack.c.bf16 %v3567_v9, %v3566_v47 }
 0x301   : > { %v2422_v49 = vpop.f32.mrb[160].mxu0  ;;  %8705 = vmatprep.mubr.msk.bf16.mxu1 %vm9589_vm0, %v9588_v28 }
 0x302   : > { %v2469_v60 = vadd.f32 %v2422_v49, %v10857_v17  ;;  %v8335_v52 = vpop.f32.mrb[161].mxu0 }
 0x303   : > { %v2425_v35 = vpop.f32.mrb[162].mxu0  ;;  %v2653_v0 = vpop.f32.mrb[200].mxu1  ;;  %8732 = vmatpush3.bf16.msra.mxu0 %v9505_v11  ;;  %v3795_v52 = vpack.c.bf16 %v3786_v34, %v3785_v16 }
 0x304   : > { %v2470_v41 = vadd.f32 %v2425_v35, %v10859_v29  ;;  %v8336_v33 = vpop.f32.mrb[163].mxu0  ;;  %v8395_v56 = vpop.f32.mrb[201].mxu1  ;;  %8821 = vmatprep.subr.bf16.mxu0 %v9588_v28  ;;  %v11032_v12 = vadd.f32 %v10986_v48, %v2469_v60 }
 0x305   : > { %v2656_v25 = vpop.f32.mrb[202].mxu1 }
 0x306   : > { %8646 = vmatmul.mubr.bf16.gmra.mrb[12].mxu0 %v3576_v58  ;;  %v8396_v17 = vpop.f32.mrb[203].mxu1  ;;  %v11034_v51 = vadd.f32 %v2640_v54, %v2470_v41  ;;  %v3568_v41 = vld [vmem:[#allocation2 + $0x8e] sm:$0xff] }
 0x307   : > { %8649 = vmatprep.mubr.msk.bf16.mxu0 %vm9589_vm0, %v9588_v28  ;;  %v4200_v58 = vld [vmem:[#allocation2 + $0x32] sm:$0xff]  ;;  %v3579_v10 = vpack.c.bf16 %v3569_v38, %v3568_v41  ;;  %v9578_v38 = vld [vmem:[#allocation2 + $0x20] sm:$0xff]  ;;  %v4203_v41 = vld [vmem:[#allocation2 + $0x4a] sm:$0xff] }
 0x308   : > { %8706 = vmatmul.mubr.bf16.gmra.mrb[52].mxu1 %v3793_v8 }
 0x309   : > { %v2430_v29 = vpop.f32.mrb[164].mxu0  ;;  %8709 = vmatprep.mubr.msk.bf16.mxu1 %vm9589_vm0, %v9588_v28 }
 0x30a   : > { %v2471_v15 = vadd.f32 %v2430_v29, %v10867_v21  ;;  %v8339_v48 = vpop.f32.mrb[165].mxu0 }
 0x30b   : > { %v2433_v40 = vpop.f32.mrb[166].mxu0  ;;  %v2661_v19 = vpop.f32.mrb[204].mxu1  ;;  %v4217_v48 = vpack.c.bf16 %v4200_v58, %v4199_v42  ;;  %v9516_v58 = vld [vmem:[%s12332_s3 + $0x460] sm:$0xff]  }
 0x30c   : > { %v2472_v31 = vadd.f32 %v2433_v40, %v10869_v55  ;;  %v8340_v54 = vpop.f32.mrb[167].mxu0  ;;  %v8399_v62 = vpop.f32.mrb[205].mxu1  ;;  %v11042_v5 = vadd.f32 %v2645_v3, %v2471_v15  ;;  %v9510_v15 = vld [vmem:[%s12332_s3 + $0x440] sm:$0xff]  }
 0x30d   : > { %v2664_v30 = vpop.f32.mrb[206].mxu1 }
 0x30e   : > { %8650 = vmatmul.mubr.bf16.gmra.mrb[16].mxu0 %v3577_v36  ;;  %v8400_v63 = vpop.f32.mrb[207].mxu1  ;;  %v11044_v6 = vadd.f32 %v2648_v59, %v2472_v31  ;;  %v3570_v36 = vld [vmem:[#allocation2 + $0x9e] sm:$0xff] }
 0x30f   : > { %8653 = vmatprep.mubr.msk.bf16.mxu0 %vm9589_vm0, %v9588_v28 }
 0x310   : > { %8710 = vmatmul.mubr.bf16.gmra.mrb[56].mxu1 %v3794_v46  ;;  %v3580_v46 = vpack.c.bf16 %v3571_v13, %v3570_v36  ;;  %v4206_v13 = vld [vmem:[#allocation2 + $0x62] sm:$0xff] }
 0x311   : > { %v2438_v21 = vpop.f32.mrb[168].mxu0  ;;  %8713 = vmatprep.mubr.msk.bf16.mxu1 %vm9589_vm0, %v9588_v28 }
 0x312   : > { %v2473_v55 = vadd.f32 %v2438_v21, %v10877_v14  ;;  %v8343_v3 = vpop.f32.mrb[169].mxu0 }
 0x313   : > { %v2441_v32 = vpop.f32.mrb[170].mxu0  ;;  %v2669_v7 = vpop.f32.mrb[208].mxu1  ;;  %v4201_v3 = vld [vmem:[#allocation2 + $0x3a] sm:$0xff] }
 0x314   : > { %v2474_v39 = vadd.f32 %v2441_v32, %v10879_v27  ;;  %v8344_v59 = vpop.f32.mrb[171].mxu0  ;;  %v8403_v26 = vpop.f32.mrb[209].mxu1  ;;  %v11052_v11 = vadd.f32 %v2653_v0, %v2473_v55 }
 0x315   : > { %v2672_v49 = vpop.f32.mrb[210].mxu1 }
 0x316   : > { %8654 = vmatmul.mubr.bf16.gmra.mrb[20].mxu0 %v3578_v18  ;;  %v8404_v60 = vpop.f32.mrb[211].mxu1  ;;  %v11054_v35 = vadd.f32 %v2656_v25, %v2474_v39  ;;  %v9515_v39 = vld [vmem:[%s12332_s3 + $0x458] sm:$0xff]  }
 0x317   : > { %8657 = vmatprep.mubr.msk.bf16.mxu0 %vm9589_vm0, %v9588_v28  ;;  %v4204_v60 = vld [vmem:[#allocation2 + $0x52] sm:$0xff] }
 0x318   : > { %8714 = vmatmul.mubr.bf16.gmra.mrb[60].mxu1 %v3795_v52 }
 0x319   : > { %v2446_v14 = vpop.f32.mrb[172].mxu0  ;;  %8785 = vmatprep.mubr.msk.bf16.mxu1 %vm9589_vm0, %v9588_v28 }
 0x31a   : > { %v2475_v27 = vadd.f32 %v2446_v14, %v10887_v50  ;;  %v8347_v0 = vpop.f32.mrb[173].mxu0 }
 0x31b   : > { %v2449_v24 = vpop.f32.mrb[174].mxu0  ;;  %v3035_v33 = vpop.f32.mrb[212].mxu1 }
 0x31c   : > { %v2476_v56 = vadd.f32 %v2449_v24, %v10892_v53  ;;  %v8348_v25 = vpop.f32.mrb[175].mxu0  ;;  %v8475_v17 = vpop.f32.mrb[213].mxu1  ;;  %v11062_v8 = vadd.f32 %v2661_v19, %v2475_v27  ;;  %v9512_v19 = vld [vmem:[%s12332_s3 + $0x448] sm:$0xff]  }
 0x31d   : > { %v11064_v29 = vpop.f32.mrb[214].mxu1  ;;  %v4219_v25 = vpack.c.bf16 %v4204_v60, %v4203_v41  ;;  %v3987_v17 = vld [vmem:[#allocation2 + $0x38] sm:$0xff] }
 0x31e   : > { %8658 = vmatmul.mubr.bf16.gmra.mrb[24].mxu0 %v3579_v10  ;;  %v8476_v50 = vpop.f32.mrb[215].mxu1  ;;  %v11069_v40 = vadd.f32 %v2664_v30, %v2476_v56  ;;  %v4202_v30 = vld [vmem:[#allocation2 + $0x42] sm:$0xff] }
 0x31f   : > { %8661 = vmatprep.mubr.msk.bf16.mxu0 %vm9589_vm0, %v9588_v28  ;;  %v4218_v47 = vpack.c.bf16 %v4202_v30, %v4201_v3 }
 0x320   : > { %8786 = vmatmul.mubr.bf16.vlgmr.msra.gmra.mrb[64].mxu1 %v4217_v48  ;;  %v3986_v48 = vld [vmem:[#allocation2 + $0x30] sm:$0xff] }
 0x321   : > { %v2454_v53 = vpop.f32.mrb[176].mxu0  ;;  %8789 = vmatprep.mubr.msk.bf16.mxu1 %vm9589_vm0, %v9588_v28  ;;  %8874 = vmatpush3.bf16.msra.mxu1 %v9510_v15 }
 0x322   : > { %v2477_v1 = vadd.f32 %v2454_v53, %v10906_v23  ;;  %v8351_v31 = vpop.f32.mrb[177].mxu0  ;;  %8875 = vmatprep.subr.bf16.mxu1 %v9588_v28  ;;  %v9513_v23 = vld [vmem:[%s12332_s3 + $0x450] sm:$0xff]  }
 0x323   : > { %v2457_v54 = vpop.f32.mrb[178].mxu0  ;;  %v11080_v62 = vpop.f32.mrb[216].mxu1 }
 0x324   : > { %v2478_v43 = vadd.f32 %v2457_v54, %v10914_v4  ;;  %v8352_v63 = vpop.f32.mrb[179].mxu0  ;;  %v8479_v21 = vpop.f32.mrb[217].mxu1  ;;  %v11083_v9 = vadd.f32 %v2669_v7, %v2477_v1  ;;  %v3985_v7 = vld [vmem:[#allocation2 + $0x28] sm:$0xff]  ;;  %v4003_v54 = vpack.c.bf16 %v3987_v17, %v3986_v48 }
 0x325   : > { %v11085_v55 = vpop.f32.mrb[218].mxu1  ;;  %8876 = vmatpush3.bf16.msra.mxu1 %v9512_v19  ;;  %v4002_v27 = vpack.c.bf16 %v3985_v7, %v9578_v38  ;;  %v9508_v19 = vld [vmem:[%s12332_s3 + $0x410] sm:$0xff]   ;;  %v3988_v7 = vld [vmem:[#allocation2 + $0x40] sm:$0xff] }
 0x326   : > { %8662 = vmatmul.mubr.bf16.gmra.mrb[28].mxu0 %v3580_v46  ;;  %v8480_v32 = vpop.f32.mrb[219].mxu1  ;;  %8877 = vmatprep.subr.bf16.mxu1 %v9588_v28  ;;  %v11091_v34 = vadd.f32 %v2672_v49, %v2478_v43  ;;  %v9506_v49 = vld [vmem:[%s12332_s3 + $0x400] sm:$0xff]   ;;  %v9519_v63 = vld [vmem:[%s12332_s3 + $0x470] sm:$0xff]  }
 0x327   : > { %8733 = vmatprep.mubr.msk.bf16.mxu0 %vm9589_vm0, %v9588_v28  ;;  %v4205_v43 = vld [vmem:[#allocation2 + $0x5a] sm:$0xff]  ;;  %v4207_v38 = vld [vmem:[#allocation2 + $0x6a] sm:$0xff]  ;;  %v4210_v17 = vld [vmem:[#allocation2 + $0x82] sm:$0xff] }
 0x328   : > { %8790 = vmatmul.mubr.bf16.gmra.mrb[68].mxu1 %v4218_v47  ;;  %v4220_v21 = vpack.c.bf16 %v4206_v13, %v4205_v43 }
 0x329   : > { %v2820_v4 = vpop.f32.mrb[180].mxu0  ;;  %8793 = vmatprep.mubr.msk.bf16.mxu1 %vm9589_vm0, %v9588_v28  ;;  %8878 = vmatpush3.bf16.msra.mxu1 %v9513_v23  ;;  %v3989_v23 = vld [vmem:[#allocation2 + $0x48] sm:$0xff] }
 0x32a   : > { %v2891_v59 = vadd.f32 %v2820_v4, %v10931_v22  ;;  %v8423_v18 = vpop.f32.mrb[181].mxu0  ;;  %8879 = vmatprep.subr.bf16.mxu1 %v9588_v28  ;;  %v4004_v60 = vpack.c.bf16 %v3989_v23, %v3988_v7  ;;  %v4211_v7 = vld [vmem:[#allocation2 + $0x8a] sm:$0xff] }
 0x32b   : > { %v2823_v26 = vpop.f32.mrb[182].mxu0  ;;  %v11105_v16 = vpop.f32.mrb[220].mxu1  ;;  %v9511_v18 = vld [vmem:[%s12332_s3 + $0x420] sm:$0xff]  }
 0x32c   : > { %v2892_v52 = vadd.f32 %v2823_v26, %v10939_v45  ;;  %v8424_v14 = vpop.f32.mrb[183].mxu0  ;;  %v8483_v0 = vpop.f32.mrb[221].mxu1  ;;  %v11108_v24 = vadd.f32 %v3035_v33, %v2891_v59  ;;  %v9507_v33 = vld [vmem:[%s12332_s3 + $0x408] sm:$0xff]   ;;  %v4208_v59 = vld [vmem:[#allocation2 + $0x72] sm:$0xff] }
 0x32d   : > { %v11110_v22 = vpop.f32.mrb[222].mxu1  ;;  %8880 = vmatpush3.bf16.msra.mxu1 %v9515_v39  ;;  %v4221_v0 = vpack.c.bf16 %v4208_v59, %v4207_v38 }
 0x32e   : > { %8734 = vmatmul.mubr.bf16.vlgmr.msra.gmra.mrb[32].mxu0 %v4002_v27  ;;  %v8484_v56 = vpop.f32.mrb[223].mxu1  ;;  %8881 = vmatprep.subr.bf16.mxu1 %v9588_v28  ;;  %v11117_v45 = vadd.f32 %v11064_v29, %v2892_v52  ;;  %v9518_v29 = vld [vmem:[%s12332_s3 + $0x468] sm:$0xff]  }
 0x32f   : > { %8822 = vmatpush3.bf16.msra.mxu0 %v9506_v49  ;;  %8737 = vmatprep.mubr.msk.bf16.mxu0 %vm9589_vm0, %v9588_v28 }
 0x330   : > { %8823 = vmatprep.subr.bf16.mxu0 %v9588_v28  ;;  %8794 = vmatmul.mubr.bf16.gmra.mrb[72].mxu1 %v4219_v25 }
 0x331   : > { %v2828_v10 = vpop.f32.mrb[184].mxu0  ;;  %8797 = vmatprep.mubr.msk.bf16.mxu1 %vm9589_vm0, %v9588_v28  ;;  %8882 = vmatpush3.bf16.msra.mxu1 %v9516_v58  ;;  %v3991_v58 = vld [vmem:[#allocation2 + $0x58] sm:$0xff] }
 0x332   : > { %v2893_v42 = vadd.f32 %v2828_v10, %v10962_v61  ;;  %v8427_v15 = vpop.f32.mrb[185].mxu0  ;;  %8883 = vmatprep.subr.bf16.mxu1 %v9588_v28 }
 0x333   : > { %v2831_v50 = vpop.f32.mrb[186].mxu0  ;;  %8824 = vmatpush3.bf16.msra.mxu0 %v9507_v33  ;;  %v11132_v53 = vpop.f32.mrb[224].mxu1  ;;  %v3990_v33 = vld [vmem:[#allocation2 + $0x50] sm:$0xff] }
 0x334   : > { %v2894_v1 = vadd.f32 %v2831_v50, %v10971_v2  ;;  %v8428_v31 = vpop.f32.mrb[187].mxu0  ;;  %v8487_v36 = vpop.f32.mrb[225].mxu1  ;;  %8825 = vmatprep.subr.bf16.mxu0 %v9588_v28  ;;  %v11140_v61 = vadd.f32 %v11080_v62, %v2893_v42  ;;  %v9509_v62 = vld [vmem:[%s12332_s3 + $0x418] sm:$0xff]   ;;  %v4005_v50 = vpack.c.bf16 %v3991_v58, %v3990_v33 }
 0x335   : > { %v11142_v30 = vpop.f32.mrb[226].mxu1  ;;  %8884 = vmatpush3.bf16.msra.mxu1 %v9518_v29  ;;  %v9517_v29 = vld [vmem:[%s12332_s3 + $0x430] sm:$0xff]   ;;  %v3993_v36 = vld [vmem:[#allocation2 + $0x68] sm:$0xff] }
 0x336   : > { %8738 = vmatmul.mubr.bf16.gmra.mrb[36].mxu0 %v4003_v54  ;;  %v8488_v46 = vpop.f32.mrb[227].mxu1  ;;  %8885 = vmatprep.subr.bf16.mxu1 %v9588_v28  ;;  %v11149_v2 = vadd.f32 %v11085_v55, %v2894_v1  ;;  %v9520_v55 = vld [vmem:[%s12332_s3 + $0x478] sm:$0xff]  }
 0x337   : > { %8741 = vmatprep.mubr.msk.bf16.mxu0 %vm9589_vm0, %v9588_v28  ;;  %8826 = vmatpush3.bf16.msra.mxu0 %v9508_v19  ;;  %v4209_v19 = vld [vmem:[#allocation2 + $0x7a] sm:$0xff] }
 0x338   : > { %8798 = vmatmul.mubr.bf16.gmra.mrb[76].mxu1 %v4220_v21  ;;  %8827 = vmatprep.subr.bf16.mxu0 %v9588_v28  ;;  %v4222_v31 = vpack.c.bf16 %v4210_v17, %v4209_v19  ;;  %v3992_v46 = vld [vmem:[#allocation2 + $0x60] sm:$0xff] }
 0x339   : > { %v2836_v3 = vpop.f32.mrb[188].mxu0  ;;  %8801 = vmatprep.mubr.msk.bf16.mxu1 %vm9589_vm0, %v9588_v28  ;;  %8886 = vmatpush3.bf16.msra.mxu1 %v9519_v63 }
 0x33a   : > { %v2895_v32 = vadd.f32 %v2836_v3, %v10994_v37  ;;  %v8431_v47 = vpop.f32.mrb[189].mxu0  ;;  %8887 = vmatprep.subr.bf16.mxu1 %v9588_v28 }
 0x33b   : > { %v2839_v4 = vpop.f32.mrb[190].mxu0  ;;  %v11164_v39 = vpop.f32.mrb[228].mxu1  ;;  %8828 = vmatpush3.bf16.msra.mxu0 %v9509_v62  ;;  %v4212_v62 = vld [vmem:[#allocation2 + $0x92] sm:$0xff] }
 0x33c   : > { %v2896_v26 = vadd.f32 %v2839_v4, %v10997_v20  ;;  %v8432_v49 = vpop.f32.mrb[191].mxu0  ;;  %v8491_v52 = vpop.f32.mrb[229].mxu1  ;;  %8829 = vmatprep.subr.bf16.mxu0 %v9588_v28  ;;  %v11172_v37 = vadd.f32 %v11105_v16, %v2895_v32  ;;  %v9514_v20 = vld [vmem:[%s12332_s3 + $0x428] sm:$0xff]   ;;  %v4223_v59 = vpack.c.bf16 %v4212_v62, %v4211_v7 }
 0x33d   : > { %v3070_v14 = vpop.f32.mrb[230].mxu1  ;;  %8888 = vmatpush3.bf16.msra.mxu1 %v9520_v55  ;;  %v4006_v55 = vpack.c.bf16 %v3993_v36, %v3992_v46  ;;  %v3994_v52 = vld [vmem:[#allocation2 + $0x70] sm:$0xff]  ;;  %v3999_v46 = vld [vmem:[#allocation2 + $0x98] sm:$0xff] }
 0x33e   : > { %8742 = vmatmul.mubr.bf16.gmra.mrb[40].mxu0 %v4004_v60  ;;  %v8492_v27 = vpop.f32.mrb[231].mxu1  ;;  %v11175_v41 = vadd.f32 %v11110_v22, %v2896_v26  ;;  %8977 = vmatprep.subr.bf16.mxu1 %v9588_v28  ;;  %v3995_v26 = vld [vmem:[#allocation2 + $0x78] sm:$0xff]  ;;  %v4215_v36 = vld [vmem:[#allocation2 + $0xaa] sm:$0xff] }
 0x33f   : > { %8745 = vmatprep.mubr.msk.bf16.mxu0 %vm9589_vm0, %v9588_v28  ;;  %8830 = vmatpush3.bf16.msra.mxu0 %v9511_v18  ;;  %v4214_v27 = vld [vmem:[#allocation2 + $0xa2] sm:$0xff] }
 0x340   : > { %8802 = vmatmul.mubr.bf16.gmra.mrb[80].mxu1 %v4221_v0  ;;  %8831 = vmatprep.subr.bf16.mxu0 %v9588_v28 }
 0x341   : > { %v2844_v16 = vpop.f32.mrb[192].mxu0  ;;  %8805 = vmatprep.mubr.msk.bf16.mxu1 %vm9589_vm0, %v9588_v28 }
 0x342   : > { %v2897_v22 = vadd.f32 %v2844_v16, %v11015_v57  ;;  %v8435_v56 = vpop.f32.mrb[193].mxu0 }
 0x343   : > { %v2847_v25 = vpop.f32.mrb[194].mxu0  ;;  %v3075_v10 = vpop.f32.mrb[232].mxu1  ;;  %8832 = vmatpush3.bf16.msra.mxu0 %v9514_v20  ;;  %v4007_v20 = vpack.c.bf16 %v3995_v26, %v3994_v52  ;;  %v4213_v56 = vld [vmem:[#allocation2 + $0x9a] sm:$0xff]  ;;  %v4629_v26 = vld [vmem:[#allocation2 + $0x2c] sm:$0xff] }
 0x344   : > { %v2898_v42 = vadd.f32 %v2847_v25, %v11018_v44  ;;  %v8436_v15 = vpop.f32.mrb[195].mxu0  ;;  %v8495_v48 = vpop.f32.mrb[233].mxu1  ;;  %8833 = vmatprep.subr.bf16.mxu0 %v9588_v28  ;;  %v11193_v13 = vadd.f32 %v11132_v53, %v2897_v22  ;;  %v9521_v44 = vld [vmem:[%s12332_s3 + $0x438] sm:$0xff]   ;;  %v4224_v33 = vpack.c.bf16 %v4214_v27, %v4213_v56  ;;  %v4001_v52 = vld [vmem:[#allocation2 + $0xa8] sm:$0xff] }
 0x345   : > { %v3078_v57 = vpop.f32.mrb[234].mxu1  ;;  %v3996_v15 = vld [vmem:[#allocation2 + $0x80] sm:$0xff]  ;;  %v4216_v48 = vld [vmem:[#allocation2 + $0xb2] sm:$0xff] }
 0x346   : > { %8746 = vmatmul.mubr.bf16.gmra.mrb[44].mxu0 %v4005_v50  ;;  %v8496_v1 = vpop.f32.mrb[235].mxu1  ;;  %v11196_v54 = vadd.f32 %v11142_v30, %v2898_v42 }
 0x347   : > { %8749 = vmatprep.mubr.msk.bf16.mxu0 %vm9589_vm0, %v9588_v28  ;;  %8834 = vmatpush3.bf16.msra.mxu0 %v9517_v29  ;;  %v3997_v29 = vld [vmem:[#allocation2 + $0x88] sm:$0xff] }
 0x348   : > { %8806 = vmatmul.mubr.bf16.gmra.mrb[84].mxu1 %v4222_v31  ;;  %8835 = vmatprep.subr.bf16.mxu0 %v9588_v28  ;;  %v4008_v1 = vpack.c.bf16 %v3997_v29, %v3996_v15 }
 0x349   : > { %v2852_v53 = vpop.f32.mrb[196].mxu0  ;;  %8809 = vmatprep.mubr.msk.bf16.mxu1 %vm9589_vm0, %v9588_v28 }
 0x34a   : > { %v2899_v43 = vadd.f32 %v2852_v53, %v11032_v12  ;;  %v8439_v30 = vpop.f32.mrb[197].mxu0 }
 0x34b   : > { %v2855_v63 = vpop.f32.mrb[198].mxu0  ;;  %v3083_v21 = vpop.f32.mrb[236].mxu1  ;;  %8836 = vmatpush3.bf16.msra.mxu0 %v9521_v44  ;;  %v4225_v30 = vpack.c.bf16 %v4216_v48, %v4215_v36  ;;  %v9522_v36 = vld [vmem:[%s12332_s3 + $0x480] sm:$0xff]  }
 0x34c   : > { %v2900_v3 = vadd.f32 %v2855_v63, %v11034_v51  ;;  %v8440_v23 = vpop.f32.mrb[199].mxu0  ;;  %v8499_v32 = vpop.f32.mrb[237].mxu1  ;;  %8925 = vmatprep.subr.bf16.mxu0 %v9588_v28  ;;  %v11210_v47 = vadd.f32 %v11164_v39, %v2899_v43 }
 0x34d   : > { %v3086_v4 = vpop.f32.mrb[238].mxu1 }
 0x34e   : > { %8750 = vmatmul.mubr.bf16.gmra.mrb[48].mxu0 %v4006_v55  ;;  %v8500_v12 = vpop.f32.mrb[239].mxu1  ;;  %v11212_v18 = vadd.f32 %v3070_v14, %v2900_v3  ;;  %v3998_v3 = vld [vmem:[#allocation2 + $0x90] sm:$0xff] }
 0x34f   : > { %8753 = vmatprep.mubr.msk.bf16.mxu0 %vm9589_vm0, %v9588_v28  ;;  %v4630_v55 = vld [vmem:[#allocation2 + $0x34] sm:$0xff]  ;;  %v4009_v7 = vpack.c.bf16 %v3999_v46, %v3998_v3  ;;  %v4633_v3 = vld [vmem:[#allocation2 + $0x4c] sm:$0xff] }
 0x350   : > { %8810 = vmatmul.mubr.bf16.gmra.mrb[88].mxu1 %v4223_v59 }
 0x351   : > { %v2860_v51 = vpop.f32.mrb[200].mxu0  ;;  %8813 = vmatprep.mubr.msk.bf16.mxu1 %vm9589_vm0, %v9588_v28 }
 0x352   : > { %v2901_v49 = vadd.f32 %v2860_v51, %v11042_v5  ;;  %v8443_v39 = vpop.f32.mrb[201].mxu0 }
 0x353   : > { %v2863_v60 = vpop.f32.mrb[202].mxu0  ;;  %v3091_v38 = vpop.f32.mrb[240].mxu1  ;;  %v4647_v39 = vpack.c.bf16 %v4630_v55, %v4629_v26  ;;  %v9532_v55 = vld [vmem:[%s12332_s3 + $0x4e0] sm:$0xff]  }
 0x354   : > { %v2902_v0 = vadd.f32 %v2863_v60, %v11044_v6  ;;  %v8444_v14 = vpop.f32.mrb[203].mxu0  ;;  %v8503_v16 = vpop.f32.mrb[241].mxu1  ;;  %v11220_v58 = vadd.f32 %v3075_v10, %v2901_v49  ;;  %v9526_v49 = vld [vmem:[%s12332_s3 + $0x4c0] sm:$0xff]  }
 0x355   : > { %v3094_v22 = vpop.f32.mrb[242].mxu1 }
 0x356   : > { %8754 = vmatmul.mubr.bf16.gmra.mrb[52].mxu0 %v4007_v20  ;;  %v8504_v25 = vpop.f32.mrb[243].mxu1  ;;  %v11222_v17 = vadd.f32 %v3078_v57, %v2902_v0  ;;  %v4000_v20 = vld [vmem:[#allocation2 + $0xa0] sm:$0xff] }
 0x357   : > { %8757 = vmatprep.mubr.msk.bf16.mxu0 %vm9589_vm0, %v9588_v28 }
 0x358   : > { %8814 = vmatmul.mubr.bf16.gmra.mrb[92].mxu1 %v4224_v33  ;;  %v4010_v33 = vpack.c.bf16 %v4001_v52, %v4000_v20  ;;  %v4636_v52 = vld [vmem:[#allocation2 + $0x64] sm:$0xff] }
 0x359   : > { %v2868_v5 = vpop.f32.mrb[204].mxu0  ;;  %8817 = vmatprep.mubr.msk.bf16.mxu1 %vm9589_vm0, %v9588_v28 }
 0x35a   : > { %v2903_v6 = vadd.f32 %v2868_v5, %v11052_v11  ;;  %v8447_v10 = vpop.f32.mrb[205].mxu0 }
 0x35b   : > { %v2871_v42 = vpop.f32.mrb[206].mxu0  ;;  %v3099_v50 = vpop.f32.mrb[244].mxu1  ;;  %v4631_v10 = vld [vmem:[#allocation2 + $0x3c] sm:$0xff] }
 0x35c   : > { %v2904_v19 = vadd.f32 %v2871_v42, %v11054_v35  ;;  %v8448_v57 = vpop.f32.mrb[207].mxu0  ;;  %v8507_v31 = vpop.f32.mrb[245].mxu1  ;;  %v11230_v44 = vadd.f32 %v3083_v21, %v2903_v6 }
 0x35d   : > { %v3102_v53 = vpop.f32.mrb[246].mxu1 }
 0x35e   : > { %8758 = vmatmul.mubr.bf16.gmra.mrb[56].mxu0 %v4008_v1  ;;  %v8508_v43 = vpop.f32.mrb[247].mxu1  ;;  %v11232_v63 = vadd.f32 %v3086_v4, %v2904_v19  ;;  %v9531_v19 = vld [vmem:[%s12332_s3 + $0x4d8] sm:$0xff]  }
 0x35f   : > { %8761 = vmatprep.mubr.msk.bf16.mxu0 %vm9589_vm0, %v9588_v28 }
 0x360   : > { %8818 = vmatmul.mubr.bf16.gmra.mrb[96].mxu1 %v4225_v30  ;;  %v4634_v30 = vld [vmem:[#allocation2 + $0x54] sm:$0xff] }
 0x361   : > { %v2876_v11 = vpop.f32.mrb[208].mxu0  ;;  %8889 = vmatprep.mubr.msk.bf16.mxu1 %vm9589_vm0, %v9588_v28 }
 0x362   : > { %v2905_v35 = vadd.f32 %v2876_v11, %v11062_v8  ;;  %v8451_v21 = vpop.f32.mrb[209].mxu0 }
 0x363   : > { %v2879_v62 = vpop.f32.mrb[210].mxu0  ;;  %v3465_v23 = vpop.f32.mrb[248].mxu1 }
 0x364   : > { %v2906_v32 = vadd.f32 %v2879_v62, %v11069_v40  ;;  %v8452_v4 = vpop.f32.mrb[211].mxu0  ;;  %v8579_v12 = vpop.f32.mrb[249].mxu1  ;;  %v11240_v59 = vadd.f32 %v3091_v38, %v2905_v35  ;;  %v9528_v38 = vld [vmem:[%s12332_s3 + $0x4c8] sm:$0xff]  }
 0x365   : > { %v11242_v51 = vpop.f32.mrb[250].mxu1  ;;  %v4649_v4 = vpack.c.bf16 %v4634_v30, %v4633_v3  ;;  %v4417_v12 = vld [vmem:[#allocation2 + $0x43] sm:$0xff] }
 0x366   : > { %8762 = vmatmul.mubr.bf16.gmra.mrb[60].mxu0 %v4009_v7  ;;  %v8580_v8 = vpop.f32.mrb[251].mxu1  ;;  %v11247_v60 = vadd.f32 %v3094_v22, %v2906_v32  ;;  %v4632_v22 = vld [vmem:[#allocation2 + $0x44] sm:$0xff] }
 0x367   : > { %8765 = vmatprep.mubr.msk.bf16.mxu0 %vm9589_vm0, %v9588_v28  ;;  %v4648_v15 = vpack.c.bf16 %v4632_v22, %v4631_v10 }
 0x368   : > { %8890 = vmatmul.mubr.bf16.vlgmr.msra.gmra.mrb[100].mxu1 %v4647_v39  ;;  %v4416_v39 = vld [vmem:[#allocation2 + $0x3b] sm:$0xff] }
 0x369   : > { %v2884_v40 = vpop.f32.mrb[212].mxu0  ;;  %8893 = vmatprep.mubr.msk.bf16.mxu1 %vm9589_vm0, %v9588_v28  ;;  %8978 = vmatpush3.bf16.msra.mxu1 %v9526_v49 }
 0x36a   : > { %v2907_v27 = vadd.f32 %v2884_v40, %v11083_v9  ;;  %v8455_v0 = vpop.f32.mrb[213].mxu0  ;;  %8979 = vmatprep.subr.bf16.mxu1 %v9588_v28  ;;  %v9529_v9 = vld [vmem:[%s12332_s3 + $0x4d0] sm:$0xff]  }
 0x36b   : > { %v2887_v14 = vpop.f32.mrb[214].mxu0  ;;  %v11258_v16 = vpop.f32.mrb[252].mxu1 }
 0x36c   : > { %v2908_v56 = vadd.f32 %v2887_v14, %v11091_v34  ;;  %v8456_v25 = vpop.f32.mrb[215].mxu0  ;;  %v8583_v5 = vpop.f32.mrb[253].mxu1  ;;  %v11261_v29 = vadd.f32 %v3099_v50, %v2907_v27  ;;  %v4415_v50 = vld [vmem:[#allocation2 + $0x33] sm:$0xff]  ;;  %v4433_v14 = vpack.c.bf16 %v4417_v12, %v4416_v39  ;;  %v4640_v12 = vld [vmem:[#allocation2 + $0x84] sm:$0xff] }
 0x36d   : > { %v11263_v6 = vpop.f32.mrb[254].mxu1  ;;  %8980 = vmatpush3.bf16.msra.mxu1 %v9528_v38  ;;  %v9524_v38 = vld [vmem:[%s12332_s3 + $0x490] sm:$0xff]  }
 0x36e   : > { %8766 = vmatmul.mubr.bf16.gmra.mrb[64].mxu0 %v4010_v33  ;;  %v8584_v42 = vpop.f32.mrb[255].mxu1  ;;  %8981 = vmatprep.subr.bf16.mxu1 %v9588_v28  ;;  %v11269_v48 = vadd.f32 %v3102_v53, %v2908_v56  ;;  %v4414_v53 = vld [vmem:[#allocation2 + $0x2b] sm:$0xff]  ;;  %v4635_v56 = vld [vmem:[#allocation2 + $0x5c] sm:$0xff] }
 0x36f   : > { %8837 = vmatprep.mubr.msk.bf16.mxu0 %vm9589_vm0, %v9588_v28  ;;  %v4432_v35 = vpack.c.bf16 %v4415_v50, %v4414_v53  ;;  %v9535_v25 = vld [vmem:[%s12332_s3 + $0x4f0] sm:$0xff]   ;;  %v4650_v5 = vpack.c.bf16 %v4636_v52, %v4635_v56 }
 0x370   : > { %8894 = vmatmul.mubr.bf16.gmra.mrb[104].mxu1 %v4648_v15  ;;  %v4418_v50 = vld [vmem:[#allocation2 + $0x4b] sm:$0xff] }
 0x371   : > { %v3250_v34 = vpop.f32.mrb[216].mxu0  ;;  %8897 = vmatprep.mubr.msk.bf16.mxu1 %vm9589_vm0, %v9588_v28  ;;  %8982 = vmatpush3.bf16.msra.mxu1 %v9529_v9  ;;  %v4419_v9 = vld [vmem:[#allocation2 + $0x53] sm:$0xff] }
 0x372   : > { %v3321_v57 = vadd.f32 %v3250_v34, %v11108_v24  ;;  %v8527_v1 = vpop.f32.mrb[217].mxu0  ;;  %8983 = vmatprep.subr.bf16.mxu1 %v9588_v28 }
 0x373   : > { %v3253_v31 = vpop.f32.mrb[218].mxu0  ;;  %v11283_v43 = vpop.f32.mrb[0].mxu1  ;;  %v9527_v1 = vld [vmem:[%s12332_s3 + $0x4a0] sm:$0xff]  }
 0x374   : > { %v3322_v11 = vadd.f32 %v3253_v31, %v11117_v45  ;;  %v8528_v46 = vpop.f32.mrb[219].mxu0  ;;  %v8587_v21 = vpop.f32.mrb[1].mxu1  ;;  %v11286_v62 = vadd.f32 %v3465_v23, %v3321_v57  ;;  %v9523_v23 = vld [vmem:[%s12332_s3 + $0x488] sm:$0xff]   ;;  %v4638_v57 = vld [vmem:[#allocation2 + $0x74] sm:$0xff] }
 0x375   : > { %v11288_v24 = vpop.f32.mrb[2].mxu1  ;;  %8984 = vmatpush3.bf16.msra.mxu1 %v9531_v19  ;;  %v4637_v46 = vld [vmem:[#allocation2 + $0x6c] sm:$0xff] }
 0x376   : > { %8838 = vmatmul.mubr.bf16.vlgmr.msra.gmra.mrb[68].mxu0 %v4432_v35  ;;  %v8588_v32 = vpop.f32.mrb[3].mxu1  ;;  %8985 = vmatprep.subr.bf16.mxu1 %v9588_v28  ;;  %v11295_v45 = vadd.f32 %v11242_v51, %v3322_v11  ;;  %v9534_v51 = vld [vmem:[%s12332_s3 + $0x4e8] sm:$0xff]   ;;  %v4651_v21 = vpack.c.bf16 %v4638_v57, %v4637_v46 }
 0x377   : > { %8926 = vmatpush3.bf16.msra.mxu0 %v9522_v36  ;;  %8841 = vmatprep.mubr.msk.bf16.mxu0 %vm9589_vm0, %v9588_v28  ;;  %v4434_v36 = vpack.c.bf16 %v4419_v9, %v4418_v50  ;;  %v4641_v50 = vld [vmem:[#allocation2 + $0x8c] sm:$0xff] }
 0x378   : > { %8927 = vmatprep.subr.bf16.mxu0 %v9588_v28  ;;  %8898 = vmatmul.mubr.bf16.gmra.mrb[108].mxu1 %v4649_v4 }
 0x379   : > { %v3258_v7 = vpop.f32.mrb[220].mxu0  ;;  %8901 = vmatprep.mubr.msk.bf16.mxu1 %vm9589_vm0, %v9588_v28  ;;  %8986 = vmatpush3.bf16.msra.mxu1 %v9532_v55  ;;  %v4421_v55 = vld [vmem:[#allocation2 + $0x63] sm:$0xff] }
 0x37a   : > { %v3323_v26 = vadd.f32 %v3258_v7, %v11140_v61  ;;  %v8531_v49 = vpop.f32.mrb[221].mxu0  ;;  %8987 = vmatprep.subr.bf16.mxu1 %v9588_v28 }
 0x37b   : > { %v3261_v8 = vpop.f32.mrb[222].mxu0  ;;  %8928 = vmatpush3.bf16.msra.mxu0 %v9523_v23  ;;  %v11310_v40 = vpop.f32.mrb[4].mxu1  ;;  %v4420_v23 = vld [vmem:[#allocation2 + $0x5b] sm:$0xff] }
 0x37c   : > { %v3324_v27 = vadd.f32 %v3261_v8, %v11149_v2  ;;  %v8532_v0 = vpop.f32.mrb[223].mxu0  ;;  %v8591_v20 = vpop.f32.mrb[5].mxu1  ;;  %8929 = vmatprep.subr.bf16.mxu0 %v9588_v28  ;;  %v11318_v61 = vadd.f32 %v11258_v16, %v3323_v26  ;;  %v9525_v16 = vld [vmem:[%s12332_s3 + $0x498] sm:$0xff]   ;;  %v4435_v8 = vpack.c.bf16 %v4421_v55, %v4420_v23 }
 0x37d   : > { %v11320_v22 = vpop.f32.mrb[6].mxu1  ;;  %8988 = vmatpush3.bf16.msra.mxu1 %v9534_v51  ;;  %v9533_v51 = vld [vmem:[%s12332_s3 + $0x4b0] sm:$0xff]  }
 0x37e   : > { %8842 = vmatmul.mubr.bf16.gmra.mrb[72].mxu0 %v4433_v14  ;;  %v8592_v33 = vpop.f32.mrb[7].mxu1  ;;  %8989 = vmatprep.subr.bf16.mxu1 %v9588_v28  ;;  %v11327_v2 = vadd.f32 %v11263_v6, %v3324_v27  ;;  %v9536_v6 = vld [vmem:[%s12332_s3 + $0x4f8] sm:$0xff]  }
 0x37f   : > { %8845 = vmatprep.mubr.msk.bf16.mxu0 %vm9589_vm0, %v9588_v28  ;;  %8930 = vmatpush3.bf16.msra.mxu0 %v9524_v38  ;;  %v4639_v38 = vld [vmem:[#allocation2 + $0x7c] sm:$0xff]  ;;  %v4423_v20 = vld [vmem:[#allocation2 + $0x73] sm:$0xff]  ;;  %v4422_v33 = vld [vmem:[#allocation2 + $0x6b] sm:$0xff] }
 0x380   : > { %8902 = vmatmul.mubr.bf16.gmra.mrb[112].mxu1 %v4650_v5  ;;  %8931 = vmatprep.subr.bf16.mxu0 %v9588_v28  ;;  %v4652_v0 = vpack.c.bf16 %v4640_v12, %v4639_v38 }
 0x381   : > { %v3266_v10 = vpop.f32.mrb[224].mxu0  ;;  %8905 = vmatprep.mubr.msk.bf16.mxu1 %vm9589_vm0, %v9588_v28  ;;  %8990 = vmatpush3.bf16.msra.mxu1 %v9535_v25 }
 0x382   : > { %v3325_v42 = vadd.f32 %v3266_v10, %v11172_v37  ;;  %v8535_v15 = vpop.f32.mrb[225].mxu0  ;;  %8991 = vmatprep.subr.bf16.mxu1 %v9588_v28 }
 0x383   : > { %v3269_v34 = vpop.f32.mrb[226].mxu0  ;;  %v11342_v19 = vpop.f32.mrb[8].mxu1  ;;  %8932 = vmatpush3.bf16.msra.mxu0 %v9525_v16  ;;  %v4642_v16 = vld [vmem:[#allocation2 + $0x94] sm:$0xff] }
 0x384   : > { %v3326_v31 = vadd.f32 %v3269_v34, %v11175_v41  ;;  %v8536_v53 = vpop.f32.mrb[227].mxu0  ;;  %v8595_v30 = vpop.f32.mrb[9].mxu1  ;;  %8933 = vmatprep.subr.bf16.mxu0 %v9588_v28  ;;  %v11350_v37 = vadd.f32 %v11283_v43, %v3325_v42  ;;  %v9530_v41 = vld [vmem:[%s12332_s3 + $0x4a8] sm:$0xff]   ;;  %v4653_v57 = vpack.c.bf16 %v4642_v16, %v4641_v50 }
 0x385   : > { %v3500_v11 = vpop.f32.mrb[10].mxu1  ;;  %8992 = vmatpush3.bf16.msra.mxu1 %v9536_v6  ;;  %v4436_v6 = vpack.c.bf16 %v4423_v20, %v4422_v33  ;;  %v4424_v30 = vld [vmem:[#allocation2 + $0x7b] sm:$0xff]  ;;  %v4645_v20 = vld [vmem:[#allocation2 + $0xac] sm:$0xff]  ;;  %v4429_v33 = vld [vmem:[#allocation2 + $0xa3] sm:$0xff] }
 0x386   : > { %8846 = vmatmul.mubr.bf16.gmra.mrb[76].mxu0 %v4434_v36  ;;  %v8596_v35 = vpop.f32.mrb[11].mxu1  ;;  %v11353_v3 = vadd.f32 %v11288_v24, %v3326_v31  ;;  %9081 = vmatprep.subr.bf16.mxu1 %v9588_v28  ;;  %v4425_v31 = vld [vmem:[#allocation2 + $0x83] sm:$0xff] }
 0x387   : > { %8849 = vmatprep.mubr.msk.bf16.mxu0 %vm9589_vm0, %v9588_v28  ;;  %8934 = vmatpush3.bf16.msra.mxu0 %v9527_v1  ;;  %v4644_v35 = vld [vmem:[#allocation2 + $0xa4] sm:$0xff] }
 0x388   : > { %8906 = vmatmul.mubr.bf16.gmra.mrb[116].mxu1 %v4651_v21  ;;  %8935 = vmatprep.subr.bf16.mxu0 %v9588_v28 }
 0x389   : > { %v3274_v43 = vpop.f32.mrb[228].mxu0  ;;  %8909 = vmatprep.mubr.msk.bf16.mxu1 %vm9589_vm0, %v9588_v28 }
 0x38a   : > { %v3327_v24 = vadd.f32 %v3274_v43, %v11193_v13  ;;  %v8539_v32 = vpop.f32.mrb[229].mxu0 }
 0x38b   : > { %v3277_v4 = vpop.f32.mrb[230].mxu0  ;;  %v3505_v7 = vpop.f32.mrb[12].mxu1  ;;  %8936 = vmatpush3.bf16.msra.mxu0 %v9530_v41  ;;  %v4437_v41 = vpack.c.bf16 %v4425_v31, %v4424_v30  ;;  %v4643_v32 = vld [vmem:[#allocation2 + $0x9c] sm:$0xff]  ;;  %v5059_v31 = vld [vmem:[#allocation2 + $0x2e] sm:$0xff] }
 0x38c   : > { %v3328_v26 = vadd.f32 %v3277_v4, %v11196_v54  ;;  %v8540_v49 = vpop.f32.mrb[231].mxu0  ;;  %v8599_v39 = vpop.f32.mrb[13].mxu1  ;;  %8937 = vmatprep.subr.bf16.mxu0 %v9588_v28  ;;  %v11371_v52 = vadd.f32 %v11310_v40, %v3327_v24  ;;  %v9537_v54 = vld [vmem:[%s12332_s3 + $0x4b8] sm:$0xff]   ;;  %v4654_v23 = vpack.c.bf16 %v4644_v35, %v4643_v32 }
 0x38d   : > { %v3508_v13 = vpop.f32.mrb[14].mxu1  ;;  %v4426_v49 = vld [vmem:[#allocation2 + $0x8b] sm:$0xff]  ;;  %v4646_v39 = vld [vmem:[#allocation2 + $0xb4] sm:$0xff] }
 0x38e   : > { %8850 = vmatmul.mubr.bf16.gmra.mrb[80].mxu0 %v4435_v8  ;;  %v8600_v27 = vpop.f32.mrb[15].mxu1  ;;  %v11374_v14 = vadd.f32 %v11320_v22, %v3328_v26  ;;  %v4431_v30 = vld [vmem:[#allocation2 + $0xb3] sm:$0xff] }
 0x38f   : > { %8853 = vmatprep.mubr.msk.bf16.mxu0 %vm9589_vm0, %v9588_v28  ;;  %8938 = vmatpush3.bf16.msra.mxu0 %v9533_v51  ;;  %v4427_v51 = vld [vmem:[#allocation2 + $0x93] sm:$0xff] }
 0x390   : > { %8910 = vmatmul.mubr.bf16.gmra.mrb[120].mxu1 %v4652_v0  ;;  %8939 = vmatprep.subr.bf16.mxu0 %v9588_v28  ;;  %v4438_v27 = vpack.c.bf16 %v4427_v51, %v4426_v49 }
 0x391   : > { %v3282_v40 = vpop.f32.mrb[232].mxu0  ;;  %8913 = vmatprep.mubr.msk.bf16.mxu1 %vm9589_vm0, %v9588_v28 }
 0x392   : > { %v3329_v56 = vadd.f32 %v3282_v40, %v11210_v47  ;;  %v8543_v22 = vpop.f32.mrb[233].mxu0 }
 0x393   : > { %v3285_v25 = vpop.f32.mrb[234].mxu0  ;;  %v3513_v5 = vpop.f32.mrb[16].mxu1  ;;  %8940 = vmatpush3.bf16.msra.mxu0 %v9537_v54  ;;  %v4655_v22 = vpack.c.bf16 %v4646_v39, %v4645_v20  ;;  %v9538_v20 = vld [vmem:[%s12332_s3 + $0x500] sm:$0xff]  }
 0x394   : > { %v3330_v10 = vadd.f32 %v3285_v25, %v11212_v18  ;;  %v8544_v9 = vpop.f32.mrb[235].mxu0  ;;  %v8603_v42 = vpop.f32.mrb[17].mxu1  ;;  %9029 = vmatprep.subr.bf16.mxu0 %v9588_v28  ;;  %v11388_v15 = vadd.f32 %v11342_v19, %v3329_v56 }
 0x395   : > { %v3516_v34 = vpop.f32.mrb[18].mxu1 }
 0x396   : > { %8854 = vmatmul.mubr.bf16.gmra.mrb[84].mxu0 %v4436_v6  ;;  %v8604_v47 = vpop.f32.mrb[19].mxu1  ;;  %v11390_v1 = vadd.f32 %v3500_v11, %v3330_v10  ;;  %v4428_v10 = vld [vmem:[#allocation2 + $0x9b] sm:$0xff] }
 0x397   : > { %8857 = vmatprep.mubr.msk.bf16.mxu0 %vm9589_vm0, %v9588_v28  ;;  %v5060_v6 = vld [vmem:[#allocation2 + $0x36] sm:$0xff]  ;;  %v4439_v50 = vpack.c.bf16 %v4429_v33, %v4428_v10  ;;  %v5063_v10 = vld [vmem:[#allocation2 + $0x4e] sm:$0xff] }
 0x398   : > { %8914 = vmatmul.mubr.bf16.gmra.mrb[124].mxu1 %v4653_v57 }
 0x399   : > { %v3290_v18 = vpop.f32.mrb[236].mxu0  ;;  %8917 = vmatprep.mubr.msk.bf16.mxu1 %vm9589_vm0, %v9588_v28 }
 0x39a   : > { %v3331_v53 = vadd.f32 %v3290_v18, %v11220_v58  ;;  %v8547_v19 = vpop.f32.mrb[237].mxu0 }
 0x39b   : > { %v3293_v36 = vpop.f32.mrb[238].mxu0  ;;  %v3521_v46 = vpop.f32.mrb[20].mxu1  ;;  %v5077_v19 = vpack.c.bf16 %v5060_v6, %v5059_v31  ;;  %v9548_v6 = vld [vmem:[%s12332_s3 + $0x560] sm:$0xff]  }
 0x39c   : > { %v3332_v21 = vadd.f32 %v3293_v36, %v11222_v17  ;;  %v8548_v11 = vpop.f32.mrb[239].mxu0  ;;  %v8607_v43 = vpop.f32.mrb[21].mxu1  ;;  %v11398_v55 = vadd.f32 %v3505_v7, %v3331_v53  ;;  %v9542_v53 = vld [vmem:[%s12332_s3 + $0x540] sm:$0xff]  }
 0x39d   : > { %v3524_v24 = vpop.f32.mrb[22].mxu1 }
 0x39e   : > { %8858 = vmatmul.mubr.bf16.gmra.mrb[88].mxu0 %v4437_v41  ;;  %v8608_v4 = vpop.f32.mrb[23].mxu1  ;;  %v11400_v12 = vadd.f32 %v3508_v13, %v3332_v21  ;;  %v4430_v41 = vld [vmem:[#allocation2 + $0xab] sm:$0xff] }
 0x39f   : > { %8861 = vmatprep.mubr.msk.bf16.mxu0 %vm9589_vm0, %v9588_v28 }
 0x3a0   : > { %8918 = vmatmul.mubr.bf16.gmra.mrb[128].mxu1 %v4654_v23  ;;  %v4440_v23 = vpack.c.bf16 %v4431_v30, %v4430_v41  ;;  %v5066_v30 = vld [vmem:[#allocation2 + $0x66] sm:$0xff] }
 0x3a1   : > { %v3298_v58 = vpop.f32.mrb[240].mxu0  ;;  %8921 = vmatprep.mubr.msk.bf16.mxu1 %vm9589_vm0, %v9588_v28 }
 0x3a2   : > { %v3333_v17 = vadd.f32 %v3298_v58, %v11230_v44  ;;  %v8551_v7 = vpop.f32.mrb[241].mxu0 }
 0x3a3   : > { %v3301_v26 = vpop.f32.mrb[242].mxu0  ;;  %v3529_v8 = vpop.f32.mrb[24].mxu1  ;;  %v5061_v7 = vld [vmem:[#allocation2 + $0x3e] sm:$0xff] }
 0x3a4   : > { %v3334_v38 = vadd.f32 %v3301_v26, %v11232_v63  ;;  %v8552_v13 = vpop.f32.mrb[243].mxu0  ;;  %v8611_v0 = vpop.f32.mrb[25].mxu1  ;;  %v11408_v54 = vadd.f32 %v3513_v5, %v3333_v17 }
 0x3a5   : > { %v3532_v40 = vpop.f32.mrb[26].mxu1 }
 0x3a6   : > { %8862 = vmatmul.mubr.bf16.gmra.mrb[92].mxu0 %v4438_v27  ;;  %v8612_v56 = vpop.f32.mrb[27].mxu1  ;;  %v11410_v25 = vadd.f32 %v3516_v34, %v3334_v38  ;;  %v9547_v38 = vld [vmem:[%s12332_s3 + $0x558] sm:$0xff]  }
 0x3a7   : > { %8865 = vmatprep.mubr.msk.bf16.mxu0 %vm9589_vm0, %v9588_v28 }
 0x3a8   : > { %8922 = vmatmul.mubr.bf16.gmra.mrb[132].mxu1 %v4655_v22  ;;  %v5064_v22 = vld [vmem:[#allocation2 + $0x56] sm:$0xff] }
 0x3a9   : > { %v3306_v44 = vpop.f32.mrb[244].mxu0  ;;  %8993 = vmatprep.mubr.msk.bf16.mxu1 %vm9589_vm0, %v9588_v28 }
 0x3aa   : > { %v3335_v63 = vadd.f32 %v3306_v44, %v11240_v59  ;;  %v8555_v5 = vpop.f32.mrb[245].mxu0 }
 0x3ab   : > { %v3309_v16 = vpop.f32.mrb[246].mxu0  ;;  %v3895_v9 = vpop.f32.mrb[28].mxu1 }
 0x3ac   : > { %v3336_v42 = vadd.f32 %v3309_v16, %v11247_v60  ;;  %v8556_v34 = vpop.f32.mrb[247].mxu0  ;;  %v8683_v47 = vpop.f32.mrb[29].mxu1  ;;  %v11418_v57 = vadd.f32 %v3521_v46, %v3335_v63  ;;  %v9544_v46 = vld [vmem:[%s12332_s3 + $0x548] sm:$0xff]  }
 0x3ad   : > { %v11420_v18 = vpop.f32.mrb[30].mxu1  ;;  %v5079_v34 = vpack.c.bf16 %v5064_v22, %v5063_v10  ;;  %v4847_v47 = vld [vmem:[#allocation2 + $0x45] sm:$0xff] }
 0x3ae   : > { %8866 = vmatmul.mubr.bf16.gmra.mrb[96].mxu0 %v4439_v50  ;;  %v8684_v59 = vpop.f32.mrb[31].mxu1  ;;  %v11425_v36 = vadd.f32 %v3524_v24, %v3336_v42  ;;  %v5062_v24 = vld [vmem:[#allocation2 + $0x46] sm:$0xff] }
 0x3af   : > { %8869 = vmatprep.mubr.msk.bf16.mxu0 %vm9589_vm0, %v9588_v28  ;;  %v5078_v49 = vpack.c.bf16 %v5062_v24, %v5061_v7 }
 0x3b0   : > { %8994 = vmatmul.mubr.bf16.vlgmr.msra.gmra.mrb[136].mxu1 %v5077_v19  ;;  %v4846_v19 = vld [vmem:[#allocation2 + $0x3d] sm:$0xff] }
 0x3b1   : > { %v3314_v60 = vpop.f32.mrb[248].mxu0  ;;  %8997 = vmatprep.mubr.msk.bf16.mxu1 %vm9589_vm0, %v9588_v28  ;;  %9082 = vmatpush3.bf16.msra.mxu1 %v9542_v53 }
 0x3b2   : > { %v3337_v35 = vadd.f32 %v3314_v60, %v11261_v29  ;;  %v8559_v21 = vpop.f32.mrb[249].mxu0  ;;  %9083 = vmatprep.subr.bf16.mxu1 %v9588_v28  ;;  %v9545_v29 = vld [vmem:[%s12332_s3 + $0x550] sm:$0xff]  }
 0x3b3   : > { %v3317_v11 = vpop.f32.mrb[250].mxu0  ;;  %v11436_v43 = vpop.f32.mrb[32].mxu1 }
 0x3b4   : > { %v3338_v32 = vadd.f32 %v3317_v11, %v11269_v48  ;;  %v8560_v4 = vpop.f32.mrb[251].mxu0  ;;  %v8687_v58 = vpop.f32.mrb[33].mxu1  ;;  %v11439_v51 = vadd.f32 %v3529_v8, %v3337_v35  ;;  %v4845_v8 = vld [vmem:[#allocation2 + $0x35] sm:$0xff]  ;;  %v4863_v11 = vpack.c.bf16 %v4847_v47, %v4846_v19  ;;  %v5070_v47 = vld [vmem:[#allocation2 + $0x86] sm:$0xff] }
 0x3b5   : > { %v11441_v17 = vpop.f32.mrb[34].mxu1  ;;  %9084 = vmatpush3.bf16.msra.mxu1 %v9544_v46  ;;  %v9540_v46 = vld [vmem:[%s12332_s3 + $0x510] sm:$0xff]  }
 0x3b6   : > { %8870 = vmatmul.mubr.bf16.gmra.mrb[100].mxu0 %v4440_v23  ;;  %v8688_v26 = vpop.f32.mrb[35].mxu1  ;;  %9085 = vmatprep.subr.bf16.mxu1 %v9588_v28  ;;  %v11447_v39 = vadd.f32 %v3532_v40, %v3338_v32  ;;  %v4844_v40 = vld [vmem:[#allocation2 + $0x2d] sm:$0xff]  ;;  %v5065_v32 = vld [vmem:[#allocation2 + $0x5e] sm:$0xff] }
 0x3b7   : > { %8941 = vmatprep.mubr.msk.bf16.mxu0 %vm9589_vm0, %v9588_v28  ;;  %v4862_v63 = vpack.c.bf16 %v4845_v8, %v4844_v40  ;;  %v9551_v4 = vld [vmem:[%s12332_s3 + $0x570] sm:$0xff]   ;;  %v5080_v58 = vpack.c.bf16 %v5066_v30, %v5065_v32 }
 0x3b8   : > { %8998 = vmatmul.mubr.bf16.gmra.mrb[140].mxu1 %v5078_v49  ;;  %v4848_v8 = vld [vmem:[#allocation2 + $0x4d] sm:$0xff] }
 0x3b9   : > { %v3680_v48 = vpop.f32.mrb[252].mxu0  ;;  %9001 = vmatprep.mubr.msk.bf16.mxu1 %vm9589_vm0, %v9588_v28  ;;  %9086 = vmatpush3.bf16.msra.mxu1 %v9545_v29  ;;  %v4849_v29 = vld [vmem:[#allocation2 + $0x55] sm:$0xff] }
 0x3ba   : > { %v3751_v13 = vadd.f32 %v3680_v48, %v11286_v62  ;;  %v8631_v27 = vpop.f32.mrb[253].mxu0  ;;  %9087 = vmatprep.subr.bf16.mxu1 %v9588_v28 }
 0x3bb   : > { %v3683_v0 = vpop.f32.mrb[254].mxu0  ;;  %v11461_v56 = vpop.f32.mrb[36].mxu1  ;;  %v9543_v27 = vld [vmem:[%s12332_s3 + $0x520] sm:$0xff]  }
 0x3bc   : > { %v3752_v44 = vadd.f32 %v3683_v0, %v11295_v45  ;;  %v8632_v33 = vpop.f32.mrb[255].mxu0  ;;  %v8691_v5 = vpop.f32.mrb[37].mxu1  ;;  %v11464_v16 = vadd.f32 %v3895_v9, %v3751_v13  ;;  %v9539_v9 = vld [vmem:[%s12332_s3 + $0x508] sm:$0xff]   ;;  %v5068_v13 = vld [vmem:[#allocation2 + $0x76] sm:$0xff] }
 0x3bd   : > { %v11466_v62 = vpop.f32.mrb[38].mxu1  ;;  %9088 = vmatpush3.bf16.msra.mxu1 %v9547_v38  ;;  %v5067_v33 = vld [vmem:[#allocation2 + $0x6e] sm:$0xff] }
 0x3be   : > { %8942 = vmatmul.mubr.bf16.vlgmr.msra.gmra.mrb[104].mxu0 %v4862_v63  ;;  %v8692_v42 = vpop.f32.mrb[39].mxu1  ;;  %9089 = vmatprep.subr.bf16.mxu1 %v9588_v28  ;;  %v11473_v45 = vadd.f32 %v11420_v18, %v3752_v44  ;;  %v9550_v18 = vld [vmem:[%s12332_s3 + $0x568] sm:$0xff]   ;;  %v5081_v5 = vpack.c.bf16 %v5068_v13, %v5067_v33 }
 0x3bf   : > { %9030 = vmatpush3.bf16.msra.mxu0 %v9538_v20  ;;  %8945 = vmatprep.mubr.msk.bf16.mxu0 %vm9589_vm0, %v9588_v28  ;;  %v4864_v20 = vpack.c.bf16 %v4849_v29, %v4848_v8  ;;  %v5071_v8 = vld [vmem:[#allocation2 + $0x8e] sm:$0xff] }
 0x3c0   : > { %9031 = vmatprep.subr.bf16.mxu0 %v9588_v28  ;;  %9002 = vmatmul.mubr.bf16.gmra.mrb[144].mxu1 %v5079_v34 }
 0x3c1   : > { %v3688_v50 = vpop.f32.mrb[0].mxu0  ;;  %9005 = vmatprep.mubr.msk.bf16.mxu1 %vm9589_vm0, %v9588_v28  ;;  %9090 = vmatpush3.bf16.msra.mxu1 %v9548_v6  ;;  %v4851_v6 = vld [vmem:[#allocation2 + $0x65] sm:$0xff] }
 0x3c2   : > { %v3753_v31 = vadd.f32 %v3688_v50, %v11318_v61  ;;  %v8635_v53 = vpop.f32.mrb[1].mxu0  ;;  %9091 = vmatprep.subr.bf16.mxu1 %v9588_v28 }
 0x3c3   : > { %v3691_v59 = vpop.f32.mrb[2].mxu0  ;;  %9032 = vmatpush3.bf16.msra.mxu0 %v9539_v9  ;;  %v11488_v60 = vpop.f32.mrb[40].mxu1  ;;  %v4850_v9 = vld [vmem:[#allocation2 + $0x5d] sm:$0xff] }
 0x3c4   : > { %v3754_v35 = vadd.f32 %v3691_v59, %v11327_v2  ;;  %v8636_v21 = vpop.f32.mrb[3].mxu0  ;;  %v8695_v41 = vpop.f32.mrb[41].mxu1  ;;  %9033 = vmatprep.subr.bf16.mxu0 %v9588_v28  ;;  %v11496_v61 = vadd.f32 %v11436_v43, %v3753_v31  ;;  %v9541_v43 = vld [vmem:[%s12332_s3 + $0x518] sm:$0xff]   ;;  %v4865_v59 = vpack.c.bf16 %v4851_v6, %v4850_v9 }
 0x3c5   : > { %v11498_v24 = vpop.f32.mrb[42].mxu1  ;;  %9092 = vmatpush3.bf16.msra.mxu1 %v9550_v18  ;;  %v9549_v18 = vld [vmem:[%s12332_s3 + $0x530] sm:$0xff]  }
 0x3c6   : > { %8946 = vmatmul.mubr.bf16.gmra.mrb[108].mxu0 %v4863_v11  ;;  %v8696_v23 = vpop.f32.mrb[43].mxu1  ;;  %9093 = vmatprep.subr.bf16.mxu1 %v9588_v28  ;;  %v11505_v2 = vadd.f32 %v11441_v17, %v3754_v35  ;;  %v9552_v17 = vld [vmem:[%s12332_s3 + $0x578] sm:$0xff]  }
 0x3c7   : > { %8949 = vmatprep.mubr.msk.bf16.mxu0 %vm9589_vm0, %v9588_v28  ;;  %9034 = vmatpush3.bf16.msra.mxu0 %v9540_v46  ;;  %v5069_v46 = vld [vmem:[#allocation2 + $0x7e] sm:$0xff]  ;;  %v4853_v41 = vld [vmem:[#allocation2 + $0x75] sm:$0xff]  ;;  %v4852_v23 = vld [vmem:[#allocation2 + $0x6d] sm:$0xff] }
 0x3c8   : > { %9006 = vmatmul.mubr.bf16.gmra.mrb[148].mxu1 %v5080_v58  ;;  %9035 = vmatprep.subr.bf16.mxu0 %v9588_v28  ;;  %v5082_v21 = vpack.c.bf16 %v5070_v47, %v5069_v46 }
 0x3c9   : > { %v3696_v7 = vpop.f32.mrb[4].mxu0  ;;  %9009 = vmatprep.mubr.msk.bf16.mxu1 %vm9589_vm0, %v9588_v28  ;;  %9094 = vmatpush3.bf16.msra.mxu1 %v9551_v4 }
 0x3ca   : > { %v3755_v26 = vadd.f32 %v3696_v7, %v11350_v37  ;;  %v8639_v49 = vpop.f32.mrb[5].mxu0  ;;  %9095 = vmatprep.subr.bf16.mxu1 %v9588_v28 }
 0x3cb   : > { %v3699_v48 = vpop.f32.mrb[6].mxu0  ;;  %v11520_v38 = vpop.f32.mrb[44].mxu1  ;;  %9036 = vmatpush3.bf16.msra.mxu0 %v9541_v43  ;;  %v5072_v43 = vld [vmem:[#allocation2 + $0x96] sm:$0xff] }
 0x3cc   : > { %v3756_v0 = vadd.f32 %v3699_v48, %v11353_v3  ;;  %v8640_v40 = vpop.f32.mrb[7].mxu0  ;;  %v8699_v22 = vpop.f32.mrb[45].mxu1  ;;  %9037 = vmatprep.subr.bf16.mxu0 %v9588_v28  ;;  %v11528_v37 = vadd.f32 %v11461_v56, %v3755_v26  ;;  %v9546_v3 = vld [vmem:[%s12332_s3 + $0x528] sm:$0xff]   ;;  %v5083_v13 = vpack.c.bf16 %v5072_v43, %v5071_v8 }
 0x3cd   : > { %v3930_v44 = vpop.f32.mrb[46].mxu1  ;;  %9096 = vmatpush3.bf16.msra.mxu1 %v9552_v17  ;;  %v4866_v17 = vpack.c.bf16 %v4853_v41, %v4852_v23  ;;  %v4854_v22 = vld [vmem:[#allocation2 + $0x7d] sm:$0xff]  ;;  %v5075_v41 = vld [vmem:[#allocation2 + $0xae] sm:$0xff]  ;;  %v4859_v23 = vld [vmem:[#allocation2 + $0xa5] sm:$0xff] }
 0x3ce   : > { %8950 = vmatmul.mubr.bf16.gmra.mrb[112].mxu0 %v4864_v20  ;;  %v8700_v63 = vpop.f32.mrb[47].mxu1  ;;  %v11531_v10 = vadd.f32 %v11466_v62, %v3756_v0  ;;  %9185 = vmatprep.subr.bf16.mxu1 %v9588_v28  ;;  %v4855_v0 = vld [vmem:[#allocation2 + $0x85] sm:$0xff] }
 0x3cf   : > { %8953 = vmatprep.mubr.msk.bf16.mxu0 %vm9589_vm0, %v9588_v28  ;;  %9038 = vmatpush3.bf16.msra.mxu0 %v9543_v27  ;;  %v5074_v63 = vld [vmem:[#allocation2 + $0xa6] sm:$0xff] }
 0x3d0   : > { %9010 = vmatmul.mubr.bf16.gmra.mrb[152].mxu1 %v5081_v5  ;;  %9039 = vmatprep.subr.bf16.mxu0 %v9588_v28 }
 0x3d1   : > { %v3704_v56 = vpop.f32.mrb[8].mxu0  ;;  %9013 = vmatprep.mubr.msk.bf16.mxu1 %vm9589_vm0, %v9588_v28 }
 0x3d2   : > { %v3757_v62 = vadd.f32 %v3704_v56, %v11371_v52  ;;  %v8643_v42 = vpop.f32.mrb[9].mxu0 }
 0x3d3   : > { %v3707_v34 = vpop.f32.mrb[10].mxu0  ;;  %v3935_v50 = vpop.f32.mrb[48].mxu1  ;;  %9040 = vmatpush3.bf16.msra.mxu0 %v9546_v3  ;;  %v4867_v3 = vpack.c.bf16 %v4855_v0, %v4854_v22  ;;  %v5073_v42 = vld [vmem:[#allocation2 + $0x9e] sm:$0xff]  ;;  %v4861_v22 = vld [vmem:[#allocation2 + $0xb5] sm:$0xff] }
 0x3d4   : > { %v3758_v31 = vadd.f32 %v3707_v34, %v11374_v14  ;;  %v8644_v53 = vpop.f32.mrb[11].mxu0  ;;  %v8703_v19 = vpop.f32.mrb[49].mxu1  ;;  %9041 = vmatprep.subr.bf16.mxu0 %v9588_v28  ;;  %v11549_v30 = vadd.f32 %v11488_v60, %v3757_v62  ;;  %v9553_v14 = vld [vmem:[%s12332_s3 + $0x538] sm:$0xff]   ;;  %v5084_v9 = vpack.c.bf16 %v5074_v63, %v5073_v42 }
 0x3d5   : > { %v3938_v52 = vpop.f32.mrb[50].mxu1  ;;  %v4856_v53 = vld [vmem:[#allocation2 + $0x8d] sm:$0xff]  ;;  %v5076_v19 = vld [vmem:[#allocation2 + $0xb6] sm:$0xff] }
 0x3d6   : > { %8954 = vmatmul.mubr.bf16.gmra.mrb[116].mxu0 %v4865_v59  ;;  %v8704_v35 = vpop.f32.mrb[51].mxu1  ;;  %v11552_v11 = vadd.f32 %v11498_v24, %v3758_v31  ;;  %v5489_v0 = vld [vmem:[#allocation2 + $0x39] sm:$0xff] }
 0x3d7   : > { %8957 = vmatprep.mubr.msk.bf16.mxu0 %vm9589_vm0, %v9588_v28  ;;  %9042 = vmatpush3.bf16.msra.mxu0 %v9549_v18  ;;  %v4857_v18 = vld [vmem:[#allocation2 + $0x95] sm:$0xff] }
 0x3d8   : > { %9014 = vmatmul.mubr.bf16.gmra.mrb[156].mxu1 %v5082_v21  ;;  %9043 = vmatprep.subr.bf16.mxu0 %v9588_v28  ;;  %v4868_v35 = vpack.c.bf16 %v4857_v18, %v4856_v53 }
 0x3d9   : > { %v3712_v60 = vpop.f32.mrb[12].mxu0  ;;  %9017 = vmatprep.mubr.msk.bf16.mxu1 %vm9589_vm0, %v9588_v28 }
 0x3da   : > { %v3759_v32 = vadd.f32 %v3712_v60, %v11388_v15  ;;  %v8647_v24 = vpop.f32.mrb[13].mxu0 }
 0x3db   : > { %v3715_v4 = vpop.f32.mrb[14].mxu0  ;;  %v3943_v58 = vpop.f32.mrb[52].mxu1  ;;  %9044 = vmatpush3.bf16.msra.mxu0 %v9553_v14  ;;  %v5085_v24 = vpack.c.bf16 %v5076_v19, %v5075_v41  ;;  %v9554_v41 = vld [vmem:[%s12332_s3 + $0x580] sm:$0xff]  }
 0x3dc   : > { %v3760_v7 = vadd.f32 %v3715_v4, %v11390_v1  ;;  %v8648_v29 = vpop.f32.mrb[15].mxu0  ;;  %v8707_v26 = vpop.f32.mrb[53].mxu1  ;;  %9133 = vmatprep.subr.bf16.mxu0 %v9588_v28  ;;  %v11566_v49 = vadd.f32 %v11520_v38, %v3759_v32 }
 0x3dd   : > { %v3946_v48 = vpop.f32.mrb[54].mxu1 }
 0x3de   : > { %8958 = vmatmul.mubr.bf16.gmra.mrb[120].mxu0 %v4866_v17  ;;  %v8708_v15 = vpop.f32.mrb[55].mxu1  ;;  %v11568_v27 = vadd.f32 %v3930_v44, %v3760_v7  ;;  %v4858_v7 = vld [vmem:[#allocation2 + $0x9d] sm:$0xff] }
 0x3df   : > { %8961 = vmatprep.mubr.msk.bf16.mxu0 %vm9589_vm0, %v9588_v28  ;;  %v5490_v17 = vld [vmem:[#allocation2 + $0x41] sm:$0xff]  ;;  %v4869_v8 = vpack.c.bf16 %v4859_v23, %v4858_v7  ;;  %v5493_v7 = vld [vmem:[#allocation2 + $0x59] sm:$0xff] }
 0x3e0   : > { %9018 = vmatmul.mubr.bf16.gmra.mrb[160].mxu1 %v5083_v13 }
 0x3e1   : > { %v3720_v1 = vpop.f32.mrb[16].mxu0  ;;  %9021 = vmatprep.mubr.msk.bf16.mxu1 %vm9589_vm0, %v9588_v28 }
 0x3e2   : > { %v3761_v40 = vadd.f32 %v3720_v1, %v11398_v55  ;;  %v8651_v38 = vpop.f32.mrb[17].mxu0 }
 0x3e3   : > { %v3723_v20 = vpop.f32.mrb[18].mxu0  ;;  %v3951_v33 = vpop.f32.mrb[56].mxu1  ;;  %v5507_v38 = vpack.c.bf16 %v5490_v17, %v5489_v0  ;;  %v9564_v17 = vld [vmem:[%s12332_s3 + $0x5e0] sm:$0xff]  }
 0x3e4   : > { %v3762_v5 = vadd.f32 %v3723_v20, %v11400_v12  ;;  %v8652_v44 = vpop.f32.mrb[19].mxu0  ;;  %v8711_v56 = vpop.f32.mrb[57].mxu1  ;;  %v11576_v6 = vadd.f32 %v3935_v50, %v3761_v40  ;;  %v9558_v40 = vld [vmem:[%s12332_s3 + $0x5c0] sm:$0xff]  }
 0x3e5   : > { %v3954_v62 = vpop.f32.mrb[58].mxu1 }
 0x3e6   : > { %8962 = vmatmul.mubr.bf16.gmra.mrb[124].mxu0 %v4867_v3  ;;  %v8712_v34 = vpop.f32.mrb[59].mxu1  ;;  %v11578_v47 = vadd.f32 %v3938_v52, %v3762_v5  ;;  %v4860_v3 = vld [vmem:[#allocation2 + $0xad] sm:$0xff] }
 0x3e7   : > { %8965 = vmatprep.mubr.msk.bf16.mxu0 %vm9589_vm0, %v9588_v28 }
 0x3e8   : > { %9022 = vmatmul.mubr.bf16.gmra.mrb[164].mxu1 %v5084_v9  ;;  %v4870_v9 = vpack.c.bf16 %v4861_v22, %v4860_v3  ;;  %v5496_v22 = vld [vmem:[#allocation2 + $0x71] sm:$0xff] }
 0x3e9   : > { %v3728_v55 = vpop.f32.mrb[20].mxu0  ;;  %9025 = vmatprep.mubr.msk.bf16.mxu1 %vm9589_vm0, %v9588_v28 }
 0x3ea   : > { %v3763_v12 = vadd.f32 %v3728_v55, %v11408_v54  ;;  %v8655_v50 = vpop.f32.mrb[21].mxu0 }
 0x3eb   : > { %v3731_v31 = vpop.f32.mrb[22].mxu0  ;;  %v3959_v59 = vpop.f32.mrb[60].mxu1  ;;  %v5491_v50 = vld [vmem:[#allocation2 + $0x49] sm:$0xff] }
 0x3ec   : > { %v3764_v46 = vadd.f32 %v3731_v31, %v11410_v25  ;;  %v8656_v52 = vpop.f32.mrb[23].mxu0  ;;  %v8715_v21 = vpop.f32.mrb[61].mxu1  ;;  %v11586_v14 = vadd.f32 %v3943_v58, %v3763_v12 }
 0x3ed   : > { %v3962_v60 = vpop.f32.mrb[62].mxu1 }
 0x3ee   : > { %8966 = vmatmul.mubr.bf16.gmra.mrb[128].mxu0 %v4868_v35  ;;  %v8716_v32 = vpop.f32.mrb[63].mxu1  ;;  %v11588_v4 = vadd.f32 %v3946_v48, %v3764_v46  ;;  %v9563_v46 = vld [vmem:[%s12332_s3 + $0x5d8] sm:$0xff]  }
 0x3ef   : > { %8969 = vmatprep.mubr.msk.bf16.mxu0 %vm9589_vm0, %v9588_v28 }
 0x3f0   : > { %9026 = vmatmul.mubr.bf16.gmra.mrb[168].mxu1 %v5085_v24  ;;  %v5494_v24 = vld [vmem:[#allocation2 + $0x61] sm:$0xff] }
 0x3f1   : > { %v3736_v54 = vpop.f32.mrb[24].mxu0  ;;  %9097 = vmatprep.mubr.msk.bf16.mxu1 %vm9589_vm0, %v9588_v28 }
 0x3f2   : > { %v3765_v25 = vadd.f32 %v3736_v54, %v11418_v57  ;;  %v8659_v58 = vpop.f32.mrb[25].mxu0 }
 0x3f3   : > { %v3739_v43 = vpop.f32.mrb[26].mxu0  ;;  %v4325_v29 = vpop.f32.mrb[64].mxu1 }
 0x3f4   : > { %v3766_v26 = vadd.f32 %v3739_v43, %v11425_v36  ;;  %v8660_v48 = vpop.f32.mrb[27].mxu0  ;;  %v8787_v15 = vpop.f32.mrb[65].mxu1  ;;  %v11596_v13 = vadd.f32 %v3951_v33, %v3765_v25  ;;  %v9560_v33 = vld [vmem:[%s12332_s3 + $0x5c8] sm:$0xff]  }
 0x3f5   : > { %v11598_v1 = vpop.f32.mrb[66].mxu1  ;;  %v5509_v48 = vpack.c.bf16 %v5494_v24, %v5493_v7  ;;  %v5277_v15 = vld [vmem:[#allocation2 + $0x50] sm:$0xff] }
 0x3f6   : > { %8970 = vmatmul.mubr.bf16.gmra.mrb[132].mxu0 %v4869_v8  ;;  %v8788_v57 = vpop.f32.mrb[67].mxu1  ;;  %v11603_v20 = vadd.f32 %v3954_v62, %v3766_v26  ;;  %v5492_v62 = vld [vmem:[#allocation2 + $0x51] sm:$0xff] }
 0x3f7   : > { %8973 = vmatprep.mubr.msk.bf16.mxu0 %vm9589_vm0, %v9588_v28  ;;  %v5508_v53 = vpack.c.bf16 %v5492_v62, %v5491_v50 }
 0x3f8   : > { %9098 = vmatmul.mubr.bf16.vlgmr.msra.gmra.mrb[172].mxu1 %v5507_v38  ;;  %v5276_v38 = vld [vmem:[#allocation2 + $0x48] sm:$0xff] }
 0x3f9   : > { %v3744_v36 = vpop.f32.mrb[28].mxu0  ;;  %9101 = vmatprep.mubr.msk.bf16.mxu1 %vm9589_vm0, %v9588_v28  ;;  %9186 = vmatpush3.bf16.msra.mxu1 %v9558_v40 }
 0x3fa   : > { %v3767_v63 = vadd.f32 %v3744_v36, %v11439_v51  ;;  %v8663_v5 = vpop.f32.mrb[29].mxu0  ;;  %9187 = vmatprep.subr.bf16.mxu1 %v9588_v28  ;;  %v9561_v51 = vld [vmem:[%s12332_s3 + $0x5d0] sm:$0xff]  }
 0x3fb   : > { %v3747_v44 = vpop.f32.mrb[30].mxu0  ;;  %v11614_v56 = vpop.f32.mrb[68].mxu1 }
 0x3fc   : > { %v3768_v42 = vadd.f32 %v3747_v44, %v11447_v39  ;;  %v8664_v34 = vpop.f32.mrb[31].mxu0  ;;  %v8791_v55 = vpop.f32.mrb[69].mxu1  ;;  %v11617_v18 = vadd.f32 %v3959_v59, %v3767_v63  ;;  %v5275_v59 = vld [vmem:[#allocation2 + $0x40] sm:$0xff]  ;;  %v5293_v44 = vpack.c.bf16 %v5277_v15, %v5276_v38  ;;  %v5500_v15 = vld [vmem:[#allocation2 + $0x91] sm:$0xff] }
 0x3fd   : > { %v11619_v12 = vpop.f32.mrb[70].mxu1  ;;  %9188 = vmatpush3.bf16.msra.mxu1 %v9560_v33  ;;  %v9556_v33 = vld [vmem:[%s12332_s3 + $0x590] sm:$0xff]  }
 0x3fe   : > { %8974 = vmatmul.mubr.bf16.gmra.mrb[136].mxu0 %v4870_v9  ;;  %v8792_v31 = vpop.f32.mrb[71].mxu1  ;;  %9189 = vmatprep.subr.bf16.mxu1 %v9588_v28  ;;  %v11625_v19 = vadd.f32 %v3962_v60, %v3768_v42  ;;  %v5274_v60 = vld [vmem:[#allocation2 + $0x38] sm:$0xff]  ;;  %v5495_v42 = vld [vmem:[#allocation2 + $0x69] sm:$0xff] }
 0x3ff   : > { %9045 = vmatprep.mubr.msk.bf16.mxu0 %vm9589_vm0, %v9588_v28  ;;  %v5292_v25 = vpack.c.bf16 %v5275_v59, %v5274_v60  ;;  %v9567_v34 = vld [vmem:[%s12332_s3 + $0x5f0] sm:$0xff]   ;;  %v5510_v55 = vpack.c.bf16 %v5496_v22, %v5495_v42  ;;  %v5278_v59 = vld [vmem:[#allocation2 + $0x58] sm:$0xff] }
 0x400   : > { %9102 = vmatmul.mubr.bf16.gmra.mrb[176].mxu1 %v5508_v53 }
 0x401   : > { %v4110_v39 = vpop.f32.mrb[32].mxu0  ;;  %9105 = vmatprep.mubr.msk.bf16.mxu1 %vm9589_vm0, %v9588_v28  ;;  %9190 = vmatpush3.bf16.msra.mxu1 %v9561_v51  ;;  %v5279_v51 = vld [vmem:[#allocation2 + $0x60] sm:$0xff] }
 0x402   : > { %v4181_v52 = vadd.f32 %v4110_v39, %v11464_v16  ;;  %v8735_v35 = vpop.f32.mrb[33].mxu0  ;;  %9191 = vmatprep.subr.bf16.mxu1 %v9588_v28 }
 0x403   : > { %v4113_v21 = vpop.f32.mrb[34].mxu0  ;;  %v11639_v32 = vpop.f32.mrb[72].mxu1  ;;  %v9559_v35 = vld [vmem:[%s12332_s3 + $0x5a0] sm:$0xff]  }
 0x404   : > { %v4182_v54 = vadd.f32 %v4113_v21, %v11473_v45  ;;  %v8736_v23 = vpop.f32.mrb[35].mxu0  ;;  %v8795_v58 = vpop.f32.mrb[73].mxu1  ;;  %v11642_v43 = vadd.f32 %v4325_v29, %v4181_v52  ;;  %v9555_v29 = vld [vmem:[%s12332_s3 + $0x588] sm:$0xff]  }
 0x405   : > { %v11644_v16 = vpop.f32.mrb[74].mxu1  ;;  %9192 = vmatpush3.bf16.msra.mxu1 %v9563_v46  ;;  %v5498_v52 = vld [vmem:[#allocation2 + $0x81] sm:$0xff]  ;;  %v5497_v23 = vld [vmem:[#allocation2 + $0x79] sm:$0xff] }
 0x406   : > { %9046 = vmatmul.mubr.bf16.vlgmr.msra.gmra.mrb[140].mxu0 %v5292_v25  ;;  %v8796_v26 = vpop.f32.mrb[75].mxu1  ;;  %9193 = vmatprep.subr.bf16.mxu1 %v9588_v28  ;;  %v11651_v45 = vadd.f32 %v11598_v1, %v4182_v54  ;;  %v9566_v1 = vld [vmem:[%s12332_s3 + $0x5e8] sm:$0xff]   ;;  %v5511_v58 = vpack.c.bf16 %v5498_v52, %v5497_v23 }
 0x407   : > { %9134 = vmatpush3.bf16.msra.mxu0 %v9554_v41  ;;  %9049 = vmatprep.mubr.msk.bf16.mxu0 %vm9589_vm0, %v9588_v28  ;;  %v5294_v41 = vpack.c.bf16 %v5279_v51, %v5278_v59  ;;  %v5501_v59 = vld [vmem:[#allocation2 + $0x99] sm:$0xff] }
 0x408   : > { %9135 = vmatprep.subr.bf16.mxu0 %v9588_v28  ;;  %9106 = vmatmul.mubr.bf16.gmra.mrb[180].mxu1 %v5509_v48 }
 0x409   : > { %v4118_v8 = vpop.f32.mrb[36].mxu0  ;;  %9109 = vmatprep.mubr.msk.bf16.mxu1 %vm9589_vm0, %v9588_v28  ;;  %9194 = vmatpush3.bf16.msra.mxu1 %v9564_v17  ;;  %v5281_v17 = vld [vmem:[#allocation2 + $0x70] sm:$0xff] }
 0x40a   : > { %v4183_v0 = vadd.f32 %v4118_v8, %v11496_v61  ;;  %v8739_v40 = vpop.f32.mrb[37].mxu0  ;;  %9195 = vmatprep.subr.bf16.mxu1 %v9588_v28 }
 0x40b   : > { %v4121_v57 = vpop.f32.mrb[38].mxu0  ;;  %9136 = vmatpush3.bf16.msra.mxu0 %v9555_v29  ;;  %v11666_v36 = vpop.f32.mrb[76].mxu1  ;;  %v5280_v29 = vld [vmem:[#allocation2 + $0x68] sm:$0xff] }
 0x40c   : > { %v4184_v63 = vadd.f32 %v4121_v57, %v11505_v2  ;;  %v8740_v5 = vpop.f32.mrb[39].mxu0  ;;  %v8799_v3 = vpop.f32.mrb[77].mxu1  ;;  %9137 = vmatprep.subr.bf16.mxu0 %v9588_v28  ;;  %v11674_v61 = vadd.f32 %v11614_v56, %v4183_v0  ;;  %v9557_v56 = vld [vmem:[%s12332_s3 + $0x598] sm:$0xff]   ;;  %v5295_v57 = vpack.c.bf16 %v5281_v17, %v5280_v29 }
 0x40d   : > { %v11676_v62 = vpop.f32.mrb[78].mxu1  ;;  %9196 = vmatpush3.bf16.msra.mxu1 %v9566_v1  ;;  %v9565_v1 = vld [vmem:[%s12332_s3 + $0x5b0] sm:$0xff]   ;;  %v5283_v3 = vld [vmem:[#allocation2 + $0x80] sm:$0xff] }
 0x40e   : > { %9050 = vmatmul.mubr.bf16.gmra.mrb[144].mxu0 %v5293_v44  ;;  %v8800_v9 = vpop.f32.mrb[79].mxu1  ;;  %9197 = vmatprep.subr.bf16.mxu1 %v9588_v28  ;;  %v11683_v2 = vadd.f32 %v11619_v12, %v4184_v63  ;;  %v9568_v12 = vld [vmem:[%s12332_s3 + $0x5f8] sm:$0xff]  }
 0x40f   : > { %9053 = vmatprep.mubr.msk.bf16.mxu0 %vm9589_vm0, %v9588_v28  ;;  %9138 = vmatpush3.bf16.msra.mxu0 %v9556_v33  ;;  %v5499_v33 = vld [vmem:[#allocation2 + $0x89] sm:$0xff]  ;;  %v5282_v9 = vld [vmem:[#allocation2 + $0x78] sm:$0xff] }
 0x410   : > { %9110 = vmatmul.mubr.bf16.gmra.mrb[184].mxu1 %v5510_v55  ;;  %9139 = vmatprep.subr.bf16.mxu0 %v9588_v28  ;;  %v5512_v5 = vpack.c.bf16 %v5500_v15, %v5499_v33 }
 0x411   : > { %v4126_v50 = vpop.f32.mrb[40].mxu0  ;;  %9113 = vmatprep.mubr.msk.bf16.mxu1 %vm9589_vm0, %v9588_v28  ;;  %9198 = vmatpush3.bf16.msra.mxu1 %v9567_v34 }
 0x412   : > { %v4185_v31 = vadd.f32 %v4126_v50, %v11528_v37  ;;  %v8743_v53 = vpop.f32.mrb[41].mxu0  ;;  %9199 = vmatprep.subr.bf16.mxu1 %v9588_v28 }
 0x413   : > { %v4129_v39 = vpop.f32.mrb[42].mxu0  ;;  %v11698_v46 = vpop.f32.mrb[80].mxu1  ;;  %9140 = vmatpush3.bf16.msra.mxu0 %v9557_v56  ;;  %v5502_v56 = vld [vmem:[#allocation2 + $0xa1] sm:$0xff] }
 0x414   : > { %v4186_v21 = vadd.f32 %v4129_v39, %v11531_v10  ;;  %v8744_v60 = vpop.f32.mrb[43].mxu0  ;;  %v8803_v24 = vpop.f32.mrb[81].mxu1  ;;  %9141 = vmatprep.subr.bf16.mxu0 %v9588_v28  ;;  %v11706_v37 = vadd.f32 %v11639_v32, %v4185_v31  ;;  %v9562_v10 = vld [vmem:[%s12332_s3 + $0x5a8] sm:$0xff]   ;;  %v5513_v52 = vpack.c.bf16 %v5502_v56, %v5501_v59 }
 0x415   : > { %v4360_v54 = vpop.f32.mrb[82].mxu1  ;;  %9200 = vmatpush3.bf16.msra.mxu1 %v9568_v12  ;;  %v5296_v12 = vpack.c.bf16 %v5283_v3, %v5282_v9  ;;  %v5284_v24 = vld [vmem:[#allocation2 + $0x88] sm:$0xff]  ;;  %v5505_v3 = vld [vmem:[#allocation2 + $0xb9] sm:$0xff]  ;;  %v5289_v9 = vld [vmem:[#allocation2 + $0xb0] sm:$0xff] }
 0x416   : > { %9054 = vmatmul.mubr.bf16.gmra.mrb[148].mxu0 %v5294_v41  ;;  %v8804_v25 = vpop.f32.mrb[83].mxu1  ;;  %v11709_v7 = vadd.f32 %v11644_v16, %v4186_v21  ;;  %v5285_v21 = vld [vmem:[#allocation2 + $0x90] sm:$0xff] }
 0x417   : > { %9057 = vmatprep.mubr.msk.bf16.mxu0 %vm9589_vm0, %v9588_v28  ;;  %9142 = vmatpush3.bf16.msra.mxu0 %v9559_v35  ;;  %v5504_v25 = vld [vmem:[#allocation2 + $0xb1] sm:$0xff] }
 0x418   : > { %9114 = vmatmul.mubr.bf16.gmra.mrb[188].mxu1 %v5511_v58  ;;  %9143 = vmatprep.subr.bf16.mxu0 %v9588_v28 }
 0x419   : > { %v4134_v32 = vpop.f32.mrb[44].mxu0  ;;  %9117 = vmatprep.mubr.msk.bf16.mxu1 %vm9589_vm0, %v9588_v28 }
 0x41a   : > { %v4187_v26 = vadd.f32 %v4134_v32, %v11549_v30  ;;  %v8747_v16 = vpop.f32.mrb[45].mxu0 }
 0x41b   : > { %v4137_v48 = vpop.f32.mrb[46].mxu0  ;;  %v4365_v8 = vpop.f32.mrb[84].mxu1  ;;  %9144 = vmatpush3.bf16.msra.mxu0 %v9562_v10  ;;  %v5297_v10 = vpack.c.bf16 %v5285_v21, %v5284_v24  ;;  %v5503_v16 = vld [vmem:[#allocation2 + $0xa9] sm:$0xff]  ;;  %v5919_v21 = vld [vmem:[#allocation2 + $0x3b] sm:$0xff] }
 0x41c   : > { %v4188_v0 = vadd.f32 %v4137_v48, %v11552_v11  ;;  %v8748_v40 = vpop.f32.mrb[47].mxu0  ;;  %v8807_v38 = vpop.f32.mrb[85].mxu1  ;;  %9145 = vmatprep.subr.bf16.mxu0 %v9588_v28  ;;  %v11726_v22 = vadd.f32 %v11666_v36, %v4187_v26  ;;  %v9569_v11 = vld [vmem:[%s12332_s3 + $0x5b8] sm:$0xff]   ;;  %v5514_v29 = vpack.c.bf16 %v5504_v25, %v5503_v16  ;;  %v5291_v24 = vld [vmem:[#allocation2 + $0xc0] sm:$0xff] }
 0x41d   : > { %v4368_v30 = vpop.f32.mrb[86].mxu1  ;;  %v5286_v40 = vld [vmem:[#allocation2 + $0x98] sm:$0xff]  ;;  %v5506_v38 = vld [vmem:[#allocation2 + $0xc1] sm:$0xff] }
 0x41e   : > { %9058 = vmatmul.mubr.bf16.gmra.mrb[152].mxu0 %v5295_v57  ;;  %v8808_v63 = vpop.f32.mrb[87].mxu1  ;;  %v11729_v44 = vadd.f32 %v11676_v62, %v4188_v0 }
 0x41f   : > { %9061 = vmatprep.mubr.msk.bf16.mxu0 %vm9589_vm0, %v9588_v28  ;;  %9146 = vmatpush3.bf16.msra.mxu0 %v9565_v1  ;;  %v5287_v1 = vld [vmem:[#allocation2 + $0xa0] sm:$0xff] }
 0x420   : > { %9118 = vmatmul.mubr.bf16.gmra.mrb[192].mxu1 %v5512_v5  ;;  %9147 = vmatprep.subr.bf16.mxu0 %v9588_v28  ;;  %v5298_v63 = vpack.c.bf16 %v5287_v1, %v5286_v40  ;;  %v5921_v1 = vld [vmem:[#allocation2 + $0x4b] sm:$0xff]  ;;  %v5705_v40 = vld [vmem:[#allocation2 + $0x42] sm:$0xff] }
 0x421   : > { %v4142_v36 = vpop.f32.mrb[48].mxu0  ;;  %9121 = vmatprep.mubr.msk.bf16.mxu1 %vm9589_vm0, %v9588_v28 }
 0x422   : > { %v4189_v42 = vadd.f32 %v4142_v36, %v11566_v49  ;;  %v8751_v62 = vpop.f32.mrb[49].mxu0 }
 0x423   : > { %v4145_v34 = vpop.f32.mrb[50].mxu0  ;;  %v4373_v55 = vpop.f32.mrb[88].mxu1  ;;  %9148 = vmatpush3.bf16.msra.mxu0 %v9569_v11  ;;  %v5515_v62 = vpack.c.bf16 %v5506_v38, %v5505_v3 }
 0x424   : > { %v4190_v50 = vadd.f32 %v4145_v34, %v11568_v27  ;;  %v8752_v51 = vpop.f32.mrb[51].mxu0  ;;  %v8811_v31 = vpop.f32.mrb[89].mxu1  ;;  %9237 = vmatprep.subr.bf16.mxu0 %v9588_v28  ;;  %v11743_v53 = vadd.f32 %v11698_v46, %v4189_v42 }
 0x425   : > { %v4376_v39 = vpop.f32.mrb[90].mxu1 }
 0x426   : > { %9062 = vmatmul.mubr.bf16.gmra.mrb[156].mxu0 %v5296_v12  ;;  %v8812_v49 = vpop.f32.mrb[91].mxu1  ;;  %v11745_v35 = vadd.f32 %v4360_v54, %v4190_v50  ;;  %v5288_v50 = vld [vmem:[#allocation2 + $0xa8] sm:$0xff] }
 0x427   : > { %9065 = vmatprep.mubr.msk.bf16.mxu0 %vm9589_vm0, %v9588_v28  ;;  %v5920_v12 = vld [vmem:[#allocation2 + $0x43] sm:$0xff]  ;;  %v5299_v59 = vpack.c.bf16 %v5289_v9, %v5288_v50 }
 0x428   : > { %9122 = vmatmul.mubr.bf16.gmra.mrb[196].mxu1 %v5513_v52 }
 0x429   : > { %v4150_v27 = vpop.f32.mrb[52].mxu0  ;;  %9125 = vmatprep.mubr.msk.bf16.mxu1 %vm9589_vm0, %v9588_v28 }
 0x42a   : > { %v4191_v60 = vadd.f32 %v4150_v27, %v11576_v6  ;;  %v8755_v46 = vpop.f32.mrb[53].mxu0 }
 0x42b   : > { %v4153_v41 = vpop.f32.mrb[54].mxu0  ;;  %v4381_v23 = vpop.f32.mrb[92].mxu1  ;;  %v5937_v46 = vpack.c.bf16 %v5920_v12, %v5919_v21  ;;  %v9572_v21 = vld [vmem:[%s12332_s3 + $0x610] sm:$0xff]  }
 0x42c   : > { %v4192_v58 = vadd.f32 %v4153_v41, %v11578_v47  ;;  %v8756_v54 = vpop.f32.mrb[55].mxu0  ;;  %v8815_v32 = vpop.f32.mrb[93].mxu1  ;;  %v11753_v17 = vadd.f32 %v4365_v8, %v4191_v60 }
 0x42d   : > { %v4384_v26 = vpop.f32.mrb[94].mxu1 }
 0x42e   : > { %9066 = vmatmul.mubr.bf16.gmra.mrb[160].mxu0 %v5297_v10  ;;  %v8816_v48 = vpop.f32.mrb[95].mxu1  ;;  %v11755_v15 = vadd.f32 %v4368_v30, %v4192_v58  ;;  %v5290_v58 = vld [vmem:[#allocation2 + $0xb8] sm:$0xff] }
 0x42f   : > { %9069 = vmatprep.mubr.msk.bf16.mxu0 %vm9589_vm0, %v9588_v28  ;;  %v5922_v10 = vld [vmem:[#allocation2 + $0x53] sm:$0xff]  ;;  %v5300_v16 = vpack.c.bf16 %v5291_v24, %v5290_v58 }
 0x430   : > { %9126 = vmatmul.mubr.bf16.gmra.mrb[200].mxu1 %v5514_v29 }
 0x431   : > { %v4158_v6 = vpop.f32.mrb[56].mxu0  ;;  %9129 = vmatprep.mubr.msk.bf16.mxu1 %vm9589_vm0, %v9588_v28 }
 0x432   : > { %v4193_v47 = vadd.f32 %v4158_v6, %v11586_v14  ;;  %v8759_v8 = vpop.f32.mrb[57].mxu0 }
 0x433   : > { %v4161_v0 = vpop.f32.mrb[58].mxu0  ;;  %v4389_v57 = vpop.f32.mrb[96].mxu1  ;;  %v5938_v8 = vpack.c.bf16 %v5922_v10, %v5921_v1 }
 0x434   : > { %v4194_v33 = vadd.f32 %v4161_v0, %v11588_v4  ;;  %v8760_v30 = vpop.f32.mrb[59].mxu0  ;;  %v8819_v5 = vpop.f32.mrb[97].mxu1  ;;  %v11763_v11 = vadd.f32 %v4373_v55, %v4193_v47 }
 0x435   : > { %v4392_v36 = vpop.f32.mrb[98].mxu1  ;;  %v9570_v30 = vld [vmem:[%s12332_s3 + $0x600] sm:$0xff]  }
 0x436   : > { %9070 = vmatmul.mubr.bf16.gmra.mrb[164].mxu0 %v5298_v63  ;;  %v8820_v42 = vpop.f32.mrb[99].mxu1  ;;  %v11765_v34 = vadd.f32 %v4376_v39, %v4194_v33  ;;  %v5704_v33 = vld [vmem:[#allocation2 + $0x3a] sm:$0xff]  ;;  %v5924_v5 = vld [vmem:[#allocation2 + $0x63] sm:$0xff] }
 0x437   : > { %9073 = vmatprep.mubr.msk.bf16.mxu0 %vm9589_vm0, %v9588_v28  ;;  %v5722_v42 = vpack.c.bf16 %v5705_v40, %v5704_v33  ;;  %v5927_v33 = vld [vmem:[#allocation2 + $0x7b] sm:$0xff] }
 0x438   : > { %9130 = vmatmul.mubr.bf16.gmra.mrb[204].mxu1 %v5515_v62 }
 0x439   : > { %v4166_v14 = vpop.f32.mrb[60].mxu0  ;;  %9201 = vmatprep.mubr.msk.bf16.mxu1 %vm9589_vm0, %v9588_v28 }
 0x43a   : > { %v4195_v4 = vadd.f32 %v4166_v14, %v11596_v13  ;;  %v8763_v55 = vpop.f32.mrb[61].mxu0 }
 0x43b   : > { %v4169_v56 = vpop.f32.mrb[62].mxu0  ;;  %v4755_v51 = vpop.f32.mrb[100].mxu1 }
 0x43c   : > { %v4196_v31 = vadd.f32 %v4169_v56, %v11603_v20  ;;  %v8764_v39 = vpop.f32.mrb[63].mxu0  ;;  %v8891_v49 = vpop.f32.mrb[101].mxu1  ;;  %v11773_v52 = vadd.f32 %v4381_v23, %v4195_v4  ;;  %v5923_v4 = vld [vmem:[#allocation2 + $0x5b] sm:$0xff] }
 0x43d   : > { %v4758_v27 = vpop.f32.mrb[102].mxu1  ;;  %v5939_v55 = vpack.c.bf16 %v5924_v5, %v5923_v4  ;;  %v5710_v4 = vld [vmem:[#allocation2 + $0x6a] sm:$0xff] }
 0x43e   : > { %9074 = vmatmul.mubr.bf16.gmra.mrb[168].mxu0 %v5299_v59  ;;  %v8892_v60 = vpop.f32.mrb[103].mxu1  ;;  %v11775_v41 = vadd.f32 %v4384_v26, %v4196_v31  ;;  %v5706_v59 = vld [vmem:[#allocation2 + $0x4a] sm:$0xff] }
 0x43f   : > { %9077 = vmatprep.mubr.msk.bf16.mxu0 %vm9589_vm0, %v9588_v28 }
 0x440   : > { %9202 = vmatmul.mubr.bf16.vlgmr.msra.gmra.mrb[208].mxu1 %v5937_v46 }
 0x441   : > { %v4174_v13 = vpop.f32.mrb[64].mxu0  ;;  %9205 = vmatprep.mubr.msk.bf16.mxu1 %vm9589_vm0, %v9588_v28 }
 0x442   : > { %v4197_v20 = vadd.f32 %v4174_v13, %v11617_v18  ;;  %v8767_v23 = vpop.f32.mrb[65].mxu0 }
 0x443   : > { %v4177_v25 = vpop.f32.mrb[66].mxu0  ;;  %v4763_v54 = vpop.f32.mrb[104].mxu1  ;;  %v5925_v23 = vld [vmem:[#allocation2 + $0x6b] sm:$0xff] }
 0x444   : > { %v4198_v32 = vadd.f32 %v4177_v25, %v11625_v19  ;;  %v8768_v26 = vpop.f32.mrb[67].mxu0  ;;  %v8895_v48 = vpop.f32.mrb[105].mxu1  ;;  %v11783_v29 = vadd.f32 %v4389_v57, %v4197_v20 }
 0x445   : > { %v4766_v6 = vpop.f32.mrb[106].mxu1 }
 0x446   : > { %9078 = vmatmul.mubr.bf16.gmra.mrb[172].mxu0 %v5300_v16  ;;  %v8896_v47 = vpop.f32.mrb[107].mxu1  ;;  %v11785_v0 = vadd.f32 %v4392_v36, %v4198_v32  ;;  %v5709_v32 = vld [vmem:[#allocation2 + $0x62] sm:$0xff] }
 0x447   : > { %9149 = vmatprep.mubr.msk.bf16.mxu0 %vm9589_vm0, %v9588_v28  ;;  %v5928_v47 = vld [vmem:[#allocation2 + $0x83] sm:$0xff] }
 0x448   : > { %9206 = vmatmul.mubr.bf16.gmra.mrb[212].mxu1 %v5938_v8  ;;  %v9574_v8 = vld [vmem:[%s12332_s3 + $0x620] sm:$0xff]   ;;  %v5941_v5 = vpack.c.bf16 %v5928_v47, %v5927_v33 }
 0x449   : > { %v4540_v18 = vpop.f32.mrb[68].mxu0  ;;  %9209 = vmatprep.mubr.msk.bf16.mxu1 %vm9589_vm0, %v9588_v28 }
 0x44a   : > { %v4611_v19 = vadd.f32 %v4540_v18, %v11642_v43  ;;  %v8839_v57 = vpop.f32.mrb[69].mxu0 }
 0x44b   : > { %v4543_v38 = vpop.f32.mrb[70].mxu0  ;;  %v4771_v63 = vpop.f32.mrb[108].mxu1 }
 0x44c   : > { %v4612_v36 = vadd.f32 %v4543_v38, %v11651_v45  ;;  %v8840_v3 = vpop.f32.mrb[71].mxu0  ;;  %v8899_v62 = vpop.f32.mrb[109].mxu1  ;;  %v11796_v14 = vadd.f32 %v4755_v51, %v4611_v19  ;;  %v9571_v45 = vld [vmem:[%s12332_s3 + $0x608] sm:$0xff]   ;;  %v5707_v51 = vld [vmem:[#allocation2 + $0x52] sm:$0xff] }
 0x44d   : > { %v4774_v9 = vpop.f32.mrb[110].mxu1  ;;  %v5723_v13 = vpack.c.bf16 %v5707_v51, %v5706_v59  ;;  %v5711_v3 = vld [vmem:[#allocation2 + $0x72] sm:$0xff] }
 0x44e   : > { %9150 = vmatmul.mubr.bf16.vlgmr.msra.gmra.mrb[176].mxu0 %v5722_v42  ;;  %v8900_v43 = vpop.f32.mrb[111].mxu1  ;;  %v11798_v56 = vadd.f32 %v4758_v27, %v4612_v36  ;;  %v5926_v27 = vld [vmem:[#allocation2 + $0x73] sm:$0xff]  ;;  %v5929_v59 = vld [vmem:[#allocation2 + $0x8b] sm:$0xff] }
 0x44f   : > { %9238 = vmatpush3.bf16.msra.mxu0 %v9570_v30  ;;  %9153 = vmatprep.mubr.msk.bf16.mxu0 %vm9589_vm0, %v9588_v28  ;;  %v5940_v58 = vpack.c.bf16 %v5926_v27, %v5925_v23  ;;  %v5712_v23 = vld [vmem:[#allocation2 + $0x7a] sm:$0xff] }
 0x450   : > { %9239 = vmatprep.subr.bf16.mxu0 %v9588_v28  ;;  %9210 = vmatmul.mubr.bf16.gmra.mrb[216].mxu1 %v5939_v55  ;;  %v5930_v55 = vld [vmem:[#allocation2 + $0x93] sm:$0xff] }
 0x451   : > { %v4548_v50 = vpop.f32.mrb[72].mxu0  ;;  %9213 = vmatprep.mubr.msk.bf16.mxu1 %vm9589_vm0, %v9588_v28 }
 0x452   : > { %v4613_v12 = vadd.f32 %v4548_v50, %v11674_v61  ;;  %v8843_v31 = vpop.f32.mrb[73].mxu0 }
 0x453   : > { %v4551_v39 = vpop.f32.mrb[74].mxu0  ;;  %9240 = vmatpush3.bf16.msra.mxu0 %v9571_v45  ;;  %v11809_v49 = vpop.f32.mrb[112].mxu1  ;;  %v9576_v45 = vld [vmem:[%s12332_s3 + $0x630] sm:$0xff]  }
 0x454   : > { %v4614_v60 = vadd.f32 %v4551_v39, %v11683_v2  ;;  %v8844_v46 = vpop.f32.mrb[75].mxu0  ;;  %v8903_v24 = vpop.f32.mrb[113].mxu1  ;;  %9241 = vmatprep.subr.bf16.mxu0 %v9588_v28  ;;  %v11816_v20 = vadd.f32 %v4763_v54, %v4613_v12  ;;  %v9573_v2 = vld [vmem:[%s12332_s3 + $0x618] sm:$0xff]   ;;  %v5725_v12 = vpack.c.bf16 %v5711_v3, %v5710_v4 }
 0x455   : > { %v4782_v61 = vpop.f32.mrb[114].mxu1  ;;  %v5713_v46 = vld [vmem:[#allocation2 + $0x82] sm:$0xff] }
 0x456   : > { %9154 = vmatmul.mubr.bf16.gmra.mrb[180].mxu0 %v5723_v13  ;;  %v8904_v25 = vpop.f32.mrb[115].mxu1  ;;  %v11818_v10 = vadd.f32 %v4766_v6, %v4614_v60  ;;  %v5708_v6 = vld [vmem:[#allocation2 + $0x5a] sm:$0xff] }
 0x457   : > { %9157 = vmatprep.mubr.msk.bf16.mxu0 %vm9589_vm0, %v9588_v28  ;;  %9242 = vmatpush3.bf16.msra.mxu0 %v9572_v21  ;;  %v5724_v19 = vpack.c.bf16 %v5709_v32, %v5708_v6  ;;  %v5942_v21 = vpack.c.bf16 %v5930_v55, %v5929_v59  ;;  %v5726_v32 = vpack.c.bf16 %v5713_v46, %v5712_v23  ;;  %v5931_v6 = vld [vmem:[#allocation2 + $0x9b] sm:$0xff]  ;;  %v5719_v23 = vld [vmem:[#allocation2 + $0xb2] sm:$0xff] }
 0x458   : > { %9214 = vmatmul.mubr.bf16.gmra.mrb[220].mxu1 %v5940_v58  ;;  %9243 = vmatprep.subr.bf16.mxu0 %v9588_v28  ;;  %v5932_v58 = vld [vmem:[#allocation2 + $0xa3] sm:$0xff]  ;;  %v5935_v46 = vld [vmem:[#allocation2 + $0xbb] sm:$0xff] }
 0x459   : > { %v4556_v54 = vpop.f32.mrb[76].mxu0  ;;  %9217 = vmatprep.mubr.msk.bf16.mxu1 %vm9589_vm0, %v9588_v28 }
 0x45a   : > { %v4615_v26 = vadd.f32 %v4556_v54, %v11706_v37  ;;  %v8847_v16 = vpop.f32.mrb[77].mxu0 }
 0x45b   : > { %v4559_v48 = vpop.f32.mrb[78].mxu0  ;;  %v11829_v1 = vpop.f32.mrb[116].mxu1  ;;  %9244 = vmatpush3.bf16.msra.mxu0 %v9573_v2 }
 0x45c   : > { %v4616_v18 = vadd.f32 %v4559_v48, %v11709_v7  ;;  %v8848_v40 = vpop.f32.mrb[79].mxu0  ;;  %v8907_v57 = vpop.f32.mrb[117].mxu1  ;;  %9245 = vmatprep.subr.bf16.mxu0 %v9588_v28  ;;  %v11836_v38 = vadd.f32 %v4771_v63, %v4615_v26  ;;  %v9575_v7 = vld [vmem:[%s12332_s3 + $0x628] sm:$0xff]  }
 0x45d   : > { %v4790_v37 = vpop.f32.mrb[118].mxu1  ;;  %v5715_v40 = vld [vmem:[#allocation2 + $0x92] sm:$0xff]  ;;  %v5714_v57 = vld [vmem:[#allocation2 + $0x8a] sm:$0xff] }
 0x45e   : > { %9158 = vmatmul.mubr.bf16.gmra.mrb[184].mxu0 %v5724_v19  ;;  %v8908_v30 = vpop.f32.mrb[119].mxu1  ;;  %v11838_v36 = vadd.f32 %v4774_v9, %v4616_v18 }
 0x45f   : > { %9161 = vmatprep.mubr.msk.bf16.mxu0 %vm9589_vm0, %v9588_v28  ;;  %9246 = vmatpush3.bf16.msra.mxu0 %v9574_v8  ;;  %v5943_v8 = vpack.c.bf16 %v5932_v58, %v5931_v6  ;;  %v5934_v30 = vld [vmem:[#allocation2 + $0xb3] sm:$0xff] }
 0x460   : > { %9218 = vmatmul.mubr.bf16.gmra.mrb[224].mxu1 %v5941_v5  ;;  %9247 = vmatprep.subr.bf16.mxu0 %v9588_v28 }
 0x461   : > { %v4564_v63 = vpop.f32.mrb[80].mxu0  ;;  %9221 = vmatprep.mubr.msk.bf16.mxu1 %vm9589_vm0, %v9588_v28 }
 0x462   : > { %v4617_v42 = vadd.f32 %v4564_v63, %v11726_v22  ;;  %v8851_v62 = vpop.f32.mrb[81].mxu0 }
 0x463   : > { %v4567_v9 = vpop.f32.mrb[82].mxu0  ;;  %v4795_v43 = vpop.f32.mrb[120].mxu1  ;;  %9248 = vmatpush3.bf16.msra.mxu0 %v9575_v7  ;;  %v5727_v7 = vpack.c.bf16 %v5715_v40, %v5714_v57  ;;  %v5933_v62 = vld [vmem:[#allocation2 + $0xab] sm:$0xff] }
 0x464   : > { %v4618_v50 = vadd.f32 %v4567_v9, %v11729_v44  ;;  %v8852_v51 = vpop.f32.mrb[83].mxu0  ;;  %v8911_v31 = vpop.f32.mrb[121].mxu1  ;;  %9249 = vmatprep.subr.bf16.mxu0 %v9588_v28  ;;  %v11855_v39 = vadd.f32 %v11809_v49, %v4617_v42  ;;  %v9577_v44 = vld [vmem:[%s12332_s3 + $0x638] sm:$0xff]   ;;  %v5944_v4 = vpack.c.bf16 %v5934_v30, %v5933_v62 }
 0x465   : > { %v4798_v22 = vpop.f32.mrb[122].mxu1  ;;  %v5716_v51 = vld [vmem:[#allocation2 + $0x9a] sm:$0xff]  ;;  %v5936_v31 = vld [vmem:[#allocation2 + $0xc3] sm:$0xff] }
 0x466   : > { %9162 = vmatmul.mubr.bf16.gmra.mrb[188].mxu0 %v5725_v12  ;;  %v8912_v27 = vpop.f32.mrb[123].mxu1  ;;  %v11857_v60 = vadd.f32 %v4782_v61, %v4618_v50 }
 0x467   : > { %9165 = vmatprep.mubr.msk.bf16.mxu0 %vm9589_vm0, %v9588_v28  ;;  %9250 = vmatpush3.bf16.msra.mxu0 %v9576_v45  ;;  %v5717_v45 = vld [vmem:[#allocation2 + $0xa2] sm:$0xff] }
 0x468   : > { %9222 = vmatmul.mubr.bf16.gmra.mrb[228].mxu1 %v5942_v21  ;;  %9251 = vmatprep.subr.bf16.mxu0 %v9588_v28  ;;  %v5728_v27 = vpack.c.bf16 %v5717_v45, %v5716_v51 }
 0x469   : > { %v4572_v49 = vpop.f32.mrb[84].mxu0  ;;  %9225 = vmatprep.mubr.msk.bf16.mxu1 %vm9589_vm0, %v9588_v28 }
 0x46a   : > { %v4619_v13 = vadd.f32 %v4572_v49, %v11743_v53  ;;  %v8855_v24 = vpop.f32.mrb[85].mxu0 }
 0x46b   : > { %v4575_v61 = vpop.f32.mrb[86].mxu0  ;;  %v4803_v25 = vpop.f32.mrb[124].mxu1  ;;  %9252 = vmatpush3.bf16.msra.mxu0 %v9577_v44  ;;  %v5945_v24 = vpack.c.bf16 %v5936_v31, %v5935_v46 }
 0x46c   : > { %v4620_v2 = vadd.f32 %v4575_v61, %v11745_v35  ;;  %v8856_v54 = vpop.f32.mrb[87].mxu0  ;;  %v8915_v26 = vpop.f32.mrb[125].mxu1  ;;  %v11870_v16 = vadd.f32 %v11829_v1, %v4619_v13 }
 0x46d   : > { %v4806_v48 = vpop.f32.mrb[126].mxu1  ;;  %v5718_v54 = vld [vmem:[#allocation2 + $0xaa] sm:$0xff] }
 0x46e   : > { %9166 = vmatmul.mubr.bf16.gmra.mrb[192].mxu0 %v5726_v32  ;;  %v8916_v47 = vpop.f32.mrb[127].mxu1  ;;  %v11872_v53 = vadd.f32 %v4790_v37, %v4620_v2  ;;  %v5729_v6 = vpack.c.bf16 %v5719_v23, %v5718_v54 }
 0x46f   : > { %9169 = vmatprep.mubr.msk.bf16.mxu0 %vm9589_vm0, %v9588_v28 }
 0x470   : > { %9226 = vmatmul.mubr.bf16.gmra.mrb[232].mxu1 %v5943_v8 }
 0x471   : > { %v4580_v18 = vpop.f32.mrb[88].mxu0  ;;  %9229 = vmatprep.mubr.msk.bf16.mxu1 %vm9589_vm0, %v9588_v28 }
 0x472   : > { %v4621_v35 = vadd.f32 %v4580_v18, %v11753_v17  ;;  %v8859_v1 = vpop.f32.mrb[89].mxu0 }
 0x473   : > { %v4583_v19 = vpop.f32.mrb[90].mxu0  ;;  %v4811_v33 = vpop.f32.mrb[128].mxu1 }
 0x474   : > { %v4622_v5 = vadd.f32 %v4583_v19, %v11755_v15  ;;  %v8860_v37 = vpop.f32.mrb[91].mxu0  ;;  %v8919_v63 = vpop.f32.mrb[129].mxu1  ;;  %v11880_v3 = vadd.f32 %v4795_v43, %v4621_v35  ;;  %v5721_v35 = vld [vmem:[#allocation2 + $0xc2] sm:$0xff] }
 0x475   : > { %v4814_v42 = vpop.f32.mrb[130].mxu1 }
 0x476   : > { %9170 = vmatmul.mubr.bf16.gmra.mrb[196].mxu0 %v5727_v7  ;;  %v8920_v9 = vpop.f32.mrb[131].mxu1  ;;  %v11882_v55 = vadd.f32 %v4798_v22, %v4622_v5 }
 0x477   : > { %9173 = vmatprep.mubr.msk.bf16.mxu0 %vm9589_vm0, %v9588_v28 }
 0x478   : > { %9230 = vmatmul.mubr.bf16.gmra.mrb[236].mxu1 %v5944_v4  ;;  %v6135_v4 = vld [vmem:[#allocation2 + $0x44] sm:$0xff] }
 0x479   : > { %v4588_v17 = vpop.f32.mrb[92].mxu0  ;;  %9233 = vmatprep.mubr.msk.bf16.mxu1 %vm9589_vm0, %v9588_v28 }
 0x47a   : > { %v4623_v15 = vadd.f32 %v4588_v17, %v11763_v11  ;;  %v8863_v43 = vpop.f32.mrb[93].mxu0 }
 0x47b   : > { %v4591_v50 = vpop.f32.mrb[94].mxu0  ;;  %v4819_v12 = vpop.f32.mrb[132].mxu1 }
 0x47c   : > { %v4624_v59 = vadd.f32 %v4591_v50, %v11765_v34  ;;  %v8864_v22 = vpop.f32.mrb[95].mxu0  ;;  %v8923_v21 = vpop.f32.mrb[133].mxu1  ;;  %v11890_v44 = vadd.f32 %v4803_v25, %v4623_v15 }
 0x47d   : > { %v4822_v49 = vpop.f32.mrb[134].mxu1 }
 0x47e   : > { %9174 = vmatmul.mubr.bf16.gmra.mrb[200].mxu0 %v5728_v27  ;;  %v8924_v13 = vpop.f32.mrb[135].mxu1  ;;  %v11892_v61 = vadd.f32 %v4806_v48, %v4624_v59 }
 0x47f   : > { %9177 = vmatprep.mubr.msk.bf16.mxu0 %vm9589_vm0, %v9588_v28 }
 0x480   : > { %9234 = vmatmul.mubr.bf16.gmra.mrb[240].mxu1 %v5945_v24 }
 0x481   : > { %v4596_v11 = vpop.f32.mrb[96].mxu0 }
 0x482   : > { %v4625_v34 = vadd.f32 %v4596_v11, %v11773_v52  ;;  %v8867_v58 = vpop.f32.mrb[97].mxu0 }
 0x483   : > { %v4599_v2 = vpop.f32.mrb[98].mxu0  ;;  %v5185_v25 = vpop.f32.mrb[136].mxu1 }
 0x484   : > { %v4626_v32 = vadd.f32 %v4599_v2, %v11775_v41  ;;  %v8868_v26 = vpop.f32.mrb[99].mxu0  ;;  %v8995_v47 = vpop.f32.mrb[137].mxu1  ;;  %v11898_v8 = vadd.f32 %v4811_v33, %v4625_v34  ;;  %v5720_v41 = vld [vmem:[#allocation2 + $0xba] sm:$0xff] }
 0x485   : > { %v5188_v48 = vpop.f32.mrb[138].mxu1  ;;  %v5730_v37 = vpack.c.bf16 %v5721_v35, %v5720_v41 }
 0x486   : > { %9178 = vmatmul.mubr.bf16.gmra.mrb[204].mxu0 %v5729_v6  ;;  %v8996_v18 = vpop.f32.mrb[139].mxu1  ;;  %v11900_v40 = vadd.f32 %v4814_v42, %v4626_v32  ;;  %v6139_v6 = vld [vmem:[#allocation2 + $0x64] sm:$0xff] }
 0x487   : > { %9181 = vmatprep.mubr.msk.bf16.mxu0 %vm9589_vm0, %v9588_v28 }
 0x489   : > { %v4604_v52 = vpop.f32.mrb[100].mxu0 }
 0x48a   : > { %v4627_v1 = vadd.f32 %v4604_v52, %v11783_v29  ;;  %v8871_v19 = vpop.f32.mrb[101].mxu0 }
 0x48b   : > { %v4607_v57 = vpop.f32.mrb[102].mxu0  ;;  %v5193_v30 = vpop.f32.mrb[140].mxu1 }
 0x48c   : > { %v4628_v5 = vadd.f32 %v4607_v57, %v11785_v0  ;;  %v8872_v33 = vpop.f32.mrb[103].mxu0  ;;  %v8999_v7 = vpop.f32.mrb[141].mxu1  ;;  %v11906_v63 = vadd.f32 %v4819_v12, %v4627_v1  ;;  %v6134_v0 = vld [vmem:[#allocation2 + $0x3c] sm:$0xff] }
 0x48d   : > { %v5196_v42 = vpop.f32.mrb[142].mxu1  ;;  %v6152_v12 = vpack.c.bf16 %v6135_v4, %v6134_v0 }
 0x48e   : > { %9182 = vmatmul.mubr.bf16.gmra.mrb[208].mxu0 %v5730_v37  ;;  %v9000_v62 = vpop.f32.mrb[143].mxu1  ;;  %v11908_v9 = vadd.f32 %v4822_v49, %v4628_v5  ;;  %v6137_v49 = vld [vmem:[#allocation2 + $0x54] sm:$0xff] }
 0x48f   : > { %9253 = vmatprep.mubr.msk.bf16.mxu0 %vm9589_vm0, %v9588_v28  ;;  %v6141_v37 = vld [vmem:[#allocation2 + $0x74] sm:$0xff] }
 0x491   : > { %v4970_v29 = vpop.f32.mrb[104].mxu0 }
 0x492   : > { %v5041_v17 = vadd.f32 %v4970_v29, %v11796_v14  ;;  %v8943_v45 = vpop.f32.mrb[105].mxu0 }
 0x493   : > { %v4973_v15 = vpop.f32.mrb[106].mxu0  ;;  %v5201_v43 = vpop.f32.mrb[144].mxu1 }
 0x494   : > { %v5042_v50 = vadd.f32 %v4973_v15, %v11798_v56  ;;  %v8944_v51 = vpop.f32.mrb[107].mxu0  ;;  %v9003_v31 = vpop.f32.mrb[145].mxu1  ;;  %v11914_v59 = vadd.f32 %v5185_v25, %v5041_v17  ;;  %v6136_v56 = vld [vmem:[#allocation2 + $0x4c] sm:$0xff] }
 0x495   : > { %v5204_v22 = vpop.f32.mrb[146].mxu1  ;;  %v6153_v58 = vpack.c.bf16 %v6137_v49, %v6136_v56 }
 0x496   : > { %9254 = vmatmul.mubr.bf16.vlgmr.msra.gmra.mrb[212].mxu0 %v6152_v12  ;;  %v9004_v27 = vpop.f32.mrb[147].mxu1  ;;  %v11916_v21 = vadd.f32 %v5188_v48, %v5042_v50  ;;  %v6143_v12 = vld [vmem:[#allocation2 + $0x84] sm:$0xff] }
 0x497   : > { %9257 = vmatprep.mubr.msk.bf16.mxu0 %vm9589_vm0, %v9588_v28 }
 0x499   : > { %v4978_v14 = vpop.f32.mrb[108].mxu0 }
 0x49a   : > { %v5043_v46 = vadd.f32 %v4978_v14, %v11816_v20  ;;  %v8947_v13 = vpop.f32.mrb[109].mxu0 }
 0x49b   : > { %v4981_v24 = vpop.f32.mrb[110].mxu0  ;;  %v5209_v11 = vpop.f32.mrb[148].mxu1 }
 0x49c   : > { %v5044_v23 = vadd.f32 %v4981_v24, %v11818_v10  ;;  %v8948_v34 = vpop.f32.mrb[111].mxu0  ;;  %v9007_v2 = vpop.f32.mrb[149].mxu1  ;;  %v11922_v54 = vadd.f32 %v5193_v30, %v5043_v46  ;;  %v6138_v10 = vld [vmem:[#allocation2 + $0x5c] sm:$0xff] }
 0x49d   : > { %v5212_v25 = vpop.f32.mrb[150].mxu1  ;;  %v6154_v19 = vpack.c.bf16 %v6139_v6, %v6138_v10 }
 0x49e   : > { %9258 = vmatmul.mubr.bf16.gmra.mrb[216].mxu0 %v6153_v58  ;;  %v9008_v32 = vpop.f32.mrb[151].mxu1  ;;  %v11924_v26 = vadd.f32 %v5196_v42, %v5044_v23  ;;  %v6145_v58 = vld [vmem:[#allocation2 + $0x94] sm:$0xff] }
 0x49f   : > { %9261 = vmatprep.mubr.msk.bf16.mxu0 %vm9589_vm0, %v9588_v28 }
 0x4a1   : > { %v4986_v20 = vpop.f32.mrb[112].mxu0 }
 0x4a2   : > { %v5045_v47 = vadd.f32 %v4986_v20, %v11836_v38  ;;  %v8951_v48 = vpop.f32.mrb[113].mxu0 }
 0x4a3   : > { %v4989_v18 = vpop.f32.mrb[114].mxu0  ;;  %v5217_v52 = vpop.f32.mrb[152].mxu1 }
 0x4a4   : > { %v5046_v35 = vadd.f32 %v4989_v18, %v11838_v36  ;;  %v8952_v1 = vpop.f32.mrb[115].mxu0  ;;  %v9011_v57 = vpop.f32.mrb[153].mxu1  ;;  %v11930_v41 = vadd.f32 %v5201_v43, %v5045_v47  ;;  %v6140_v36 = vld [vmem:[#allocation2 + $0x6c] sm:$0xff] }
 0x4a5   : > { %v5220_v30 = vpop.f32.mrb[154].mxu1  ;;  %v6155_v45 = vpack.c.bf16 %v6141_v37, %v6140_v36 }
 0x4a6   : > { %9262 = vmatmul.mubr.bf16.gmra.mrb[220].mxu0 %v6154_v19  ;;  %v9012_v5 = vpop.f32.mrb[155].mxu1  ;;  %v11932_v33 = vadd.f32 %v5204_v22, %v5046_v35  ;;  %v6147_v19 = vld [vmem:[#allocation2 + $0xa4] sm:$0xff] }
 0x4a7   : > { %9265 = vmatprep.mubr.msk.bf16.mxu0 %vm9589_vm0, %v9588_v28 }
 0x4a9   : > { %v4994_v38 = vpop.f32.mrb[116].mxu0 }
 0x4aa   : > { %v5047_v7 = vadd.f32 %v4994_v38, %v11855_v39  ;;  %v8955_v42 = vpop.f32.mrb[117].mxu0 }
 0x4ab   : > { %v4997_v62 = vpop.f32.mrb[118].mxu0  ;;  %v5225_v29 = vpop.f32.mrb[156].mxu1 }
 0x4ac   : > { %v5048_v4 = vadd.f32 %v4997_v62, %v11857_v60  ;;  %v8956_v17 = vpop.f32.mrb[119].mxu0  ;;  %v9015_v15 = vpop.f32.mrb[157].mxu1  ;;  %v11938_v0 = vadd.f32 %v5209_v11, %v5047_v7  ;;  %v6142_v60 = vld [vmem:[#allocation2 + $0x7c] sm:$0xff] }
 0x4ad   : > { %v5228_v43 = vpop.f32.mrb[158].mxu1  ;;  %v6156_v13 = vpack.c.bf16 %v6143_v12, %v6142_v60 }
 0x4ae   : > { %9266 = vmatmul.mubr.bf16.gmra.mrb[224].mxu0 %v6155_v45  ;;  %v9016_v50 = vpop.f32.mrb[159].mxu1  ;;  %v11940_v51 = vadd.f32 %v5212_v25, %v5048_v4  ;;  %v6149_v45 = vld [vmem:[#allocation2 + $0xb4] sm:$0xff] }
 0x4af   : > { %9269 = vmatprep.mubr.msk.bf16.mxu0 %vm9589_vm0, %v9588_v28 }
 0x4b1   : > { %v5002_v39 = vpop.f32.mrb[120].mxu0 }
 0x4b2   : > { %v5049_v31 = vadd.f32 %v5002_v39, %v11870_v16  ;;  %v8959_v22 = vpop.f32.mrb[121].mxu0 }
 0x4b3   : > { %v5005_v27 = vpop.f32.mrb[122].mxu0  ;;  %v5233_v14 = vpop.f32.mrb[160].mxu1 }
 0x4b4   : > { %v5050_v49 = vadd.f32 %v5005_v27, %v11872_v53  ;;  %v8960_v46 = vpop.f32.mrb[123].mxu0  ;;  %v9019_v24 = vpop.f32.mrb[161].mxu1  ;;  %v11946_v56 = vadd.f32 %v5217_v52, %v5049_v31  ;;  %v6144_v53 = vld [vmem:[#allocation2 + $0x8c] sm:$0xff] }
 0x4b5   : > { %v5236_v11 = vpop.f32.mrb[162].mxu1  ;;  %v6157_v48 = vpack.c.bf16 %v6145_v58, %v6144_v53 }
 0x4b6   : > { %9270 = vmatmul.mubr.bf16.gmra.mrb[228].mxu0 %v6156_v13  ;;  %v9020_v23 = vpop.f32.mrb[163].mxu1  ;;  %v11948_v34 = vadd.f32 %v5220_v30, %v5050_v49  ;;  %v6151_v13 = vld [vmem:[#allocation2 + $0xc4] sm:$0xff] }
 0x4b7   : > { %9273 = vmatprep.mubr.msk.bf16.mxu0 %vm9589_vm0, %v9588_v28 }
 0x4b9   : > { %v5010_v16 = vpop.f32.mrb[124].mxu0 }
 0x4ba   : > { %v5051_v2 = vadd.f32 %v5010_v16, %v11880_v3  ;;  %v8963_v25 = vpop.f32.mrb[125].mxu0 }
 0x4bb   : > { %v5013_v32 = vpop.f32.mrb[126].mxu0  ;;  %v5241_v20 = vpop.f32.mrb[164].mxu1 }
 0x4bc   : > { %v5052_v6 = vadd.f32 %v5013_v32, %v11882_v55  ;;  %v8964_v47 = vpop.f32.mrb[127].mxu0  ;;  %v9023_v18 = vpop.f32.mrb[165].mxu1  ;;  %v11954_v10 = vadd.f32 %v5225_v29, %v5051_v2  ;;  %v6146_v55 = vld [vmem:[#allocation2 + $0x9c] sm:$0xff] }
 0x4bd   : > { %v5244_v52 = vpop.f32.mrb[166].mxu1  ;;  %v6158_v42 = vpack.c.bf16 %v6147_v19, %v6146_v55 }
 0x4be   : > { %9274 = vmatmul.mubr.bf16.gmra.mrb[232].mxu0 %v6157_v48  ;;  %v9024_v35 = vpop.f32.mrb[167].mxu1  ;;  %v11956_v1 = vadd.f32 %v5228_v43, %v5052_v6 }
 0x4bf   : > { %9277 = vmatprep.mubr.msk.bf16.mxu0 %vm9589_vm0, %v9588_v28 }
 0x4c1   : > { %v5018_v3 = vpop.f32.mrb[128].mxu0 }
 0x4c2   : > { %v5053_v57 = vadd.f32 %v5018_v3, %v11890_v44  ;;  %v8967_v30 = vpop.f32.mrb[129].mxu0 }
 0x4c3   : > { %v5021_v5 = vpop.f32.mrb[130].mxu0  ;;  %v5249_v38 = vpop.f32.mrb[168].mxu1 }
 0x4c4   : > { %v5054_v37 = vadd.f32 %v5021_v5, %v11892_v61  ;;  %v8968_v7 = vpop.f32.mrb[131].mxu0  ;;  %v9027_v62 = vpop.f32.mrb[169].mxu1  ;;  %v11962_v36 = vadd.f32 %v5233_v14, %v5053_v57  ;;  %v6148_v61 = vld [vmem:[#allocation2 + $0xac] sm:$0xff] }
 0x4c5   : > { %v5252_v29 = vpop.f32.mrb[170].mxu1  ;;  %v6159_v22 = vpack.c.bf16 %v6149_v45, %v6148_v61 }
 0x4c6   : > { %9278 = vmatmul.mubr.bf16.gmra.mrb[236].mxu0 %v6158_v42  ;;  %v9028_v4 = vpop.f32.mrb[171].mxu1  ;;  %v11964_v17 = vadd.f32 %v5236_v11, %v5054_v37 }
 0x4c7   : > { %9281 = vmatprep.mubr.msk.bf16.mxu0 %vm9589_vm0, %v9588_v28 }
 0x4c9   : > { %v5026_v44 = vpop.f32.mrb[132].mxu0 }
 0x4ca   : > { %v5055_v15 = vadd.f32 %v5026_v44, %v11898_v8  ;;  %v8971_v43 = vpop.f32.mrb[133].mxu0 }
 0x4cb   : > { %v5029_v50 = vpop.f32.mrb[134].mxu0  ;;  %v5615_v39 = vpop.f32.mrb[172].mxu1 }
 0x4cc   : > { %v5056_v12 = vadd.f32 %v5029_v50, %v11900_v40  ;;  %v8972_v31 = vpop.f32.mrb[135].mxu0  ;;  %v9099_v27 = vpop.f32.mrb[173].mxu1  ;;  %v11970_v60 = vadd.f32 %v5241_v20, %v5055_v15  ;;  %v6150_v40 = vld [vmem:[#allocation2 + $0xbc] sm:$0xff] }
 0x4cd   : > { %v5618_v14 = vpop.f32.mrb[174].mxu1  ;;  %v6160_v25 = vpack.c.bf16 %v6151_v13, %v6150_v40 }
 0x4ce   : > { %9282 = vmatmul.mubr.bf16.gmra.mrb[240].mxu0 %v6159_v22  ;;  %v9100_v49 = vpop.f32.mrb[175].mxu1  ;;  %v11972_v46 = vadd.f32 %v5244_v52, %v5056_v12 }
 0x4cf   : > { %9285 = vmatprep.mubr.msk.bf16.mxu0 %vm9589_vm0, %v9588_v28  ;;  %vm6615_vm0 = vsmask.f32 7946 }
 0x4d0   : > { %vm12197_vm2 = vmand %vm6599_vm5, %vm6615_vm0 }
 0x4d1   : > { %v5034_v8 = vpop.f32.mrb[136].mxu0 }
 0x4d2   : > { %v5057_v24 = vadd.f32 %v5034_v8, %v11906_v63  ;;  %v8975_v11 = vpop.f32.mrb[137].mxu0 }
 0x4d3   : > { %v5037_v23 = vpop.f32.mrb[138].mxu0  ;;  %v5623_v16 = vpop.f32.mrb[176].mxu1 }
 0x4d4   : > { %v5058_v58 = vadd.f32 %v5037_v23, %v11908_v9  ;;  %v8976_v2 = vpop.f32.mrb[139].mxu0  ;;  %v9103_v32 = vpop.f32.mrb[177].mxu1  ;;  %v11978_v53 = vadd.f32 %v5249_v38, %v5057_v24 }
 0x4d5   : > { %v5626_v20 = vpop.f32.mrb[178].mxu1 }
 0x4d6   : > { %9286 = vmatmul.mubr.bf16.gmra.mrb[244].mxu0 %v6160_v25  ;;  %v9104_v6 = vpop.f32.mrb[179].mxu1  ;;  %v11980_v47 = vadd.f32 %v5252_v29, %v5058_v58 }
 0x4d9   : > { %v5400_v28 = vpop.f32.mrb[140].mxu0 }
 0x4da   : > { %v5471_v48 = vadd.f32 %v5400_v28, %v11914_v59  ;;  %v9047_v63 = vpop.f32.mrb[141].mxu0 }
 0x4db   : > { %v5403_v18 = vpop.f32.mrb[142].mxu0  ;;  %v5631_v52 = vpop.f32.mrb[180].mxu1 }
 0x4dc   : > { %v5472_v35 = vadd.f32 %v5403_v18, %v11916_v21  ;;  %v9048_v3 = vpop.f32.mrb[143].mxu0  ;;  %v9107_v9 = vpop.f32.mrb[181].mxu1  ;;  %v11984_v19 = vadd.f32 %v5615_v39, %v5471_v48 }
 0x4dd   : > { %v5634_v57 = vpop.f32.mrb[182].mxu1 }
 0x4de   : > { %v9108_v30 = vpop.f32.mrb[183].mxu1  ;;  %v11986_v5 = vadd.f32 %v5618_v14, %v5472_v35 }
 0x4e1   : > { %v5408_v55 = vpop.f32.mrb[144].mxu0 }
 0x4e2   : > { %v5473_v38 = vadd.f32 %v5408_v55, %v11922_v54  ;;  %v9051_v37 = vpop.f32.mrb[145].mxu0 }
 0x4e3   : > { %v5411_v7 = vpop.f32.mrb[146].mxu0  ;;  %v5639_v42 = vpop.f32.mrb[184].mxu1 }
 0x4e4   : > { %v5474_v59 = vadd.f32 %v5411_v7, %v11924_v26  ;;  %v9052_v62 = vpop.f32.mrb[147].mxu0  ;;  %v9111_v29 = vpop.f32.mrb[185].mxu1  ;;  %v11990_v4 = vadd.f32 %v5623_v16, %v5473_v38 }
 0x4e5   : > { %v5642_v21 = vpop.f32.mrb[186].mxu1 }
 0x4e6   : > { %v9112_v44 = vpop.f32.mrb[187].mxu1  ;;  %v11992_v45 = vadd.f32 %v5626_v20, %v5474_v59 }
 0x4e9   : > { %v5416_v15 = vpop.f32.mrb[148].mxu0 }
 0x4ea   : > { %v5475_v43 = vadd.f32 %v5416_v15, %v11930_v41  ;;  %v9055_v50 = vpop.f32.mrb[149].mxu0 }
 0x4eb   : > { %v5419_v61 = vpop.f32.mrb[150].mxu0  ;;  %v5647_v39 = vpop.f32.mrb[188].mxu1 }
 0x4ec   : > { %v5476_v54 = vadd.f32 %v5419_v61, %v11932_v33  ;;  %v9056_v12 = vpop.f32.mrb[151].mxu0  ;;  %v9115_v31 = vpop.f32.mrb[189].mxu1  ;;  %v11996_v22 = vadd.f32 %v5631_v52, %v5475_v43 }
 0x4ed   : > { %v5650_v26 = vpop.f32.mrb[190].mxu1 }
 0x4ee   : > { %v9116_v27 = vpop.f32.mrb[191].mxu1  ;;  %v11998_v14 = vadd.f32 %v5634_v57, %v5476_v54 }
 0x4f1   : > { %v5424_v49 = vpop.f32.mrb[152].mxu0 }
 0x4f2   : > { %v5477_v8 = vadd.f32 %v5424_v49, %v11938_v0  ;;  %v9059_v13 = vpop.f32.mrb[153].mxu0 }
 0x4f3   : > { %v5427_v24 = vpop.f32.mrb[154].mxu0  ;;  %v5655_v11 = vpop.f32.mrb[192].mxu1 }
 0x4f4   : > { %v5478_v41 = vadd.f32 %v5427_v24, %v11940_v51  ;;  %v9060_v23 = vpop.f32.mrb[155].mxu0  ;;  %v9119_v40 = vpop.f32.mrb[193].mxu1  ;;  %v12002_v16 = vadd.f32 %v5639_v42, %v5477_v8 }
 0x4f5   : > { %v5658_v33 = vpop.f32.mrb[194].mxu1 }
 0x4f6   : > { %v9120_v58 = vpop.f32.mrb[195].mxu1  ;;  %v12004_v2 = vadd.f32 %v5642_v21, %v5478_v41 }
 0x4f9   : > { %v5432_v25 = vpop.f32.mrb[156].mxu0 }
 0x4fa   : > { %v5479_v32 = vadd.f32 %v5432_v25, %v11946_v56  ;;  %v9063_v20 = vpop.f32.mrb[157].mxu0 }
 0x4fb   : > { %v5435_v6 = vpop.f32.mrb[158].mxu0  ;;  %v5663_v28 = vpop.f32.mrb[196].mxu1 }
 0x4fc   : > { %v5480_v0 = vadd.f32 %v5435_v6, %v11948_v34  ;;  %v9064_v48 = vpop.f32.mrb[159].mxu0  ;;  %v9123_v63 = vpop.f32.mrb[197].mxu1  ;;  %v12008_v18 = vadd.f32 %v5647_v39, %v5479_v32 }
 0x4fd   : > { %v5666_v51 = vpop.f32.mrb[198].mxu1 }
 0x4fe   : > { %v9124_v52 = vpop.f32.mrb[199].mxu1  ;;  %v12010_v35 = vadd.f32 %v5650_v26, %v5480_v0 }
 0x501   : > { %v5440_v3 = vpop.f32.mrb[160].mxu0 }
 0x502   : > { %v5481_v9 = vadd.f32 %v5440_v3, %v11954_v10  ;;  %v9067_v57 = vpop.f32.mrb[161].mxu0 }
 0x503   : > { %v5443_v30 = vpop.f32.mrb[162].mxu0  ;;  %v5671_v55 = vpop.f32.mrb[200].mxu1 }
 0x504   : > { %v5482_v56 = vadd.f32 %v5443_v30, %v11956_v1  ;;  %v9068_v38 = vpop.f32.mrb[163].mxu0  ;;  %v9127_v37 = vpop.f32.mrb[201].mxu1  ;;  %v12014_v7 = vadd.f32 %v5655_v11, %v5481_v9 }
 0x505   : > { %v5674_v34 = vpop.f32.mrb[202].mxu1 }
 0x506   : > { %v9128_v42 = vpop.f32.mrb[203].mxu1  ;;  %v12016_v59 = vadd.f32 %v5658_v33, %v5482_v56 }
 0x509   : > { %v5448_v62 = vpop.f32.mrb[164].mxu0 }
 0x50a   : > { %v5483_v29 = vadd.f32 %v5448_v62, %v11962_v36  ;;  %v9071_v21 = vpop.f32.mrb[165].mxu0 }
 0x50b   : > { %v5451_v44 = vpop.f32.mrb[166].mxu0  ;;  %v5679_v15 = vpop.f32.mrb[204].mxu1 }
 0x50c   : > { %v5484_v10 = vadd.f32 %v5451_v44, %v11964_v17  ;;  %v9072_v43 = vpop.f32.mrb[167].mxu0  ;;  %v9131_v50 = vpop.f32.mrb[205].mxu1  ;;  %v12020_v61 = vadd.f32 %v5663_v28, %v5483_v29 }
 0x50d   : > { %v5682_v1 = vpop.f32.mrb[206].mxu1 }
 0x50e   : > { %v9132_v39 = vpop.f32.mrb[207].mxu1  ;;  %v12022_v54 = vadd.f32 %v5666_v51, %v5484_v10 }
 0x511   : > { %v5456_v12 = vpop.f32.mrb[168].mxu0 }
 0x512   : > { %v5485_v31 = vadd.f32 %v5456_v12, %v11970_v60  ;;  %v9075_v26 = vpop.f32.mrb[169].mxu0 }
 0x513   : > { %v5459_v27 = vpop.f32.mrb[170].mxu0  ;;  %v6045_v49 = vpop.f32.mrb[208].mxu1 }
 0x514   : > { %v5486_v36 = vadd.f32 %v5459_v27, %v11972_v46  ;;  %v9076_v8 = vpop.f32.mrb[171].mxu0  ;;  %v9203_v13 = vpop.f32.mrb[209].mxu1  ;;  %v12026_v24 = vadd.f32 %v5671_v55, %v5485_v31 }
 0x515   : > { %v6048_v17 = vpop.f32.mrb[210].mxu1 }
 0x516   : > { %v9204_v11 = vpop.f32.mrb[211].mxu1  ;;  %v12028_v41 = vadd.f32 %v5674_v34, %v5486_v36 }
 0x519   : > { %v5464_v23 = vpop.f32.mrb[172].mxu0 }
 0x51a   : > { %v5487_v40 = vadd.f32 %v5464_v23, %v11978_v53  ;;  %v9079_v33 = vpop.f32.mrb[173].mxu0 }
 0x51b   : > { %v5467_v58 = vpop.f32.mrb[174].mxu0  ;;  %v6053_v25 = vpop.f32.mrb[212].mxu1 }
 0x51c   : > { %v5488_v60 = vadd.f32 %v5467_v58, %v11980_v47  ;;  %v9080_v32 = vpop.f32.mrb[175].mxu0  ;;  %v9207_v20 = vpop.f32.mrb[213].mxu1  ;;  %v12032_v6 = vadd.f32 %v5679_v15, %v5487_v40 }
 0x51d   : > { %v6056_v46 = vpop.f32.mrb[214].mxu1 }
 0x51e   : > { %v9208_v28 = vpop.f32.mrb[215].mxu1  ;;  %v12034_v0 = vadd.f32 %v5682_v1, %v5488_v60 }
 0x521   : > { %v5830_v48 = vpop.f32.mrb[176].mxu0 }
 0x522   : > { %v5901_v63 = vadd.f32 %v5830_v48, %v11984_v19  ;;  %v9151_v51 = vpop.f32.mrb[177].mxu0 }
 0x523   : > { %v5833_v52 = vpop.f32.mrb[178].mxu0  ;;  %v6061_v3 = vpop.f32.mrb[216].mxu1 }
 0x524   : > { %v5902_v53 = vadd.f32 %v5833_v52, %v11986_v5  ;;  %v9152_v9 = vpop.f32.mrb[179].mxu0  ;;  %v9211_v57 = vpop.f32.mrb[217].mxu1  ;;  %v12038_v30 = vadd.f32 %v6045_v49, %v5901_v63 }
 0x525   : > { %v6064_v47 = vpop.f32.mrb[218].mxu1 }
 0x526   : > { %v9212_v55 = vpop.f32.mrb[219].mxu1  ;;  %v12040_v56 = vadd.f32 %v6048_v17, %v5902_v53 }
 0x529   : > { %v5838_v38 = vpop.f32.mrb[180].mxu0 }
 0x52a   : > { %v5903_v37 = vadd.f32 %v5838_v38, %v11990_v4  ;;  %v9155_v34 = vpop.f32.mrb[181].mxu0 }
 0x52b   : > { %v5841_v42 = vpop.f32.mrb[182].mxu0  ;;  %v6069_v62 = vpop.f32.mrb[220].mxu1 }
 0x52c   : > { %v5904_v19 = vadd.f32 %v5841_v42, %v11992_v45  ;;  %v9156_v29 = vpop.f32.mrb[183].mxu0  ;;  %v9215_v21 = vpop.f32.mrb[221].mxu1  ;;  %v12044_v44 = vadd.f32 %v6053_v25, %v5903_v37 }
 0x52d   : > { %v6072_v5 = vpop.f32.mrb[222].mxu1 }
 0x52e   : > { %v9216_v15 = vpop.f32.mrb[223].mxu1  ;;  %v12046_v10 = vadd.f32 %v6056_v46, %v5904_v19 }
 0x531   : > { %v5846_v43 = vpop.f32.mrb[184].mxu0 }
 0x532   : > { %v5905_v50 = vadd.f32 %v5846_v43, %v11996_v22  ;;  %v9159_v1 = vpop.f32.mrb[185].mxu0 }
 0x533   : > { %v5849_v39 = vpop.f32.mrb[186].mxu0  ;;  %v6077_v12 = vpop.f32.mrb[224].mxu1 }
 0x534   : > { %v5906_v4 = vadd.f32 %v5849_v39, %v11998_v14  ;;  %v9160_v31 = vpop.f32.mrb[187].mxu0  ;;  %v9219_v26 = vpop.f32.mrb[225].mxu1  ;;  %v12050_v27 = vadd.f32 %v6061_v3, %v5905_v50 }
 0x535   : > { %v6080_v45 = vpop.f32.mrb[226].mxu1 }
 0x536   : > { %v9220_v49 = vpop.f32.mrb[227].mxu1  ;;  %v12052_v36 = vadd.f32 %v6064_v47, %v5906_v4 }
 0x539   : > { %v5854_v8 = vpop.f32.mrb[188].mxu0 }
 0x53a   : > { %v5907_v13 = vadd.f32 %v5854_v8, %v12002_v16  ;;  %v9163_v17 = vpop.f32.mrb[189].mxu0 }
 0x53b   : > { %v5857_v11 = vpop.f32.mrb[190].mxu0  ;;  %v6085_v23 = vpop.f32.mrb[228].mxu1 }
 0x53c   : > { %v5908_v22 = vadd.f32 %v5857_v11, %v12004_v2  ;;  %v9164_v40 = vpop.f32.mrb[191].mxu0  ;;  %v9223_v33 = vpop.f32.mrb[229].mxu1  ;;  %v12056_v58 = vadd.f32 %v6069_v62, %v5907_v13 }
 0x53d   : > { %v6088_v14 = vpop.f32.mrb[230].mxu1 }
 0x53e   : > { %v9224_v25 = vpop.f32.mrb[231].mxu1  ;;  %v12058_v60 = vadd.f32 %v6072_v5, %v5908_v22 }
 0x541   : > { %v5862_v32 = vpop.f32.mrb[192].mxu0 }
 0x542   : > { %v5909_v20 = vadd.f32 %v5862_v32, %v12008_v18  ;;  %v9167_v46 = vpop.f32.mrb[193].mxu0 }
 0x543   : > { %v5865_v28 = vpop.f32.mrb[194].mxu0  ;;  %v6093_v48 = vpop.f32.mrb[232].mxu1 }
 0x544   : > { %v5910_v16 = vadd.f32 %v5865_v28, %v12010_v35  ;;  %v9168_v63 = vpop.f32.mrb[195].mxu0  ;;  %v9227_v51 = vpop.f32.mrb[233].mxu1  ;;  %v12062_v52 = vadd.f32 %v6077_v12, %v5909_v20 }
 0x545   : > { %v6096_v2 = vpop.f32.mrb[234].mxu1 }
 0x546   : > { %v9228_v3 = vpop.f32.mrb[235].mxu1  ;;  %v12064_v53 = vadd.f32 %v6080_v45, %v5910_v16 }
 0x549   : > { %v5870_v9 = vpop.f32.mrb[196].mxu0 }
 0x54a   : > { %v5911_v57 = vadd.f32 %v5870_v9, %v12014_v7  ;;  %v9171_v47 = vpop.f32.mrb[197].mxu0 }
 0x54b   : > { %v5873_v55 = vpop.f32.mrb[198].mxu0  ;;  %v6101_v38 = vpop.f32.mrb[236].mxu1 }
 0x54c   : > { %v5912_v18 = vadd.f32 %v5873_v55, %v12016_v59  ;;  %v9172_v37 = vpop.f32.mrb[199].mxu0  ;;  %v9231_v34 = vpop.f32.mrb[237].mxu1  ;;  %v12068_v42 = vadd.f32 %v6085_v23, %v5911_v57 }
 0x54d   : > { %v6104_v35 = vpop.f32.mrb[238].mxu1 }
 0x54e   : > { %v9232_v62 = vpop.f32.mrb[239].mxu1  ;;  %v12070_v19 = vadd.f32 %v6088_v14, %v5912_v18 }
 0x551   : > { %v5878_v29 = vpop.f32.mrb[200].mxu0 }
 0x552   : > { %v5913_v21 = vadd.f32 %v5878_v29, %v12020_v61  ;;  %v9175_v5 = vpop.f32.mrb[201].mxu0 }
 0x553   : > { %v5881_v15 = vpop.f32.mrb[202].mxu0  ;;  %v6109_v43 = vpop.f32.mrb[240].mxu1 }
 0x554   : > { %v5914_v7 = vadd.f32 %v5881_v15, %v12022_v54  ;;  %v9176_v50 = vpop.f32.mrb[203].mxu0  ;;  %v9235_v1 = vpop.f32.mrb[241].mxu1  ;;  %v12074_v39 = vadd.f32 %v6093_v48, %v5913_v21 }
 0x555   : > { %v6112_v59 = vpop.f32.mrb[242].mxu1 }
 0x556   : > { %v9236_v12 = vpop.f32.mrb[243].mxu1  ;;  %v12076_v4 = vadd.f32 %v6096_v2, %v5914_v7 }
 0x559   : > { %v5886_v31 = vpop.f32.mrb[204].mxu0 }
 0x55a   : > { %v5915_v26 = vadd.f32 %v5886_v31, %v12026_v24  ;;  %v9179_v45 = vpop.f32.mrb[205].mxu0 }
 0x55b   : > { %v5889_v49 = vpop.f32.mrb[206].mxu0 }
 0x55c   : > { %v5916_v61 = vadd.f32 %v5889_v49, %v12028_v41  ;;  %v9180_v8 = vpop.f32.mrb[207].mxu0  ;;  %v12080_v13 = vadd.f32 %v6101_v38, %v5915_v26  ;;  %v12093_v41 = vld [vmem:[%s12333_s4] ss:$0 sm:$0xff] }
 0x55e   : > { %v12082_v17 = vadd.f32 %v6104_v35, %v5916_v61 }
 0x561   : > { %v5894_v54 = vpop.f32.mrb[208].mxu0 }
 0x562   : > { %v5917_v11 = vadd.f32 %v5894_v54, %v12032_v6  ;;  %v9183_v23 = vpop.f32.mrb[209].mxu0 }
 0x563   : > { %v5897_v22 = vpop.f32.mrb[210].mxu0 }
 0x564   : > { %v5918_v40 = vadd.f32 %v5897_v22, %v12034_v0  ;;  %v9184_v33 = vpop.f32.mrb[211].mxu0  ;;  %v12086_v14 = vadd.f32 %v6109_v43, %v5917_v11 }
 0x566   : > { %v12088_v24 = vadd.f32 %v6112_v59, %v5918_v40 }
 0x569   : > { %v6260_v25 = vpop.f32.mrb[212].mxu0 }
 0x56a   : > { %v6331_v32 = vadd.f32 %v6260_v25, %v12038_v30  ;;  %v9255_v20 = vpop.f32.mrb[213].mxu0 }
 0x56b   : > { %v6263_v46 = vpop.f32.mrb[214].mxu0 }
 0x56c   : > { %v6356_v6 = vadd.f32 %v12093_v41, %v6331_v32  ;;  %v6332_v28 = vadd.f32 %v6263_v46, %v12040_v56  ;;  %v9256_v0 = vpop.f32.mrb[215].mxu0  ;;  %v6547_v46 = vld [vmem:[%s9648_s9] sm:$0x1] }
 0x56e   : > { %v6374_v48 = vmax.f32 %v6356_v6, 0.0  ;;  %v6357_v16 = vadd.f32 %v12093_v41, %v6332_v28 }
 0x570   : > { %6392 = vst [vmem:[#allocation3] sm:$0xff] %v6374_v48  ;;  %v6375_v63 = vmax.f32 %v6357_v16, 0.0 }
 0x571   : > { %v6268_v51 = vpop.f32.mrb[216].mxu0 }
 0x572   : > { %6393 = vst [vmem:[#allocation3 + $0x8] sm:$0xff] %v6375_v63  ;;  %v6333_v2 = vadd.f32 %v6268_v51, %v12044_v44  ;;  %v9259_v3 = vpop.f32.mrb[217].mxu0 }
 0x573   : > { %v6271_v9 = vpop.f32.mrb[218].mxu0 }
 0x574   : > { %v6358_v30 = vadd.f32 %v12093_v41, %v6333_v2  ;;  %v6334_v57 = vadd.f32 %v6271_v9, %v12046_v10  ;;  %v9260_v47 = vpop.f32.mrb[219].mxu0  ;;  %v6574_v9 = vld [vmem:[%s9648_s9] sm:$0x2] }
 0x576   : > { %v6376_v55 = vmax.f32 %v6358_v30, 0.0  ;;  %v6359_v56 = vadd.f32 %v12093_v41, %v6334_v57 }
 0x578   : > { %6394 = vst [vmem:[#allocation3 + $0x10] sm:$0xff] %v6376_v55  ;;  %v6377_v38 = vmax.f32 %v6359_v56, 0.0 }
 0x579   : > { %v6276_v18 = vpop.f32.mrb[220].mxu0  ;;  %v6426_v21 = vld [vmem:[#allocation3 + $0x1] sm:$0xff] }
 0x57a   : > { %6395 = vst [vmem:[#allocation3 + $0x18] sm:$0xff] %v6377_v38  ;;  %v6335_v37 = vadd.f32 %v6276_v18, %v12050_v27  ;;  %v9263_v34 = vpop.f32.mrb[221].mxu0  ;;  %v6442_v50 = vmax.f32 %v6374_v48, %v6426_v21 }
 0x57b   : > { %v6279_v35 = vpop.f32.mrb[222].mxu0 }
 0x57c   : > { %v12105_v44 = vadd.f32 %v12093_v41, %v6335_v37  ;;  %v6336_v62 = vadd.f32 %v6279_v35, %v12052_v36  ;;  %v9264_v29 = vpop.f32.mrb[223].mxu0 }
 0x57e   : > { %v6378_v10 = vmax.f32 %v12105_v44, 0.0  ;;  %v6361_v5 = vadd.f32 %v12093_v41, %v6336_v62 }
 0x57f   : > { %v6427_v15 = vld [vmem:[#allocation3 + $0x9] sm:$0xff] }
 0x580   : > { %v6458_v43 = vld [vmem:[#allocation3 + $0xe] sm:$0xff]  ;;  %6396 = vst [vmem:[#allocation3 + $0x20] sm:$0xff] %v6378_v10  ;;  %v6379_v27 = vmax.f32 %v6361_v5, 0.0  ;;  %v6443_v26 = vmax.f32 %v6375_v63, %v6427_v15 }
 0x581   : > { %v6474_v7 = vld [vmem:[#allocation3 + $0xf] sm:$0xff]  ;;  %v6475_v12 = vld [vmem:[#allocation3 + $0x17] sm:$0xff]  ;;  %v6284_v31 = vpop.f32.mrb[224].mxu0 }
 0x582   : > { %v6490_v1 = vmax.f32 %v6458_v43, %v6474_v7  ;;  %v6459_v59 = vld [vmem:[#allocation3 + $0x16] sm:$0xff]  ;;  %6397 = vst [vmem:[#allocation3 + $0x28] sm:$0xff] %v6379_v27  ;;  %v6337_v49 = vadd.f32 %v6284_v31, %v12056_v58  ;;  %v9267_v61 = vpop.f32.mrb[225].mxu0  ;;  %v6602_v5 = vld [vmem:[%s9648_s9] sm:$0x4] }
 0x583   : > { %v6491_v45 = vmax.f32 %v6459_v59, %v6475_v12  ;;  %v6287_v8 = vpop.f32.mrb[226].mxu0 }
 0x584   : > { %v6506_v36 = vmax.f32 %v6442_v50, %v6490_v1  ;;  %v6362_v11 = vadd.f32 %v12093_v41, %v6337_v49  ;;  %v6338_v23 = vadd.f32 %v6287_v8, %v12058_v60  ;;  %v9268_v22 = vpop.f32.mrb[227].mxu0 }
 0x585   : > { %v6507_v54 = vmax.f32 %v6443_v26, %v6491_v45 }
 0x586   : > { %6522 = vst [vmem:[#allocation4] sm:$0xff] %v6506_v36  ;;  %v6380_v40 = vmax.f32 %v6362_v11, 0.0  ;;  %v12116_v33 = vadd.f32 %v12093_v41, %v6338_v23 }
 0x587   : > { %6523 = vst [vmem:[#allocation4 + $0x8] sm:$0xff] %v6507_v54  ;;  %v6429_v25 = vld [vmem:[#allocation3 + $0x19] sm:$0xff] }
 0x588   : > { %6398 = vst [vmem:[#allocation3 + $0x30] sm:$0xff] %v6380_v40  ;;  %v6381_v58 = vmax.f32 %v12116_v33, 0.0  ;;  %v6445_v6 = vmax.f32 %v6377_v38, %v6429_v25 }
 0x589   : > { %v6461_v32 = vld [vmem:[#allocation3 + $0x26] sm:$0xff]  ;;  %v6292_v60 = vpop.f32.mrb[228].mxu0 }
 0x58a   : > { %v6477_v20 = vld [vmem:[#allocation3 + $0x27] sm:$0xff]  ;;  %6399 = vst [vmem:[#allocation3 + $0x38] sm:$0xff] %v6381_v58  ;;  %v6339_v0 = vadd.f32 %v6292_v60, %v12062_v52  ;;  %v9271_v48 = vpop.f32.mrb[229].mxu0 }
 0x58b   : > { %v6493_v28 = vmax.f32 %v6461_v32, %v6477_v20  ;;  %v6295_v47 = vpop.f32.mrb[230].mxu0  ;;  %v6430_v56 = vld [vmem:[#allocation3 + $0x21] sm:$0xff]  ;;  %v6630_v48 = vld [vmem:[%s9648_s9] sm:$0x8] }
 0x58c   : > { %v12137_v38 = vadd.f32 %v12093_v41, %v6339_v0  ;;  %v6340_v18 = vadd.f32 %v6295_v47, %v12064_v53  ;;  %v9272_v37 = vpop.f32.mrb[231].mxu0  ;;  %v6446_v59 = vmax.f32 %v6378_v10, %v6430_v56 }
 0x58d   : > { %v6542_v16 = vld [vmem:[#allocation4] sm:$0x1]  ;;  %v6564_v51 = vld [vmem:[#allocation4 + $0x4] sm:$0x1]  ;;  %v6577_v30 = vld [vmem:[#allocation4 + $0x6] sm:$0x1]  ;;  %v6509_v57 = vmax.f32 %v6445_v6, %v6493_v28 }
 0x58e   : > { %v6543_v2 = vpack.c.bf16 %v6542_v16, %v6542_v16  ;;  %v7544_v3 = vpack.c.bf16 %v6564_v51, %v6564_v51  ;;  %v6592_v55 = vld [vmem:[#allocation4 + $0x8] sm:$0x1]  ;;  %v6550_v35 = vld [vmem:[#allocation4 + $0x2] sm:$0x1]  ;;  %v7545_v15 = vpack.c.bf16 %v6577_v30, %v6577_v30  ;;  %v6382_v7 = vmax.f32 %v12137_v38, 0.0 }
 0x58f   : > { %v7546_v29 = vpack.c.bf16 %v6592_v55, %v6592_v55  ;;  %6525 = vst [vmem:[#allocation4 + $0x18] sm:$0xff] %v6509_v57  ;;  %v6462_v43 = vld [vmem:[#allocation3 + $0x2e] sm:$0xff]  ;;  %v6365_v50 = vadd.f32 %v12093_v41, %v6340_v18  ;;  %v7543_v31 = vpack.c.bf16 %v6550_v35, %v6550_v35 }
 0x590   : > { %v6548_v34 = vsel %vm12125_vm6, %v6543_v2, %v6547_v46  ;;  %v6569_v62 = vrot.slane %v7544_v3, 7  ;;  %v6478_v53 = vld [vmem:[#allocation3 + $0x2f] sm:$0xff]  ;;  %6400 = vst [vmem:[#allocation3 + $0x40] sm:$0xff] %v6382_v7  ;;  %v6583_v8 = vshll.u32 %v7545_v15, 16 }
 0x591   : > { %6549 = vst [vmem:[%s9648_s9] sm:$0x1] %v6548_v34  ;;  %v6597_v27 = vrot.slane %v7546_v29, 6  ;;  %v6494_v12 = vmax.f32 %v6462_v43, %v6478_v53  ;;  %v6383_v26 = vmax.f32 %v6365_v50, 0.0  ;;  %v6300_v36 = vpop.f32.mrb[232].mxu0  ;;  %v6556_v22 = vshll.u32 %v7543_v31, 16 }
 0x592   : > { %v6575_v1 = vsel %vm12132_vm8, %v6569_v62, %v6574_v9  ;;  %v9275_v61 = vpop.f32.mrb[233].mxu0  ;;  %v6341_v44 = vadd.f32 %v6300_v36, %v12068_v42  ;;  %v6585_v28 = vrot.slane %v6583_v8, 7  ;;  %v6650_v15 = vld [vmem:[%s9648_s9 + $0x4] sm:$0x1] }
 0x593   : > { %6576 = vst [vmem:[%s9648_s9] sm:$0x2] %v6575_v1  ;;  %v6603_v45 = vsel %vm12144_vm9, %v6597_v27, %v6602_v5  ;;  %v6510_v49 = vmax.f32 %v6446_v59, %v6494_v12  ;;  %6401 = vst [vmem:[#allocation3 + $0x48] sm:$0xff] %v6383_v26  ;;  %v6303_v10 = vpop.f32.mrb[234].mxu0 }
 0x594   : > { %6604 = vst [vmem:[%s9648_s9] sm:$0x4] %v6603_v45  ;;  %v6342_v11 = vadd.f32 %v6303_v10, %v12070_v19  ;;  %v9276_v23 = vpop.f32.mrb[235].mxu0  ;;  %v12170_v42 = vadd.f32 %v12093_v41, %v6341_v44 }
 0x595   : > { %6526 = vst [vmem:[#allocation4 + $0x20] sm:$0xff] %v6510_v49 }
 0x596   : > { %v6605_v40 = vld [vmem:[#allocation4 + $0x1c] sm:$0x1]  ;;  %v6620_v25 = vld [vmem:[#allocation4 + $0x1e] sm:$0x1]  ;;  %v12180_v19 = vadd.f32 %v12093_v41, %v6342_v11  ;;  %v6384_v16 = vmax.f32 %v12170_v42, 0.0 }
 0x597   : > { %v7547_v60 = vpack.c.bf16 %v6605_v40, %v6605_v40  ;;  %v7548_v46 = vpack.c.bf16 %v6620_v25, %v6620_v25  ;;  %v6433_v57 = vld [vmem:[#allocation3 + $0x39] sm:$0xff] }
 0x598   : > { %v6561_v32 = vld [vmem:[%s9648_s9] sm:$0x1]  ;;  %6402 = vst [vmem:[#allocation3 + $0x50] sm:$0xff] %v6384_v16  ;;  %v6385_v47 = vmax.f32 %v12180_v19, 0.0  ;;  %v6449_v1 = vmax.f32 %v6381_v58, %v6433_v57 }
 0x599   : > { %v6562_v6 = vsel %vm12164_vm12, %v6556_v22, %v6561_v32  ;;  %v6611_v2 = vshll.u32 %v7547_v60, 16  ;;  %v6625_v3 = vrot.slane %v7548_v46, 5  ;;  %v6308_v55 = vpop.f32.mrb[236].mxu0 }
 0x59a   : > { %6563 = vst [vmem:[%s9648_s9] sm:$0x1] %v6562_v6  ;;  %v6589_v51 = vld [vmem:[%s9648_s9] sm:$0x2]  ;;  %v6465_v34 = vld [vmem:[#allocation3 + $0x46] sm:$0xff]  ;;  %v6343_v35 = vadd.f32 %v6308_v55, %v12074_v39  ;;  %v9279_v62 = vpop.f32.mrb[237].mxu0  ;;  %6403 = vst [vmem:[#allocation3 + $0x58] sm:$0xff] %v6385_v47 }
 0x59b   : > { %v6590_v9 = vsel %vm12175_vm15, %v6585_v28, %v6589_v51  ;;  %v6613_v56 = vrot.slane %v6611_v2, 6  ;;  %v6617_v18 = vld [vmem:[%s9648_s9] sm:$0x4]  ;;  %v6631_v37 = vsel %vm12186_vm1, %v6625_v3, %v6630_v48  ;;  %v6481_v27 = vld [vmem:[#allocation3 + $0x47] sm:$0xff]  ;;  %v6311_v59 = vpop.f32.mrb[238].mxu0 }
 0x59c   : > { %6591 = vst [vmem:[%s9648_s9] sm:$0x2] %v6590_v9  ;;  %6632 = vst [vmem:[%s9648_s9] sm:$0x8] %v6631_v37  ;;  %v6633_v29 = vld [vmem:[#allocation4 + $0x20] sm:$0x1]  ;;  %v6648_v5 = vld [vmem:[#allocation4 + $0x22] sm:$0x1]  ;;  %v6497_v39 = vmax.f32 %v6465_v34, %v6481_v27  ;;  %v6368_v12 = vadd.f32 %v12093_v41, %v6343_v35  ;;  %v6344_v31 = vadd.f32 %v6311_v59, %v12076_v4 }
 0x59d   : > { %v6618_v43 = vsel %vm12197_vm2, %v6613_v56, %v6617_v18  ;;  %v7549_v53 = vpack.c.bf16 %v6633_v29, %v6633_v29  ;;  %v6649_v50 = vpack.c.bf16 %v6648_v5, %v6648_v5  ;;  %v9280_v26 = vpop.f32.mrb[239].mxu0  ;;  %v6653_v49 = vld [vmem:[#allocation4 + $0x24] sm:$0x1]  ;;  %v6434_v61 = vld [vmem:[#allocation3 + $0x41] sm:$0xff]  ;;  %v6672_v37 = vld [vmem:[%s9648_s9 + $0x4] sm:$0x2] }
 0x59e   : > { %6619 = vst [vmem:[%s9648_s9] sm:$0x4] %v6618_v43  ;;  %v6513_v8 = vmax.f32 %v6449_v1, %v6497_v39  ;;  %v6386_v33 = vmax.f32 %v6368_v12, 0.0  ;;  %v6369_v58 = vadd.f32 %v12093_v41, %v6344_v31  ;;  %v7550_v23 = vpack.c.bf16 %v6653_v49, %v6653_v49 }
 0x59f   : > { %v6639_v36 = vshll.u32 %v7549_v53, 16  ;;  %v6651_v45 = vsel %vm12125_vm6, %v6649_v50, %v6650_v15  ;;  %v6466_v4 = vld [vmem:[#allocation3 + $0x4e] sm:$0xff]  ;;  %v6450_v22 = vmax.f32 %v6382_v7, %v6434_v61  ;;  %v6695_v50 = vld [vmem:[%s9648_s9 + $0x4] sm:$0x4] }
 0x5a0   : > { %6652 = vst [vmem:[%s9648_s9 + $0x4] sm:$0x1] %v6651_v45  ;;  %v6482_v11 = vld [vmem:[#allocation3 + $0x4f] sm:$0xff]  ;;  %6529 = vst [vmem:[#allocation4 + $0x38] sm:$0xff] %v6513_v8  ;;  %v6387_v25 = vmax.f32 %v6369_v58, 0.0  ;;  %v6659_v3 = vshll.u32 %v7550_v23, 16 }
 0x5a1   : > { %v6641_v44 = vrot.slane %v6639_v36, 5  ;;  %v6498_v40 = vmax.f32 %v6466_v4, %v6482_v11  ;;  %6404 = vst [vmem:[#allocation3 + $0x60] sm:$0xff] %v6386_v33  ;;  %v6316_v32 = vpop.f32.mrb[240].mxu0  ;;  %v6436_v56 = vld [vmem:[#allocation3 + $0x51] sm:$0xff] }
 0x5a2   : > { %v6345_v46 = vadd.f32 %v6316_v32, %v12080_v13  ;;  %v9283_v6 = vpop.f32.mrb[241].mxu0  ;;  %6405 = vst [vmem:[#allocation3 + $0x68] sm:$0xff] %v6387_v25  ;;  %v6452_v1 = vmax.f32 %v6384_v16, %v6436_v56  ;;  %v6718_v23 = vld [vmem:[%s9648_s9 + $0x4] sm:$0x8] }
 0x5a3   : > { %v6645_v60 = vld [vmem:[%s9648_s9] sm:$0x8]  ;;  %v6514_v48 = vmax.f32 %v6450_v22, %v6498_v40  ;;  %v6319_v51 = vpop.f32.mrb[242].mxu0 }
 0x5a4   : > { %v6646_v28 = vsel %vm12226_vm4, %v6641_v44, %v6645_v60  ;;  %v12238_v38 = vadd.f32 %v12093_v41, %v6345_v46  ;;  %v6346_v7 = vadd.f32 %v6319_v51, %v12082_v17  ;;  %v9284_v2 = vpop.f32.mrb[243].mxu0 }
 0x5a5   : > { %6647 = vst [vmem:[%s9648_s9] sm:$0x8] %v6646_v28  ;;  %6530 = vst [vmem:[#allocation4 + $0x40] sm:$0xff] %v6514_v48 }
 0x5a6   : > { %v6388_v13 = vmax.f32 %v12238_v38, 0.0  ;;  %v12244_v57 = vadd.f32 %v12093_v41, %v6346_v7 }
 0x5a7   : > { %v6662_v9 = vld [vmem:[%s9648_s9 + $0x4] sm:$0x1]  ;;  %v6665_v18 = vld [vmem:[#allocation4 + $0x38] sm:$0x1]  ;;  %v6675_v34 = vld [vmem:[#allocation4 + $0x3a] sm:$0x1] }
 0x5a8   : > { %v6663_v55 = vsel %vm12164_vm12, %v6659_v3, %v6662_v9  ;;  %v6688_v35 = vld [vmem:[#allocation4 + $0x3c] sm:$0x1]  ;;  %6406 = vst [vmem:[#allocation3 + $0x70] sm:$0xff] %v6388_v13  ;;  %v7551_v17 = vpack.c.bf16 %v6665_v18, %v6665_v18  ;;  %v6698_v29 = vld [vmem:[#allocation4 + $0x3e] sm:$0x1]  ;;  %v6437_v5 = vld [vmem:[#allocation3 + $0x59] sm:$0xff]  ;;  %v7552_v26 = vpack.c.bf16 %v6675_v34, %v6675_v34 }
 0x5a9   : > { %6664 = vst [vmem:[%s9648_s9 + $0x4] sm:$0x1] %v6663_v55  ;;  %v7553_v62 = vpack.c.bf16 %v6688_v35, %v6688_v35  ;;  %v6468_v15 = vld [vmem:[#allocation3 + $0x5e] sm:$0xff]  ;;  %v6389_v43 = vmax.f32 %v12244_v57, 0.0  ;;  %v6324_v53 = vpop.f32.mrb[244].mxu0  ;;  %v6469_v59 = vld [vmem:[#allocation3 + $0x66] sm:$0xff]  ;;  %v7554_v8 = vpack.c.bf16 %v6698_v29, %v6698_v29  ;;  %v6453_v16 = vmax.f32 %v6385_v47, %v6437_v5 }
 0x5aa   : > { %v6484_v27 = vld [vmem:[#allocation3 + $0x5f] sm:$0xff]  ;;  %v6347_v39 = vadd.f32 %v6324_v53, %v12086_v14  ;;  %v9287_v12 = vpop.f32.mrb[245].mxu0  ;;  %v6670_v31 = vrot.slane %v7551_v17, 7  ;;  %v6485_v49 = vld [vmem:[#allocation3 + $0x67] sm:$0xff]  ;;  %v6681_v32 = vshll.u32 %v7552_v26, 16 }
 0x5ab   : > { %v6693_v36 = vrot.slane %v7553_v62, 6  ;;  %v6500_v45 = vmax.f32 %v6468_v15, %v6484_v27  ;;  %6407 = vst [vmem:[#allocation3 + $0x78] sm:$0xff] %v6389_v43  ;;  %v6327_v61 = vpop.f32.mrb[246].mxu0  ;;  %v6501_v33 = vmax.f32 %v6469_v59, %v6485_v49  ;;  %v6704_v60 = vshll.u32 %v7554_v8, 16  ;;  %v6736_v9 = vld [vmem:[%s9648_s9 + $0x8] sm:$0x1] }
 0x5ac   : > { %v6711_v42 = vld [vmem:[#allocation4 + $0x40] sm:$0x1]  ;;  %v6372_v14 = vadd.f32 %v12093_v41, %v6347_v39  ;;  %v9288_v58 = vpop.f32.mrb[247].mxu0  ;;  %v6673_v44 = vsel %vm12132_vm8, %v6670_v31, %v6672_v37  ;;  %v6348_v25 = vadd.f32 %v6327_v61, %v12088_v24  ;;  %v6683_v48 = vrot.slane %v6681_v32, 7 }
 0x5ad   : > { %v6696_v4 = vsel %vm12144_vm9, %v6693_v36, %v6695_v50  ;;  %v7555_v11 = vpack.c.bf16 %v6711_v42, %v6711_v42  ;;  %6674 = vst [vmem:[%s9648_s9 + $0x4] sm:$0x2] %v6673_v44  ;;  %v6516_v22 = vmax.f32 %v6452_v1, %v6500_v45  ;;  %v6517_v40 = vmax.f32 %v6453_v16, %v6501_v33  ;;  %v6758_v50 = vld [vmem:[%s9648_s9 + $0x8] sm:$0x2] }
 0x5ae   : > { %6697 = vst [vmem:[%s9648_s9 + $0x4] sm:$0x4] %v6696_v4  ;;  %v6390_v19 = vmax.f32 %v6372_v14, 0.0  ;;  %v6373_v6 = vadd.f32 %v12093_v41, %v6348_v25  ;;  %v6706_v51 = vrot.slane %v6704_v60, 6  ;;  %v6822_v60 = vld [vmem:[%s9648_s9 + $0xc] sm:$0x1] }
 0x5af   : > { %v6716_v47 = vrot.slane %v7555_v11, 5  ;;  %6532 = vst [vmem:[#allocation4 + $0x50] sm:$0xff] %v6516_v22  ;;  %6533 = vst [vmem:[#allocation4 + $0x58] sm:$0xff] %v6517_v40  ;;  %v6781_v40 = vld [vmem:[%s9648_s9 + $0x8] sm:$0x4] }
 0x5b0   : > { %6408 = vst [vmem:[#allocation3 + $0x80] sm:$0xff] %v6390_v19  ;;  %v6391_v28 = vmax.f32 %v6373_v6, 0.0 }
 0x5b1   : > { %v6719_v46 = vsel %vm12186_vm1, %v6716_v47, %v6718_v23  ;;  %v6804_v47 = vld [vmem:[%s9648_s9 + $0x8] sm:$0x8] }
 0x5b2   : > { %6720 = vst [vmem:[%s9648_s9 + $0x4] sm:$0x8] %v6719_v46  ;;  %6409 = vst [vmem:[#allocation3 + $0x88] sm:$0xff] %v6391_v28  ;;  %v6440_v41 = vld [vmem:[#allocation3 + $0x71] sm:$0xff] }
 0x5b3   : > { %v6456_v1 = vmax.f32 %v6388_v13, %v6440_v41 }
 0x5b4   : > { %v6685_v7 = vld [vmem:[%s9648_s9 + $0x4] sm:$0x2] }
 0x5b5   : > { %v6708_v2 = vld [vmem:[%s9648_s9 + $0x4] sm:$0x4]  ;;  %v6686_v24 = vsel %vm12175_vm15, %v6683_v48, %v6685_v7 }
 0x5b6   : > { %v6709_v3 = vsel %vm12197_vm2, %v6706_v51, %v6708_v2  ;;  %6687 = vst [vmem:[%s9648_s9 + $0x4] sm:$0x2] %v6686_v24  ;;  %v6721_v55 = vld [vmem:[#allocation4 + $0x54] sm:$0x1]  ;;  %v6734_v56 = vld [vmem:[#allocation4 + $0x56] sm:$0x1] }
 0x5b7   : > { %6710 = vst [vmem:[%s9648_s9 + $0x4] sm:$0x4] %v6709_v3  ;;  %v7556_v18 = vpack.c.bf16 %v6721_v55, %v6721_v55  ;;  %v6735_v37 = vpack.c.bf16 %v6734_v56, %v6734_v56  ;;  %v6751_v34 = vld [vmem:[#allocation4 + $0x5a] sm:$0x1]  ;;  %v6761_v17 = vld [vmem:[#allocation4 + $0x5c] sm:$0x1] }
 0x5b8   : > { %v7558_v35 = vpack.c.bf16 %v6751_v34, %v6751_v34  ;;  %v6472_v62 = vld [vmem:[#allocation3 + $0x7e] sm:$0xff]  ;;  %v6739_v53 = vld [vmem:[#allocation4 + $0x58] sm:$0x1]  ;;  %v7559_v26 = vpack.c.bf16 %v6761_v17, %v6761_v17 }
 0x5b9   : > { %v6488_v29 = vld [vmem:[#allocation3 + $0x7f] sm:$0xff]  ;;  %v6727_v5 = vshll.u32 %v7556_v18, 16  ;;  %v6737_v15 = vsel %vm12125_vm6, %v6735_v37, %v6736_v9  ;;  %v6731_v39 = vld [vmem:[%s9648_s9 + $0x4] sm:$0x8]  ;;  %v6489_v49 = vld [vmem:[#allocation3 + $0x87] sm:$0xff]  ;;  %v7557_v61 = vpack.c.bf16 %v6739_v53, %v6739_v53 }
 0x5ba   : > { %v6441_v27 = vld [vmem:[#allocation3 + $0x79] sm:$0xff]  ;;  %v6504_v59 = vmax.f32 %v6472_v62, %v6488_v29  ;;  %6738 = vst [vmem:[%s9648_s9 + $0x8] sm:$0x1] %v6737_v15  ;;  %v6756_v12 = vrot.slane %v7558_v35, 7  ;;  %v6473_v45 = vld [vmem:[#allocation3 + $0x86] sm:$0xff]  ;;  %v6767_v33 = vshll.u32 %v7559_v26, 16 }
 0x5bb   : > { %v6729_v31 = vrot.slane %v6727_v5, 5  ;;  %v6457_v13 = vmax.f32 %v6389_v43, %v6441_v27  ;;  %v6505_v8 = vmax.f32 %v6473_v45, %v6489_v49  ;;  %v6745_v14 = vshll.u32 %v7557_v61, 16 }
 0x5bc   : > { %v6520_v36 = vmax.f32 %v6456_v1, %v6504_v59  ;;  %v6759_v38 = vsel %vm12132_vm8, %v6756_v12, %v6758_v50  ;;  %v6769_v57 = vrot.slane %v6767_v33, 7 }
 0x5bd   : > { %v6732_v42 = vsel %vm12226_vm4, %v6729_v31, %v6731_v39  ;;  %6760 = vst [vmem:[%s9648_s9 + $0x8] sm:$0x2] %v6759_v38  ;;  %v6521_v16 = vmax.f32 %v6457_v13, %v6505_v8 }
 0x5be   : > { %6536 = vst [vmem:[#allocation4 + $0x70] sm:$0xff] %v6520_v36  ;;  %6733 = vst [vmem:[%s9648_s9 + $0x4] sm:$0x8] %v6732_v42 }
 0x5bf   : > { %6537 = vst [vmem:[#allocation4 + $0x78] sm:$0xff] %v6521_v16 }
 0x5c1   : > { %v6748_v52 = vld [vmem:[%s9648_s9 + $0x8] sm:$0x1] }
 0x5c2   : > { %v6749_v58 = vsel %vm12164_vm12, %v6745_v14, %v6748_v52 }
 0x5c3   : > { %6750 = vst [vmem:[%s9648_s9 + $0x8] sm:$0x1] %v6749_v58 }
 0x5c4   : > { %v6771_v43 = vld [vmem:[%s9648_s9 + $0x8] sm:$0x2] }
 0x5c5   : > { %v6774_v44 = vld [vmem:[#allocation4 + $0x70] sm:$0x1]  ;;  %v6772_v4 = vsel %vm12175_vm15, %v6769_v57, %v6771_v43  ;;  %v6784_v23 = vld [vmem:[#allocation4 + $0x72] sm:$0x1]  ;;  %v6797_v22 = vld [vmem:[#allocation4 + $0x74] sm:$0x1] }
 0x5c6   : > { %v7560_v11 = vpack.c.bf16 %v6774_v44, %v6774_v44  ;;  %6773 = vst [vmem:[%s9648_s9 + $0x8] sm:$0x2] %v6772_v4  ;;  %v7562_v19 = vpack.c.bf16 %v6797_v22, %v6797_v22  ;;  %v6807_v54 = vld [vmem:[#allocation4 + $0x76] sm:$0x1]  ;;  %v6820_v32 = vld [vmem:[#allocation4 + $0x78] sm:$0x1]  ;;  %v7561_v46 = vpack.c.bf16 %v6784_v23, %v6784_v23 }
 0x5c7   : > { %v6821_v20 = vpack.c.bf16 %v6820_v32, %v6820_v32  ;;  %v7563_v48 = vpack.c.bf16 %v6807_v54, %v6807_v54 }
 0x5c8   : > { %v6779_v25 = vrot.slane %v7560_v11, 6  ;;  %v6802_v6 = vrot.slane %v7562_v19, 5  ;;  %v6790_v2 = vshll.u32 %v7561_v46, 16 }
 0x5c9   : > { %v6823_v7 = vsel %vm12125_vm6, %v6821_v20, %v6822_v60  ;;  %v6813_v24 = vshll.u32 %v7563_v48, 16 }
 0x5ca   : > { %v6782_v28 = vsel %vm12144_vm9, %v6779_v25, %v6781_v40  ;;  %v6805_v51 = vsel %vm12186_vm1, %v6802_v6, %v6804_v47  ;;  %6824 = vst [vmem:[%s9648_s9 + $0xc] sm:$0x1] %v6823_v7  ;;  %v6792_v3 = vrot.slane %v6790_v2, 6 }
 0x5cb   : > { %6783 = vst [vmem:[%s9648_s9 + $0x8] sm:$0x4] %v6782_v28  ;;  %6806 = vst [vmem:[%s9648_s9 + $0x8] sm:$0x8] %v6805_v51  ;;  %v6815_v55 = vrot.slane %v6813_v24, 5 }
 0x5d2   : > { %v6794_v9 = vld [vmem:[%s9648_s9 + $0x8] sm:$0x4]  ;;  %v6817_v56 = vld [vmem:[%s9648_s9 + $0x8] sm:$0x8] }
 0x5d3   : > { %v6795_v21 = vsel %vm12197_vm2, %v6792_v3, %v6794_v9  ;;  %v6818_v41 = vsel %vm12226_vm4, %v6815_v55, %v6817_v56 }
 0x5d4   : > { %6796 = vst [vmem:[%s9648_s9 + $0x8] sm:$0x4] %v6795_v21  ;;  %6819 = vst [vmem:[%s9648_s9 + $0x8] sm:$0x8] %v6818_v41 }
 0x5d5 PF: > { %s15_s18 = sadd.s32 1, %s9585_s18  }
 0x5d6   : > { %p12_p4 = scmp.ge.s32.totalorder %s15_s18, 4  }
 0x5d8   :  { %14 = sbr.rel (!%p12_p4) target bundleno = 1 (0x1), region = 94 }

</bundles_post_ra>
